<compile_context>
chip_gen: v5e
topology: v5e:2x2
jax: 0.10.0
libtpu: 0.0.40
codegen_flags: <defaults>
</compile_context>

<pallas_src>
import functools

import numpy as np
import jax
import jax.numpy as jnp
from jax.experimental import pallas as pl
from jax.experimental.pallas import tpu as pltpu


VGG_CFG = [8, 8, 'M', 16, 16, 'M', 32, 32, 32, 'M', 64, 64, 64, 'M',
           64, 64, 64, 'M']
HIDDEN = 256          # scaled-down analogue of 4096
CPAD = 16             # bf16 sublane packing: pad channel dims to 16


def _ceil_to(x, m):
    return (x + m - 1) // m * m


# ---------------------------------------------------------------------------
# In-kernel layer helpers (operate on traced VMEM values, never touch HBM)
# ---------------------------------------------------------------------------
def _conv3x3_relu(x, w, b, mask, H, W):
    """3x3 conv (stride 1, pad 1) + bias + ReLU on the zero-padded flat layout.

      x    : (Cin_p, F)        bf16, F=(H+2)*(W+2), zero borders
      w    : (Cout_p, 9*Cin_p) bf16, K ordered t*Cin_p+ci with t=kh*3+kw
      b    : (Cout_p, 1)       f32
      mask : (1, L)            f32, zeroes the row-wrap columns
      ->     (Cout_p, F)       bf16, same padded-flat layout
    """
    Wp = W + 2
    F = (H + 2) * Wp
    L = (H - 1) * Wp + W
    # im2col folded into the contraction dim: 9 shifted lane slices stacked
    # along K -> one MXU matmul with K = 9 * Cin_p.
    taps = [x[:, kh * Wp + kw: kh * Wp + kw + L]
            for kh in range(3) for kw in range(3)]
    a = jnp.concatenate(taps, axis=0)                           # (9*Cin_p, L)
    acc = jnp.dot(w, a, preferred_element_type=jnp.float32)     # (Cout_p, L)
    y = (jnp.maximum(acc + b, 0.0) * mask).astype(jnp.bfloat16)
    # Re-embed into the zero-bordered padded-flat layout (VMEM-only concat).
    cout = y.shape[0]
    zl = jnp.zeros((cout, Wp + 1), jnp.bfloat16)
    zr = jnp.zeros((cout, F - L - (Wp + 1)), jnp.bfloat16)
    return jnp.concatenate([zl, y, zr], axis=1)                 # (Cout_p, F)


def _maxpool2x2(x, sel, H, W):
    """2x2 / stride-2 max-pool on the padded-flat layout (bf16, exact).

      x   : (C, F)       bf16 at resolution (H, W)
      sel : (F-W-3, F2)  bf16 0/1 selection matrix, F2=(H//2+2)*(W//2+2)
      ->    (C, F2)      bf16 zero-bordered padded-flat layout at (H//2, W//2)
    """
    Wp = W + 2
    F = (H + 2) * Wp
    span = F - Wp - 1
    v = jnp.maximum(x[:, :F - 1], x[:, 1:])          # max over (w, w+1)
    m = jnp.maximum(v[:, :span], v[:, Wp:])          # max over (h, h+1)
    # Stride-2 down-select + re-pad in one lane-dense MXU matmul.
    out = jnp.dot(m, sel, preferred_element_type=jnp.float32)
    return out.astype(jnp.bfloat16)


# ---------------------------------------------------------------------------
# Pallas kernels
# ---------------------------------------------------------------------------
def _vgg_features_kernel(*refs, cfg, H, W):
    """Whole VGG feature stack (13 convs + 5 pools) for one image, fused."""
    it = iter(refs)
    x_ref = next(it)
    h = x_ref[0]                                     # (C0_p, F0) bf16
    cur_h, cur_w = H, W
    for v in cfg:
        if v == 'M':
            s_ref = next(it)
            h = _maxpool2x2(h, s_ref[...], cur_h, cur_w)
            cur_h //= 2
            cur_w //= 2
        else:
            w_ref = next(it)
            b_ref = next(it)
            m_ref = next(it)
            h = _conv3x3_relu(h, w_ref[...], b_ref[...], m_ref[...],
                              cur_h, cur_w)
    out_ref = next(it)
    out_ref[0] = h                                   # (C_last_p, F_last) bf16


def _classifier_kernel(x_ref, w1_ref, b1_ref, w2_ref, b2_ref, o_ref):
    """Linear -> ReLU -> (Dropout=id) -> Linear, whole batch in one step."""
    y = jnp.dot(x_ref[...], w1_ref[...],
                preferred_element_type=jnp.float32) + b1_ref[...]
    y = jnp.maximum(y, 0.0)
    # TODO(synk): nn.Dropout is identity at inference; no stochastic dropout.
    y = jnp.dot(y.astype(jnp.bfloat16), w2_ref[...],
                preferred_element_type=jnp.float32) + b2_ref[...]
    o_ref[...] = y


# ---------------------------------------------------------------------------
# Constant matrices (built once, at init)
# ---------------------------------------------------------------------------
def _conv_mask(H, W):
    """(1, L) f32 mask that zeroes the row-wrap columns of the flat conv out."""
    Wp = W + 2
    L = (H - 1) * Wp + W
    m = ((np.arange(L) % Wp) < W).astype(np.float32).reshape(1, L)
    return jnp.asarray(m)


def _pool_select(H, W):
    """(span, F2) bf16 0/1 matrix: stride-2 down-select + re-pad for the pool."""
    Wp = W + 2
    F = (H + 2) * Wp
    span = F - Wp - 1
    H2, W2 = H // 2, W // 2
    Wp2 = W2 + 2
    F2 = (H2 + 2) * Wp2
    S = np.zeros((span, F2), np.float32)
    for i in range(H2):
        for j in range(W2):
            S[(1 + 2 * i) * Wp + (1 + 2 * j), (1 + i) * Wp2 + (1 + j)] = 1.0
    return jnp.asarray(S, dtype=jnp.bfloat16)


def _avgpool7_matrix(Hf, Wf):
    """(F_last, 49) f32: exact AdaptiveAvgPool2d((7,7)) as a linear map from the
    padded-flat final feature map to the 49 pooled bins."""
    Wpf = Wf + 2
    F = (Hf + 2) * Wpf
    P = np.zeros((F, 49), np.float32)
    for i in range(7):
        hs = (i * Hf) // 7
        he = -(-((i + 1) * Hf) // 7)
        for j in range(7):
            ws = (j * Wf) // 7
            we = -(-((j + 1) * Wf) // 7)
            inv = 1.0 / float((he - hs) * (we - ws))
            for hh in range(hs, he):
                for ww in range(ws, we):
                    P[(hh + 1) * Wpf + (ww + 1), i * 7 + j] = inv
    return P


# ---------------------------------------------------------------------------
# Parameters (generated in PyTorch layout, stored pre-transformed once)
# ---------------------------------------------------------------------------
def init_params(key, in_channels=3, image_hw=(32, 32)):
    H, W = image_hw
    params = {'conv': [], 'masks': [], 'pools': []}
    c_in = in_channels
    cur_h, cur_w = H, W
    for v in VGG_CFG:
        if v == 'M':
            params['pools'].append(_pool_select(cur_h, cur_w))
            cur_h //= 2
            cur_w //= 2
            continue
        key, kw_, kb_ = jax.random.split(key, 3)
        fan_in = c_in * 9
        w = jax.random.normal(kw_, (v, c_in, 3, 3), jnp.float32) * (2.0 / fan_in) ** 0.5
        b = jax.random.normal(kb_, (v,), jnp.float32) * 0.01
        cin_p = _ceil_to(c_in, CPAD)
        cout_p = _ceil_to(v, CPAD)
        # torch (Cout, Cin, kh, kw) -> (Cout_p, 9*Cin_p) bf16, K = t*Cin_p + ci
        wt = jnp.transpose(w, (2, 3, 0, 1)).reshape(9, v, c_in)
        wt = jnp.pad(wt, ((0, 0), (0, cout_p - v), (0, cin_p - c_in)))
        wk = jnp.transpose(wt, (1, 0, 2)).reshape(cout_p, 9 * cin_p)
        bp = jnp.pad(b, (0, cout_p - v)).reshape(cout_p, 1)
        params['conv'].append((wk.astype(jnp.bfloat16), bp.astype(jnp.float32)))
        params['masks'].append(_conv_mask(cur_h, cur_w))
        c_in = v

    # classifier: Linear(49*C -> HIDDEN) -> ReLU -> Dropout -> Linear(HIDDEN -> HIDDEN)
    c_last = c_in
    c_last_p = _ceil_to(c_last, CPAD)
    hf, wf = cur_h, cur_w
    f_last = (hf + 2) * (wf + 2)
    flat_in = c_last * 49
    key, k1, kb1, k2, kb2 = jax.random.split(key, 5)
    w1 = jax.random.normal(k1, (HIDDEN, flat_in), jnp.float32) * (2.0 / flat_in) ** 0.5
    b1 = jax.random.normal(kb1, (HIDDEN,), jnp.float32) * 0.01
    w2 = jax.random.normal(k2, (HIDDEN, HIDDEN), jnp.float32) * (2.0 / HIDDEN) ** 0.5
    b2 = jax.random.normal(kb2, (HIDDEN,), jnp.float32) * 0.01
    # Fold avgpool(7x7) + flatten into the first FC weight (exact, done once).
    P = jnp.asarray(_avgpool7_matrix(hf, wf))                   # (f_last, 49)
    w1r = w1.reshape(HIDDEN, c_last, 49)                        # (o, c, k)
    w1f = jnp.einsum('pk,ock->cpo', P, w1r)                     # (c, p, o)
    w1f = jnp.pad(w1f, ((0, c_last_p - c_last), (0, 0), (0, 0)))
    w1f = w1f.reshape(c_last_p * f_last, HIDDEN).astype(jnp.bfloat16)
    params['fc1'] = (w1f, b1.reshape(1, HIDDEN))
    params['fc2'] = (w2.T.astype(jnp.bfloat16), b2.reshape(1, HIDDEN))
    return params


# ---------------------------------------------------------------------------
# Forward
# ---------------------------------------------------------------------------
def to_internal(x):
    """(N, C, H, W) f32 -> zero-padded flat (N, ceil16(C), (H+2)*(W+2)) bf16."""
    N, C, H, W = x.shape
    Cp = _ceil_to(C, CPAD)
    xp = jnp.pad(x, ((0, 0), (0, Cp - C), (1, 1), (1, 1)))
    return xp.reshape(N, Cp, (H + 2) * (W + 2)).astype(jnp.bfloat16)


def vgg16_feature_extractor(params, x):
    N, C, H, W = x.shape
    xi = to_internal(x)

    operands = [xi]
    in_specs = [pl.BlockSpec((1,) + xi.shape[1:], lambda n: (n, 0, 0))]
    ci = pi = 0
    cur_h, cur_w = H, W
    c_last = C
    for v in VGG_CFG:
        if v == 'M':
            S = params['pools'][pi]
            pi += 1
            operands.append(S)
            in_specs.append(pl.BlockSpec(S.shape, lambda n: (0, 0)))
            cur_h //= 2
            cur_w //= 2
        else:
            wk, bp = params['conv'][ci]
            msk = params['masks'][ci]
            ci += 1
            for a in (wk, bp, msk):
                operands.append(a)
                in_specs.append(pl.BlockSpec(a.shape, lambda n: (0, 0)))
            c_last = v
    c_last_p = _ceil_to(c_last, CPAD)
    f_last = (cur_h + 2) * (cur_w + 2)

    feat_kernel = functools.partial(_vgg_features_kernel,
                                    cfg=tuple(VGG_CFG), H=H, W=W)
    feats = pl.pallas_call(
        feat_kernel,
        out_shape=jax.ShapeDtypeStruct((N, c_last_p, f_last), jnp.bfloat16),
        grid=(N,),
        in_specs=in_specs,
        out_specs=pl.BlockSpec((1, c_last_p, f_last), lambda n: (n, 0, 0)),
        compiler_params=pltpu.CompilerParams(
            dimension_semantics=("parallel",),
            vmem_limit_bytes=32 * 1024 * 1024),
    )(*operands)

    # avgpool(7,7) + flatten are folded into fc1's weight; only this tiny
    # reshape (a few KB) remains outside the kernels.
    flat = feats.reshape(N, c_last_p * f_last)

    w1f, b1 = params['fc1']
    w2t, b2 = params['fc2']
    out = pl.pallas_call(
        _classifier_kernel,
        out_shape=jax.ShapeDtypeStruct((N, HIDDEN), jnp.float32),
        in_specs=[pl.BlockSpec(flat.shape, lambda: (0, 0)),
                  pl.BlockSpec(w1f.shape, lambda: (0, 0)),
                  pl.BlockSpec(b1.shape, lambda: (0, 0)),
                  pl.BlockSpec(w2t.shape, lambda: (0, 0)),
                  pl.BlockSpec(b2.shape, lambda: (0, 0))],
        out_specs=pl.BlockSpec((N, HIDDEN), lambda: (0, 0)),
    )(flat, w1f, b1, w2t, b2)
    return out


if __name__ == "__main__":
    key = jax.random.PRNGKey(0)
    key, kx, kp = jax.random.split(key, 3)
    x = jax.random.normal(kx, (2, 3, 32, 32), jnp.float32)   # NCHW
    params = init_params(kp, in_channels=3, image_hw=(32, 32))

    fwd = jax.jit(vgg16_feature_extractor)
    out = fwd(params, x)
    jax.block_until_ready(out)
    assert out.shape == (2, HIDDEN) and out.dtype == jnp.float32
    print("KERNEL_OK")
</pallas_src>

<mosaic_0001>
module attributes {stable_mosaic.version = 11 : i64} {
  func.func @_vgg_features_kernel(%arg0: i32, %arg1: memref<1x16x1156xbf16, #tpu.memory_space<vmem>>, %arg2: memref<16x144xbf16, #tpu.memory_space<vmem>>, %arg3: memref<16x1xf32, #tpu.memory_space<vmem>>, %arg4: memref<1x1086xf32, #tpu.memory_space<vmem>>, %arg5: memref<16x144xbf16, #tpu.memory_space<vmem>>, %arg6: memref<16x1xf32, #tpu.memory_space<vmem>>, %arg7: memref<1x1086xf32, #tpu.memory_space<vmem>>, %arg8: memref<1121x324xbf16, #tpu.memory_space<vmem>>, %arg9: memref<16x144xbf16, #tpu.memory_space<vmem>>, %arg10: memref<16x1xf32, #tpu.memory_space<vmem>>, %arg11: memref<1x286xf32, #tpu.memory_space<vmem>>, %arg12: memref<16x144xbf16, #tpu.memory_space<vmem>>, %arg13: memref<16x1xf32, #tpu.memory_space<vmem>>, %arg14: memref<1x286xf32, #tpu.memory_space<vmem>>, %arg15: memref<305x100xbf16, #tpu.memory_space<vmem>>, %arg16: memref<32x144xbf16, #tpu.memory_space<vmem>>, %arg17: memref<32x1xf32, #tpu.memory_space<vmem>>, %arg18: memref<1x78xf32, #tpu.memory_space<vmem>>, %arg19: memref<32x288xbf16, #tpu.memory_space<vmem>>, %arg20: memref<32x1xf32, #tpu.memory_space<vmem>>, %arg21: memref<1x78xf32, #tpu.memory_space<vmem>>, %arg22: memref<32x288xbf16, #tpu.memory_space<vmem>>, %arg23: memref<32x1xf32, #tpu.memory_space<vmem>>, %arg24: memref<1x78xf32, #tpu.memory_space<vmem>>, %arg25: memref<89x36xbf16, #tpu.memory_space<vmem>>, %arg26: memref<64x288xbf16, #tpu.memory_space<vmem>>, %arg27: memref<64x1xf32, #tpu.memory_space<vmem>>, %arg28: memref<1x22xf32, #tpu.memory_space<vmem>>, %arg29: memref<64x576xbf16, #tpu.memory_space<vmem>>, %arg30: memref<64x1xf32, #tpu.memory_space<vmem>>, %arg31: memref<1x22xf32, #tpu.memory_space<vmem>>, %arg32: memref<64x576xbf16, #tpu.memory_space<vmem>>, %arg33: memref<64x1xf32, #tpu.memory_space<vmem>>, %arg34: memref<1x22xf32, #tpu.memory_space<vmem>>, %arg35: memref<29x16xbf16, #tpu.memory_space<vmem>>, %arg36: memref<64x576xbf16, #tpu.memory_space<vmem>>, %arg37: memref<64x1xf32, #tpu.memory_space<vmem>>, %arg38: memref<1x6xf32, #tpu.memory_space<vmem>>, %arg39: memref<64x576xbf16, #tpu.memory_space<vmem>>, %arg40: memref<64x1xf32, #tpu.memory_space<vmem>>, %arg41: memref<1x6xf32, #tpu.memory_space<vmem>>, %arg42: memref<64x576xbf16, #tpu.memory_space<vmem>>, %arg43: memref<64x1xf32, #tpu.memory_space<vmem>>, %arg44: memref<1x6xf32, #tpu.memory_space<vmem>>, %arg45: memref<11x9xbf16, #tpu.memory_space<vmem>>, %arg46: memref<1x64x9xbf16, #tpu.memory_space<vmem>>) attributes {dimension_semantics = [#tpu.dimension_semantics<parallel>], iteration_bounds = array<i64: 2>, scalar_prefetch = 0 : i64, scratch_operands = 0 : i64, tpu.core_type = #tpu.core_type<tc>, window_params = [{transform_indices = @transform_0, window_bounds = array<i64: 1, 16, 1156>}, {pipeline_mode = #tpu.pipeline_mode<synchronous>, transform_indices = @transform_1, window_bounds = array<i64: 16, 144>}, {pipeline_mode = #tpu.pipeline_mode<synchronous>, transform_indices = @transform_2, window_bounds = array<i64: 16, 1>}, {pipeline_mode = #tpu.pipeline_mode<synchronous>, transform_indices = @transform_3, window_bounds = array<i64: 1, 1086>}, {pipeline_mode = #tpu.pipeline_mode<synchronous>, transform_indices = @transform_4, window_bounds = array<i64: 16, 144>}, {pipeline_mode = #tpu.pipeline_mode<synchronous>, transform_indices = @transform_5, window_bounds = array<i64: 16, 1>}, {pipeline_mode = #tpu.pipeline_mode<synchronous>, transform_indices = @transform_6, window_bounds = array<i64: 1, 1086>}, {pipeline_mode = #tpu.pipeline_mode<synchronous>, transform_indices = @transform_7, window_bounds = array<i64: 1121, 324>}, {pipeline_mode = #tpu.pipeline_mode<synchronous>, transform_indices = @transform_8, window_bounds = array<i64: 16, 144>}, {pipeline_mode = #tpu.pipeline_mode<synchronous>, transform_indices = @transform_9, window_bounds = array<i64: 16, 1>}, {pipeline_mode = #tpu.pipeline_mode<synchronous>, transform_indices = @transform_10, window_bounds = array<i64: 1, 286>}, {pipeline_mode = #tpu.pipeline_mode<synchronous>, transform_indices = @transform_11, window_bounds = array<i64: 16, 144>}, {pipeline_mode = #tpu.pipeline_mode<synchronous>, transform_indices = @transform_12, window_bounds = array<i64: 16, 1>}, {pipeline_mode = #tpu.pipeline_mode<synchronous>, transform_indices = @transform_13, window_bounds = array<i64: 1, 286>}, {pipeline_mode = #tpu.pipeline_mode<synchronous>, transform_indices = @transform_14, window_bounds = array<i64: 305, 100>}, {pipeline_mode = #tpu.pipeline_mode<synchronous>, transform_indices = @transform_15, window_bounds = array<i64: 32, 144>}, {pipeline_mode = #tpu.pipeline_mode<synchronous>, transform_indices = @transform_16, window_bounds = array<i64: 32, 1>}, {pipeline_mode = #tpu.pipeline_mode<synchronous>, transform_indices = @transform_17, window_bounds = array<i64: 1, 78>}, {pipeline_mode = #tpu.pipeline_mode<synchronous>, transform_indices = @transform_18, window_bounds = array<i64: 32, 288>}, {pipeline_mode = #tpu.pipeline_mode<synchronous>, transform_indices = @transform_19, window_bounds = array<i64: 32, 1>}, {pipeline_mode = #tpu.pipeline_mode<synchronous>, transform_indices = @transform_20, window_bounds = array<i64: 1, 78>}, {pipeline_mode = #tpu.pipeline_mode<synchronous>, transform_indices = @transform_21, window_bounds = array<i64: 32, 288>}, {pipeline_mode = #tpu.pipeline_mode<synchronous>, transform_indices = @transform_22, window_bounds = array<i64: 32, 1>}, {pipeline_mode = #tpu.pipeline_mode<synchronous>, transform_indices = @transform_23, window_bounds = array<i64: 1, 78>}, {pipeline_mode = #tpu.pipeline_mode<synchronous>, transform_indices = @transform_24, window_bounds = array<i64: 89, 36>}, {pipeline_mode = #tpu.pipeline_mode<synchronous>, transform_indices = @transform_25, window_bounds = array<i64: 64, 288>}, {pipeline_mode = #tpu.pipeline_mode<synchronous>, transform_indices = @transform_26, window_bounds = array<i64: 64, 1>}, {pipeline_mode = #tpu.pipeline_mode<synchronous>, transform_indices = @transform_27, window_bounds = array<i64: 1, 22>}, {pipeline_mode = #tpu.pipeline_mode<synchronous>, transform_indices = @transform_28, window_bounds = array<i64: 64, 576>}, {pipeline_mode = #tpu.pipeline_mode<synchronous>, transform_indices = @transform_29, window_bounds = array<i64: 64, 1>}, {pipeline_mode = #tpu.pipeline_mode<synchronous>, transform_indices = @transform_30, window_bounds = array<i64: 1, 22>}, {pipeline_mode = #tpu.pipeline_mode<synchronous>, transform_indices = @transform_31, window_bounds = array<i64: 64, 576>}, {pipeline_mode = #tpu.pipeline_mode<synchronous>, transform_indices = @transform_32, window_bounds = array<i64: 64, 1>}, {pipeline_mode = #tpu.pipeline_mode<synchronous>, transform_indices = @transform_33, window_bounds = array<i64: 1, 22>}, {pipeline_mode = #tpu.pipeline_mode<synchronous>, transform_indices = @transform_34, window_bounds = array<i64: 29, 16>}, {pipeline_mode = #tpu.pipeline_mode<synchronous>, transform_indices = @transform_35, window_bounds = array<i64: 64, 576>}, {pipeline_mode = #tpu.pipeline_mode<synchronous>, transform_indices = @transform_36, window_bounds = array<i64: 64, 1>}, {pipeline_mode = #tpu.pipeline_mode<synchronous>, transform_indices = @transform_37, window_bounds = array<i64: 1, 6>}, {pipeline_mode = #tpu.pipeline_mode<synchronous>, transform_indices = @transform_38, window_bounds = array<i64: 64, 576>}, {pipeline_mode = #tpu.pipeline_mode<synchronous>, transform_indices = @transform_39, window_bounds = array<i64: 64, 1>}, {pipeline_mode = #tpu.pipeline_mode<synchronous>, transform_indices = @transform_40, window_bounds = array<i64: 1, 6>}, {pipeline_mode = #tpu.pipeline_mode<synchronous>, transform_indices = @transform_41, window_bounds = array<i64: 64, 576>}, {pipeline_mode = #tpu.pipeline_mode<synchronous>, transform_indices = @transform_42, window_bounds = array<i64: 64, 1>}, {pipeline_mode = #tpu.pipeline_mode<synchronous>, transform_indices = @transform_43, window_bounds = array<i64: 1, 6>}, {pipeline_mode = #tpu.pipeline_mode<synchronous>, transform_indices = @transform_44, window_bounds = array<i64: 11, 9>}, {transform_indices = @transform_45, window_bounds = array<i64: 1, 64, 9>}]} {
    %c0 = arith.constant 0 : index
    %c0_0 = arith.constant 0 : index
    %c0_1 = arith.constant 0 : index
    %0 = vector.load %arg1[%c0, %c0_0, %c0_1] : memref<1x16x1156xbf16, #tpu.memory_space<vmem>>, vector<1x16x1156xbf16>
    %1 = vector.shape_cast %0 : vector<1x16x1156xbf16> to vector<16x1156xbf16>
    %c0_2 = arith.constant 0 : index
    %c0_3 = arith.constant 0 : index
    %2 = vector.load %arg2[%c0_2, %c0_3] : memref<16x144xbf16, #tpu.memory_space<vmem>>, vector<16x144xbf16>
    %c0_4 = arith.constant 0 : index
    %c0_5 = arith.constant 0 : index
    %3 = vector.load %arg3[%c0_4, %c0_5] : memref<16x1xf32, #tpu.memory_space<vmem>>, vector<16x1xf32>
    %c0_6 = arith.constant 0 : index
    %c0_7 = arith.constant 0 : index
    %4 = vector.load %arg4[%c0_6, %c0_7] : memref<1x1086xf32, #tpu.memory_space<vmem>>, vector<1x1086xf32>
    %5 = vector.extract_strided_slice %1 {offsets = [0, 0], sizes = [16, 1086], strides = [1, 1]} : vector<16x1156xbf16> to vector<16x1086xbf16>
    %6 = vector.extract_strided_slice %1 {offsets = [0, 1], sizes = [16, 1086], strides = [1, 1]} : vector<16x1156xbf16> to vector<16x1086xbf16>
    %7 = vector.extract_strided_slice %1 {offsets = [0, 2], sizes = [16, 1086], strides = [1, 1]} : vector<16x1156xbf16> to vector<16x1086xbf16>
    %8 = vector.extract_strided_slice %1 {offsets = [0, 34], sizes = [16, 1086], strides = [1, 1]} : vector<16x1156xbf16> to vector<16x1086xbf16>
    %9 = vector.extract_strided_slice %1 {offsets = [0, 35], sizes = [16, 1086], strides = [1, 1]} : vector<16x1156xbf16> to vector<16x1086xbf16>
    %10 = vector.extract_strided_slice %1 {offsets = [0, 36], sizes = [16, 1086], strides = [1, 1]} : vector<16x1156xbf16> to vector<16x1086xbf16>
    %11 = vector.extract_strided_slice %1 {offsets = [0, 68], sizes = [16, 1086], strides = [1, 1]} : vector<16x1156xbf16> to vector<16x1086xbf16>
    %12 = vector.extract_strided_slice %1 {offsets = [0, 69], sizes = [16, 1086], strides = [1, 1]} : vector<16x1156xbf16> to vector<16x1086xbf16>
    %13 = vector.extract_strided_slice %1 {offsets = [0, 70], sizes = [16, 1086], strides = [1, 1]} : vector<16x1156xbf16> to vector<16x1086xbf16>
    %14 = tpu.concatenate %5, %6, %7, %8, %9, %10, %11, %12, %13 in 0 : vector<16x1086xbf16>, vector<16x1086xbf16>, vector<16x1086xbf16>, vector<16x1086xbf16>, vector<16x1086xbf16>, vector<16x1086xbf16>, vector<16x1086xbf16>, vector<16x1086xbf16>, vector<16x1086xbf16> -> vector<144x1086xbf16>
    %cst = arith.constant dense<0.000000e+00> : vector<16x1086xf32>
    %15 = tpu.matmul %2, %14, %cst {dimension_numbers = #tpu.dot_dimension_numbers<[1], [0], [0], [1], [0, 0, 1, 1], [], []>} : vector<16x144xbf16>, vector<144x1086xbf16>, vector<16x1086xf32> -> vector<16x1086xf32>
    %16 = vector.broadcast %3 : vector<16x1xf32> to vector<16x1086xf32>
    %17 = arith.addf %15, %16 : vector<16x1086xf32>
    %cst_8 = arith.constant 0.000000e+00 : f32
    %18 = vector.broadcast %cst_8 : f32 to vector<16x1086xf32>
    %19 = arith.maximumf %17, %18 : vector<16x1086xf32>
    %20 = vector.broadcast %4 : vector<1x1086xf32> to vector<16x1086xf32>
    %21 = arith.mulf %19, %20 : vector<16x1086xf32>
    %22 = arith.truncf %21 : vector<16x1086xf32> to vector<16x1086xbf16>
    %cst_9 = arith.constant 0.000000e+00 : bf16
    %23 = vector.broadcast %cst_9 : bf16 to vector<16x35xbf16>
    %cst_10 = arith.constant 0.000000e+00 : bf16
    %24 = vector.broadcast %cst_10 : bf16 to vector<16x35xbf16>
    %25 = tpu.concatenate %23, %22, %24 in 1 : vector<16x35xbf16>, vector<16x1086xbf16>, vector<16x35xbf16> -> vector<16x1156xbf16>
    %c0_11 = arith.constant 0 : index
    %c0_12 = arith.constant 0 : index
    %26 = vector.load %arg5[%c0_11, %c0_12] : memref<16x144xbf16, #tpu.memory_space<vmem>>, vector<16x144xbf16>
    %c0_13 = arith.constant 0 : index
    %c0_14 = arith.constant 0 : index
    %27 = vector.load %arg6[%c0_13, %c0_14] : memref<16x1xf32, #tpu.memory_space<vmem>>, vector<16x1xf32>
    %c0_15 = arith.constant 0 : index
    %c0_16 = arith.constant 0 : index
    %28 = vector.load %arg7[%c0_15, %c0_16] : memref<1x1086xf32, #tpu.memory_space<vmem>>, vector<1x1086xf32>
    %29 = vector.extract_strided_slice %25 {offsets = [0, 0], sizes = [16, 1086], strides = [1, 1]} : vector<16x1156xbf16> to vector<16x1086xbf16>
    %30 = vector.extract_strided_slice %25 {offsets = [0, 1], sizes = [16, 1086], strides = [1, 1]} : vector<16x1156xbf16> to vector<16x1086xbf16>
    %31 = vector.extract_strided_slice %25 {offsets = [0, 2], sizes = [16, 1086], strides = [1, 1]} : vector<16x1156xbf16> to vector<16x1086xbf16>
    %32 = vector.extract_strided_slice %25 {offsets = [0, 34], sizes = [16, 1086], strides = [1, 1]} : vector<16x1156xbf16> to vector<16x1086xbf16>
    %33 = vector.extract_strided_slice %25 {offsets = [0, 35], sizes = [16, 1086], strides = [1, 1]} : vector<16x1156xbf16> to vector<16x1086xbf16>
    %34 = vector.extract_strided_slice %25 {offsets = [0, 36], sizes = [16, 1086], strides = [1, 1]} : vector<16x1156xbf16> to vector<16x1086xbf16>
    %35 = vector.extract_strided_slice %25 {offsets = [0, 68], sizes = [16, 1086], strides = [1, 1]} : vector<16x1156xbf16> to vector<16x1086xbf16>
    %36 = vector.extract_strided_slice %25 {offsets = [0, 69], sizes = [16, 1086], strides = [1, 1]} : vector<16x1156xbf16> to vector<16x1086xbf16>
    %37 = vector.extract_strided_slice %25 {offsets = [0, 70], sizes = [16, 1086], strides = [1, 1]} : vector<16x1156xbf16> to vector<16x1086xbf16>
    %38 = tpu.concatenate %29, %30, %31, %32, %33, %34, %35, %36, %37 in 0 : vector<16x1086xbf16>, vector<16x1086xbf16>, vector<16x1086xbf16>, vector<16x1086xbf16>, vector<16x1086xbf16>, vector<16x1086xbf16>, vector<16x1086xbf16>, vector<16x1086xbf16>, vector<16x1086xbf16> -> vector<144x1086xbf16>
    %cst_17 = arith.constant dense<0.000000e+00> : vector<16x1086xf32>
    %39 = tpu.matmul %26, %38, %cst_17 {dimension_numbers = #tpu.dot_dimension_numbers<[1], [0], [0], [1], [0, 0, 1, 1], [], []>} : vector<16x144xbf16>, vector<144x1086xbf16>, vector<16x1086xf32> -> vector<16x1086xf32>
    %40 = vector.broadcast %27 : vector<16x1xf32> to vector<16x1086xf32>
    %41 = arith.addf %39, %40 : vector<16x1086xf32>
    %cst_18 = arith.constant 0.000000e+00 : f32
    %42 = vector.broadcast %cst_18 : f32 to vector<16x1086xf32>
    %43 = arith.maximumf %41, %42 : vector<16x1086xf32>
    %44 = vector.broadcast %28 : vector<1x1086xf32> to vector<16x1086xf32>
    %45 = arith.mulf %43, %44 : vector<16x1086xf32>
    %46 = arith.truncf %45 : vector<16x1086xf32> to vector<16x1086xbf16>
    %cst_19 = arith.constant 0.000000e+00 : bf16
    %47 = vector.broadcast %cst_19 : bf16 to vector<16x35xbf16>
    %cst_20 = arith.constant 0.000000e+00 : bf16
    %48 = vector.broadcast %cst_20 : bf16 to vector<16x35xbf16>
    %49 = tpu.concatenate %47, %46, %48 in 1 : vector<16x35xbf16>, vector<16x1086xbf16>, vector<16x35xbf16> -> vector<16x1156xbf16>
    %c0_21 = arith.constant 0 : index
    %c0_22 = arith.constant 0 : index
    %50 = vector.load %arg8[%c0_21, %c0_22] : memref<1121x324xbf16, #tpu.memory_space<vmem>>, vector<1121x324xbf16>
    %51 = vector.extract_strided_slice %49 {offsets = [0, 0], sizes = [16, 1155], strides = [1, 1]} : vector<16x1156xbf16> to vector<16x1155xbf16>
    %52 = vector.extract_strided_slice %49 {offsets = [0, 1], sizes = [16, 1155], strides = [1, 1]} : vector<16x1156xbf16> to vector<16x1155xbf16>
    %53 = arith.maximumf %51, %52 : vector<16x1155xbf16>
    %54 = vector.extract_strided_slice %53 {offsets = [0, 0], sizes = [16, 1121], strides = [1, 1]} : vector<16x1155xbf16> to vector<16x1121xbf16>
    %55 = vector.extract_strided_slice %53 {offsets = [0, 34], sizes = [16, 1121], strides = [1, 1]} : vector<16x1155xbf16> to vector<16x1121xbf16>
    %56 = arith.maximumf %54, %55 : vector<16x1121xbf16>
    %cst_23 = arith.constant dense<0.000000e+00> : vector<16x324xf32>
    %57 = tpu.matmul %56, %50, %cst_23 {dimension_numbers = #tpu.dot_dimension_numbers<[1], [0], [0], [1], [0, 0, 1, 1], [], []>} : vector<16x1121xbf16>, vector<1121x324xbf16>, vector<16x324xf32> -> vector<16x324xf32>
    %58 = arith.truncf %57 : vector<16x324xf32> to vector<16x324xbf16>
    %c0_24 = arith.constant 0 : index
    %c0_25 = arith.constant 0 : index
    %59 = vector.load %arg9[%c0_24, %c0_25] : memref<16x144xbf16, #tpu.memory_space<vmem>>, vector<16x144xbf16>
    %c0_26 = arith.constant 0 : index
    %c0_27 = arith.constant 0 : index
    %60 = vector.load %arg10[%c0_26, %c0_27] : memref<16x1xf32, #tpu.memory_space<vmem>>, vector<16x1xf32>
    %c0_28 = arith.constant 0 : index
    %c0_29 = arith.constant 0 : index
    %61 = vector.load %arg11[%c0_28, %c0_29] : memref<1x286xf32, #tpu.memory_space<vmem>>, vector<1x286xf32>
    %62 = vector.extract_strided_slice %58 {offsets = [0, 0], sizes = [16, 286], strides = [1, 1]} : vector<16x324xbf16> to vector<16x286xbf16>
    %63 = vector.extract_strided_slice %58 {offsets = [0, 1], sizes = [16, 286], strides = [1, 1]} : vector<16x324xbf16> to vector<16x286xbf16>
    %64 = vector.extract_strided_slice %58 {offsets = [0, 2], sizes = [16, 286], strides = [1, 1]} : vector<16x324xbf16> to vector<16x286xbf16>
    %65 = vector.extract_strided_slice %58 {offsets = [0, 18], sizes = [16, 286], strides = [1, 1]} : vector<16x324xbf16> to vector<16x286xbf16>
    %66 = vector.extract_strided_slice %58 {offsets = [0, 19], sizes = [16, 286], strides = [1, 1]} : vector<16x324xbf16> to vector<16x286xbf16>
    %67 = vector.extract_strided_slice %58 {offsets = [0, 20], sizes = [16, 286], strides = [1, 1]} : vector<16x324xbf16> to vector<16x286xbf16>
    %68 = vector.extract_strided_slice %58 {offsets = [0, 36], sizes = [16, 286], strides = [1, 1]} : vector<16x324xbf16> to vector<16x286xbf16>
    %69 = vector.extract_strided_slice %58 {offsets = [0, 37], sizes = [16, 286], strides = [1, 1]} : vector<16x324xbf16> to vector<16x286xbf16>
    %70 = vector.extract_strided_slice %58 {offsets = [0, 38], sizes = [16, 286], strides = [1, 1]} : vector<16x324xbf16> to vector<16x286xbf16>
    %71 = tpu.concatenate %62, %63, %64, %65, %66, %67, %68, %69, %70 in 0 : vector<16x286xbf16>, vector<16x286xbf16>, vector<16x286xbf16>, vector<16x286xbf16>, vector<16x286xbf16>, vector<16x286xbf16>, vector<16x286xbf16>, vector<16x286xbf16>, vector<16x286xbf16> -> vector<144x286xbf16>
    %cst_30 = arith.constant dense<0.000000e+00> : vector<16x286xf32>
    %72 = tpu.matmul %59, %71, %cst_30 {dimension_numbers = #tpu.dot_dimension_numbers<[1], [0], [0], [1], [0, 0, 1, 1], [], []>} : vector<16x144xbf16>, vector<144x286xbf16>, vector<16x286xf32> -> vector<16x286xf32>
    %73 = vector.broadcast %60 : vector<16x1xf32> to vector<16x286xf32>
    %74 = arith.addf %72, %73 : vector<16x286xf32>
    %cst_31 = arith.constant 0.000000e+00 : f32
    %75 = vector.broadcast %cst_31 : f32 to vector<16x286xf32>
    %76 = arith.maximumf %74, %75 : vector<16x286xf32>
    %77 = vector.broadcast %61 : vector<1x286xf32> to vector<16x286xf32>
    %78 = arith.mulf %76, %77 : vector<16x286xf32>
    %79 = arith.truncf %78 : vector<16x286xf32> to vector<16x286xbf16>
    %cst_32 = arith.constant 0.000000e+00 : bf16
    %80 = vector.broadcast %cst_32 : bf16 to vector<16x19xbf16>
    %cst_33 = arith.constant 0.000000e+00 : bf16
    %81 = vector.broadcast %cst_33 : bf16 to vector<16x19xbf16>
    %82 = tpu.concatenate %80, %79, %81 in 1 : vector<16x19xbf16>, vector<16x286xbf16>, vector<16x19xbf16> -> vector<16x324xbf16>
    %c0_34 = arith.constant 0 : index
    %c0_35 = arith.constant 0 : index
    %83 = vector.load %arg12[%c0_34, %c0_35] : memref<16x144xbf16, #tpu.memory_space<vmem>>, vector<16x144xbf16>
    %c0_36 = arith.constant 0 : index
    %c0_37 = arith.constant 0 : index
    %84 = vector.load %arg13[%c0_36, %c0_37] : memref<16x1xf32, #tpu.memory_space<vmem>>, vector<16x1xf32>
    %c0_38 = arith.constant 0 : index
    %c0_39 = arith.constant 0 : index
    %85 = vector.load %arg14[%c0_38, %c0_39] : memref<1x286xf32, #tpu.memory_space<vmem>>, vector<1x286xf32>
    %86 = vector.extract_strided_slice %82 {offsets = [0, 0], sizes = [16, 286], strides = [1, 1]} : vector<16x324xbf16> to vector<16x286xbf16>
    %87 = vector.extract_strided_slice %82 {offsets = [0, 1], sizes = [16, 286], strides = [1, 1]} : vector<16x324xbf16> to vector<16x286xbf16>
    %88 = vector.extract_strided_slice %82 {offsets = [0, 2], sizes = [16, 286], strides = [1, 1]} : vector<16x324xbf16> to vector<16x286xbf16>
    %89 = vector.extract_strided_slice %82 {offsets = [0, 18], sizes = [16, 286], strides = [1, 1]} : vector<16x324xbf16> to vector<16x286xbf16>
    %90 = vector.extract_strided_slice %82 {offsets = [0, 19], sizes = [16, 286], strides = [1, 1]} : vector<16x324xbf16> to vector<16x286xbf16>
    %91 = vector.extract_strided_slice %82 {offsets = [0, 20], sizes = [16, 286], strides = [1, 1]} : vector<16x324xbf16> to vector<16x286xbf16>
    %92 = vector.extract_strided_slice %82 {offsets = [0, 36], sizes = [16, 286], strides = [1, 1]} : vector<16x324xbf16> to vector<16x286xbf16>
    %93 = vector.extract_strided_slice %82 {offsets = [0, 37], sizes = [16, 286], strides = [1, 1]} : vector<16x324xbf16> to vector<16x286xbf16>
    %94 = vector.extract_strided_slice %82 {offsets = [0, 38], sizes = [16, 286], strides = [1, 1]} : vector<16x324xbf16> to vector<16x286xbf16>
    %95 = tpu.concatenate %86, %87, %88, %89, %90, %91, %92, %93, %94 in 0 : vector<16x286xbf16>, vector<16x286xbf16>, vector<16x286xbf16>, vector<16x286xbf16>, vector<16x286xbf16>, vector<16x286xbf16>, vector<16x286xbf16>, vector<16x286xbf16>, vector<16x286xbf16> -> vector<144x286xbf16>
    %cst_40 = arith.constant dense<0.000000e+00> : vector<16x286xf32>
    %96 = tpu.matmul %83, %95, %cst_40 {dimension_numbers = #tpu.dot_dimension_numbers<[1], [0], [0], [1], [0, 0, 1, 1], [], []>} : vector<16x144xbf16>, vector<144x286xbf16>, vector<16x286xf32> -> vector<16x286xf32>
    %97 = vector.broadcast %84 : vector<16x1xf32> to vector<16x286xf32>
    %98 = arith.addf %96, %97 : vector<16x286xf32>
    %cst_41 = arith.constant 0.000000e+00 : f32
    %99 = vector.broadcast %cst_41 : f32 to vector<16x286xf32>
    %100 = arith.maximumf %98, %99 : vector<16x286xf32>
    %101 = vector.broadcast %85 : vector<1x286xf32> to vector<16x286xf32>
    %102 = arith.mulf %100, %101 : vector<16x286xf32>
    %103 = arith.truncf %102 : vector<16x286xf32> to vector<16x286xbf16>
    %cst_42 = arith.constant 0.000000e+00 : bf16
    %104 = vector.broadcast %cst_42 : bf16 to vector<16x19xbf16>
    %cst_43 = arith.constant 0.000000e+00 : bf16
    %105 = vector.broadcast %cst_43 : bf16 to vector<16x19xbf16>
    %106 = tpu.concatenate %104, %103, %105 in 1 : vector<16x19xbf16>, vector<16x286xbf16>, vector<16x19xbf16> -> vector<16x324xbf16>
    %c0_44 = arith.constant 0 : index
    %c0_45 = arith.constant 0 : index
    %107 = vector.load %arg15[%c0_44, %c0_45] : memref<305x100xbf16, #tpu.memory_space<vmem>>, vector<305x100xbf16>
    %108 = vector.extract_strided_slice %106 {offsets = [0, 0], sizes = [16, 323], strides = [1, 1]} : vector<16x324xbf16> to vector<16x323xbf16>
    %109 = vector.extract_strided_slice %106 {offsets = [0, 1], sizes = [16, 323], strides = [1, 1]} : vector<16x324xbf16> to vector<16x323xbf16>
    %110 = arith.maximumf %108, %109 : vector<16x323xbf16>
    %111 = vector.extract_strided_slice %110 {offsets = [0, 0], sizes = [16, 305], strides = [1, 1]} : vector<16x323xbf16> to vector<16x305xbf16>
    %112 = vector.extract_strided_slice %110 {offsets = [0, 18], sizes = [16, 305], strides = [1, 1]} : vector<16x323xbf16> to vector<16x305xbf16>
    %113 = arith.maximumf %111, %112 : vector<16x305xbf16>
    %cst_46 = arith.constant dense<0.000000e+00> : vector<16x100xf32>
    %114 = tpu.matmul %113, %107, %cst_46 {dimension_numbers = #tpu.dot_dimension_numbers<[1], [0], [0], [1], [0, 0, 1, 1], [], []>} : vector<16x305xbf16>, vector<305x100xbf16>, vector<16x100xf32> -> vector<16x100xf32>
    %115 = arith.truncf %114 : vector<16x100xf32> to vector<16x100xbf16>
    %c0_47 = arith.constant 0 : index
    %c0_48 = arith.constant 0 : index
    %116 = vector.load %arg16[%c0_47, %c0_48] : memref<32x144xbf16, #tpu.memory_space<vmem>>, vector<32x144xbf16>
    %c0_49 = arith.constant 0 : index
    %c0_50 = arith.constant 0 : index
    %117 = vector.load %arg17[%c0_49, %c0_50] : memref<32x1xf32, #tpu.memory_space<vmem>>, vector<32x1xf32>
    %c0_51 = arith.constant 0 : index
    %c0_52 = arith.constant 0 : index
    %118 = vector.load %arg18[%c0_51, %c0_52] : memref<1x78xf32, #tpu.memory_space<vmem>>, vector<1x78xf32>
    %119 = vector.extract_strided_slice %115 {offsets = [0, 0], sizes = [16, 78], strides = [1, 1]} : vector<16x100xbf16> to vector<16x78xbf16>
    %120 = vector.extract_strided_slice %115 {offsets = [0, 1], sizes = [16, 78], strides = [1, 1]} : vector<16x100xbf16> to vector<16x78xbf16>
    %121 = vector.extract_strided_slice %115 {offsets = [0, 2], sizes = [16, 78], strides = [1, 1]} : vector<16x100xbf16> to vector<16x78xbf16>
    %122 = vector.extract_strided_slice %115 {offsets = [0, 10], sizes = [16, 78], strides = [1, 1]} : vector<16x100xbf16> to vector<16x78xbf16>
    %123 = vector.extract_strided_slice %115 {offsets = [0, 11], sizes = [16, 78], strides = [1, 1]} : vector<16x100xbf16> to vector<16x78xbf16>
    %124 = vector.extract_strided_slice %115 {offsets = [0, 12], sizes = [16, 78], strides = [1, 1]} : vector<16x100xbf16> to vector<16x78xbf16>
    %125 = vector.extract_strided_slice %115 {offsets = [0, 20], sizes = [16, 78], strides = [1, 1]} : vector<16x100xbf16> to vector<16x78xbf16>
    %126 = vector.extract_strided_slice %115 {offsets = [0, 21], sizes = [16, 78], strides = [1, 1]} : vector<16x100xbf16> to vector<16x78xbf16>
    %127 = vector.extract_strided_slice %115 {offsets = [0, 22], sizes = [16, 78], strides = [1, 1]} : vector<16x100xbf16> to vector<16x78xbf16>
    %128 = tpu.concatenate %119, %120, %121, %122, %123, %124, %125, %126, %127 in 0 : vector<16x78xbf16>, vector<16x78xbf16>, vector<16x78xbf16>, vector<16x78xbf16>, vector<16x78xbf16>, vector<16x78xbf16>, vector<16x78xbf16>, vector<16x78xbf16>, vector<16x78xbf16> -> vector<144x78xbf16>
    %cst_53 = arith.constant dense<0.000000e+00> : vector<32x78xf32>
    %129 = tpu.matmul %116, %128, %cst_53 {dimension_numbers = #tpu.dot_dimension_numbers<[1], [0], [0], [1], [0, 0, 1, 1], [], []>} : vector<32x144xbf16>, vector<144x78xbf16>, vector<32x78xf32> -> vector<32x78xf32>
    %130 = vector.broadcast %117 : vector<32x1xf32> to vector<32x78xf32>
    %131 = arith.addf %129, %130 : vector<32x78xf32>
    %cst_54 = arith.constant 0.000000e+00 : f32
    %132 = vector.broadcast %cst_54 : f32 to vector<32x78xf32>
    %133 = arith.maximumf %131, %132 : vector<32x78xf32>
    %134 = vector.broadcast %118 : vector<1x78xf32> to vector<32x78xf32>
    %135 = arith.mulf %133, %134 : vector<32x78xf32>
    %136 = arith.truncf %135 : vector<32x78xf32> to vector<32x78xbf16>
    %cst_55 = arith.constant 0.000000e+00 : bf16
    %137 = vector.broadcast %cst_55 : bf16 to vector<32x11xbf16>
    %cst_56 = arith.constant 0.000000e+00 : bf16
    %138 = vector.broadcast %cst_56 : bf16 to vector<32x11xbf16>
    %139 = tpu.concatenate %137, %136, %138 in 1 : vector<32x11xbf16>, vector<32x78xbf16>, vector<32x11xbf16> -> vector<32x100xbf16>
    %c0_57 = arith.constant 0 : index
    %c0_58 = arith.constant 0 : index
    %140 = vector.load %arg19[%c0_57, %c0_58] : memref<32x288xbf16, #tpu.memory_space<vmem>>, vector<32x288xbf16>
    %c0_59 = arith.constant 0 : index
    %c0_60 = arith.constant 0 : index
    %141 = vector.load %arg20[%c0_59, %c0_60] : memref<32x1xf32, #tpu.memory_space<vmem>>, vector<32x1xf32>
    %c0_61 = arith.constant 0 : index
    %c0_62 = arith.constant 0 : index
    %142 = vector.load %arg21[%c0_61, %c0_62] : memref<1x78xf32, #tpu.memory_space<vmem>>, vector<1x78xf32>
    %143 = vector.extract_strided_slice %139 {offsets = [0, 0], sizes = [32, 78], strides = [1, 1]} : vector<32x100xbf16> to vector<32x78xbf16>
    %144 = vector.extract_strided_slice %139 {offsets = [0, 1], sizes = [32, 78], strides = [1, 1]} : vector<32x100xbf16> to vector<32x78xbf16>
    %145 = vector.extract_strided_slice %139 {offsets = [0, 2], sizes = [32, 78], strides = [1, 1]} : vector<32x100xbf16> to vector<32x78xbf16>
    %146 = vector.extract_strided_slice %139 {offsets = [0, 10], sizes = [32, 78], strides = [1, 1]} : vector<32x100xbf16> to vector<32x78xbf16>
    %147 = vector.extract_strided_slice %139 {offsets = [0, 11], sizes = [32, 78], strides = [1, 1]} : vector<32x100xbf16> to vector<32x78xbf16>
    %148 = vector.extract_strided_slice %139 {offsets = [0, 12], sizes = [32, 78], strides = [1, 1]} : vector<32x100xbf16> to vector<32x78xbf16>
    %149 = vector.extract_strided_slice %139 {offsets = [0, 20], sizes = [32, 78], strides = [1, 1]} : vector<32x100xbf16> to vector<32x78xbf16>
    %150 = vector.extract_strided_slice %139 {offsets = [0, 21], sizes = [32, 78], strides = [1, 1]} : vector<32x100xbf16> to vector<32x78xbf16>
    %151 = vector.extract_strided_slice %139 {offsets = [0, 22], sizes = [32, 78], strides = [1, 1]} : vector<32x100xbf16> to vector<32x78xbf16>
    %152 = tpu.concatenate %143, %144, %145, %146, %147, %148, %149, %150, %151 in 0 : vector<32x78xbf16>, vector<32x78xbf16>, vector<32x78xbf16>, vector<32x78xbf16>, vector<32x78xbf16>, vector<32x78xbf16>, vector<32x78xbf16>, vector<32x78xbf16>, vector<32x78xbf16> -> vector<288x78xbf16>
    %cst_63 = arith.constant dense<0.000000e+00> : vector<32x78xf32>
    %153 = tpu.matmul %140, %152, %cst_63 {dimension_numbers = #tpu.dot_dimension_numbers<[1], [0], [0], [1], [0, 0, 1, 1], [], []>} : vector<32x288xbf16>, vector<288x78xbf16>, vector<32x78xf32> -> vector<32x78xf32>
    %154 = vector.broadcast %141 : vector<32x1xf32> to vector<32x78xf32>
    %155 = arith.addf %153, %154 : vector<32x78xf32>
    %cst_64 = arith.constant 0.000000e+00 : f32
    %156 = vector.broadcast %cst_64 : f32 to vector<32x78xf32>
    %157 = arith.maximumf %155, %156 : vector<32x78xf32>
    %158 = vector.broadcast %142 : vector<1x78xf32> to vector<32x78xf32>
    %159 = arith.mulf %157, %158 : vector<32x78xf32>
    %160 = arith.truncf %159 : vector<32x78xf32> to vector<32x78xbf16>
    %cst_65 = arith.constant 0.000000e+00 : bf16
    %161 = vector.broadcast %cst_65 : bf16 to vector<32x11xbf16>
    %cst_66 = arith.constant 0.000000e+00 : bf16
    %162 = vector.broadcast %cst_66 : bf16 to vector<32x11xbf16>
    %163 = tpu.concatenate %161, %160, %162 in 1 : vector<32x11xbf16>, vector<32x78xbf16>, vector<32x11xbf16> -> vector<32x100xbf16>
    %c0_67 = arith.constant 0 : index
    %c0_68 = arith.constant 0 : index
    %164 = vector.load %arg22[%c0_67, %c0_68] : memref<32x288xbf16, #tpu.memory_space<vmem>>, vector<32x288xbf16>
    %c0_69 = arith.constant 0 : index
    %c0_70 = arith.constant 0 : index
    %165 = vector.load %arg23[%c0_69, %c0_70] : memref<32x1xf32, #tpu.memory_space<vmem>>, vector<32x1xf32>
    %c0_71 = arith.constant 0 : index
    %c0_72 = arith.constant 0 : index
    %166 = vector.load %arg24[%c0_71, %c0_72] : memref<1x78xf32, #tpu.memory_space<vmem>>, vector<1x78xf32>
    %167 = vector.extract_strided_slice %163 {offsets = [0, 0], sizes = [32, 78], strides = [1, 1]} : vector<32x100xbf16> to vector<32x78xbf16>
    %168 = vector.extract_strided_slice %163 {offsets = [0, 1], sizes = [32, 78], strides = [1, 1]} : vector<32x100xbf16> to vector<32x78xbf16>
    %169 = vector.extract_strided_slice %163 {offsets = [0, 2], sizes = [32, 78], strides = [1, 1]} : vector<32x100xbf16> to vector<32x78xbf16>
    %170 = vector.extract_strided_slice %163 {offsets = [0, 10], sizes = [32, 78], strides = [1, 1]} : vector<32x100xbf16> to vector<32x78xbf16>
    %171 = vector.extract_strided_slice %163 {offsets = [0, 11], sizes = [32, 78], strides = [1, 1]} : vector<32x100xbf16> to vector<32x78xbf16>
    %172 = vector.extract_strided_slice %163 {offsets = [0, 12], sizes = [32, 78], strides = [1, 1]} : vector<32x100xbf16> to vector<32x78xbf16>
    %173 = vector.extract_strided_slice %163 {offsets = [0, 20], sizes = [32, 78], strides = [1, 1]} : vector<32x100xbf16> to vector<32x78xbf16>
    %174 = vector.extract_strided_slice %163 {offsets = [0, 21], sizes = [32, 78], strides = [1, 1]} : vector<32x100xbf16> to vector<32x78xbf16>
    %175 = vector.extract_strided_slice %163 {offsets = [0, 22], sizes = [32, 78], strides = [1, 1]} : vector<32x100xbf16> to vector<32x78xbf16>
    %176 = tpu.concatenate %167, %168, %169, %170, %171, %172, %173, %174, %175 in 0 : vector<32x78xbf16>, vector<32x78xbf16>, vector<32x78xbf16>, vector<32x78xbf16>, vector<32x78xbf16>, vector<32x78xbf16>, vector<32x78xbf16>, vector<32x78xbf16>, vector<32x78xbf16> -> vector<288x78xbf16>
    %cst_73 = arith.constant dense<0.000000e+00> : vector<32x78xf32>
    %177 = tpu.matmul %164, %176, %cst_73 {dimension_numbers = #tpu.dot_dimension_numbers<[1], [0], [0], [1], [0, 0, 1, 1], [], []>} : vector<32x288xbf16>, vector<288x78xbf16>, vector<32x78xf32> -> vector<32x78xf32>
    %178 = vector.broadcast %165 : vector<32x1xf32> to vector<32x78xf32>
    %179 = arith.addf %177, %178 : vector<32x78xf32>
    %cst_74 = arith.constant 0.000000e+00 : f32
    %180 = vector.broadcast %cst_74 : f32 to vector<32x78xf32>
    %181 = arith.maximumf %179, %180 : vector<32x78xf32>
    %182 = vector.broadcast %166 : vector<1x78xf32> to vector<32x78xf32>
    %183 = arith.mulf %181, %182 : vector<32x78xf32>
    %184 = arith.truncf %183 : vector<32x78xf32> to vector<32x78xbf16>
    %cst_75 = arith.constant 0.000000e+00 : bf16
    %185 = vector.broadcast %cst_75 : bf16 to vector<32x11xbf16>
    %cst_76 = arith.constant 0.000000e+00 : bf16
    %186 = vector.broadcast %cst_76 : bf16 to vector<32x11xbf16>
    %187 = tpu.concatenate %185, %184, %186 in 1 : vector<32x11xbf16>, vector<32x78xbf16>, vector<32x11xbf16> -> vector<32x100xbf16>
    %c0_77 = arith.constant 0 : index
    %c0_78 = arith.constant 0 : index
    %188 = vector.load %arg25[%c0_77, %c0_78] : memref<89x36xbf16, #tpu.memory_space<vmem>>, vector<89x36xbf16>
    %189 = vector.extract_strided_slice %187 {offsets = [0, 0], sizes = [32, 99], strides = [1, 1]} : vector<32x100xbf16> to vector<32x99xbf16>
    %190 = vector.extract_strided_slice %187 {offsets = [0, 1], sizes = [32, 99], strides = [1, 1]} : vector<32x100xbf16> to vector<32x99xbf16>
    %191 = arith.maximumf %189, %190 : vector<32x99xbf16>
    %192 = vector.extract_strided_slice %191 {offsets = [0, 0], sizes = [32, 89], strides = [1, 1]} : vector<32x99xbf16> to vector<32x89xbf16>
    %193 = vector.extract_strided_slice %191 {offsets = [0, 10], sizes = [32, 89], strides = [1, 1]} : vector<32x99xbf16> to vector<32x89xbf16>
    %194 = arith.maximumf %192, %193 : vector<32x89xbf16>
    %cst_79 = arith.constant dense<0.000000e+00> : vector<32x36xf32>
    %195 = tpu.matmul %194, %188, %cst_79 {dimension_numbers = #tpu.dot_dimension_numbers<[1], [0], [0], [1], [0, 0, 1, 1], [], []>} : vector<32x89xbf16>, vector<89x36xbf16>, vector<32x36xf32> -> vector<32x36xf32>
    %196 = arith.truncf %195 : vector<32x36xf32> to vector<32x36xbf16>
    %c0_80 = arith.constant 0 : index
    %c0_81 = arith.constant 0 : index
    %197 = vector.load %arg26[%c0_80, %c0_81] : memref<64x288xbf16, #tpu.memory_space<vmem>>, vector<64x288xbf16>
    %c0_82 = arith.constant 0 : index
    %c0_83 = arith.constant 0 : index
    %198 = vector.load %arg27[%c0_82, %c0_83] : memref<64x1xf32, #tpu.memory_space<vmem>>, vector<64x1xf32>
    %c0_84 = arith.constant 0 : index
    %c0_85 = arith.constant 0 : index
    %199 = vector.load %arg28[%c0_84, %c0_85] : memref<1x22xf32, #tpu.memory_space<vmem>>, vector<1x22xf32>
    %200 = vector.extract_strided_slice %196 {offsets = [0, 0], sizes = [32, 22], strides = [1, 1]} : vector<32x36xbf16> to vector<32x22xbf16>
    %201 = vector.extract_strided_slice %196 {offsets = [0, 1], sizes = [32, 22], strides = [1, 1]} : vector<32x36xbf16> to vector<32x22xbf16>
    %202 = vector.extract_strided_slice %196 {offsets = [0, 2], sizes = [32, 22], strides = [1, 1]} : vector<32x36xbf16> to vector<32x22xbf16>
    %203 = vector.extract_strided_slice %196 {offsets = [0, 6], sizes = [32, 22], strides = [1, 1]} : vector<32x36xbf16> to vector<32x22xbf16>
    %204 = vector.extract_strided_slice %196 {offsets = [0, 7], sizes = [32, 22], strides = [1, 1]} : vector<32x36xbf16> to vector<32x22xbf16>
    %205 = vector.extract_strided_slice %196 {offsets = [0, 8], sizes = [32, 22], strides = [1, 1]} : vector<32x36xbf16> to vector<32x22xbf16>
    %206 = vector.extract_strided_slice %196 {offsets = [0, 12], sizes = [32, 22], strides = [1, 1]} : vector<32x36xbf16> to vector<32x22xbf16>
    %207 = vector.extract_strided_slice %196 {offsets = [0, 13], sizes = [32, 22], strides = [1, 1]} : vector<32x36xbf16> to vector<32x22xbf16>
    %208 = vector.extract_strided_slice %196 {offsets = [0, 14], sizes = [32, 22], strides = [1, 1]} : vector<32x36xbf16> to vector<32x22xbf16>
    %209 = tpu.concatenate %200, %201, %202, %203, %204, %205, %206, %207, %208 in 0 : vector<32x22xbf16>, vector<32x22xbf16>, vector<32x22xbf16>, vector<32x22xbf16>, vector<32x22xbf16>, vector<32x22xbf16>, vector<32x22xbf16>, vector<32x22xbf16>, vector<32x22xbf16> -> vector<288x22xbf16>
    %cst_86 = arith.constant dense<0.000000e+00> : vector<64x22xf32>
    %210 = tpu.matmul %197, %209, %cst_86 {dimension_numbers = #tpu.dot_dimension_numbers<[1], [0], [0], [1], [0, 0, 1, 1], [], []>} : vector<64x288xbf16>, vector<288x22xbf16>, vector<64x22xf32> -> vector<64x22xf32>
    %211 = vector.broadcast %198 : vector<64x1xf32> to vector<64x22xf32>
    %212 = arith.addf %210, %211 : vector<64x22xf32>
    %cst_87 = arith.constant 0.000000e+00 : f32
    %213 = vector.broadcast %cst_87 : f32 to vector<64x22xf32>
    %214 = arith.maximumf %212, %213 : vector<64x22xf32>
    %215 = vector.broadcast %199 : vector<1x22xf32> to vector<64x22xf32>
    %216 = arith.mulf %214, %215 : vector<64x22xf32>
    %217 = arith.truncf %216 : vector<64x22xf32> to vector<64x22xbf16>
    %cst_88 = arith.constant 0.000000e+00 : bf16
    %218 = vector.broadcast %cst_88 : bf16 to vector<64x7xbf16>
    %cst_89 = arith.constant 0.000000e+00 : bf16
    %219 = vector.broadcast %cst_89 : bf16 to vector<64x7xbf16>
    %220 = tpu.concatenate %218, %217, %219 in 1 : vector<64x7xbf16>, vector<64x22xbf16>, vector<64x7xbf16> -> vector<64x36xbf16>
    %c0_90 = arith.constant 0 : index
    %c0_91 = arith.constant 0 : index
    %221 = vector.load %arg29[%c0_90, %c0_91] : memref<64x576xbf16, #tpu.memory_space<vmem>>, vector<64x576xbf16>
    %c0_92 = arith.constant 0 : index
    %c0_93 = arith.constant 0 : index
    %222 = vector.load %arg30[%c0_92, %c0_93] : memref<64x1xf32, #tpu.memory_space<vmem>>, vector<64x1xf32>
    %c0_94 = arith.constant 0 : index
    %c0_95 = arith.constant 0 : index
    %223 = vector.load %arg31[%c0_94, %c0_95] : memref<1x22xf32, #tpu.memory_space<vmem>>, vector<1x22xf32>
    %224 = vector.extract_strided_slice %220 {offsets = [0, 0], sizes = [64, 22], strides = [1, 1]} : vector<64x36xbf16> to vector<64x22xbf16>
    %225 = vector.extract_strided_slice %220 {offsets = [0, 1], sizes = [64, 22], strides = [1, 1]} : vector<64x36xbf16> to vector<64x22xbf16>
    %226 = vector.extract_strided_slice %220 {offsets = [0, 2], sizes = [64, 22], strides = [1, 1]} : vector<64x36xbf16> to vector<64x22xbf16>
    %227 = vector.extract_strided_slice %220 {offsets = [0, 6], sizes = [64, 22], strides = [1, 1]} : vector<64x36xbf16> to vector<64x22xbf16>
    %228 = vector.extract_strided_slice %220 {offsets = [0, 7], sizes = [64, 22], strides = [1, 1]} : vector<64x36xbf16> to vector<64x22xbf16>
    %229 = vector.extract_strided_slice %220 {offsets = [0, 8], sizes = [64, 22], strides = [1, 1]} : vector<64x36xbf16> to vector<64x22xbf16>
    %230 = vector.extract_strided_slice %220 {offsets = [0, 12], sizes = [64, 22], strides = [1, 1]} : vector<64x36xbf16> to vector<64x22xbf16>
    %231 = vector.extract_strided_slice %220 {offsets = [0, 13], sizes = [64, 22], strides = [1, 1]} : vector<64x36xbf16> to vector<64x22xbf16>
    %232 = vector.extract_strided_slice %220 {offsets = [0, 14], sizes = [64, 22], strides = [1, 1]} : vector<64x36xbf16> to vector<64x22xbf16>
    %233 = tpu.concatenate %224, %225, %226, %227, %228, %229, %230, %231, %232 in 0 : vector<64x22xbf16>, vector<64x22xbf16>, vector<64x22xbf16>, vector<64x22xbf16>, vector<64x22xbf16>, vector<64x22xbf16>, vector<64x22xbf16>, vector<64x22xbf16>, vector<64x22xbf16> -> vector<576x22xbf16>
    %cst_96 = arith.constant dense<0.000000e+00> : vector<64x22xf32>
    %234 = tpu.matmul %221, %233, %cst_96 {dimension_numbers = #tpu.dot_dimension_numbers<[1], [0], [0], [1], [0, 0, 1, 1], [], []>} : vector<64x576xbf16>, vector<576x22xbf16>, vector<64x22xf32> -> vector<64x22xf32>
    %235 = vector.broadcast %222 : vector<64x1xf32> to vector<64x22xf32>
    %236 = arith.addf %234, %235 : vector<64x22xf32>
    %cst_97 = arith.constant 0.000000e+00 : f32
    %237 = vector.broadcast %cst_97 : f32 to vector<64x22xf32>
    %238 = arith.maximumf %236, %237 : vector<64x22xf32>
    %239 = vector.broadcast %223 : vector<1x22xf32> to vector<64x22xf32>
    %240 = arith.mulf %238, %239 : vector<64x22xf32>
    %241 = arith.truncf %240 : vector<64x22xf32> to vector<64x22xbf16>
    %cst_98 = arith.constant 0.000000e+00 : bf16
    %242 = vector.broadcast %cst_98 : bf16 to vector<64x7xbf16>
    %cst_99 = arith.constant 0.000000e+00 : bf16
    %243 = vector.broadcast %cst_99 : bf16 to vector<64x7xbf16>
    %244 = tpu.concatenate %242, %241, %243 in 1 : vector<64x7xbf16>, vector<64x22xbf16>, vector<64x7xbf16> -> vector<64x36xbf16>
    %c0_100 = arith.constant 0 : index
    %c0_101 = arith.constant 0 : index
    %245 = vector.load %arg32[%c0_100, %c0_101] : memref<64x576xbf16, #tpu.memory_space<vmem>>, vector<64x576xbf16>
    %c0_102 = arith.constant 0 : index
    %c0_103 = arith.constant 0 : index
    %246 = vector.load %arg33[%c0_102, %c0_103] : memref<64x1xf32, #tpu.memory_space<vmem>>, vector<64x1xf32>
    %c0_104 = arith.constant 0 : index
    %c0_105 = arith.constant 0 : index
    %247 = vector.load %arg34[%c0_104, %c0_105] : memref<1x22xf32, #tpu.memory_space<vmem>>, vector<1x22xf32>
    %248 = vector.extract_strided_slice %244 {offsets = [0, 0], sizes = [64, 22], strides = [1, 1]} : vector<64x36xbf16> to vector<64x22xbf16>
    %249 = vector.extract_strided_slice %244 {offsets = [0, 1], sizes = [64, 22], strides = [1, 1]} : vector<64x36xbf16> to vector<64x22xbf16>
    %250 = vector.extract_strided_slice %244 {offsets = [0, 2], sizes = [64, 22], strides = [1, 1]} : vector<64x36xbf16> to vector<64x22xbf16>
    %251 = vector.extract_strided_slice %244 {offsets = [0, 6], sizes = [64, 22], strides = [1, 1]} : vector<64x36xbf16> to vector<64x22xbf16>
    %252 = vector.extract_strided_slice %244 {offsets = [0, 7], sizes = [64, 22], strides = [1, 1]} : vector<64x36xbf16> to vector<64x22xbf16>
    %253 = vector.extract_strided_slice %244 {offsets = [0, 8], sizes = [64, 22], strides = [1, 1]} : vector<64x36xbf16> to vector<64x22xbf16>
    %254 = vector.extract_strided_slice %244 {offsets = [0, 12], sizes = [64, 22], strides = [1, 1]} : vector<64x36xbf16> to vector<64x22xbf16>
    %255 = vector.extract_strided_slice %244 {offsets = [0, 13], sizes = [64, 22], strides = [1, 1]} : vector<64x36xbf16> to vector<64x22xbf16>
    %256 = vector.extract_strided_slice %244 {offsets = [0, 14], sizes = [64, 22], strides = [1, 1]} : vector<64x36xbf16> to vector<64x22xbf16>
    %257 = tpu.concatenate %248, %249, %250, %251, %252, %253, %254, %255, %256 in 0 : vector<64x22xbf16>, vector<64x22xbf16>, vector<64x22xbf16>, vector<64x22xbf16>, vector<64x22xbf16>, vector<64x22xbf16>, vector<64x22xbf16>, vector<64x22xbf16>, vector<64x22xbf16> -> vector<576x22xbf16>
    %cst_106 = arith.constant dense<0.000000e+00> : vector<64x22xf32>
    %258 = tpu.matmul %245, %257, %cst_106 {dimension_numbers = #tpu.dot_dimension_numbers<[1], [0], [0], [1], [0, 0, 1, 1], [], []>} : vector<64x576xbf16>, vector<576x22xbf16>, vector<64x22xf32> -> vector<64x22xf32>
    %259 = vector.broadcast %246 : vector<64x1xf32> to vector<64x22xf32>
    %260 = arith.addf %258, %259 : vector<64x22xf32>
    %cst_107 = arith.constant 0.000000e+00 : f32
    %261 = vector.broadcast %cst_107 : f32 to vector<64x22xf32>
    %262 = arith.maximumf %260, %261 : vector<64x22xf32>
    %263 = vector.broadcast %247 : vector<1x22xf32> to vector<64x22xf32>
    %264 = arith.mulf %262, %263 : vector<64x22xf32>
    %265 = arith.truncf %264 : vector<64x22xf32> to vector<64x22xbf16>
    %cst_108 = arith.constant 0.000000e+00 : bf16
    %266 = vector.broadcast %cst_108 : bf16 to vector<64x7xbf16>
    %cst_109 = arith.constant 0.000000e+00 : bf16
    %267 = vector.broadcast %cst_109 : bf16 to vector<64x7xbf16>
    %268 = tpu.concatenate %266, %265, %267 in 1 : vector<64x7xbf16>, vector<64x22xbf16>, vector<64x7xbf16> -> vector<64x36xbf16>
    %c0_110 = arith.constant 0 : index
    %c0_111 = arith.constant 0 : index
    %269 = vector.load %arg35[%c0_110, %c0_111] : memref<29x16xbf16, #tpu.memory_space<vmem>>, vector<29x16xbf16>
    %270 = vector.extract_strided_slice %268 {offsets = [0, 0], sizes = [64, 35], strides = [1, 1]} : vector<64x36xbf16> to vector<64x35xbf16>
    %271 = vector.extract_strided_slice %268 {offsets = [0, 1], sizes = [64, 35], strides = [1, 1]} : vector<64x36xbf16> to vector<64x35xbf16>
    %272 = arith.maximumf %270, %271 : vector<64x35xbf16>
    %273 = vector.extract_strided_slice %272 {offsets = [0, 0], sizes = [64, 29], strides = [1, 1]} : vector<64x35xbf16> to vector<64x29xbf16>
    %274 = vector.extract_strided_slice %272 {offsets = [0, 6], sizes = [64, 29], strides = [1, 1]} : vector<64x35xbf16> to vector<64x29xbf16>
    %275 = arith.maximumf %273, %274 : vector<64x29xbf16>
    %cst_112 = arith.constant dense<0.000000e+00> : vector<64x16xf32>
    %276 = tpu.matmul %275, %269, %cst_112 {dimension_numbers = #tpu.dot_dimension_numbers<[1], [0], [0], [1], [0, 0, 1, 1], [], []>} : vector<64x29xbf16>, vector<29x16xbf16>, vector<64x16xf32> -> vector<64x16xf32>
    %277 = arith.truncf %276 : vector<64x16xf32> to vector<64x16xbf16>
    %c0_113 = arith.constant 0 : index
    %c0_114 = arith.constant 0 : index
    %278 = vector.load %arg36[%c0_113, %c0_114] : memref<64x576xbf16, #tpu.memory_space<vmem>>, vector<64x576xbf16>
    %c0_115 = arith.constant 0 : index
    %c0_116 = arith.constant 0 : index
    %279 = vector.load %arg37[%c0_115, %c0_116] : memref<64x1xf32, #tpu.memory_space<vmem>>, vector<64x1xf32>
    %c0_117 = arith.constant 0 : index
    %c0_118 = arith.constant 0 : index
    %280 = vector.load %arg38[%c0_117, %c0_118] : memref<1x6xf32, #tpu.memory_space<vmem>>, vector<1x6xf32>
    %281 = vector.extract_strided_slice %277 {offsets = [0, 0], sizes = [64, 6], strides = [1, 1]} : vector<64x16xbf16> to vector<64x6xbf16>
    %282 = vector.extract_strided_slice %277 {offsets = [0, 1], sizes = [64, 6], strides = [1, 1]} : vector<64x16xbf16> to vector<64x6xbf16>
    %283 = vector.extract_strided_slice %277 {offsets = [0, 2], sizes = [64, 6], strides = [1, 1]} : vector<64x16xbf16> to vector<64x6xbf16>
    %284 = vector.extract_strided_slice %277 {offsets = [0, 4], sizes = [64, 6], strides = [1, 1]} : vector<64x16xbf16> to vector<64x6xbf16>
    %285 = vector.extract_strided_slice %277 {offsets = [0, 5], sizes = [64, 6], strides = [1, 1]} : vector<64x16xbf16> to vector<64x6xbf16>
    %286 = vector.extract_strided_slice %277 {offsets = [0, 6], sizes = [64, 6], strides = [1, 1]} : vector<64x16xbf16> to vector<64x6xbf16>
    %287 = vector.extract_strided_slice %277 {offsets = [0, 8], sizes = [64, 6], strides = [1, 1]} : vector<64x16xbf16> to vector<64x6xbf16>
    %288 = vector.extract_strided_slice %277 {offsets = [0, 9], sizes = [64, 6], strides = [1, 1]} : vector<64x16xbf16> to vector<64x6xbf16>
    %289 = vector.extract_strided_slice %277 {offsets = [0, 10], sizes = [64, 6], strides = [1, 1]} : vector<64x16xbf16> to vector<64x6xbf16>
    %290 = tpu.concatenate %281, %282, %283, %284, %285, %286, %287, %288, %289 in 0 : vector<64x6xbf16>, vector<64x6xbf16>, vector<64x6xbf16>, vector<64x6xbf16>, vector<64x6xbf16>, vector<64x6xbf16>, vector<64x6xbf16>, vector<64x6xbf16>, vector<64x6xbf16> -> vector<576x6xbf16>
    %cst_119 = arith.constant dense<0.000000e+00> : vector<64x6xf32>
    %291 = tpu.matmul %278, %290, %cst_119 {dimension_numbers = #tpu.dot_dimension_numbers<[1], [0], [0], [1], [0, 0, 1, 1], [], []>} : vector<64x576xbf16>, vector<576x6xbf16>, vector<64x6xf32> -> vector<64x6xf32>
    %292 = vector.broadcast %279 : vector<64x1xf32> to vector<64x6xf32>
    %293 = arith.addf %291, %292 : vector<64x6xf32>
    %cst_120 = arith.constant 0.000000e+00 : f32
    %294 = vector.broadcast %cst_120 : f32 to vector<64x6xf32>
    %295 = arith.maximumf %293, %294 : vector<64x6xf32>
    %296 = vector.broadcast %280 : vector<1x6xf32> to vector<64x6xf32>
    %297 = arith.mulf %295, %296 : vector<64x6xf32>
    %298 = arith.truncf %297 : vector<64x6xf32> to vector<64x6xbf16>
    %cst_121 = arith.constant 0.000000e+00 : bf16
    %299 = vector.broadcast %cst_121 : bf16 to vector<64x5xbf16>
    %cst_122 = arith.constant 0.000000e+00 : bf16
    %300 = vector.broadcast %cst_122 : bf16 to vector<64x5xbf16>
    %301 = tpu.concatenate %299, %298, %300 in 1 : vector<64x5xbf16>, vector<64x6xbf16>, vector<64x5xbf16> -> vector<64x16xbf16>
    %c0_123 = arith.constant 0 : index
    %c0_124 = arith.constant 0 : index
    %302 = vector.load %arg39[%c0_123, %c0_124] : memref<64x576xbf16, #tpu.memory_space<vmem>>, vector<64x576xbf16>
    %c0_125 = arith.constant 0 : index
    %c0_126 = arith.constant 0 : index
    %303 = vector.load %arg40[%c0_125, %c0_126] : memref<64x1xf32, #tpu.memory_space<vmem>>, vector<64x1xf32>
    %c0_127 = arith.constant 0 : index
    %c0_128 = arith.constant 0 : index
    %304 = vector.load %arg41[%c0_127, %c0_128] : memref<1x6xf32, #tpu.memory_space<vmem>>, vector<1x6xf32>
    %305 = vector.extract_strided_slice %301 {offsets = [0, 0], sizes = [64, 6], strides = [1, 1]} : vector<64x16xbf16> to vector<64x6xbf16>
    %306 = vector.extract_strided_slice %301 {offsets = [0, 1], sizes = [64, 6], strides = [1, 1]} : vector<64x16xbf16> to vector<64x6xbf16>
    %307 = vector.extract_strided_slice %301 {offsets = [0, 2], sizes = [64, 6], strides = [1, 1]} : vector<64x16xbf16> to vector<64x6xbf16>
    %308 = vector.extract_strided_slice %301 {offsets = [0, 4], sizes = [64, 6], strides = [1, 1]} : vector<64x16xbf16> to vector<64x6xbf16>
    %309 = vector.extract_strided_slice %301 {offsets = [0, 5], sizes = [64, 6], strides = [1, 1]} : vector<64x16xbf16> to vector<64x6xbf16>
    %310 = vector.extract_strided_slice %301 {offsets = [0, 6], sizes = [64, 6], strides = [1, 1]} : vector<64x16xbf16> to vector<64x6xbf16>
    %311 = vector.extract_strided_slice %301 {offsets = [0, 8], sizes = [64, 6], strides = [1, 1]} : vector<64x16xbf16> to vector<64x6xbf16>
    %312 = vector.extract_strided_slice %301 {offsets = [0, 9], sizes = [64, 6], strides = [1, 1]} : vector<64x16xbf16> to vector<64x6xbf16>
    %313 = vector.extract_strided_slice %301 {offsets = [0, 10], sizes = [64, 6], strides = [1, 1]} : vector<64x16xbf16> to vector<64x6xbf16>
    %314 = tpu.concatenate %305, %306, %307, %308, %309, %310, %311, %312, %313 in 0 : vector<64x6xbf16>, vector<64x6xbf16>, vector<64x6xbf16>, vector<64x6xbf16>, vector<64x6xbf16>, vector<64x6xbf16>, vector<64x6xbf16>, vector<64x6xbf16>, vector<64x6xbf16> -> vector<576x6xbf16>
    %cst_129 = arith.constant dense<0.000000e+00> : vector<64x6xf32>
    %315 = tpu.matmul %302, %314, %cst_129 {dimension_numbers = #tpu.dot_dimension_numbers<[1], [0], [0], [1], [0, 0, 1, 1], [], []>} : vector<64x576xbf16>, vector<576x6xbf16>, vector<64x6xf32> -> vector<64x6xf32>
    %316 = vector.broadcast %303 : vector<64x1xf32> to vector<64x6xf32>
    %317 = arith.addf %315, %316 : vector<64x6xf32>
    %cst_130 = arith.constant 0.000000e+00 : f32
    %318 = vector.broadcast %cst_130 : f32 to vector<64x6xf32>
    %319 = arith.maximumf %317, %318 : vector<64x6xf32>
    %320 = vector.broadcast %304 : vector<1x6xf32> to vector<64x6xf32>
    %321 = arith.mulf %319, %320 : vector<64x6xf32>
    %322 = arith.truncf %321 : vector<64x6xf32> to vector<64x6xbf16>
    %cst_131 = arith.constant 0.000000e+00 : bf16
    %323 = vector.broadcast %cst_131 : bf16 to vector<64x5xbf16>
    %cst_132 = arith.constant 0.000000e+00 : bf16
    %324 = vector.broadcast %cst_132 : bf16 to vector<64x5xbf16>
    %325 = tpu.concatenate %323, %322, %324 in 1 : vector<64x5xbf16>, vector<64x6xbf16>, vector<64x5xbf16> -> vector<64x16xbf16>
    %c0_133 = arith.constant 0 : index
    %c0_134 = arith.constant 0 : index
    %326 = vector.load %arg42[%c0_133, %c0_134] : memref<64x576xbf16, #tpu.memory_space<vmem>>, vector<64x576xbf16>
    %c0_135 = arith.constant 0 : index
    %c0_136 = arith.constant 0 : index
    %327 = vector.load %arg43[%c0_135, %c0_136] : memref<64x1xf32, #tpu.memory_space<vmem>>, vector<64x1xf32>
    %c0_137 = arith.constant 0 : index
    %c0_138 = arith.constant 0 : index
    %328 = vector.load %arg44[%c0_137, %c0_138] : memref<1x6xf32, #tpu.memory_space<vmem>>, vector<1x6xf32>
    %329 = vector.extract_strided_slice %325 {offsets = [0, 0], sizes = [64, 6], strides = [1, 1]} : vector<64x16xbf16> to vector<64x6xbf16>
    %330 = vector.extract_strided_slice %325 {offsets = [0, 1], sizes = [64, 6], strides = [1, 1]} : vector<64x16xbf16> to vector<64x6xbf16>
    %331 = vector.extract_strided_slice %325 {offsets = [0, 2], sizes = [64, 6], strides = [1, 1]} : vector<64x16xbf16> to vector<64x6xbf16>
    %332 = vector.extract_strided_slice %325 {offsets = [0, 4], sizes = [64, 6], strides = [1, 1]} : vector<64x16xbf16> to vector<64x6xbf16>
    %333 = vector.extract_strided_slice %325 {offsets = [0, 5], sizes = [64, 6], strides = [1, 1]} : vector<64x16xbf16> to vector<64x6xbf16>
    %334 = vector.extract_strided_slice %325 {offsets = [0, 6], sizes = [64, 6], strides = [1, 1]} : vector<64x16xbf16> to vector<64x6xbf16>
    %335 = vector.extract_strided_slice %325 {offsets = [0, 8], sizes = [64, 6], strides = [1, 1]} : vector<64x16xbf16> to vector<64x6xbf16>
    %336 = vector.extract_strided_slice %325 {offsets = [0, 9], sizes = [64, 6], strides = [1, 1]} : vector<64x16xbf16> to vector<64x6xbf16>
    %337 = vector.extract_strided_slice %325 {offsets = [0, 10], sizes = [64, 6], strides = [1, 1]} : vector<64x16xbf16> to vector<64x6xbf16>
    %338 = tpu.concatenate %329, %330, %331, %332, %333, %334, %335, %336, %337 in 0 : vector<64x6xbf16>, vector<64x6xbf16>, vector<64x6xbf16>, vector<64x6xbf16>, vector<64x6xbf16>, vector<64x6xbf16>, vector<64x6xbf16>, vector<64x6xbf16>, vector<64x6xbf16> -> vector<576x6xbf16>
    %cst_139 = arith.constant dense<0.000000e+00> : vector<64x6xf32>
    %339 = tpu.matmul %326, %338, %cst_139 {dimension_numbers = #tpu.dot_dimension_numbers<[1], [0], [0], [1], [0, 0, 1, 1], [], []>} : vector<64x576xbf16>, vector<576x6xbf16>, vector<64x6xf32> -> vector<64x6xf32>
    %340 = vector.broadcast %327 : vector<64x1xf32> to vector<64x6xf32>
    %341 = arith.addf %339, %340 : vector<64x6xf32>
    %cst_140 = arith.constant 0.000000e+00 : f32
    %342 = vector.broadcast %cst_140 : f32 to vector<64x6xf32>
    %343 = arith.maximumf %341, %342 : vector<64x6xf32>
    %344 = vector.broadcast %328 : vector<1x6xf32> to vector<64x6xf32>
    %345 = arith.mulf %343, %344 : vector<64x6xf32>
    %346 = arith.truncf %345 : vector<64x6xf32> to vector<64x6xbf16>
    %cst_141 = arith.constant 0.000000e+00 : bf16
    %347 = vector.broadcast %cst_141 : bf16 to vector<64x5xbf16>
    %cst_142 = arith.constant 0.000000e+00 : bf16
    %348 = vector.broadcast %cst_142 : bf16 to vector<64x5xbf16>
    %349 = tpu.concatenate %347, %346, %348 in 1 : vector<64x5xbf16>, vector<64x6xbf16>, vector<64x5xbf16> -> vector<64x16xbf16>
    %c0_143 = arith.constant 0 : index
    %c0_144 = arith.constant 0 : index
    %350 = vector.load %arg45[%c0_143, %c0_144] : memref<11x9xbf16, #tpu.memory_space<vmem>>, vector<11x9xbf16>
    %351 = vector.extract_strided_slice %349 {offsets = [0, 0], sizes = [64, 15], strides = [1, 1]} : vector<64x16xbf16> to vector<64x15xbf16>
    %352 = vector.extract_strided_slice %349 {offsets = [0, 1], sizes = [64, 15], strides = [1, 1]} : vector<64x16xbf16> to vector<64x15xbf16>
    %353 = arith.maximumf %351, %352 : vector<64x15xbf16>
    %354 = vector.extract_strided_slice %353 {offsets = [0, 0], sizes = [64, 11], strides = [1, 1]} : vector<64x15xbf16> to vector<64x11xbf16>
    %355 = vector.extract_strided_slice %353 {offsets = [0, 4], sizes = [64, 11], strides = [1, 1]} : vector<64x15xbf16> to vector<64x11xbf16>
    %356 = arith.maximumf %354, %355 : vector<64x11xbf16>
    %cst_145 = arith.constant dense<0.000000e+00> : vector<64x9xf32>
    %357 = tpu.matmul %356, %350, %cst_145 {dimension_numbers = #tpu.dot_dimension_numbers<[1], [0], [0], [1], [0, 0, 1, 1], [], []>} : vector<64x11xbf16>, vector<11x9xbf16>, vector<64x9xf32> -> vector<64x9xf32>
    %358 = arith.truncf %357 : vector<64x9xf32> to vector<64x9xbf16>
    %c0_146 = arith.constant 0 : index
    %c0_147 = arith.constant 0 : index
    %c0_148 = arith.constant 0 : index
    %359 = vector.load %arg46[%c0_146, %c0_147, %c0_148] : memref<1x64x9xbf16, #tpu.memory_space<vmem>>, vector<1x64x9xbf16>
    %360 = vector.shape_cast %359 : vector<1x64x9xbf16> to vector<64x9xbf16>
    %361 = vector.shape_cast %358 : vector<64x9xbf16> to vector<1x64x9xbf16>
    tpu.vector_store %arg46[%c0_146, %c0_147, %c0_148], %361 {strides = array<i32>} : memref<1x64x9xbf16, #tpu.memory_space<vmem>>, vector<1x64x9xbf16>,
    return
  }
  func.func @transform_0(%arg0: i32) -> (i32, i32, i32) {
    %c0_i32 = arith.constant 0 : i32
    %c0_i32_0 = arith.constant 0 : i32
    %c0_i32_1 = arith.constant 0 : i32
    return %arg0, %c0_i32, %c0_i32_0 : i32, i32, i32
  }
  func.func @transform_1(%arg0: i32) -> (i32, i32) {
    %c0_i32 = arith.constant 0 : i32
    %c0_i32_0 = arith.constant 0 : i32
    %c0_i32_1 = arith.constant 0 : i32
    return %c0_i32, %c0_i32_0 : i32, i32
  }
  func.func @transform_2(%arg0: i32) -> (i32, i32) {
    %c0_i32 = arith.constant 0 : i32
    %c0_i32_0 = arith.constant 0 : i32
    %c0_i32_1 = arith.constant 0 : i32
    return %c0_i32, %c0_i32_0 : i32, i32
  }
  func.func @transform_3(%arg0: i32) -> (i32, i32) {
    %c0_i32 = arith.constant 0 : i32
    %c0_i32_0 = arith.constant 0 : i32
    %c0_i32_1 = arith.constant 0 : i32
    return %c0_i32, %c0_i32_0 : i32, i32
  }
  func.func @transform_4(%arg0: i32) -> (i32, i32) {
    %c0_i32 = arith.constant 0 : i32
    %c0_i32_0 = arith.constant 0 : i32
    %c0_i32_1 = arith.constant 0 : i32
    return %c0_i32, %c0_i32_0 : i32, i32
  }
  func.func @transform_5(%arg0: i32) -> (i32, i32) {
    %c0_i32 = arith.constant 0 : i32
    %c0_i32_0 = arith.constant 0 : i32
    %c0_i32_1 = arith.constant 0 : i32
    return %c0_i32, %c0_i32_0 : i32, i32
  }
  func.func @transform_6(%arg0: i32) -> (i32, i32) {
    %c0_i32 = arith.constant 0 : i32
    %c0_i32_0 = arith.constant 0 : i32
    %c0_i32_1 = arith.constant 0 : i32
    return %c0_i32, %c0_i32_0 : i32, i32
  }
  func.func @transform_7(%arg0: i32) -> (i32, i32) {
    %c0_i32 = arith.constant 0 : i32
    %c0_i32_0 = arith.constant 0 : i32
    %c0_i32_1 = arith.constant 0 : i32
    return %c0_i32, %c0_i32_0 : i32, i32
  }
  func.func @transform_8(%arg0: i32) -> (i32, i32) {
    %c0_i32 = arith.constant 0 : i32
    %c0_i32_0 = arith.constant 0 : i32
    %c0_i32_1 = arith.constant 0 : i32
    return %c0_i32, %c0_i32_0 : i32, i32
  }
  func.func @transform_9(%arg0: i32) -> (i32, i32) {
    %c0_i32 = arith.constant 0 : i32
    %c0_i32_0 = arith.constant 0 : i32
    %c0_i32_1 = arith.constant 0 : i32
    return %c0_i32, %c0_i32_0 : i32, i32
  }
  func.func @transform_10(%arg0: i32) -> (i32, i32) {
    %c0_i32 = arith.constant 0 : i32
    %c0_i32_0 = arith.constant 0 : i32
    %c0_i32_1 = arith.constant 0 : i32
    return %c0_i32, %c0_i32_0 : i32, i32
  }
  func.func @transform_11(%arg0: i32) -> (i32, i32) {
    %c0_i32 = arith.constant 0 : i32
    %c0_i32_0 = arith.constant 0 : i32
    %c0_i32_1 = arith.constant 0 : i32
    return %c0_i32, %c0_i32_0 : i32, i32
  }
  func.func @transform_12(%arg0: i32) -> (i32, i32) {
    %c0_i32 = arith.constant 0 : i32
    %c0_i32_0 = arith.constant 0 : i32
    %c0_i32_1 = arith.constant 0 : i32
    return %c0_i32, %c0_i32_0 : i32, i32
  }
  func.func @transform_13(%arg0: i32) -> (i32, i32) {
    %c0_i32 = arith.constant 0 : i32
    %c0_i32_0 = arith.constant 0 : i32
    %c0_i32_1 = arith.constant 0 : i32
    return %c0_i32, %c0_i32_0 : i32, i32
  }
  func.func @transform_14(%arg0: i32) -> (i32, i32) {
    %c0_i32 = arith.constant 0 : i32
    %c0_i32_0 = arith.constant 0 : i32
    %c0_i32_1 = arith.constant 0 : i32
    return %c0_i32, %c0_i32_0 : i32, i32
  }
  func.func @transform_15(%arg0: i32) -> (i32, i32) {
    %c0_i32 = arith.constant 0 : i32
    %c0_i32_0 = arith.constant 0 : i32
    %c0_i32_1 = arith.constant 0 : i32
    return %c0_i32, %c0_i32_0 : i32, i32
  }
  func.func @transform_16(%arg0: i32) -> (i32, i32) {
    %c0_i32 = arith.constant 0 : i32
    %c0_i32_0 = arith.constant 0 : i32
    %c0_i32_1 = arith.constant 0 : i32
    return %c0_i32, %c0_i32_0 : i32, i32
  }
  func.func @transform_17(%arg0: i32) -> (i32, i32) {
    %c0_i32 = arith.constant 0 : i32
    %c0_i32_0 = arith.constant 0 : i32
    %c0_i32_1 = arith.constant 0 : i32
    return %c0_i32, %c0_i32_0 : i32, i32
  }
  func.func @transform_18(%arg0: i32) -> (i32, i32) {
    %c0_i32 = arith.constant 0 : i32
    %c0_i32_0 = arith.constant 0 : i32
    %c0_i32_1 = arith.constant 0 : i32
    return %c0_i32, %c0_i32_0 : i32, i32
  }
  func.func @transform_19(%arg0: i32) -> (i32, i32) {
    %c0_i32 = arith.constant 0 : i32
    %c0_i32_0 = arith.constant 0 : i32
    %c0_i32_1 = arith.constant 0 : i32
    return %c0_i32, %c0_i32_0 : i32, i32
  }
  func.func @transform_20(%arg0: i32) -> (i32, i32) {
    %c0_i32 = arith.constant 0 : i32
    %c0_i32_0 = arith.constant 0 : i32
    %c0_i32_1 = arith.constant 0 : i32
    return %c0_i32, %c0_i32_0 : i32, i32
  }
  func.func @transform_21(%arg0: i32) -> (i32, i32) {
    %c0_i32 = arith.constant 0 : i32
    %c0_i32_0 = arith.constant 0 : i32
    %c0_i32_1 = arith.constant 0 : i32
    return %c0_i32, %c0_i32_0 : i32, i32
  }
  func.func @transform_22(%arg0: i32) -> (i32, i32) {
    %c0_i32 = arith.constant 0 : i32
    %c0_i32_0 = arith.constant 0 : i32
    %c0_i32_1 = arith.constant 0 : i32
    return %c0_i32, %c0_i32_0 : i32, i32
  }
  func.func @transform_23(%arg0: i32) -> (i32, i32) {
    %c0_i32 = arith.constant 0 : i32
    %c0_i32_0 = arith.constant 0 : i32
    %c0_i32_1 = arith.constant 0 : i32
    return %c0_i32, %c0_i32_0 : i32, i32
  }
  func.func @transform_24(%arg0: i32) -> (i32, i32) {
    %c0_i32 = arith.constant 0 : i32
    %c0_i32_0 = arith.constant 0 : i32
    %c0_i32_1 = arith.constant 0 : i32
    return %c0_i32, %c0_i32_0 : i32, i32
  }
  func.func @transform_25(%arg0: i32) -> (i32, i32) {
    %c0_i32 = arith.constant 0 : i32
    %c0_i32_0 = arith.constant 0 : i32
    %c0_i32_1 = arith.constant 0 : i32
    return %c0_i32, %c0_i32_0 : i32, i32
  }
  func.func @transform_26(%arg0: i32) -> (i32, i32) {
    %c0_i32 = arith.constant 0 : i32
    %c0_i32_0 = arith.constant 0 : i32
    %c0_i32_1 = arith.constant 0 : i32
    return %c0_i32, %c0_i32_0 : i32, i32
  }
  func.func @transform_27(%arg0: i32) -> (i32, i32) {
    %c0_i32 = arith.constant 0 : i32
    %c0_i32_0 = arith.constant 0 : i32
    %c0_i32_1 = arith.constant 0 : i32
    return %c0_i32, %c0_i32_0 : i32, i32
  }
  func.func @transform_28(%arg0: i32) -> (i32, i32) {
    %c0_i32 = arith.constant 0 : i32
    %c0_i32_0 = arith.constant 0 : i32
    %c0_i32_1 = arith.constant 0 : i32
    return %c0_i32, %c0_i32_0 : i32, i32
  }
  func.func @transform_29(%arg0: i32) -> (i32, i32) {
    %c0_i32 = arith.constant 0 : i32
    %c0_i32_0 = arith.constant 0 : i32
    %c0_i32_1 = arith.constant 0 : i32
    return %c0_i32, %c0_i32_0 : i32, i32
  }
  func.func @transform_30(%arg0: i32) -> (i32, i32) {
    %c0_i32 = arith.constant 0 : i32
    %c0_i32_0 = arith.constant 0 : i32
    %c0_i32_1 = arith.constant 0 : i32
    return %c0_i32, %c0_i32_0 : i32, i32
  }
  func.func @transform_31(%arg0: i32) -> (i32, i32) {
    %c0_i32 = arith.constant 0 : i32
    %c0_i32_0 = arith.constant 0 : i32
    %c0_i32_1 = arith.constant 0 : i32
    return %c0_i32, %c0_i32_0 : i32, i32
  }
  func.func @transform_32(%arg0: i32) -> (i32, i32) {
    %c0_i32 = arith.constant 0 : i32
    %c0_i32_0 = arith.constant 0 : i32
    %c0_i32_1 = arith.constant 0 : i32
    return %c0_i32, %c0_i32_0 : i32, i32
  }
  func.func @transform_33(%arg0: i32) -> (i32, i32) {
    %c0_i32 = arith.constant 0 : i32
    %c0_i32_0 = arith.constant 0 : i32
    %c0_i32_1 = arith.constant 0 : i32
    return %c0_i32, %c0_i32_0 : i32, i32
  }
  func.func @transform_34(%arg0: i32) -> (i32, i32) {
    %c0_i32 = arith.constant 0 : i32
    %c0_i32_0 = arith.constant 0 : i32
    %c0_i32_1 = arith.constant 0 : i32
    return %c0_i32, %c0_i32_0 : i32, i32
  }
  func.func @transform_35(%arg0: i32) -> (i32, i32) {
    %c0_i32 = arith.constant 0 : i32
    %c0_i32_0 = arith.constant 0 : i32
    %c0_i32_1 = arith.constant 0 : i32
    return %c0_i32, %c0_i32_0 : i32, i32
  }
  func.func @transform_36(%arg0: i32) -> (i32, i32) {
    %c0_i32 = arith.constant 0 : i32
    %c0_i32_0 = arith.constant 0 : i32
    %c0_i32_1 = arith.constant 0 : i32
    return %c0_i32, %c0_i32_0 : i32, i32
  }
  func.func @transform_37(%arg0: i32) -> (i32, i32) {
    %c0_i32 = arith.constant 0 : i32
    %c0_i32_0 = arith.constant 0 : i32
    %c0_i32_1 = arith.constant 0 : i32
    return %c0_i32, %c0_i32_0 : i32, i32
  }
  func.func @transform_38(%arg0: i32) -> (i32, i32) {
    %c0_i32 = arith.constant 0 : i32
    %c0_i32_0 = arith.constant 0 : i32
    %c0_i32_1 = arith.constant 0 : i32
    return %c0_i32, %c0_i32_0 : i32, i32
  }
  func.func @transform_39(%arg0: i32) -> (i32, i32) {
    %c0_i32 = arith.constant 0 : i32
    %c0_i32_0 = arith.constant 0 : i32
    %c0_i32_1 = arith.constant 0 : i32
    return %c0_i32, %c0_i32_0 : i32, i32
  }
  func.func @transform_40(%arg0: i32) -> (i32, i32) {
    %c0_i32 = arith.constant 0 : i32
    %c0_i32_0 = arith.constant 0 : i32
    %c0_i32_1 = arith.constant 0 : i32
    return %c0_i32, %c0_i32_0 : i32, i32
  }
  func.func @transform_41(%arg0: i32) -> (i32, i32) {
    %c0_i32 = arith.constant 0 : i32
    %c0_i32_0 = arith.constant 0 : i32
    %c0_i32_1 = arith.constant 0 : i32
    return %c0_i32, %c0_i32_0 : i32, i32
  }
  func.func @transform_42(%arg0: i32) -> (i32, i32) {
    %c0_i32 = arith.constant 0 : i32
    %c0_i32_0 = arith.constant 0 : i32
    %c0_i32_1 = arith.constant 0 : i32
    return %c0_i32, %c0_i32_0 : i32, i32
  }
  func.func @transform_43(%arg0: i32) -> (i32, i32) {
    %c0_i32 = arith.constant 0 : i32
    %c0_i32_0 = arith.constant 0 : i32
    %c0_i32_1 = arith.constant 0 : i32
    return %c0_i32, %c0_i32_0 : i32, i32
  }
  func.func @transform_44(%arg0: i32) -> (i32, i32) {
    %c0_i32 = arith.constant 0 : i32
    %c0_i32_0 = arith.constant 0 : i32
    %c0_i32_1 = arith.constant 0 : i32
    return %c0_i32, %c0_i32_0 : i32, i32
  }
  func.func @transform_45(%arg0: i32) -> (i32, i32, i32) {
    %c0_i32 = arith.constant 0 : i32
    %c0_i32_0 = arith.constant 0 : i32
    %c0_i32_1 = arith.constant 0 : i32
    return %arg0, %c0_i32, %c0_i32_0 : i32, i32, i32
  }
}

module attributes {stable_mosaic.version = 11 : i64} {
  func.func @_classifier_kernel(%arg0: memref<2x576xbf16, #tpu.memory_space<vmem>>, %arg1: memref<576x256xbf16, #tpu.memory_space<vmem>>, %arg2: memref<1x256xf32, #tpu.memory_space<vmem>>, %arg3: memref<256x256xbf16, #tpu.memory_space<vmem>>, %arg4: memref<1x256xf32, #tpu.memory_space<vmem>>, %arg5: memref<2x256xf32, #tpu.memory_space<vmem>>) attributes {dimension_semantics = [], scalar_prefetch = 0 : i64, scratch_operands = 0 : i64, tpu.core_type = #tpu.core_type<tc>} {
    %c0 = arith.constant 0 : index
    %c0_0 = arith.constant 0 : index
    %0 = vector.load %arg0[%c0, %c0_0] : memref<2x576xbf16, #tpu.memory_space<vmem>>, vector<2x576xbf16>
    %c0_1 = arith.constant 0 : index
    %c0_2 = arith.constant 0 : index
    %1 = vector.load %arg1[%c0_1, %c0_2] : memref<576x256xbf16, #tpu.memory_space<vmem>>, vector<576x256xbf16>
    %cst = arith.constant dense<0.000000e+00> : vector<2x256xf32>
    %2 = tpu.matmul %0, %1, %cst {dimension_numbers = #tpu.dot_dimension_numbers<[1], [0], [0], [1], [0, 0, 1, 1], [], []>} : vector<2x576xbf16>, vector<576x256xbf16>, vector<2x256xf32> -> vector<2x256xf32>
    %c0_3 = arith.constant 0 : index
    %c0_4 = arith.constant 0 : index
    %3 = vector.load %arg2[%c0_3, %c0_4] : memref<1x256xf32, #tpu.memory_space<vmem>>, vector<1x256xf32>
    %4 = vector.broadcast %3 : vector<1x256xf32> to vector<2x256xf32>
    %5 = arith.addf %2, %4 : vector<2x256xf32>
    %cst_5 = arith.constant 0.000000e+00 : f32
    %6 = vector.broadcast %cst_5 : f32 to vector<2x256xf32>
    %7 = arith.maximumf %5, %6 : vector<2x256xf32>
    %8 = arith.truncf %7 : vector<2x256xf32> to vector<2x256xbf16>
    %c0_6 = arith.constant 0 : index
    %c0_7 = arith.constant 0 : index
    %9 = vector.load %arg3[%c0_6, %c0_7] : memref<256x256xbf16, #tpu.memory_space<vmem>>, vector<256x256xbf16>
    %cst_8 = arith.constant dense<0.000000e+00> : vector<2x256xf32>
    %10 = tpu.matmul %8, %9, %cst_8 {dimension_numbers = #tpu.dot_dimension_numbers<[1], [0], [0], [1], [0, 0, 1, 1], [], []>} : vector<2x256xbf16>, vector<256x256xbf16>, vector<2x256xf32> -> vector<2x256xf32>
    %c0_9 = arith.constant 0 : index
    %c0_10 = arith.constant 0 : index
    %11 = vector.load %arg4[%c0_9, %c0_10] : memref<1x256xf32, #tpu.memory_space<vmem>>, vector<1x256xf32>
    %12 = vector.broadcast %11 : vector<1x256xf32> to vector<2x256xf32>
    %13 = arith.addf %10, %12 : vector<2x256xf32>
    %c0_11 = arith.constant 0 : index
    %c0_12 = arith.constant 0 : index
    %14 = vector.load %arg5[%c0_11, %c0_12] : memref<2x256xf32, #tpu.memory_space<vmem>>, vector<2x256xf32>
    tpu.vector_store %arg5[%c0_11, %c0_12], %13 {strides = array<i32>} : memref<2x256xf32, #tpu.memory_space<vmem>>, vector<2x256xf32>,
    return
  }
}

</mosaic_0001>

<bundles_post_ra>
// kernel: vgg16_feature_extractor.3
= control target key start
LH: loop header
LB: loop body
LE: loop exit
PB: predicated region body
PF: predicated region fallthrough
CT: control target
= control target key end

     0   :  { %vm472_vm0 = vcmask 523264   ;;  %s2124_s0 = inlined_call_operand.vmem [shape: bf16[2,576], index: 0, kind: input, shape index: {}]   ;;  %s2125_s1 = inlined_call_operand.vmem [shape: bf16[576,256], index: 1, kind: input, shape index: {}]   ;;  %s2126_s2 = inlined_call_operand.vmem [shape: f32[1,256], index: 2, kind: input, shape index: {}]   ;;  %s2127_s3 = inlined_call_operand.vmem [shape: bf16[256,256], index: 3, kind: input, shape index: {}]   ;;  %s2128_s4 = inlined_call_operand.vmem [shape: f32[1,256], index: 4, kind: input, shape index: {}]   ;;  %s2129_s5 = inlined_call_operand.hbm [shape: f32[2,256], index: 5, kind: output, shape index: {}]  }
   0x1   :  { %v940_v0 = vld [vmem:[%s2125_s1 + $0x70] sm:$0xf]  ;;  %v1315_v1 = vld [vmem:[%s2125_s1 + $0x74] sm:$0xf0]  ;;  %v932_v11 = vld [vmem:[%s2125_s1 + $0x60] sm:$0xf] }
   0x2   :  { %v1004_v2 = vld [vmem:[%s2125_s1 + $0xf0] sm:$0xf]  ;;  %v941_v3 = vor.u32 %v1315_v1, %v940_v0  ;;  %v1331_v4 = vld [vmem:[%s2125_s1 + $0xf4] sm:$0xf0]  ;;  %v1313_v13 = vld [vmem:[%s2125_s1 + $0x64] sm:$0xf0] }
   0x3   :  { %v1068_v5 = vld [vmem:[%s2125_s1 + $0x170] sm:$0xf]  ;;  %v1347_v6 = vld [vmem:[%s2125_s1 + $0x174] sm:$0xf0]  ;;  %v1005_v7 = vor.u32 %v1331_v4, %v1004_v2  ;;  %v996_v14 = vld [vmem:[%s2125_s1 + $0xe0] sm:$0xf]  ;;  %v933_v16 = vor.u32 %v1313_v13, %v932_v11 }
   0x4   :  { %v1069_v8 = vor.u32 %v1347_v6, %v1068_v5  ;;  %v1132_v9 = vld [vmem:[%s2125_s1 + $0x1f0] sm:$0xf]  ;;  %v1363_v10 = vld [vmem:[%s2125_s1 + $0x1f4] sm:$0xf0]  ;;  %475 = vmatpush.bf16.msra.mxu0 %v941_v3  ;;  %v1329_v15 = vld [vmem:[%s2125_s1 + $0xe4] sm:$0xf0] }
   0x5   :  { %v1133_v12 = vor.u32 %v1363_v10, %v1132_v9  ;;  %488 = vmatpush.bf16.msra.mxu1 %v1005_v7  ;;  %v997_v17 = vor.u32 %v1329_v15, %v996_v14  ;;  %v1060_v18 = vld [vmem:[%s2125_s1 + $0x160] sm:$0xf]  ;;  %v1345_v19 = vld [vmem:[%s2125_s1 + $0x164] sm:$0xf0]  ;;  %v924_v23 = vld [vmem:[%s2125_s1 + $0x50] sm:$0xf] }
   0x6   :  { %501 = vmatpush.bf16.msra.mxu2 %v1069_v8  ;;  %v1124_v20 = vld [vmem:[%s2125_s1 + $0x1e0] sm:$0xf]  ;;  %v1061_v21 = vor.u32 %v1345_v19, %v1060_v18  ;;  %v1361_v22 = vld [vmem:[%s2125_s1 + $0x1e4] sm:$0xf0]  ;;  %v1311_v24 = vld [vmem:[%s2125_s1 + $0x54] sm:$0xf0] }
   0x7   :  { %514 = vmatpush.bf16.msra.mxu3 %v1133_v12  ;;  %v1125_v25 = vor.u32 %v1361_v22, %v1124_v20  ;;  %v988_v26 = vld [vmem:[%s2125_s1 + $0xd0] sm:$0xf]  ;;  %v1327_v27 = vld [vmem:[%s2125_s1 + $0xd4] sm:$0xf0]  ;;  %v925_v29 = vor.u32 %v1311_v24, %v924_v23  ;;  %v916_v35 = vld [vmem:[%s2125_s1 + $0x40] sm:$0xf] }
   0x8   :  { %v1052_v28 = vld [vmem:[%s2125_s1 + $0x150] sm:$0xf]  ;;  %476 = vmatpush.bf16.msra.mxu0 %v933_v16  ;;  %v1343_v30 = vld [vmem:[%s2125_s1 + $0x154] sm:$0xf0]  ;;  %v989_v33 = vor.u32 %v1327_v27, %v988_v26  ;;  %v1309_v36 = vld [vmem:[%s2125_s1 + $0x44] sm:$0xf0] }
   0x9   :  { %v1116_v31 = vld [vmem:[%s2125_s1 + $0x1d0] sm:$0xf]  ;;  %v1359_v32 = vld [vmem:[%s2125_s1 + $0x1d4] sm:$0xf0]  ;;  %489 = vmatpush.bf16.msra.mxu1 %v997_v17  ;;  %v1053_v34 = vor.u32 %v1343_v30, %v1052_v28  ;;  %v980_v37 = vld [vmem:[%s2125_s1 + $0xc0] sm:$0xf]  ;;  %v917_v44 = vor.u32 %v1309_v36, %v916_v35 }
   0xa   :  { %502 = vmatpush.bf16.msra.mxu2 %v1061_v21  ;;  %v1117_v38 = vor.u32 %v1359_v32, %v1116_v31  ;;  %v1325_v39 = vld [vmem:[%s2125_s1 + $0xc4] sm:$0xf0]  ;;  %v1044_v40 = vld [vmem:[%s2125_s1 + $0x140] sm:$0xf]  ;;  %v908_v47 = vld [vmem:[%s2125_s1 + $0x30] sm:$0xf] }
   0xb   :  { %515 = vmatpush.bf16.msra.mxu3 %v1125_v25  ;;  %v1341_v41 = vld [vmem:[%s2125_s1 + $0x144] sm:$0xf0]  ;;  %v1108_v42 = vld [vmem:[%s2125_s1 + $0x1c0] sm:$0xf]  ;;  %v981_v45 = vor.u32 %v1325_v39, %v980_v37  ;;  %v1307_v48 = vld [vmem:[%s2125_s1 + $0x34] sm:$0xf0] }
   0xc   :  { %v1357_v43 = vld [vmem:[%s2125_s1 + $0x1c4] sm:$0xf0]  ;;  %477 = vmatpush.bf16.msra.mxu0 %v925_v29  ;;  %v1045_v46 = vor.u32 %v1341_v41, %v1044_v40  ;;  %v972_v49 = vld [vmem:[%s2125_s1 + $0xb0] sm:$0xf]  ;;  %v1323_v51 = vld [vmem:[%s2125_s1 + $0xb4] sm:$0xf0]  ;;  %v909_v56 = vor.u32 %v1307_v48, %v908_v47 }
   0xd   :  { %490 = vmatpush.bf16.msra.mxu1 %v989_v33  ;;  %v1109_v50 = vor.u32 %v1357_v43, %v1108_v42  ;;  %v1036_v52 = vld [vmem:[%s2125_s1 + $0x130] sm:$0xf]  ;;  %v1339_v53 = vld [vmem:[%s2125_s1 + $0x134] sm:$0xf0]  ;;  %v973_v57 = vor.u32 %v1323_v51, %v972_v49  ;;  %v900_v59 = vld [vmem:[%s2125_s1 + $0x20] sm:$0xf] }
   0xe   :  { %503 = vmatpush.bf16.msra.mxu2 %v1053_v34  ;;  %v1100_v54 = vld [vmem:[%s2125_s1 + $0x1b0] sm:$0xf]  ;;  %v1355_v55 = vld [vmem:[%s2125_s1 + $0x1b4] sm:$0xf0]  ;;  %v1037_v58 = vor.u32 %v1339_v53, %v1036_v52  ;;  %v1305_v60 = vld [vmem:[%s2125_s1 + $0x24] sm:$0xf0] }
   0xf   :  { %516 = vmatpush.bf16.msra.mxu3 %v1117_v38  ;;  %v964_v61 = vld [vmem:[%s2125_s1 + $0xa0] sm:$0xf]  ;;  %v1101_v62 = vor.u32 %v1355_v55, %v1100_v54  ;;  %v1321_v63 = vld [vmem:[%s2125_s1 + $0xa4] sm:$0xf0]  ;;  %v901_v4 = vor.u32 %v1305_v60, %v900_v59  ;;  %v892_v7 = vld [vmem:[%s2125_s1 + $0x10] sm:$0xf] }
  0x10   :  { %478 = vmatpush.bf16.msra.mxu0 %v917_v44  ;;  %v1028_v0 = vld [vmem:[%s2125_s1 + $0x120] sm:$0xf]  ;;  %v1337_v1 = vld [vmem:[%s2125_s1 + $0x124] sm:$0xf0]  ;;  %v965_v5 = vor.u32 %v1321_v63, %v964_v61  ;;  %v1303_v8 = vld [vmem:[%s2125_s1 + $0x14] sm:$0xf0] }
  0x11   :  { %491 = vmatpush.bf16.msra.mxu1 %v981_v45  ;;  %v1092_v2 = vld [vmem:[%s2125_s1 + $0x1a0] sm:$0xf]  ;;  %v1353_v3 = vld [vmem:[%s2125_s1 + $0x1a4] sm:$0xf0]  ;;  %v1029_v6 = vor.u32 %v1337_v1, %v1028_v0  ;;  %v956_v9 = vld [vmem:[%s2125_s1 + $0x90] sm:$0xf]  ;;  %v893_v17 = vor.u32 %v1303_v8, %v892_v7 }
  0x12   :  { %504 = vmatpush.bf16.msra.mxu2 %v1045_v46  ;;  %v1093_v10 = vor.u32 %v1353_v3, %v1092_v2  ;;  %v1319_v11 = vld [vmem:[%s2125_s1 + $0x94] sm:$0xf0]  ;;  %v1020_v12 = vld [vmem:[%s2125_s1 + $0x110] sm:$0xf]  ;;  %v884_v16 = vld [vmem:[%s2125_s1] sm:$0xf] }
  0x13   :  { %517 = vmatpush.bf16.msra.mxu3 %v1109_v50  ;;  %v1335_v13 = vld [vmem:[%s2125_s1 + $0x114] sm:$0xf0]  ;;  %v1084_v14 = vld [vmem:[%s2125_s1 + $0x190] sm:$0xf]  ;;  %v1301_v18 = vld [vmem:[%s2125_s1 + $0x4] sm:$0xf0]  ;;  %v957_v21 = vor.u32 %v1319_v11, %v956_v9 }
  0x14   :  { %479 = vmatpush.bf16.msra.mxu0 %v909_v56  ;;  %v1351_v15 = vld [vmem:[%s2125_s1 + $0x194] sm:$0xf0]  ;;  %v948_v19 = vld [vmem:[%s2125_s1 + $0x80] sm:$0xf]  ;;  %v1317_v20 = vld [vmem:[%s2125_s1 + $0x84] sm:$0xf0]  ;;  %v1021_v22 = vor.u32 %v1335_v13, %v1020_v12  ;;  %v885_v32 = vor.u32 %v1301_v18, %v884_v16 }
  0x15   :  { %492 = vmatpush.bf16.msra.mxu1 %v973_v57  ;;  %v1012_v23 = vld [vmem:[%s2125_s1 + $0x100] sm:$0xf]  ;;  %v1333_v24 = vld [vmem:[%s2125_s1 + $0x104] sm:$0xf0]  ;;  %v1085_v26 = vor.u32 %v1351_v15, %v1084_v14  ;;  %v1164_v29 = vld [vmem:[%s2125_s1 + $0x230] sm:$0xf]  ;;  %v949_v36 = vor.u32 %v1317_v20, %v948_v19 }
  0x16   :  { %505 = vmatpush.bf16.msra.mxu2 %v1037_v58  ;;  %v22_v25 = vld [vmem:[%s2124_s0] sm:$0x1f]  ;;  %v1349_v28 = vld [vmem:[%s2125_s1 + $0x184] sm:$0xf0]  ;;  %v1371_v30 = vld [vmem:[%s2125_s1 + $0x234] sm:$0xf0]  ;;  %v1013_v37 = vor.u32 %v1333_v24, %v1012_v23 }
  0x17   :  { %518 = vmatpush.bf16.msra.mxu3 %v1101_v62  ;;  %v1076_v27 = vld [vmem:[%s2125_s1 + $0x180] sm:$0xf]  ;;  %102 = vst [vmem:[#allocation1] ss:$9 sm:$0xff] %v22_v25  ;;  %v1314_v31 = vld [vmem:[%s2125_s1 + $0x74] sm:$0xf]  ;;  %v1165_v41 = vor.u32 %v1371_v30, %v1164_v29 }
  0x18   :  { %480 = vmatpush.bf16.msra.mxu0 %v901_v4  ;;  %v942_v33 = vld [vmem:[%s2125_s1 + $0x78] sm:$0xf0]  ;;  %v1330_v34 = vld [vmem:[%s2125_s1 + $0xf4] sm:$0xf]  ;;  %v1077_v40 = vor.u32 %v1349_v28, %v1076_v27  ;;  %v1156_v44 = vld [vmem:[%s2125_s1 + $0x220] sm:$0xf] }
  0x19   :  { %493 = vmatpush.bf16.msra.mxu1 %v965_v5  ;;  %v1006_v35 = vld [vmem:[%s2125_s1 + $0xf8] sm:$0xf0]  ;;  %v1346_v38 = vld [vmem:[%s2125_s1 + $0x174] sm:$0xf]  ;;  %v945_v42 = vor.u32 %v1314_v31, %v942_v33  ;;  %v1369_v45 = vld [vmem:[%s2125_s1 + $0x224] sm:$0xf0] }
  0x1a   :  { %506 = vmatpush.bf16.msra.mxu2 %v1029_v6  ;;  %v1070_v39 = vld [vmem:[%s2125_s1 + $0x178] sm:$0xf0]  ;;  %v1009_v43 = vor.u32 %v1330_v34, %v1006_v35  ;;  %v1312_v46 = vld [vmem:[%s2125_s1 + $0x64] sm:$0xf]  ;;  %v934_v48 = vld [vmem:[%s2125_s1 + $0x68] sm:$0xf0]  ;;  %v1157_v54 = vor.u32 %v1369_v45, %v1156_v44 }
  0x1b   :  { %519 = vmatpush.bf16.msra.mxu3 %v1093_v10  ;;  %v1073_v47 = vor.u32 %v1346_v38, %v1070_v39  ;;  %v1328_v49 = vld [vmem:[%s2125_s1 + $0xe4] sm:$0xf]  ;;  %v998_v50 = vld [vmem:[%s2125_s1 + $0xe8] sm:$0xf0]  ;;  %v1148_v57 = vld [vmem:[%s2125_s1 + $0x210] sm:$0xf]  ;;  %v937_v58 = vor.u32 %v1312_v46, %v934_v48 }
  0x1c   :  { %481 = vmatpush.bf16.msra.mxu0 %v893_v17  ;;  %v1344_v52 = vld [vmem:[%s2125_s1 + $0x164] sm:$0xf]  ;;  %v1062_v53 = vld [vmem:[%s2125_s1 + $0x168] sm:$0xf0]  ;;  %v1001_v59 = vor.u32 %v1328_v49, %v998_v50  ;;  %v1367_v60 = vld [vmem:[%s2125_s1 + $0x214] sm:$0xf0] }
  0x1d   :  { %494 = vmatpush.bf16.msra.mxu1 %v957_v21  ;;  %v1310_v61 = vld [vmem:[%s2125_s1 + $0x54] sm:$0xf]  ;;  %v1065_v63 = vor.u32 %v1344_v52, %v1062_v53  ;;  %v926_v0 = vld [vmem:[%s2125_s1 + $0x58] sm:$0xf0]  ;;  %v1149_v5 = vor.u32 %v1367_v60, %v1148_v57  ;;  %v1140_v6 = vld [vmem:[%s2125_s1 + $0x200] sm:$0xf] }
  0x1e   :  { %507 = vmatpush.bf16.msra.mxu2 %v1021_v22  ;;  %v1699_v51 = vld [vmem:[#allocation1] sm:$0xff]  ;;  %v1707_v55 = vld [vmem:[#allocation1 + $0x9] sm:$0xff]  ;;  %v1709_v56 = vld [vmem:[#allocation1 + $0x12] sm:$0xff]  ;;  %v929_v7 = vor.u32 %v1310_v61, %v926_v0 }
  0x1f   :  { %520 = vmatpush.bf16.msra.mxu3 %v1085_v26  ;;  %v1720_v62 = vld [vmem:[#allocation1 + $0x1b] sm:$0xff]  ;;  %v1326_v1 = vld [vmem:[%s2125_s1 + $0xd4] sm:$0xf]  ;;  %v1365_v9 = vld [vmem:[%s2125_s1 + $0x204] sm:$0xf0] }
  0x20   :  { %482 = vmatpush.bf16.msra.mxu0 %v885_v32  ;;  %v990_v2 = vld [vmem:[%s2125_s1 + $0xd8] sm:$0xf0]  ;;  %v1342_v3 = vld [vmem:[%s2125_s1 + $0x154] sm:$0xf]  ;;  %v1308_v10 = vld [vmem:[%s2125_s1 + $0x44] sm:$0xf]  ;;  %v1141_v19 = vor.u32 %v1365_v9, %v1140_v6 }
  0x21   :  { %495 = vmatpush.bf16.msra.mxu1 %v949_v36  ;;  %v1054_v4 = vld [vmem:[%s2125_s1 + $0x158] sm:$0xf0]  ;;  %v993_v8 = vor.u32 %v1326_v1, %v990_v2  ;;  %v918_v11 = vld [vmem:[%s2125_s1 + $0x48] sm:$0xf0]  ;;  %v1324_v13 = vld [vmem:[%s2125_s1 + $0xc4] sm:$0xf] }
  0x22   :  { %508 = vmatpush.bf16.msra.mxu2 %v1013_v37  ;;  %v1057_v12 = vor.u32 %v1342_v3, %v1054_v4  ;;  %v982_v14 = vld [vmem:[%s2125_s1 + $0xc8] sm:$0xf0]  ;;  %v1340_v15 = vld [vmem:[%s2125_s1 + $0x144] sm:$0xf]  ;;  %v1362_v17 = vld [vmem:[%s2125_s1 + $0x1f4] sm:$0xf]  ;;  %v921_v20 = vor.u32 %v1308_v10, %v918_v11 }
  0x23   :  { %521 = vmatpush.bf16.msra.mxu3 %v1077_v40  ;;  %483 = vmatmul.bf16.vlgmr.msra.gmra.mxu0 %v1699_v51  ;;  %v1046_v16 = vld [vmem:[%s2125_s1 + $0x148] sm:$0xf0]  ;;  %v1134_v18 = vld [vmem:[%s2125_s1 + $0x1f8] sm:$0xf0]  ;;  %v985_v21 = vor.u32 %v1324_v13, %v982_v14  ;;  %v1306_v22 = vld [vmem:[%s2125_s1 + $0x34] sm:$0xf] }
  0x24   :  { %531 = vmatpush.bf16.msrb.mxu0 %v1165_v41  ;;  %496 = vmatmul.bf16.vlgmr.msra.gmra.mxu1 %v1707_v55  ;;  %v910_v23 = vld [vmem:[%s2125_s1 + $0x38] sm:$0xf0]  ;;  %v1049_v24 = vor.u32 %v1340_v15, %v1046_v16  ;;  %v1137_v25 = vor.u32 %v1362_v17, %v1134_v18  ;;  %v1322_v26 = vld [vmem:[%s2125_s1 + $0xb4] sm:$0xf]  ;;  %v1360_v30 = vld [vmem:[%s2125_s1 + $0x1e4] sm:$0xf] }
  0x25   :  { %540 = vmatpush.bf16.msrb.mxu1 %v945_v42  ;;  %509 = vmatmul.bf16.vlgmr.msra.gmra.mxu2 %v1709_v56  ;;  %v974_v27 = vld [vmem:[%s2125_s1 + $0xb8] sm:$0xf0]  ;;  %v1338_v28 = vld [vmem:[%s2125_s1 + $0x134] sm:$0xf]  ;;  %v1126_v31 = vld [vmem:[%s2125_s1 + $0x1e8] sm:$0xf0]  ;;  %v913_v32 = vor.u32 %v1306_v22, %v910_v23 }
  0x26   :  { %553 = vmatpush.bf16.msrb.mxu2 %v1009_v43  ;;  %522 = vmatmul.bf16.vlgmr.msra.gmra.mxu3 %v1720_v62  ;;  %v1038_v29 = vld [vmem:[%s2125_s1 + $0x138] sm:$0xf0]  ;;  %v977_v33 = vor.u32 %v1322_v26, %v974_v27  ;;  %v1304_v34 = vld [vmem:[%s2125_s1 + $0x24] sm:$0xf]  ;;  %v902_v35 = vld [vmem:[%s2125_s1 + $0x28] sm:$0xf0]  ;;  %v1129_v37 = vor.u32 %v1360_v30, %v1126_v31 }
  0x27   :  { %566 = vmatpush.bf16.msrb.mxu3 %v1073_v47  ;;  %v1041_v36 = vor.u32 %v1338_v28, %v1038_v29  ;;  %v1320_v38 = vld [vmem:[%s2125_s1 + $0xa4] sm:$0xf]  ;;  %v966_v39 = vld [vmem:[%s2125_s1 + $0xa8] sm:$0xf0]  ;;  %v1358_v42 = vld [vmem:[%s2125_s1 + $0x1d4] sm:$0xf]  ;;  %v905_v45 = vor.u32 %v1304_v34, %v902_v35 }
  0x28   :  { %532 = vmatpush.bf16.msrb.mxu0 %v1157_v54  ;;  %v1336_v40 = vld [vmem:[%s2125_s1 + $0x124] sm:$0xf]  ;;  %v1030_v41 = vld [vmem:[%s2125_s1 + $0x128] sm:$0xf0]  ;;  %v1118_v43 = vld [vmem:[%s2125_s1 + $0x1d8] sm:$0xf0]  ;;  %v969_v46 = vor.u32 %v1320_v38, %v966_v39 }
  0x29   :  { %541 = vmatpush.bf16.msrb.mxu1 %v937_v58  ;;  %v1819_v44 = vld [vmem:[#allocation1 + $0x24] sm:$0xff]  ;;  %v1302_v47 = vld [vmem:[%s2125_s1 + $0x14] sm:$0xf]  ;;  %v894_v48 = vld [vmem:[%s2125_s1 + $0x18] sm:$0xf0]  ;;  %v1033_v49 = vor.u32 %v1336_v40, %v1030_v41  ;;  %v1121_v50 = vor.u32 %v1358_v42, %v1118_v43 }
  0x2a   :  { %554 = vmatpush.bf16.msrb.mxu2 %v1001_v59  ;;  %v1318_v52 = vld [vmem:[%s2125_s1 + $0x94] sm:$0xf]  ;;  %v958_v53 = vld [vmem:[%s2125_s1 + $0x98] sm:$0xf0]  ;;  %v1356_v58 = vld [vmem:[%s2125_s1 + $0x1c4] sm:$0xf] }
  0x2b   :  { %567 = vmatpush.bf16.msrb.mxu3 %v1065_v63  ;;  %v1334_v54 = vld [vmem:[%s2125_s1 + $0x114] sm:$0xf]  ;;  %v1022_v57 = vld [vmem:[%s2125_s1 + $0x118] sm:$0xf0]  ;;  %v1110_v59 = vld [vmem:[%s2125_s1 + $0x1c8] sm:$0xf0] }
  0x2c   :  { %533 = vmatpush.bf16.msrb.mxu0 %v1149_v5 }
  0x2d   :  { %542 = vmatpush.bf16.msrb.mxu1 %v929_v7 }
  0x2e   :  { %555 = vmatpush.bf16.msrb.mxu2 %v993_v8 }
  0x2f   :  { %568 = vmatpush.bf16.msrb.mxu3 %v1057_v12 }
  0x30   :  { %534 = vmatpush.bf16.msrb.mxu0 %v1141_v19 }
  0x31   :  { %543 = vmatpush.bf16.msrb.mxu1 %v921_v20 }
  0x32   :  { %556 = vmatpush.bf16.msrb.mxu2 %v985_v21 }
  0x33   :  { %569 = vmatpush.bf16.msrb.mxu3 %v1049_v24  ;;  %1170 = vmatmul.msk.bf16.vlgmr.msrb.gmra.mxu0 %vm472_vm0, %v1819_v44 }
  0x34   :  { %579 = vmatpush.bf16.msra.mxu0 %v1137_v25 }
  0x35   :  { %544 = vmatpush.bf16.msrb.mxu1 %v913_v32 }
  0x36   :  { %557 = vmatpush.bf16.msrb.mxu2 %v977_v33 }
  0x37   :  { %570 = vmatpush.bf16.msrb.mxu3 %v1041_v36 }
  0x38   :  { %580 = vmatpush.bf16.msra.mxu0 %v1129_v37 }
  0x39   :  { %10 = vsyncpa [#allocation3], 0  ;;  %545 = vmatpush.bf16.msrb.mxu1 %v905_v45  ;;  %v897_v60 = vor.u32 %v1302_v47, %v894_v48  ;;  %v961_v61 = vor.u32 %v1318_v52, %v958_v53  ;;  %v1300_v63 = vld [vmem:[%s2125_s1 + $0x4] sm:$0xf]  ;;  %v886_v0 = vld [vmem:[%s2125_s1 + $0x8] sm:$0xf0]  ;;  %v1025_v2 = vor.u32 %v1334_v54, %v1022_v57  ;;  %v1113_v3 = vor.u32 %v1356_v58, %v1110_v59 }
  0x3a   :  { %558 = vmatpush.bf16.msrb.mxu2 %v969_v46  ;;  %v1316_v1 = vld [vmem:[%s2125_s1 + $0x84] sm:$0xf]  ;;  %v950_v4 = vld [vmem:[%s2125_s1 + $0x88] sm:$0xf0]  ;;  %v1354_v7 = vld [vmem:[%s2125_s1 + $0x1b4] sm:$0xf]  ;;  %v889_v13 = vor.u32 %v1300_v63, %v886_v0 }
  0x3b   :  { %571 = vmatpush.bf16.msrb.mxu3 %v1033_v49  ;;  %v1332_v5 = vld [vmem:[%s2125_s1 + $0x104] sm:$0xf]  ;;  %v1014_v6 = vld [vmem:[%s2125_s1 + $0x108] sm:$0xf0]  ;;  %v1102_v8 = vld [vmem:[%s2125_s1 + $0x1b8] sm:$0xf0]  ;;  %v953_v14 = vor.u32 %v1316_v1, %v950_v4 }
  0x3c   :  { %581 = vmatpush.bf16.msra.mxu0 %v1121_v50  ;;  %v1370_v9 = vld [vmem:[%s2125_s1 + $0x234] sm:$0xf]  ;;  %v1166_v10 = vld [vmem:[%s2125_s1 + $0x238] sm:$0xf0]  ;;  %v1230_v11 = vld [vmem:[%s2127_s3 + $0x70] sm:$0xf]  ;;  %v1017_v15 = vor.u32 %v1332_v5, %v1014_v6  ;;  %v1105_v16 = vor.u32 %v1354_v7, %v1102_v8 }
  0x3d   :  { %v1387_v12 = vld [vmem:[%s2127_s3 + $0x74] sm:$0xf0]  ;;  %546 = vmatpush.bf16.msrb.mxu1 %v897_v60  ;;  %v1169_v17 = vor.u32 %v1370_v9, %v1166_v10  ;;  %v1352_v18 = vld [vmem:[%s2125_s1 + $0x1a4] sm:$0xf]  ;;  %v1094_v19 = vld [vmem:[%s2125_s1 + $0x1a8] sm:$0xf0] }
  0x3e   :  { %559 = vmatpush.bf16.msrb.mxu2 %v961_v61  ;;  %v1368_v20 = vld [vmem:[%s2125_s1 + $0x224] sm:$0xf]  ;;  %v1231_v21 = vor.u32 %v1387_v12, %v1230_v11  ;;  %v1158_v22 = vld [vmem:[%s2125_s1 + $0x228] sm:$0xf0]  ;;  %v1222_v23 = vld [vmem:[%s2127_s3 + $0x60] sm:$0xf]  ;;  %v1097_v25 = vor.u32 %v1352_v18, %v1094_v19 }
  0x3f   :  { %572 = vmatpush.bf16.msrb.mxu3 %v1025_v2  ;;  %v1385_v24 = vld [vmem:[%s2127_s3 + $0x64] sm:$0xf0]  ;;  %v1161_v26 = vor.u32 %v1368_v20, %v1158_v22  ;;  %v1350_v27 = vld [vmem:[%s2125_s1 + $0x194] sm:$0xf]  ;;  %v1086_v28 = vld [vmem:[%s2125_s1 + $0x198] sm:$0xf0] }
  0x40   :  { %582 = vmatpush.bf16.msra.mxu0 %v1113_v3  ;;  %v1223_v29 = vor.u32 %v1385_v24, %v1222_v23  ;;  %v1366_v30 = vld [vmem:[%s2125_s1 + $0x214] sm:$0xf]  ;;  %v1150_v31 = vld [vmem:[%s2125_s1 + $0x218] sm:$0xf0]  ;;  %v1089_v32 = vor.u32 %v1350_v27, %v1086_v28  ;;  %v1364_v34 = vld [vmem:[%s2125_s1 + $0x204] sm:$0xf] }
  0x41   :  { %547 = vmatpush.bf16.msrb.mxu1 %v889_v13  ;;  %v1153_v33 = vor.u32 %v1366_v30, %v1150_v31  ;;  %v1386_v35 = vld [vmem:[%s2127_s3 + $0x74] sm:$0xf]  ;;  %v1232_v36 = vld [vmem:[%s2127_s3 + $0x78] sm:$0xf0]  ;;  %v1384_v40 = vld [vmem:[%s2127_s3 + $0x64] sm:$0xf] }
  0x42   :  { %560 = vmatpush.bf16.msrb.mxu2 %v953_v14  ;;  %v1235_v39 = vor.u32 %v1386_v35, %v1232_v36  ;;  %v1224_v41 = vld [vmem:[%s2127_s3 + $0x68] sm:$0xf0]  ;;  %v1214_v43 = vld [vmem:[%s2127_s3 + $0x50] sm:$0xf]  ;;  %v1383_v45 = vld [vmem:[%s2127_s3 + $0x54] sm:$0xf0] }
  0x43   :  { %573 = vmatpush.bf16.msrb.mxu3 %v1017_v15  ;;  %v1227_v42 = vor.u32 %v1384_v40, %v1224_v41  ;;  %v1382_v46 = vld [vmem:[%s2127_s3 + $0x54] sm:$0xf]  ;;  %v1215_v47 = vor.u32 %v1383_v45, %v1214_v43  ;;  %v1381_v49 = vld [vmem:[%s2127_s3 + $0x44] sm:$0xf0]  ;;  %v1380_v50 = vld [vmem:[%s2127_s3 + $0x44] sm:$0xf] }
  0x44   :  { %583 = vmatpush.bf16.msra.mxu0 %v1105_v16  ;;  %548 = vmatmul.bf16.vlgmr.msrb.gmra.mxu1 %v1699_v51  ;;  %v1348_v51 = vld [vmem:[%s2125_s1 + $0x184] sm:$0xf]  ;;  %v1208_v53 = vld [vmem:[%s2127_s3 + $0x48] sm:$0xf0]  ;;  %v1198_v57 = vld [vmem:[%s2127_s3 + $0x30] sm:$0xf] }
  0x45   :  { %596 = vmatpush.bf16.msra.mxu1 %v1169_v17  ;;  %561 = vmatmul.bf16.vlgmr.msrb.gmra.mxu2 %v1707_v55  ;;  %v1078_v55 = vld [vmem:[%s2125_s1 + $0x188] sm:$0xf0]  ;;  %v1211_v54 = vor.u32 %v1380_v50, %v1208_v53  ;;  %v1379_v58 = vld [vmem:[%s2127_s3 + $0x34] sm:$0xf0]  ;;  %v1378_v59 = vld [vmem:[%s2127_s3 + $0x34] sm:$0xf] }
  0x46   :  { %807 = vmatpush.bf16.msra.mxu2 %v1231_v21  ;;  %574 = vmatmul.bf16.vlgmr.msrb.gmra.mxu3 %v1709_v56  ;;  %v1142_v56 = vld [vmem:[%s2125_s1 + $0x208] sm:$0xf0]  ;;  %v1081_v37 = vor.u32 %v1348_v51, %v1078_v55  ;;  %v1199_v60 = vor.u32 %v1379_v58, %v1198_v57  ;;  %v1200_v61 = vld [vmem:[%s2127_s3 + $0x38] sm:$0xf0]  ;;  %v1190_v63 = vld [vmem:[%s2127_s3 + $0x20] sm:$0xf] }
  0x47   :  { %v1145_v38 = vor.u32 %v1364_v34, %v1142_v56  ;;  %v1377_v0 = vld [vmem:[%s2127_s3 + $0x24] sm:$0xf0]  ;;  %v1203_v1 = vor.u32 %v1378_v59, %v1200_v61  ;;  %v1376_v2 = vld [vmem:[%s2127_s3 + $0x24] sm:$0xf]  ;;  %v1192_v3 = vld [vmem:[%s2127_s3 + $0x28] sm:$0xf0] }
  0x48   :  { %584 = vmatpush.bf16.msra.mxu0 %v1097_v25  ;;  %v1191_v4 = vor.u32 %v1377_v0, %v1190_v63  ;;  %v1195_v5 = vor.u32 %v1376_v2, %v1192_v3  ;;  %v1182_v6 = vld [vmem:[%s2127_s3 + $0x10] sm:$0xf]  ;;  %v1375_v7 = vld [vmem:[%s2127_s3 + $0x14] sm:$0xf0]  ;;  %v1374_v8 = vld [vmem:[%s2127_s3 + $0x14] sm:$0xf] }
  0x49   :  { %597 = vmatpush.bf16.msra.mxu1 %v1161_v26  ;;  %v1183_v9 = vor.u32 %v1375_v7, %v1182_v6  ;;  %v1184_v10 = vld [vmem:[%s2127_s3 + $0x18] sm:$0xf0]  ;;  %v1174_v12 = vld [vmem:[%s2127_s3] sm:$0xf]  ;;  %v1373_v13 = vld [vmem:[%s2127_s3 + $0x4] sm:$0xf0] }
  0x4a   :  { %808 = vmatpush.bf16.msra.mxu2 %v1223_v29  ;;  %v1187_v11 = vor.u32 %v1374_v8, %v1184_v10  ;;  %v1372_v14 = vld [vmem:[%s2127_s3 + $0x4] sm:$0xf]  ;;  %v1175_v15 = vor.u32 %v1373_v13, %v1174_v12  ;;  %v1176_v16 = vld [vmem:[%s2127_s3 + $0x8] sm:$0xf0]  ;;  %v1294_v17 = vld [vmem:[%s2127_s3 + $0xf0] sm:$0xf] }
  0x4b   :  { %v1403_v18 = vld [vmem:[%s2127_s3 + $0xf4] sm:$0xf0]  ;;  %v1179_v19 = vor.u32 %v1372_v14, %v1176_v16  ;;  %v1402_v21 = vld [vmem:[%s2127_s3 + $0xf4] sm:$0xf]  ;;  %v1296_v22 = vld [vmem:[%s2127_s3 + $0xf8] sm:$0xf0] }
  0x4c   :  { %585 = vmatpush.bf16.msra.mxu0 %v1089_v32  ;;  %v1295_v20 = vor.u32 %v1403_v18, %v1294_v17  ;;  %v1299_v23 = vor.u32 %v1402_v21, %v1296_v22  ;;  %v1286_v24 = vld [vmem:[%s2127_s3 + $0xe0] sm:$0xf]  ;;  %v1401_v25 = vld [vmem:[%s2127_s3 + $0xe4] sm:$0xf0]  ;;  %v1400_v26 = vld [vmem:[%s2127_s3 + $0xe4] sm:$0xf] }
  0x4d   :  { %598 = vmatpush.bf16.msra.mxu1 %v1153_v33  ;;  %v1287_v27 = vor.u32 %v1401_v25, %v1286_v24  ;;  %v1288_v28 = vld [vmem:[%s2127_s3 + $0xe8] sm:$0xf0]  ;;  %v2042_v30 = vld [vmem:[%s2126_s2] sm:$0x3]  ;;  %v1278_v31 = vld [vmem:[%s2127_s3 + $0xd0] sm:$0xf] }
  0x4e   :  { %809 = vmatpush.bf16.msra.mxu2 %v1215_v47  ;;  %820 = vmatpush.bf16.msra.mxu3 %v1295_v20  ;;  %v1291_v29 = vor.u32 %v1400_v26, %v1288_v28  ;;  %v1399_v32 = vld [vmem:[%s2127_s3 + $0xd4] sm:$0xf0]  ;;  %v1398_v33 = vld [vmem:[%s2127_s3 + $0xd4] sm:$0xf]  ;;  %v1280_v55 = vld [vmem:[%s2127_s3 + $0xd8] sm:$0xf0] }
  0x4f   :  { %v1279_v51 = vor.u32 %v1399_v32, %v1278_v31  ;;  %v97_v34 = vperm.slane %v2042_v30, 0  ;;  %v1283_v56 = vor.u32 %v1398_v33, %v1280_v55  ;;  %v1270_v35 = vld [vmem:[%s2127_s3 + $0xc0] sm:$0xf]  ;;  %v1397_v36 = vld [vmem:[%s2127_s3 + $0xc4] sm:$0xf0]  ;;  %v98_v22 = vperm.slane %v2042_v30, 1 }
  0x50   :  { %586 = vmatpush.bf16.msra.mxu0 %v1081_v37  ;;  %v1396_v37 = vld [vmem:[%s2127_s3 + $0xc4] sm:$0xf]  ;;  %v1272_v40 = vld [vmem:[%s2127_s3 + $0xc8] sm:$0xf0]  ;;  %v1262_v45 = vld [vmem:[%s2127_s3 + $0xb0] sm:$0xf] }
  0x51   :  { %599 = vmatpush.bf16.msra.mxu1 %v1145_v38  ;;  %v1394_v47 = vld [vmem:[%s2127_s3 + $0xb4] sm:$0xf]  ;;  %v1393_v53 = vld [vmem:[%s2127_s3 + $0xa4] sm:$0xf0]  ;;  %v1391_v2 = vld [vmem:[%s2127_s3 + $0x94] sm:$0xf0] }
  0x52   :  { %821 = vmatpush.bf16.msra.mxu3 %v1287_v27  ;;  %v1390_v3 = vld [vmem:[%s2127_s3 + $0x94] sm:$0xf]  ;;  %v1238_v10 = vld [vmem:[%s2127_s3 + $0x80] sm:$0xf]  ;;  %v1388_v12 = vld [vmem:[%s2127_s3 + $0x84] sm:$0xf] }
  0x53   :  { %587 = vmatmul.bf16.vlgmr.msra.gmra.mxu0 %v1720_v62  ;;  %v1216_v62 = vld [vmem:[%s2127_s3 + $0x58] sm:$0xf0]  ;;  %s1431_s21 = smov [#allocation2]   ;;  %s873_s25 = sshll.u32 %s2129_s5, 4  ;;  %vm862_vm1 = vcmask 1041408   ;;  %s874_s25 = int_to_ptr.hbm [resolvable:$true] %s873_s25 }
  0x54   :  { %833 = vmatpush.bf16.msrb.mxu0 %v1235_v39  ;;  %1171 = vmatmul.msk.bf16.vlgmr.msra.gmra.mxu1 %vm472_vm0, %v1819_v44  ;;  %v1219_v48 = vor.u32 %v1382_v46, %v1216_v62  ;;  %v1206_v44 = vld [vmem:[%s2127_s3 + $0x40] sm:$0xf]  ;;  %v1271_v39 = vor.u32 %v1397_v36, %v1270_v35  ;;  %v1395_v46 = vld [vmem:[%s2127_s3 + $0xb4] sm:$0xf0]  ;;  %s871_s22 = sshll.u32 %s1431_s21, 4  ;;  %s872_s22 = int_to_ptr.vmem [resolvable:$true] %s871_s22 }
  0x55   :  { %v1207_v52 = vor.u32 %v1381_v49, %v1206_v44  ;;  %846 = vmatpush.bf16.msrb.mxu1 %v1299_v23  ;;  %v1263_v62 = vor.u32 %v1395_v46, %v1262_v45 }
  0x56   :  { %822 = vmatpush.bf16.msra.mxu3 %v1279_v51 }
  0x57   :  { %810 = vmatpush.bf16.msra.mxu2 %v1207_v52  ;;  %v1254_v52 = vld [vmem:[%s2127_s3 + $0xa0] sm:$0xf] }
  0x58   :  { %834 = vmatpush.bf16.msrb.mxu0 %v1227_v42  ;;  %v1275_v42 = vor.u32 %v1396_v37, %v1272_v40  ;;  %v1255_v59 = vor.u32 %v1393_v53, %v1254_v52  ;;  %v641_v40 = vld [vmem:[%s2128_s4] sm:$0x3] }
  0x59   :  { %847 = vmatpush.bf16.msrb.mxu1 %v1291_v29  ;;  %v643_v45 = vperm.slane %v641_v40, 0 }
  0x5a   :  { %823 = vmatpush.bf16.msra.mxu3 %v1271_v39 }
  0x5b   :  { %811 = vmatpush.bf16.msra.mxu2 %v1199_v60  ;;  %v1256_v60 = vld [vmem:[%s2127_s3 + $0xa8] sm:$0xf0] }
  0x5c   :  { %835 = vmatpush.bf16.msrb.mxu0 %v1219_v48  ;;  %v1264_v48 = vld [vmem:[%s2127_s3 + $0xb8] sm:$0xf0] }
  0x5d   :  { %848 = vmatpush.bf16.msrb.mxu1 %v1283_v56  ;;  %v1267_v49 = vor.u32 %v1394_v47, %v1264_v48 }
  0x5e   :  { %824 = vmatpush.bf16.msra.mxu3 %v1263_v62 }
  0x5f   :  { %812 = vmatpush.bf16.msra.mxu2 %v1191_v4 }
  0x60   :  { %836 = vmatpush.bf16.msrb.mxu0 %v1211_v54  ;;  %v1392_v54 = vld [vmem:[%s2127_s3 + $0xa4] sm:$0xf] }
  0x61   :  { %849 = vmatpush.bf16.msrb.mxu1 %v1275_v42  ;;  %v1259_v63 = vor.u32 %v1392_v54, %v1256_v60 }
  0x62   :  { %825 = vmatpush.bf16.msra.mxu3 %v1255_v59 }
  0x63   :  { %813 = vmatpush.bf16.msra.mxu2 %v1183_v9 }
  0x64   :  { %837 = vmatpush.bf16.msrb.mxu0 %v1203_v1  ;;  %v1246_v1 = vld [vmem:[%s2127_s3 + $0x90] sm:$0xf] }
  0x65   :  { %850 = vmatpush.bf16.msrb.mxu1 %v1267_v49  ;;  %v1247_v4 = vor.u32 %v1391_v2, %v1246_v1 }
  0x67   :  { %814 = vmatpush.bf16.msra.mxu2 %v1175_v15  ;;  %826 = vmatpush.bf16.msra.mxu3 %v1247_v4  ;;  %v1240_v15 = vld [vmem:[%s2127_s3 + $0x88] sm:$0xf0] }
  0x68   :  { %838 = vmatpush.bf16.msrb.mxu0 %v1195_v5  ;;  %v1248_v5 = vld [vmem:[%s2127_s3 + $0x98] sm:$0xf0]  ;;  %v1243_v17 = vor.u32 %v1388_v12, %v1240_v15 }
  0x69   :  { %851 = vmatpush.bf16.msrb.mxu1 %v1259_v63  ;;  %v1251_v7 = vor.u32 %v1390_v3, %v1248_v5 }
  0x6c   :  { %839 = vmatpush.bf16.msrb.mxu0 %v1187_v11  ;;  %v1389_v11 = vld [vmem:[%s2127_s3 + $0x84] sm:$0xf0] }
  0x6d   :  { %852 = vmatpush.bf16.msrb.mxu1 %v1251_v7  ;;  %v1239_v14 = vor.u32 %v1389_v11, %v1238_v10 }
  0x6f   :  { %827 = vmatpush.bf16.msra.mxu3 %v1239_v14 }
  0x70   :  { %840 = vmatpush.bf16.msrb.mxu0 %v1179_v19 }
  0x71   :  { %853 = vmatpush.bf16.msrb.mxu1 %v1243_v17 }
  0xa0   :  { %v484_v38 = vpop.f32.mrf.mxu0 }
  0xa1   :  { %v497_v41 = vpop.f32.mrf.mxu1  ;;  %v485_v43 = vadd.f32 %v484_v38, %v97_v34 }
  0xa3   :  { %v498_v44 = vadd.f32 %v497_v41, %v485_v43  ;;  %v644_v41 = vperm.slane %v641_v40, 1 }
  0xa8   :  { %v510_v50 = vpop.f32.mrf.mxu2  ;;  %v486_v57 = vpop.f32.mrf.mxu0 }
  0xa9   :  { %v523_v58 = vpop.f32.mrf.mxu3  ;;  %v499_v61 = vpop.f32.mrf.mxu1  ;;  %v511_v0 = vadd.f32 %v510_v50, %v498_v44 }
  0xab   :  { %v524_v6 = vadd.f32 %v523_v58, %v511_v0 }
  0xb0   :  { %v512_v8 = vpop.f32.mrf.mxu2  ;;  %v536_v13 = vpop.f32.mrf.mxu0 }
  0xb1   :  { %v525_v9 = vpop.f32.mrf.mxu3  ;;  %v537_v16 = vadd.f32 %v536_v13, %v524_v6 }
  0xb3   :  { %v605_v18 = vmax.f32 %v537_v16, 0.0 }
  0xb5   :  { %v607_v19 = vpack.c.bf16 %v605_v18, %v605_v18 }
  0xb7   :  { %815 = vmatmul.bf16.vlgmr.msra.gmra.mxu2 %v607_v19  ;;  %841 = vmatmul.bf16.vlgmr.msrb.gmra.mxu0 %v607_v19 }
  0xb8   :  { %v538_v20 = vpop.f32.mrf.mxu0 }
  0xc1   :  { %v549_v21 = vpop.f32.mrf.mxu1 }
  0xc2   :  { %v550_v23 = vadd.f32 %v549_v21, %v98_v22 }
  0xc8   :  { %v562_v24 = vpop.f32.mrf.mxu2 }
  0xc9   :  { %v575_v25 = vpop.f32.mrf.mxu3  ;;  %v563_v26 = vadd.f32 %v562_v24, %v550_v23  ;;  %v551_v27 = vpop.f32.mrf.mxu1 }
  0xcb   :  { %v576_v28 = vadd.f32 %v575_v25, %v563_v26 }
  0xd0   :  { %v588_v29 = vpop.f32.mrf.mxu0  ;;  %v564_v32 = vpop.f32.mrf.mxu2 }
  0xd1   :  { %v589_v31 = vadd.f32 %v588_v29, %v576_v28  ;;  %v577_v33 = vpop.f32.mrf.mxu3  ;;  %v601_v51 = vpop.f32.mrf.mxu1 }
  0xd3   :  { %v602_v55 = vadd.f32 %v601_v51, %v589_v31 }
  0xd5   :  { %v606_v34 = vmax.f32 %v602_v55, 0.0 }
  0xd7   :  { %v608_v56 = vpack.c.bf16 %v606_v34, %v606_v34 }
  0xd8   :  { %v590_v35 = vpop.f32.mrf.mxu0 }
  0xd9   :  { %828 = vmatmul.bf16.vlgmr.msra.gmra.mxu3 %v608_v56  ;;  %854 = vmatmul.bf16.vlgmr.msrb.gmra.mxu1 %v608_v56  ;;  %v603_v36 = vpop.f32.mrf.mxu1 }
 0x134   :  { %v842_v37 = vpop.f32.mrf.mxu0 }
 0x135   :  { %v843_v43 = vadd.f32 %v842_v37, %v644_v41 }
 0x13a   :  { %v816_v30 = vpop.f32.mrf.mxu2 }
 0x13b   :  { %v817_v47 = vadd.f32 %v816_v30, %v643_v45 }
 0x13c   :  { %v844_v38 = vpop.f32.mrf.mxu0 }
 0x142   :  { %v818_v39 = vpop.f32.mrf.mxu2 }
 0x156   :  { %v855_v42 = vpop.f32.mrf.mxu1 }
 0x157   :  { %v856_v46 = vadd.f32 %v855_v42, %v843_v43 }
 0x159   :  { %v861_v48 = vrot.slane %v856_v46, 6 }
 0x15c   :  { %v829_v62 = vpop.f32.mrf.mxu3 }
 0x15d   :  { %v830_v44 = vadd.f32 %v829_v62, %v817_v47 }
 0x15e   :  { %v857_v49 = vpop.f32.mrf.mxu1 }
 0x15f   :  { %v863_v50 = vsel %vm862_vm1, %v830_v44, %v861_v48 }
 0x160   :  { %865 = vst [vmem:[#allocation2] sm:$0xf] %v863_v50 }
 0x161   :  { %876 = dma.vmem_to_hbm [thread:$0]  %s872_s22, 64, %s874_s25, [#allocation3]  }
 0x164   :  { %v831_v52 = vpop.f32.mrf.mxu3 }
 0x165   :  { %1429 = dma.done.wait [#allocation3], 64  }
 0x166   :  { %1430 = vsyncadd [#allocation3], 4294967232 }
 0x167   :  { %881 = vsyncpa [#allocation3], 1 }

// kernel: vgg16_feature_extractor.2
= control target key start
LH: loop header
LB: loop body
LE: loop exit
PB: predicated region body
PF: predicated region fallthrough
CT: control target
= control target key end

     0   :  { %s12176_s6 = smov 1   ;;  %s12177_s10 = smov 2   ;;  %s15468_s0 = inlined_call_operand.smem [shape: u32[46], index: -1, kind: input, shape index: {}] }
   0x1   :  { %s12262_s5 = sld [smem:[%s15468_s0]]   ;;  %s12178_s14 = smov 3  }
   0x2   :  { %s12267_s9 = sld [smem:[%s15468_s0 + %s12176_s6]]   ;;  %s12179_s18 = smov 4  }
   0x3   :  { %s12272_s13 = sld [smem:[%s15468_s0 + %s12177_s10]]   ;;  %s12180_s22 = smov 5  }
   0x4   :  { %s12277_s17 = sld [smem:[%s15468_s0 + %s12178_s14]]   ;;  %s12181_s26 = smov 6  }
   0x5   :  { %s12282_s21 = sld [smem:[%s15468_s0 + %s12179_s18]]   ;;  %s12182_s30 = smov 7  }
   0x6   :  { %s12287_s25 = sld [smem:[%s15468_s0 + %s12180_s22]]   ;;  %s12183_s4 = smov 8  }
   0x7   :  { %15542 = sst [smem:[#allocation2_spill]] %s12262_s5  ;;  %s12184_s10 = smov 9  }
   0x8   :  { %15543 = sst [smem:[#allocation3_spill]] %s12267_s9  ;;  %s12185_s15 = smov 10  }
   0x9   :  { %15544 = sst [smem:[#allocation4_spill]] %s12272_s13  ;;  %s12186_s20 = smov 11  }
   0xa   :  { %s12292_s29 = sld [smem:[%s15468_s0 + %s12181_s26]]   ;;  %s12187_s26 = smov 12  }
   0xb   :  { %s12297_s3 = sld [smem:[%s15468_s0 + %s12182_s30]]   ;;  %s12188_s1 = smov 13  }
   0xc   :  { %s12302_s8 = sld [smem:[%s15468_s0 + %s12183_s4]]   ;;  %s12189_s7 = smov 14  }
   0xd   :  { %s12307_s14 = sld [smem:[%s15468_s0 + %s12184_s10]]   ;;  %s12191_s22 = smov 16  }
   0xe   :  { %s12312_s19 = sld [smem:[%s15468_s0 + %s12185_s15]]   ;;  %s12190_s15 = smov 15  }
   0xf   :  { %s12317_s24 = sld [smem:[%s15468_s0 + %s12186_s20]]   ;;  %s12192_s28 = smov 17  }
  0x10   :  { %s12322_s30 = sld [smem:[%s15468_s0 + %s12187_s26]]  }
  0x11   :  { %15545 = sst [smem:[#allocation5_spill]] %s12297_s3 }
  0x12   :  { %15546 = sst [smem:[#allocation6_spill]] %s12302_s8 }
  0x13   :  { %15547 = sst [smem:[#allocation7_spill]] %s12307_s14 }
  0x14   :  { %s12327_s6 = sld [smem:[%s15468_s0 + %s12188_s1]]  }
  0x15   :  { %s12332_s12 = sld [smem:[%s15468_s0 + %s12189_s7]]   ;;  %s12193_s7 = smov 18  }
  0x16   :  { %s12337_s20 = sld [smem:[%s15468_s0 + %s12190_s15]]   ;;  %s12194_s15 = smov 19  }
  0x17   :  { %s12342_s27 = sld [smem:[%s15468_s0 + %s12191_s22]]   ;;  %s12195_s22 = smov 20  }
  0x18   :  { %s12347_s4 = sld [smem:[%s15468_s0 + %s12192_s28]]   ;;  %s12196_s28 = smov 21  }
  0x1a   :  { %15548 = sst [smem:[#allocation8_spill]] %s12327_s6 }
  0x1b   :  { %15549 = sst [smem:[#allocation9_spill]] %s12332_s12 }
  0x1c   :  { %15550 = sst [smem:[#allocation10_spill]] %s12337_s20 }
  0x1d   :  { %15551 = sst [smem:[#allocation11_spill]] %s12342_s27 }
  0x1e   :  { %15552 = sst [smem:[#allocation12_spill]] %s12347_s4 }
  0x1f   :  { %s12352_s12 = sld [smem:[%s15468_s0 + %s12193_s7]]   ;;  %s12197_s7 = smov 22  }
  0x20   :  { %s12357_s20 = sld [smem:[%s15468_s0 + %s12194_s15]]   ;;  %s12198_s15 = smov 23  }
  0x21   :  { %s12362_s27 = sld [smem:[%s15468_s0 + %s12195_s22]]   ;;  %s12199_s22 = smov 24  }
  0x22   :  { %s12367_s4 = sld [smem:[%s15468_s0 + %s12196_s28]]   ;;  %s12200_s28 = smov 25  }
  0x25   :  { %15553 = sst [smem:[#allocation13_spill]] %s12352_s12 }
  0x26   :  { %15554 = sst [smem:[#allocation14_spill]] %s12357_s20 }
  0x27   :  { %15555 = sst [smem:[#allocation15_spill]] %s12362_s27 }
  0x28   :  { %15556 = sst [smem:[#allocation16_spill]] %s12367_s4 }
  0x29   :  { %s12372_s12 = sld [smem:[%s15468_s0 + %s12197_s7]]   ;;  %s12201_s7 = smov 26  }
  0x2a   :  { %s12377_s20 = sld [smem:[%s15468_s0 + %s12198_s15]]   ;;  %s12202_s15 = smov 27  }
  0x2b   :  { %s12382_s27 = sld [smem:[%s15468_s0 + %s12199_s22]]   ;;  %s12203_s22 = smov 28  }
  0x2c   :  { %s12387_s4 = sld [smem:[%s15468_s0 + %s12200_s28]]   ;;  %s12204_s28 = smov 29  }
  0x2f   :  { %15557 = sst [smem:[#allocation17_spill]] %s12372_s12 }
  0x30   :  { %15558 = sst [smem:[#allocation18_spill]] %s12377_s20 }
  0x31   :  { %15559 = sst [smem:[#allocation19_spill]] %s12382_s27 }
  0x32   :  { %15560 = sst [smem:[#allocation20_spill]] %s12387_s4 }
  0x33   :  { %s12392_s12 = sld [smem:[%s15468_s0 + %s12201_s7]]   ;;  %s12205_s7 = smov 30  }
  0x34   :  { %s12397_s20 = sld [smem:[%s15468_s0 + %s12202_s15]]   ;;  %s12206_s15 = smov 31  }
  0x35   :  { %s12402_s27 = sld [smem:[%s15468_s0 + %s12203_s22]]   ;;  %s12207_s22 = smov 32  }
  0x36   :  { %s12407_s4 = sld [smem:[%s15468_s0 + %s12204_s28]]   ;;  %s12208_s28 = smov 33  }
  0x39   :  { %15561 = sst [smem:[#allocation21_spill]] %s12392_s12 }
  0x3a   :  { %15562 = sst [smem:[#allocation22_spill]] %s12397_s20 }
  0x3b   :  { %15563 = sst [smem:[#allocation23_spill]] %s12402_s27 }
  0x3c   :  { %15564 = sst [smem:[#allocation24_spill]] %s12407_s4 }
  0x3d   :  { %s12412_s12 = sld [smem:[%s15468_s0 + %s12205_s7]]   ;;  %s12209_s7 = smov 34  }
  0x3e   :  { %s12417_s20 = sld [smem:[%s15468_s0 + %s12206_s15]]   ;;  %s12210_s15 = smov 35  }
  0x3f   :  { %s12422_s27 = sld [smem:[%s15468_s0 + %s12207_s22]]   ;;  %s12211_s22 = smov 36  }
  0x40   :  { %s12427_s4 = sld [smem:[%s15468_s0 + %s12208_s28]]   ;;  %s12212_s28 = smov 37  }
  0x43   :  { %15565 = sst [smem:[#allocation25_spill]] %s12412_s12 }
  0x44   :  { %15566 = sst [smem:[#allocation26_spill]] %s12417_s20 }
  0x45   :  { %15567 = sst [smem:[#allocation27_spill]] %s12422_s27 }
  0x46   :  { %15568 = sst [smem:[#allocation28_spill]] %s12427_s4 }
  0x47   :  { %s12432_s12 = sld [smem:[%s15468_s0 + %s12209_s7]]   ;;  %s12213_s7 = smov 38  }
  0x48   :  { %s12437_s20 = sld [smem:[%s15468_s0 + %s12210_s15]]   ;;  %s12214_s15 = smov 39  }
  0x49   :  { %s12442_s27 = sld [smem:[%s15468_s0 + %s12211_s22]]   ;;  %s12215_s22 = smov 40  }
  0x4a   :  { %s12447_s4 = sld [smem:[%s15468_s0 + %s12212_s28]]   ;;  %s12216_s28 = smov 41  }
  0x4d   :  { %15569 = sst [smem:[#allocation29_spill]] %s12432_s12 }
  0x4e   :  { %15570 = sst [smem:[#allocation30_spill]] %s12437_s20 }
  0x4f   :  { %15571 = sst [smem:[#allocation31_spill]] %s12442_s27 }
  0x50   :  { %15572 = sst [smem:[#allocation32_spill]] %s12447_s4 }
  0x51   :  { %s12452_s12 = sld [smem:[%s15468_s0 + %s12213_s7]]   ;;  %s12217_s7 = smov 42  }
  0x52   :  { %s12457_s20 = sld [smem:[%s15468_s0 + %s12214_s15]]   ;;  %s12218_s15 = smov 43  }
  0x53   :  { %s12462_s27 = sld [smem:[%s15468_s0 + %s12215_s22]]   ;;  %s12219_s22 = smov 44  }
  0x54   :  { %s12467_s4 = sld [smem:[%s15468_s0 + %s12216_s28]]   ;;  %s12220_s28 = smov 45  }
  0x57   :  { %15573 = sst [smem:[#allocation33_spill]] %s12452_s12 }
  0x58   :  { %15574 = sst [smem:[#allocation34_spill]] %s12457_s20 }
  0x59   :  { %15575 = sst [smem:[#allocation35_spill]] %s12462_s27 }
  0x5a   :  { %15576 = sst [smem:[#allocation36_spill]] %s12467_s4 }
  0x5b   :  { %s12472_s12 = sld [smem:[%s15468_s0 + %s12217_s7]]   ;;  %s12489_s7 = smov 0  }
  0x5c   :  { %s12477_s20 = sld [smem:[%s15468_s0 + %s12218_s15]]  }
  0x5d   :  { %s12482_s27 = sld [smem:[%s15468_s0 + %s12219_s22]]  }
  0x5e   :  { %s12487_s4 = sld [smem:[%s15468_s0 + %s12220_s28]]  }
  0x5f LB: > { %s15577_s14 = sld [smem:[#allocation7_spill]]  ;;  %s9834_s10 = sadd.s32 4294967295, %s12174_s7   ;;  %s12174_s7 = sphi %s12489_s7, %s101_s7  }
  0x60   : > { %s15578_s13 = sld [smem:[#allocation4_spill]]  ;;  %p9838_p0 = scmp.ge.s32.totalorder %s12174_s7, 1 }
  0x61   : > { %s15579_s9 = sld [smem:[#allocation3_spill]]  ;;  %p1233_p1 = scmp.lt.s32.totalorder %s12174_s7, 3 }
  0x62   : > { %s15580_s8 = sld [smem:[#allocation6_spill]] }
  0x63   : > { %s15581_s3 = sld [smem:[#allocation5_spill]]  ;;  %p1234_p2 = pnand %p9838_p0, %p1233_p1 }
  0x64   : > { %p1341_p3 = scmp.lt.s32.totalorder (!%p1234_p2), %s9834_s10, 1  ;;  %s15582_s5 = sld [smem:[#allocation2_spill]] (!%p1234_p2) }
  0x65   : > { %1237 = sbr.rel (%p1234_p2) target bundleno = 8458 (0x210a), region = 200  ;;  %s12221_s15 = smov (!%p1234_p2), 92  }
  0x66   : > { %s12222_s16 = smov (!%p1234_p2), 60   ;;  %s12223_s18 = smov (!%p1234_p2), 59  }
  0x67   : > { %s12224_s22 = smov (!%p1234_p2), 93   ;;  %s12225_s23 = smov (!%p1234_p2), 58  }
  0x68   : > { %s12226_s26 = smov (!%p1234_p2), 94   ;;  %s15501_s28 = smov (!%p1234_p2), 126  }
  0x69   : > { %s15499_s1 = smov (!%p1234_p2), 127   ;;  %s12230_s2 = smov (!%p1234_p2), 35  }
  0x6a   : > { %s15632_s10 = smov (!%p1341_p3, %s9834_s10), 1  ;;  %vm1656_vm0 = vcmask 482304   ;;  %vm1695_vm1 = vcmask 474112   ;;  %vm1617_vm2 = vcmask 490496   ;;  %vm1576_vm3 = vcmask 752640   ;;  %s15583_s6 = sld [smem:[#allocation8_spill]] }
  0x6b   : > { %s11837_s0 = smul.u32 80, %s15632_s10  ;;  %v11463_v51 = vld [vmem:[%s15579_s9 + $0x4] sm:$0xf]  ;;  %v9886_v52 = vld [vmem:[%s15579_s9 + $0x8] sm:$0xf0]  ;;  %vm1733_vm4 = vcmask 130048  }
  0x6c   : > { %v12689_v53 = vor.u32 %v11463_v51, %v9886_v52  ;;  %vm1540_vm5 = vcmask 760832   ;;  %vm1504_vm6 = vcmask 769024   ;;  %vm1468_vm7 = vcmask 1031168   ;;  %v1364_v52 = vld [vmem:[%s15578_s13] sm:$0xff] }
  0x6d   : > { %s12501_s11 = scalar_lea.vmem %s15582_s5, %s11837_s0  ;;  %vm1432_vm8 = vcmask 1039360   ;;  %v12229_v51 = vmov 0   ;;  %vm2110_vm9 = vcmask 285696   ;;  %vm2131_vm10 = vcmask 793600   ;;  %s12231_s0 = smov 91  }
  0x6e   : > { %v9852_v0 = vld [vmem:[%s12501_s11 + $0x8] sm:$0xf]  ;;  %v11459_v1 = vld [vmem:[%s12501_s11 + $0x2c] sm:$0xf0]  ;;  %v11454_v3 = vld [vmem:[%s12501_s11 + $0xc] sm:$0xf]  ;;  %11925 = vset.pattern.permute.xlu1 %v12229_v51  ;;  %11924 = vset.pattern.permute.xlu0 %v12229_v51 }
  0x6f   : > { %v12505_v2 = vor.u32 %v11459_v1, %v9852_v0  ;;  %v9854_v4 = vld [vmem:[%s12501_s11 + $0x30] sm:$0xf0]  ;;  %v9844_v6 = vld [vmem:[%s12501_s11] sm:$0xf]  ;;  %v11458_v7 = vld [vmem:[%s12501_s11 + $0x24] sm:$0xf0]  ;;  %12026 = vset.pattern.permute.xlu2 %v12229_v51 }
  0x70   : > { %v12515_v5 = vor.u32 %v11454_v3, %v9854_v4  ;;  %v12525_v8 = vor.u32 %v11458_v7, %v9844_v6  ;;  %v11453_v9 = vld [vmem:[%s12501_s11 + $0x4] sm:$0xf]  ;;  %v9846_v10 = vld [vmem:[%s12501_s11 + $0x28] sm:$0xf0]  ;;  %v9860_v12 = vld [vmem:[%s12501_s11 + $0x10] sm:$0xf] }
  0x71   : > { %1562 = vrot.lane.b32.xlu2 %v12505_v2, %s12221_s15  ;;  %1601 = vrot.lane.b32.xlu1 %v12505_v2, %s12222_s16  ;;  %v12535_v11 = vor.u32 %v11453_v9, %v9846_v10  ;;  %v11460_v13 = vld [vmem:[%s12501_s11 + $0x34] sm:$0xf0]  ;;  %v11455_v15 = vld [vmem:[%s12501_s11 + $0x14] sm:$0xf]  ;;  %vm9907_vm11 = vmneg %vm2110_vm9  ;;  %vm4555_vm12 = vcmask 1040384   ;;  %vm5045_vm13 = vcmask 744448  }
  0x72   : > { %1640 = vrot.lane.b32.xlu0 %v12505_v2, %s12223_s18  ;;  %v12569_v14 = vor.u32 %v11460_v13, %v9860_v12  ;;  %v9862_v16 = vld [vmem:[%s12501_s11 + $0x38] sm:$0xf0]  ;;  %v9868_v21 = vld [vmem:[%s12501_s11 + $0x18] sm:$0xf]  ;;  %v11461_v22 = vld [vmem:[%s12501_s11 + $0x3c] sm:$0xf0] }
  0x73   : > { %v12599_v18 = vor.u32 %v11455_v15, %v9862_v16  ;;  %v12617_v23 = vor.u32 %v11461_v22, %v9868_v21  ;;  %v11456_v28 = vld [vmem:[%s12501_s11 + $0x1c] sm:$0xf]  ;;  %v9870_v29 = vld [vmem:[%s12501_s11 + $0x40] sm:$0xf0]  ;;  %v9876_v37 = vld [vmem:[%s12501_s11 + $0x20] sm:$0xf] }
  0x74   : > { %v12640_v33 = vor.u32 %v11456_v28, %v9870_v29  ;;  %v11462_v38 = vld [vmem:[%s12501_s11 + $0x44] sm:$0xf0]  ;;  %v11457_v56 = vld [vmem:[%s12501_s11 + $0x24] sm:$0xf]  ;;  %v9878_v57 = vld [vmem:[%s12501_s11 + $0x48] sm:$0xf0] }
  0x75   : > { %v12666_v44 = vor.u32 %v11462_v38, %v9876_v37  ;;  %v9881_v62 = vor.u32 %v11457_v56, %v9878_v57  ;;  %v9884_v16 = vld [vmem:[%s15579_s9] sm:$0xf]  ;;  %s15503_s11 = smov 108   ;;  %vm5022_vm14 = vcmask 883712   ;;  %vm5010_vm15 = vcmask 891904   ;;  %s15599_s5 = smov 116  }
  0x79   : > { %1564 = vrot.lane.b32.xlu2 %v12515_v5, %s12221_s15  ;;  %1603 = vrot.lane.b32.xlu1 %v12515_v5, %s12222_s16 }
  0x7a   : > { %1642 = vrot.lane.b32.xlu0 %v12515_v5, %s12223_s18 }
  0x81   : > { %1528 = vrot.lane.b32.xlu1 %v12515_v5, %s12224_s22  ;;  %1675 = vrot.lane.b32.xlu2 %v12525_v8, %s12225_s23 }
  0x82   : > { %1526 = vrot.lane.b32.xlu0 %v12505_v2, %s12224_s22 }
  0x89   : > { %1636 = vrot.lane.b32.xlu1 %v12525_v8, %s12223_s18  ;;  %1638 = vrot.lane.b32.xlu2 %v12535_v11, %s12223_s18 }
  0x8a   : > { %1677 = vrot.lane.b32.xlu0 %v12535_v11, %s12225_s23 }
  0x91   : > { %1492 = vrot.lane.b32.xlu1 %v12515_v5, %s12226_s26  ;;  %1597 = vrot.lane.b32.xlu2 %v12525_v8, %s12222_s16 }
  0x92   : > { %1490 = vrot.lane.b32.xlu0 %v12505_v2, %s12226_s26 }
  0x99   : > { %1454 = vrot.lane.b32.xlu1 %v12505_v2, %s15501_s28  ;;  %1456 = vrot.lane.b32.xlu2 %v12515_v5, %s15501_s28 }
  0x9a   : > { %1599 = vrot.lane.b32.xlu0 %v12535_v11, %s12222_s16 }
  0xa1   : > { %1560 = vrot.lane.b32.xlu1 %v12535_v11, %s12221_s15  ;;  %1679 = vrot.lane.b32.xlu2 %v12505_v2, %s12225_s23 }
  0xa2   : > { %1558 = vrot.lane.b32.xlu0 %v12525_v8, %s12221_s15 }
  0xa9   : > { %1420 = vrot.lane.b32.xlu1 %v12515_v5, %s15499_s1  ;;  %1522 = vrot.lane.b32.xlu2 %v12525_v8, %s12224_s22 }
  0xaa   : > { %1418 = vrot.lane.b32.xlu0 %v12505_v2, %s15499_s1 }
  0xb1   : > { %1644 = vrot.lane.b32.xlu1 %v12569_v14, %s12223_s18  ;;  %1486 = vrot.lane.b32.xlu2 %v12525_v8, %s12226_s26 }
  0xb2   : > { %1524 = vrot.lane.b32.xlu0 %v12535_v11, %s12224_s22 }
  0xb9   : > { %1605 = vrot.lane.b32.xlu1 %v12569_v14, %s12222_s16  ;;  %1450 = vrot.lane.b32.xlu2 %v12525_v8, %s15501_s28 }
  0xba   : > { %1488 = vrot.lane.b32.xlu0 %v12535_v11, %s12226_s26 }
  0xc1   : > { %1566 = vrot.lane.b32.xlu1 %v12569_v14, %s12221_s15  ;;  %1414 = vrot.lane.b32.xlu2 %v12525_v8, %s15499_s1 }
  0xc2   : > { %1452 = vrot.lane.b32.xlu0 %v12535_v11, %s15501_s28 }
  0xc9   : > { %1530 = vrot.lane.b32.xlu1 %v12569_v14, %s12224_s22  ;;  %1681 = vrot.lane.b32.xlu2 %v12515_v5, %s12225_s23 }
  0xca   : > { %1416 = vrot.lane.b32.xlu0 %v12535_v11, %s15499_s1 }
  0xcb   : > { %v12597_v17 = vpop.permute.xlu2 %1562 }
  0xd1   : > { %1494 = vrot.lane.b32.xlu1 %v12569_v14, %s12226_s26  ;;  %1607 = vrot.lane.b32.xlu2 %v12599_v18, %s12222_s16 }
  0xd2   : > { %1646 = vrot.lane.b32.xlu0 %v12599_v18, %s12223_s18 }
  0xd3   : > { %v12607_v19 = vpop.permute.xlu2 %1564 }
  0xd4   : > { %v1579_v54 = vsel %vm1576_vm3, %v12597_v17, %v12607_v19 }
  0xd9   : > { %1685 = vrot.lane.b32.xlu1 %v12599_v18, %s12225_s23  ;;  %1458 = vrot.lane.b32.xlu2 %v12569_v14, %s15501_s28 }
  0xda   : > { %1683 = vrot.lane.b32.xlu0 %v12569_v14, %s12225_s23 }
  0xdb   : > { %v1676_v20 = vpop.permute.xlu2 %1675 }
  0xe1   : > { %1568 = vrot.lane.b32.xlu1 %v12599_v18, %s12221_s15  ;;  %1422 = vrot.lane.b32.xlu2 %v12569_v14, %s15499_s1 }
  0xe2   : > { %1648 = vrot.lane.b32.xlu0 %v12617_v23, %s12223_s18 }
  0xe3   : > { %v12625_v24 = vpop.permute.xlu1 %1601  ;;  %v1639_v25 = vpop.permute.xlu2 %1638 }
  0xe4   : > { %v1641_v26 = vpop.permute.xlu0 %1640 }
  0xe5   : > { %v1658_v27 = vsel %vm1656_vm0, %v1639_v25, %v1641_v26 }
  0xe6   : > { %1765 = vmatpush.bf16.msra.mxu2 %v1658_v27 }
  0xe9   : > { %1532 = vrot.lane.b32.xlu1 %v12599_v18, %s12224_s22  ;;  %1570 = vrot.lane.b32.xlu2 %v12617_v23, %s12221_s15 }
  0xea   : > { %1609 = vrot.lane.b32.xlu0 %v12617_v23, %s12222_s16 }
  0xeb   : > { %v12636_v30 = vpop.permute.xlu1 %1603  ;;  %v1598_v31 = vpop.permute.xlu2 %1597 }
  0xec   : > { %v12638_v32 = vpop.permute.xlu0 %1642  ;;  %v1620_v47 = vsel %vm1617_vm2, %v12625_v24, %v12636_v30 }
  0xed   : > { %v1659_v46 = vsel %vm1656_vm0, %v1641_v26, %v12638_v32 }
  0xf1   : > { %1650 = vrot.lane.b32.xlu1 %v12640_v33, %s12223_s18  ;;  %1534 = vrot.lane.b32.xlu2 %v12617_v23, %s12224_s22 }
  0xf2   : > { %1496 = vrot.lane.b32.xlu0 %v12599_v18, %s12226_s26 }
  0xf3   : > { %v12648_v34 = vpop.permute.xlu1 %1528  ;;  %v12650_v35 = vpop.permute.xlu2 %1456 }
  0xf4   : > { %v12652_v36 = vpop.permute.xlu0 %1526 }
  0xf5   : > { %v1543_v55 = vsel %vm1540_vm5, %v12652_v36, %v12648_v34 }
  0xf9   : > { %1687 = vrot.lane.b32.xlu1 %v12617_v23, %s12225_s23  ;;  %1611 = vrot.lane.b32.xlu2 %v12640_v33, %s12222_s16 }
  0xfa   : > { %1460 = vrot.lane.b32.xlu0 %v12599_v18, %s15501_s28 }
  0xfb   : > { %v1637_v39 = vpop.permute.xlu1 %1636  ;;  %v12662_v40 = vpop.permute.xlu2 %1679 }
  0xfc   : > { %v1678_v41 = vpop.permute.xlu0 %1677  ;;  %v1657_v42 = vsel %vm1656_vm0, %v1637_v39, %v1639_v25 }
  0xfd   : > { %1737 = vmatpush.bf16.msra.mxu0 %v1657_v42  ;;  %v1696_v43 = vsel %vm1695_vm1, %v1676_v20, %v1678_v41  ;;  %v1697_v45 = vsel %vm1695_vm1, %v1678_v41, %v12662_v40 }
  0xfe   : > { %1758 = vmatpush.bf16.msra.mxu1 %v1696_v43  ;;  %1786 = vmatpush.bf16.msra.mxu3 %v1697_v45 }
 0x101   : > { %1424 = vrot.lane.b32.xlu1 %v12599_v18, %s15499_s1  ;;  %1652 = vrot.lane.b32.xlu2 %v12666_v44, %s12223_s18 }
 0x102   : > { %1793 = vmatpush.bf16.msrb.mxu1 %v1659_v46  ;;  %1498 = vrot.lane.b32.xlu0 %v12617_v23, %s12226_s26 }
 0x103   : > { %v12681_v48 = vpop.permute.xlu1 %1492  ;;  %v12683_v49 = vpop.permute.xlu2 %1522  ;;  %9891 = vmatmul.msk.bf16.vlgmr.msra.gmra.mxu3 %vm1733_vm4, %v12689_v53  ;;  %9890 = vmatmul.msk.bf16.vlgmr.msra.gmra.mxu1 %vm1733_vm4, %v12689_v53 }
 0x104   : > { %v12685_v50 = vpop.permute.xlu0 %1490 }
 0x105   : > { %v1507_v0 = vsel %vm1504_vm6, %v12685_v50, %v12681_v48 }
 0x106   : > { %1794 = vmatpush.bf16.msrb.mxu1 %v1620_v47 }
 0x109   : > { %1462 = vrot.lane.b32.xlu1 %v12617_v23, %s15501_s28  ;;  %1613 = vrot.lane.b32.xlu2 %v12666_v44, %s12222_s16 }
 0x10a   : > { %1795 = vmatpush.bf16.msrb.mxu1 %v1579_v54  ;;  %1572 = vrot.lane.b32.xlu0 %v12640_v33, %s12221_s15 }
 0x10b   : > { %v12709_v58 = vpop.permute.xlu1 %1454  ;;  %v1487_v59 = vpop.permute.xlu2 %1486 }
 0x10c   : > { %v1600_v60 = vpop.permute.xlu0 %1599  ;;  %v1471_v1 = vsel %vm1468_vm7, %v12709_v58, %v12650_v35 }
 0x10d   : > { %v1619_v61 = vsel %vm1617_vm2, %v1600_v60, %v12625_v24  ;;  %v1618_v63 = vsel %vm1617_vm2, %v1598_v31, %v1600_v60 }
 0x10e   : > { %1796 = vmatpush.bf16.msrb.mxu1 %v1543_v55  ;;  %1766 = vmatpush.bf16.msra.mxu2 %v1619_v61 }
 0x10f   : > { %1738 = vmatpush.bf16.msra.mxu0 %v1618_v63 }
 0x111   : > { %1426 = vrot.lane.b32.xlu1 %v12617_v23, %s15499_s1  ;;  %1654 = vrot.lane.b32.xlu2 %v9881_v62, %s12223_s18 }
 0x112   : > { %1797 = vmatpush.bf16.msrb.mxu1 %v1507_v0  ;;  %1536 = vrot.lane.b32.xlu0 %v12640_v33, %s12224_s22 }
 0x113   : > { %v1561_v3 = vpop.permute.xlu1 %1560  ;;  %v1451_v4 = vpop.permute.xlu2 %1450 }
 0x114   : > { %v1559_v6 = vpop.permute.xlu0 %1558  ;;  %v1578_v7 = vsel %vm1576_vm3, %v1561_v3, %v12597_v17  ;;  %v11464_v17 = vld [vmem:[%s15579_s9 + $0x4] sm:$0xf0]  ;;  %s15610_s9 = smov 120  }
 0x115   : > { %v1577_v9 = vsel %vm1576_vm3, %v1559_v6, %v1561_v3  ;;  %1767 = vmatpush.bf16.msra.mxu2 %v1578_v7  ;;  %v12750_v22 = vor.u32 %v11464_v17, %v9884_v16 }
 0x116   : > { %1798 = vmatpush.bf16.msrb.mxu1 %v1471_v1  ;;  %1739 = vmatpush.bf16.msra.mxu0 %v1577_v9 }
 0x119   : > { %1500 = vrot.lane.b32.xlu1 %v12640_v33, %s12226_s26  ;;  %1615 = vrot.lane.b32.xlu2 %v9881_v62, %s12222_s16 }
 0x11a   : > { %1574 = vrot.lane.b32.xlu0 %v12666_v44, %s12221_s15 }
 0x11b   : > { %v12733_v10 = vpop.permute.xlu1 %1420  ;;  %v1415_v12 = vpop.permute.xlu2 %1414 }
 0x11c   : > { %v1419_v13 = vpop.permute.xlu0 %1418 }
 0x11d   : > { %v1435_v15 = vsel %vm1432_vm8, %v1419_v13, %v12733_v10 }
 0x11e   : > { %1799 = vmatpush.bf16.msrb.mxu1 %v1435_v15 }
 0x121   : > { %1689 = vrot.lane.b32.xlu1 %v12640_v33, %s12225_s23  ;;  %1464 = vrot.lane.b32.xlu2 %v12640_v33, %s15501_s28 }
 0x122   : > { %1538 = vrot.lane.b32.xlu0 %v12666_v44, %s12224_s22  ;;  %1800 = vmatpush.bf16.msrb.mxu1 %v12505_v2 }
 0x123   : > { %v12746_v20 = vpop.permute.xlu1 %1644  ;;  %v12748_v21 = vpop.permute.xlu2 %1681 }
 0x124   : > { %v1525_v24 = vpop.permute.xlu0 %1524  ;;  %v1698_v25 = vsel %vm1695_vm1, %v12662_v40, %v12748_v21  ;;  %v1660_v26 = vsel %vm1656_vm0, %v12638_v32, %v12746_v20 }
 0x125   : > { %v1542_v27 = vsel %vm1540_vm5, %v1525_v24, %v12652_v36  ;;  %1814 = vmatpush.bf16.msrb.mxu3 %v1698_v25  ;;  %v1541_v2 = vsel %vm1540_vm5, %v12683_v49, %v1525_v24  ;;  %1801 = vmatmul.bf16.vlgmr.msrb.gmra.mxu1 %v12750_v22  ;;  %v1365_v49 = vld [vmem:[%s15578_s13 + $0x8] sm:$0xff]  ;;  %s15612_s13 = smov 114  }
 0x126   : > { %1768 = vmatpush.bf16.msra.mxu2 %v1542_v27  ;;  %1740 = vmatpush.bf16.msra.mxu0 %v1541_v2 }
 0x128   : > { %9892 = vmatmul.msk.bf16.vlgmr.msrb.gmra.mxu3 %vm1733_vm4, %v12689_v53 }
 0x129   : > { %1821 = vmatpush.bf16.msra.mxu3 %v1660_v26  ;;  %1428 = vrot.lane.b32.xlu1 %v12640_v33, %s15499_s1 }
 0x12a   : > { %1466 = vrot.lane.b32.xlu2 %v12666_v44, %s15501_s28  ;;  %1502 = vrot.lane.b32.xlu0 %v12666_v44, %s12226_s26 }
 0x12b   : > { %v1606_v28 = vpop.permute.xlu1 %1605  ;;  %v12771_v29 = vpop.permute.xlu2 %1607 }
 0x12c   : > { %v1489_v31 = vpop.permute.xlu0 %1488  ;;  %v1621_v32 = vsel %vm1617_vm2, %v12636_v30, %v1606_v28 }
 0x12d   : > { %v1506_v36 = vsel %vm1504_vm6, %v1489_v31, %v12685_v50  ;;  %1822 = vmatpush.bf16.msra.mxu3 %v1621_v32  ;;  %v1505_v37 = vsel %vm1504_vm6, %v1487_v59, %v1489_v31 }
 0x12e   : > { %1769 = vmatpush.bf16.msra.mxu2 %v1506_v36  ;;  %1741 = vmatpush.bf16.msra.mxu0 %v1505_v37 }
 0x131   : > { %1691 = vrot.lane.b32.xlu1 %v12666_v44, %s12225_s23 }
 0x132   : > { %1693 = vrot.lane.b32.xlu2 %v9881_v62, %s12225_s23  ;;  %1430 = vrot.lane.b32.xlu0 %v12666_v44, %s15499_s1 }
 0x133   : > { %v1567_v38 = vpop.permute.xlu1 %1566  ;;  %v12783_v39 = vpop.permute.xlu2 %1458 }
 0x134   : > { %v1453_v30 = vpop.permute.xlu0 %1452  ;;  %v1580_v40 = vsel %vm1576_vm3, %v12607_v19, %v1567_v38 }
 0x135   : > { %v1470_v41 = vsel %vm1468_vm7, %v1453_v30, %v12709_v58  ;;  %1823 = vmatpush.bf16.msra.mxu3 %v1580_v40  ;;  %v1469_v42 = vsel %vm1468_vm7, %v1451_v4, %v1453_v30 }
 0x136   : > { %1770 = vmatpush.bf16.msra.mxu2 %v1470_v41  ;;  %1742 = vmatpush.bf16.msra.mxu0 %v1469_v42 }
 0x139   : > { %1721 = vperm.xlu1 %11925, %v1365_v49  }
 0x13a   : > { %1716 = vperm.xlu0 %11924, %v1364_v52  }
 0x13b   : > { %v1531_v43 = vpop.permute.xlu1 %1530  ;;  %v12790_v45 = vpop.permute.xlu2 %1422 }
 0x13c   : > { %v1417_v46 = vpop.permute.xlu0 %1416  ;;  %v1544_v47 = vsel %vm1540_vm5, %v12648_v34, %v1531_v43  ;;  %v1436_v60 = vsel %vm1432_vm8, %v12733_v10, %v12790_v45 }
 0x13d   : > { %v1434_v50 = vsel %vm1432_vm8, %v1417_v46, %v1419_v13  ;;  %1824 = vmatpush.bf16.msra.mxu3 %v1544_v47  ;;  %v1433_v19 = vsel %vm1432_vm8, %v1415_v12, %v1417_v46 }
 0x13e   : > { %1771 = vmatpush.bf16.msra.mxu2 %v1434_v50  ;;  %1743 = vmatpush.bf16.msra.mxu0 %v1433_v19 }
 0x142   : > { %1772 = vmatpush.bf16.msra.mxu2 %v12535_v11  ;;  %1744 = vmatpush.bf16.msra.mxu0 %v12525_v8  ;;  %v1472_v8 = vsel %vm1468_vm7, %v12650_v35, %v12783_v39  ;;  %v1622_v11 = vsel %vm1617_vm2, %v1606_v28, %v12771_v29 }
 0x143   : > { %v1495_v34 = vpop.permute.xlu1 %1494  ;;  %v12803_v54 = vpop.permute.xlu2 %1570 }
 0x144   : > { %v1647_v55 = vpop.permute.xlu0 %1646  ;;  %v1508_v56 = vsel %vm1504_vm6, %v12681_v48, %v1495_v34 }
 0x145   : > { %1773 = vmatmul.bf16.vlgmr.msra.gmra.mxu2 %v12750_v22  ;;  %1825 = vmatpush.bf16.msra.mxu3 %v1508_v56  ;;  %v1661_v57 = vsel %vm1656_vm0, %v12746_v20, %v1647_v55 }
 0x146   : > { %1849 = vmatpush.bf16.msrb.mxu2 %v1661_v57  ;;  %1745 = vmatmul.bf16.vlgmr.msra.gmra.mxu0 %v12750_v22 }
 0x149   : > { %1826 = vmatpush.bf16.msra.mxu3 %v1472_v8 }
 0x14a   : > { %1850 = vmatpush.bf16.msrb.mxu2 %v1622_v11 }
 0x14b   : > { %v1686_v58 = vpop.permute.xlu1 %1685  ;;  %v12816_v48 = vpop.permute.xlu2 %1534 }
 0x14c   : > { %v1684_v59 = vpop.permute.xlu0 %1683 }
 0x14d   : > { %1827 = vmatpush.bf16.msra.mxu3 %v1436_v60  ;;  %v1699_v61 = vsel %vm1695_vm1, %v12748_v21, %v1684_v59  ;;  %v1700_v62 = vsel %vm1695_vm1, %v1684_v59, %v1686_v58 }
 0x14e   : > { %1842 = vmatpush.bf16.msrb.mxu0 %v1699_v61  ;;  %1870 = vmatpush.bf16.msra.mxu1 %v1700_v62 }
 0x151   : > { %1828 = vmatpush.bf16.msra.mxu3 %v12515_v5  ;;  %9894 = vmatmul.msk.bf16.vlgmr.msra.gmra.mxu1 %vm1733_vm4, %v12689_v53 }
 0x153   : > { %v1569_v35 = vpop.permute.xlu1 %1568  ;;  %v12827_v63 = vpop.permute.xlu2 %1611 }
 0x154   : > { %v1649_v0 = vpop.permute.xlu0 %1648  ;;  %1829 = vmatmul.bf16.vlgmr.msra.gmra.mxu3 %v12750_v22  ;;  %v1581_v1 = vsel %vm1576_vm3, %v1567_v38, %v1569_v35  ;;  %v1582_v10 = vsel %vm1576_vm3, %v1569_v35, %v12803_v54 }
 0x155   : > { %1851 = vmatpush.bf16.msrb.mxu2 %v1581_v1  ;;  %v1662_v3 = vsel %vm1656_vm0, %v1647_v55, %v1649_v0 }
 0x156   : > { %1877 = vmatpush.bf16.msra.mxu0 %v1662_v3 }
 0x157   : > { %9893 = vmatmul.msk.bf16.vlgmr.msrb.gmra.mxu0 %vm1733_vm4, %v12689_v53 }
 0x15b   : > { %v1533_v4 = vpop.permute.xlu1 %1532  ;;  %v12834_v5 = vpop.permute.xlu2 %1652 }
 0x15c   : > { %v1610_v6 = vpop.permute.xlu0 %1609  ;;  %v1545_v7 = vsel %vm1540_vm5, %v1531_v43, %v1533_v4  ;;  %v1546_v17 = vsel %vm1540_vm5, %v1533_v4, %v12816_v48 }
 0x15d   : > { %1852 = vmatpush.bf16.msrb.mxu2 %v1545_v7  ;;  %v1623_v9 = vsel %vm1617_vm2, %v12771_v29, %v1610_v6  ;;  %v1624_v21 = vsel %vm1617_vm2, %v1610_v6, %v12827_v63 }
 0x15e   : > { %1878 = vmatpush.bf16.msra.mxu0 %v1623_v9 }
 0x162   : > { %1879 = vmatpush.bf16.msra.mxu0 %v1582_v10 }
 0x163   : > { %v1651_v12 = vpop.permute.xlu1 %1650  ;;  %v1614_v20 = vpop.permute.xlu2 %1613 }
 0x164   : > { %v1497_v13 = vpop.permute.xlu0 %1496  ;;  %v1663_v15 = vsel %vm1656_vm0, %v1649_v0, %v1651_v12  ;;  %v1625_v55 = vsel %vm1617_vm2, %v12827_v63, %v1614_v20 }
 0x165   : > { %v1509_v16 = vsel %vm1504_vm6, %v1495_v34, %v1497_v13  ;;  %1905 = vmatpush.bf16.msrb.mxu3 %v1663_v15  ;;  %v12902_v15 = vld [vmem:[%s12277_s17] sm:$0xff] }
 0x166   : > { %1853 = vmatpush.bf16.msrb.mxu2 %v1509_v16  ;;  %1880 = vmatpush.bf16.msra.mxu0 %v1546_v17 }
 0x169   : > { %1906 = vmatpush.bf16.msrb.mxu3 %v1624_v21  ;;  %v2010_v21 = vperm.slane %v12902_v15, 1 }
 0x16b   : > { %v1688_v24 = vpop.permute.xlu1 %1687  ;;  %v1655_v2 = vpop.permute.xlu2 %1654 }
 0x16c   : > { %v1461_v25 = vpop.permute.xlu0 %1460  ;;  %v1701_v26 = vsel %vm1695_vm1, %v1686_v58, %v1688_v24  ;;  %v1665_v36 = vsel %vm1656_vm0, %v12834_v5, %v1655_v2 }
 0x16d   : > { %v1473_v27 = vsel %vm1468_vm7, %v12783_v39, %v1461_v25  ;;  %1898 = vmatpush.bf16.msrb.mxu1 %v1701_v26 }
 0x16e   : > { %1854 = vmatpush.bf16.msrb.mxu2 %v1473_v27 }
 0x170   : > { %9895 = vmatmul.msk.bf16.vlgmr.msrb.gmra.mxu1 %vm1733_vm4, %v12689_v53 }
 0x173   : > { %v1425_v28 = vpop.permute.xlu1 %1424  ;;  %v1616_v37 = vpop.permute.xlu2 %1615 }
 0x174   : > { %v1499_v29 = vpop.permute.xlu0 %1498  ;;  %v1437_v31 = vsel %vm1432_vm8, %v12790_v45, %v1425_v28  ;;  %v1626_v39 = vsel %vm1617_vm2, %v1614_v20, %v1616_v37  ;;  %v2009_v20 = vperm.slane %v12902_v15, 0 }
 0x175   : > { %1855 = vmatpush.bf16.msrb.mxu2 %v1437_v31  ;;  %v1510_v32 = vsel %vm1504_vm6, %v1497_v13, %v1499_v29 }
 0x176   : > { %1881 = vmatpush.bf16.msra.mxu0 %v1510_v32 }
 0x179   : > { %1856 = vmatpush.bf16.msrb.mxu2 %v12569_v14 }
 0x17b   : > { %v1463_v38 = vpop.permute.xlu1 %1462  ;;  %v1465_v50 = vpop.permute.xlu2 %1464 }
 0x17c   : > { %v1573_v30 = vpop.permute.xlu0 %1572  ;;  %1857 = vmatmul.bf16.vlgmr.msrb.gmra.mxu2 %v12750_v22  ;;  %v1474_v40 = vsel %vm1468_vm7, %v1461_v25, %v1463_v38  ;;  %v1475_v19 = vsel %vm1468_vm7, %v1463_v38, %v1465_v50 }
 0x17d   : > { %1961 = vmatpush.bf16.msra.mxu2 %v1665_v36  ;;  %1882 = vmatpush.bf16.msra.mxu0 %v1474_v40  ;;  %v1583_v41 = vsel %vm1576_vm3, %v12803_v54, %v1573_v30 }
 0x17e   : > { %1907 = vmatpush.bf16.msrb.mxu3 %v1583_v41 }
 0x180   : > { %v1760_v3 = vpop.f32.mrf.mxu1 }
 0x181   : > { %1962 = vmatpush.bf16.msra.mxu2 %v1626_v39 }
 0x183   : > { %v1427_v42 = vpop.permute.xlu1 %1426 }
 0x184   : > { %v1537_v43 = vpop.permute.xlu0 %1536  ;;  %v1438_v14 = vsel %vm1432_vm8, %v1425_v28, %v1427_v42  ;;  %v1467_v56 = vpop.permute.xlu2 %1466 }
 0x185   : > { %1883 = vmatpush.bf16.msra.mxu0 %v1438_v14  ;;  %v1547_v45 = vsel %vm1540_vm5, %v12816_v48, %v1537_v43 }
 0x186   : > { %1908 = vmatpush.bf16.msrb.mxu3 %v1547_v45  ;;  %v1788_v1 = vpop.f32.mrf.mxu3 }
 0x189   : > { %1884 = vmatpush.bf16.msra.mxu0 %v12599_v18  ;;  %v1664_v18 = vsel %vm1656_vm0, %v1651_v12, %v12834_v5 }
 0x18b   : > { %v1501_v46 = vpop.permute.xlu1 %1500 }
 0x18c   : > { %v1575_v47 = vpop.permute.xlu0 %1574  ;;  %1885 = vmatmul.bf16.vlgmr.msra.gmra.mxu0 %v12750_v22  ;;  %v1511_v49 = vsel %vm1504_vm6, %v1499_v29, %v1501_v46  ;;  %v1694_v59 = vpop.permute.xlu2 %1693 }
 0x18d   : > { %1909 = vmatpush.bf16.msrb.mxu3 %v1511_v49  ;;  %1963 = vmatpush.bf16.msra.mxu2 %v1575_v47  ;;  %v1584_v58 = vsel %vm1576_vm3, %v1573_v30, %v1575_v47 }
 0x18e   : > { %v1790_v4 = vpop.f32.mrf.mxu3 }
 0x191   : > { %1910 = vmatpush.bf16.msrb.mxu3 %v1475_v19 }
 0x193   : > { %v1690_v52 = vpop.permute.xlu1 %1689 }
 0x194   : > { %v1539_v34 = vpop.permute.xlu0 %1538  ;;  %v1702_v54 = vsel %vm1695_vm1, %v1688_v24, %v1690_v52 }
 0x195   : > { %1926 = vmatpush.bf16.msra.mxu1 %v1702_v54  ;;  %1964 = vmatpush.bf16.msra.mxu2 %v1539_v34  ;;  %v1548_v48 = vsel %vm1540_vm5, %v1537_v43, %v1539_v34 }
 0x198   : > { %9896 = vmatmul.msk.bf16.vlgmr.msra.gmra.mxu1 %vm1733_vm4, %v12689_v53 }
 0x199   : > { %1933 = vmatpush.bf16.msrb.mxu1 %v1664_v18 }
 0x19b   : > { %v1429_v57 = vpop.permute.xlu1 %1428 }
 0x19c   : > { %v1503_v8 = vpop.permute.xlu0 %1502  ;;  %v1439_v11 = vsel %vm1432_vm8, %v1427_v42, %v1429_v57 }
 0x19d   : > { %1934 = vmatpush.bf16.msrb.mxu1 %v1625_v55  ;;  %1965 = vmatpush.bf16.msra.mxu2 %v1503_v8  ;;  %v1512_v63 = vsel %vm1504_vm6, %v1501_v46, %v1503_v8 }
 0x19e   : > { %1911 = vmatpush.bf16.msrb.mxu3 %v1439_v11 }
 0x1a1   : > { %1935 = vmatpush.bf16.msrb.mxu1 %v1584_v58  ;;  %1966 = vmatpush.bf16.msra.mxu2 %v1467_v56 }
 0x1a2   : > { %1912 = vmatpush.bf16.msrb.mxu3 %v12617_v23  ;;  %v1476_v23 = vsel %vm1468_vm7, %v1465_v50, %v1467_v56  ;;  %v2012_v56 = vperm.slane %v12902_v15, 3 }
 0x1a3   : > { %v1692_v60 = vpop.permute.xlu1 %1691 }
 0x1a4   : > { %v1431_v61 = vpop.permute.xlu0 %1430  ;;  %v1703_v62 = vsel %vm1695_vm1, %v1690_v52, %v1692_v60  ;;  %v1704_v35 = vsel %vm1695_vm1, %v1692_v60, %v1694_v59  ;;  %v2011_v52 = vperm.slane %v12902_v15, 2 }
 0x1a5   : > { %1936 = vmatpush.bf16.msrb.mxu1 %v1548_v48  ;;  %1913 = vmatmul.bf16.vlgmr.msrb.gmra.mxu3 %v12750_v22  ;;  %v1440_v0 = vsel %vm1432_vm8, %v1429_v57, %v1431_v61 }
 0x1a6   : > { %1967 = vmatpush.bf16.msra.mxu2 %v1431_v61  ;;  %1954 = vmatpush.bf16.msrb.mxu0 %v1703_v62 }
 0x1a7   : > { %1982 = vmatpush.bf16.msra.mxu3 %v1704_v35 }
 0x1a9   : > { %1937 = vmatpush.bf16.msrb.mxu1 %v1512_v63  ;;  %9897 = vmatmul.msk.bf16.vlgmr.msrb.gmra.mxu0 %vm1733_vm4, %v12689_v53 }
 0x1aa   : > { %1968 = vmatpush.bf16.msra.mxu2 %v12666_v44  ;;  %v1762_v44 = vpop.f32.mrf.mxu1 }
 0x1ab   : > { %v1816_v7 = vpop.f32.mrf.mxu3  ;;  %v12898_v12 = vpop.permute.xlu1 %1721 }
 0x1ac   : > { %v12895_v5 = vpop.permute.xlu0 %1716 }
 0x1ad   : > { %1938 = vmatpush.bf16.msrb.mxu1 %v1476_v23  ;;  %1969 = vmatmul.bf16.vlgmr.msra.gmra.mxu2 %v12750_v22 }
 0x1b1   : > { %1939 = vmatpush.bf16.msrb.mxu1 %v1440_v0 }
 0x1b2   : > { %v1802_v16 = vpop.f32.mrf.mxu1 }
 0x1b3   : > { %v1818_v24 = vpop.f32.mrf.mxu3  ;;  %v1803_v37 = vadd.f32 %v1802_v16, %v12895_v5 }
 0x1b5   : > { %1940 = vmatpush.bf16.msrb.mxu1 %v12640_v33  ;;  %9898 = vmatmul.msk.bf16.vlgmr.msra.gmra.mxu3 %vm1733_vm4, %v12689_v53  ;;  %v1817_v14 = vadd.f32 %v1816_v7, %v1803_v37 }
 0x1b7   : > { %v1991_v18 = vmax.f32 %v1817_v14, 0.0 }
 0x1b8   : > { %1941 = vmatmul.bf16.vlgmr.msrb.gmra.mxu1 %v12750_v22 }
 0x1b9   : > { %v2029_v59 = vmul.f32 %v2011_v52, %v1991_v18 }
 0x1ba   : > { %v1804_v40 = vpop.f32.mrf.mxu1 }
 0x1bb   : > { %v1805_v46 = vadd.f32 %v1804_v40, %v12898_v12 }
 0x1bd   : > { %v1819_v57 = vadd.f32 %v1818_v24, %v1805_v46 }
 0x1bf   : > { %v2000_v61 = vmax.f32 %v1819_v57, 0.0 }
 0x1c1   : > { %v2038_v23 = vmul.f32 %v2011_v52, %v2000_v61 }
 0x1c3   : > { %v1746_v6 = vpop.f32.mrf.mxu0 }
 0x1c4   : > { %v1747_v9 = vadd.f32 %v1746_v6, %v12895_v5 }
 0x1c6   : > { %v1761_v13 = vadd.f32 %v1760_v3, %v1747_v9 }
 0x1c8   : > { %v1774_v10 = vpop.f32.mrf.mxu2  ;;  %v1989_v25 = vmax.f32 %v1761_v13, 0.0 }
 0x1c9   : > { %v1775_v33 = vadd.f32 %v1774_v10, %v12895_v5 }
 0x1ca   : > { %v2027_v31 = vmul.f32 %v2009_v20, %v1989_v25 }
 0x1cb   : > { %v1748_v53 = vpop.f32.mrf.mxu0  ;;  %v1789_v22 = vadd.f32 %v1788_v1, %v1775_v33 }
 0x1cc   : > { %v1749_v17 = vadd.f32 %v1748_v53, %v12898_v12 }
 0x1cd   : > { %v1990_v26 = vmax.f32 %v1789_v22, 0.0 }
 0x1ce   : > { %v1763_v27 = vadd.f32 %v1762_v44, %v1749_v17  ;;  %v1872_v13 = vpop.f32.mrf.mxu1 }
 0x1cf   : > { %v2028_v32 = vmul.f32 %v2010_v21, %v1990_v26 }
 0x1d0   : > { %v1776_v2 = vpop.f32.mrf.mxu2  ;;  %v1998_v28 = vmax.f32 %v1763_v27, 0.0 }
 0x1d1   : > { %v1777_v29 = vadd.f32 %v1776_v2, %v12898_v12  ;;  %v2045_v41 = vpack.c.bf16 %v2028_v32, %v2027_v31 }
 0x1d2   : > { %v2036_v38 = vmul.f32 %v2009_v20, %v1998_v28  ;;  %v2014_v28 = vperm.slane %v12902_v15, 5 }
 0x1d3   : > { %v1791_v36 = vadd.f32 %v1790_v4, %v1777_v29  ;;  %v2066_v49 = vunpack.c.h.b16 %v2045_v41  ;;  %v2065_v50 = vunpack.c.l.b16 %v2045_v41 }
 0x1d4   : > { %v1844_v30 = vpop.f32.mrf.mxu0 }
 0x1d5   : > { %v1999_v39 = vmax.f32 %v1791_v36, 0.0  ;;  %v2013_v36 = vperm.slane %v12902_v15, 4 }
 0x1d6   : > { %v1874_v33 = vpop.f32.mrf.mxu1 }
 0x1d7   : > { %v2037_v42 = vmul.f32 %v2010_v21, %v1999_v39  ;;  %v1830_v43 = vpop.f32.mrf.mxu3 }
 0x1d8   : > { %v1831_v45 = vadd.f32 %v1830_v43, %v12895_v5 }
 0x1d9   : > { %v2050_v47 = vpack.c.bf16 %v2037_v42, %v2036_v38 }
 0x1da   : > { %v1845_v19 = vadd.f32 %v1844_v30, %v1831_v45 }
 0x1db   : > { %v2075_v34 = vunpack.c.h.b16 %v2050_v47  ;;  %v2074_v54 = vunpack.c.l.b16 %v2050_v47 }
 0x1dc   : > { %v1992_v55 = vmax.f32 %v1845_v19, 0.0  ;;  %v1846_v48 = vpop.f32.mrf.mxu0 }
 0x1dd   : > { %v2084_v8 = vpack.c.b16 %v2075_v34, %v2066_v49  ;;  %v2083_v11 = vpack.c.b16 %v2074_v54, %v2065_v50 }
 0x1de   : > { %v2030_v60 = vmul.f32 %v2012_v56, %v1992_v55 }
 0x1df   : > { %2094 = vrot.lane.b32.xlu1 %v2084_v8, %s12230_s2  ;;  %2092 = vrot.lane.b32.xlu2 %v2083_v11, %s12230_s2  ;;  %v1832_v58 = vpop.f32.mrf.mxu3 }
 0x1e0   : > { %v1833_v62 = vadd.f32 %v1832_v58, %v12898_v12  ;;  %v2046_v63 = vpack.c.bf16 %v2030_v60, %v2029_v59 }
 0x1e2   : > { %v1847_v35 = vadd.f32 %v1846_v48, %v1833_v62  ;;  %v2068_v4 = vunpack.c.h.b16 %v2046_v63  ;;  %v2067_v44 = vunpack.c.l.b16 %v2046_v63 }
 0x1e4   : > { %v2001_v0 = vmax.f32 %v1847_v35, 0.0 }
 0x1e6   : > { %v2039_v1 = vmul.f32 %v2012_v56, %v2001_v0  ;;  %v2016_v0 = vperm.slane %v12902_v15, 7 }
 0x1e8   : > { %v2051_v3 = vpack.c.bf16 %v2039_v1, %v2038_v23 }
 0x1ea   : > { %v2077_v6 = vunpack.c.h.b16 %v2051_v3  ;;  %v2076_v7 = vunpack.c.l.b16 %v2051_v3 }
 0x1ec   : > { %v2086_v9 = vpack.c.b16 %v2077_v6, %v2068_v4  ;;  %v2085_v10 = vpack.c.b16 %v2076_v7, %v2067_v44  ;;  %v2015_v6 = vperm.slane %v12902_v15, 6 }
 0x1ed   : > { %v1900_v16 = vpop.f32.mrf.mxu1 }
 0x1ee   : > { %2098 = vrot.lane.b32.xlu0 %v2086_v9, %s12230_s2  ;;  %2096 = vrot.lane.b32.xlu2 %v2085_v10, %s12230_s2 }
 0x1f5   : > { %v1902_v31 = vpop.f32.mrf.mxu1 }
 0x1ff   : > { %v1858_v53 = vpop.f32.mrf.mxu2 }
 0x200   : > { %v1859_v20 = vadd.f32 %v1858_v53, %v12895_v5 }
 0x202   : > { %v1873_v26 = vadd.f32 %v1872_v13, %v1859_v20  ;;  %v12157_v13 = vld [vmem:[%s12277_s17 + $0x8] ss:$0 sm:$0xff] }
 0x204   : > { %v1993_v32 = vmax.f32 %v1873_v26, 0.0 }
 0x206   : > { %v2031_v40 = vmul.f32 %v2013_v36, %v1993_v32 }
 0x207   : > { %v1860_v22 = vpop.f32.mrf.mxu2 }
 0x208   : > { %v1861_v24 = vadd.f32 %v1860_v22, %v12898_v12 }
 0x209   : > { %v1886_v17 = vpop.f32.mrf.mxu0 }
 0x20a   : > { %v1887_v21 = vadd.f32 %v1886_v17, %v12895_v5  ;;  %v1875_v27 = vadd.f32 %v1874_v33, %v1861_v24 }
 0x20c   : > { %v1901_v25 = vadd.f32 %v1900_v16, %v1887_v21  ;;  %v2002_v38 = vmax.f32 %v1875_v27, 0.0 }
 0x20e   : > { %v1994_v2 = vmax.f32 %v1901_v25, 0.0  ;;  %v2040_v42 = vmul.f32 %v2013_v36, %v2002_v38 }
 0x210   : > { %v2032_v39 = vmul.f32 %v2014_v28, %v1994_v2 }
 0x211   : > { %v1888_v29 = vpop.f32.mrf.mxu0 }
 0x212   : > { %v1889_v37 = vadd.f32 %v1888_v29, %v12898_v12  ;;  %v2047_v43 = vpack.c.bf16 %v2032_v39, %v2031_v40 }
 0x214   : > { %v1903_v30 = vadd.f32 %v1902_v31, %v1889_v37  ;;  %v2069_v46 = vunpack.c.l.b16 %v2047_v43  ;;  %v2070_v49 = vunpack.c.h.b16 %v2047_v43 }
 0x215   : > { %v1928_v34 = vpop.f32.mrf.mxu1 }
 0x216   : > { %v2003_v41 = vmax.f32 %v1903_v30, 0.0 }
 0x218   : > { %v2041_v14 = vmul.f32 %v2014_v28, %v2003_v41 }
 0x21a   : > { %v2052_v45 = vpack.c.bf16 %v2041_v14, %v2040_v42 }
 0x21c   : > { %v2078_v47 = vunpack.c.l.b16 %v2052_v45  ;;  %v2079_v50 = vunpack.c.h.b16 %v2052_v45 }
 0x21d   : > { %v1930_v18 = vpop.f32.mrf.mxu1 }
 0x21e   : > { %v2087_v19 = vpack.c.b16 %v2078_v47, %v2069_v46  ;;  %v2088_v52 = vpack.c.b16 %v2079_v50, %v2070_v49 }
 0x220   : > { %2100 = vrot.lane.b32.xlu1 %v2087_v19, %s12230_s2  ;;  %2102 = vrot.lane.b32.xlu2 %v2088_v52, %s12230_s2 }
 0x226   : > { %v1956_v57 = vpop.f32.mrf.mxu0 }
 0x228   : > { %v1914_v54 = vpop.f32.mrf.mxu3 }
 0x229   : > { %v1915_v11 = vadd.f32 %v1914_v54, %v12895_v5 }
 0x22b   : > { %v1929_v61 = vadd.f32 %v1928_v34, %v1915_v11 }
 0x22d   : > { %v1995_v44 = vmax.f32 %v1929_v61, 0.0 }
 0x22e   : > { %v1958_v9 = vpop.f32.mrf.mxu0 }
 0x22f   : > { %v2033_v17 = vmul.f32 %v2015_v6, %v1995_v44 }
 0x230   : > { %v1916_v55 = vpop.f32.mrf.mxu3  ;;  %v1970_v56 = vpop.f32.mrf.mxu2 }
 0x231   : > { %v1917_v48 = vadd.f32 %v1916_v55, %v12898_v12  ;;  %v1971_v60 = vadd.f32 %v1970_v56, %v12895_v5 }
 0x233   : > { %v1931_v63 = vadd.f32 %v1930_v18, %v1917_v48 }
 0x235   : > { %v1942_v8 = vpop.f32.mrf.mxu1  ;;  %v2004_v33 = vmax.f32 %v1931_v63, 0.0 }
 0x236   : > { %v1943_v58 = vadd.f32 %v1942_v8, %v12895_v5 }
 0x237   : > { %v2042_v15 = vmul.f32 %v2015_v6, %v2004_v33 }
 0x238   : > { %v1957_v59 = vadd.f32 %v1956_v57, %v1943_v58  ;;  %v1984_v62 = vpop.f32.mrf.mxu3  ;;  %v1972_v5 = vpop.f32.mrf.mxu2 }
 0x239   : > { %v1985_v35 = vadd.f32 %v1984_v62, %v1971_v60  ;;  %v12931_v1 = vpop.permute.xlu2 %2092  ;;  %v1973_v22 = vadd.f32 %v1972_v5, %v12898_v12 }
 0x23a   : > { %v1996_v23 = vmax.f32 %v1957_v59, 0.0  ;;  %v12935_v3 = vsel %vm2110_vm9, 0, %v12931_v1 }
 0x23b   : > { %2319 = vrot.lane.b32.xlu2 %v12935_v3, %s12222_s16  ;;  %v1997_v10 = vmax.f32 %v1985_v35, 0.0 }
 0x23c   : > { %v2034_v53 = vmul.f32 %v2016_v0, %v1996_v23 }
 0x23d   : > { %v1944_v4 = vpop.f32.mrf.mxu1  ;;  %v2035_v24 = vmul.f32 %v12157_v13, %v1997_v10 }
 0x23e   : > { %v1945_v7 = vadd.f32 %v1944_v4, %v12898_v12  ;;  %v2048_v26 = vpack.c.bf16 %v2034_v53, %v2033_v17 }
 0x23f   : > { %v2049_v29 = vpack.c.bf16 %v2035_v24, %v2035_v24 }
 0x240   : > { %v1959_v16 = vadd.f32 %v1958_v9, %v1945_v7  ;;  %v1986_v21 = vpop.f32.mrf.mxu3  ;;  %v2071_v32 = vunpack.c.l.b16 %v2048_v26  ;;  %v2072_v41 = vunpack.c.h.b16 %v2048_v26 }
 0x241   : > { %v1987_v25 = vadd.f32 %v1986_v21, %v1973_v22  ;;  %v2073_v12 = vunpack.c.l.b16 %v2049_v29  ;;  %v11466_v29 = vld [vmem:[%s12282_s21 + $0x4] sm:$0xf0] }
 0x242   : > { %v2005_v20 = vmax.f32 %v1959_v16, 0.0 }
 0x243   : > { %v2006_v2 = vmax.f32 %v1987_v25, 0.0  ;;  %2283 = vrot.lane.b32.xlu2 %v12935_v3, %s12221_s15 }
 0x244   : > { %v2043_v27 = vmul.f32 %v2016_v0, %v2005_v20 }
 0x245   : > { %v2044_v31 = vmul.f32 %v12157_v13, %v2006_v2 }
 0x246   : > { %v2053_v28 = vpack.c.bf16 %v2043_v27, %v2042_v15 }
 0x247   : > { %v2054_v37 = vpack.c.bf16 %v2044_v31, %v2044_v31 }
 0x248   : > { %v2080_v36 = vunpack.c.l.b16 %v2053_v28  ;;  %v2081_v40 = vunpack.c.h.b16 %v2053_v28  ;;  %v2097_v45 = vpop.permute.xlu2 %2096  ;;  %v9901_v28 = vld [vmem:[%s12282_s21] sm:$0xf] }
 0x249   : > { %v2082_v39 = vunpack.c.l.b16 %v2054_v37  ;;  %v9903_v37 = vld [vmem:[%s12282_s21 + $0x8] sm:$0xf0] }
 0x24a   : > { %v2089_v38 = vpack.c.b16 %v2080_v36, %v2071_v32  ;;  %v2090_v42 = vpack.c.b16 %v2081_v40, %v2072_v41  ;;  %v13132_v32 = vor.u32 %v11466_v29, %v9901_v28  ;;  %v11465_v36 = vld [vmem:[%s12282_s21 + $0x4] sm:$0xf] }
 0x24b   : > { %v2091_v30 = vpack.c.b16 %v2082_v39, %v2073_v12  ;;  %2248 = vrot.lane.b32.xlu2 %v12935_v3, %s12224_s22  ;;  %v13142_v39 = vor.u32 %v11465_v36, %v9903_v37 }
 0x24c   : > { %2104 = vrot.lane.b32.xlu0 %v2089_v38, %s12230_s2 }
 0x24d   : > { %2108 = vrot.lane.b32.xlu1 %v2091_v30, %s12230_s2 }
 0x251   : > { %v2095_v43 = vpop.permute.xlu1 %2094 }
 0x252   : > { %v12952_v14 = vsel %vm2110_vm9, %v12931_v1, %v2095_v43  ;;  %v12973_v46 = vsel %vm2110_vm9, %v2095_v43, %v2097_v45 }
 0x253   : > { %2215 = vrot.lane.b32.xlu2 %v12952_v14, %s12226_s26 }
 0x254   : > { %2106 = vrot.lane.b32.xlu0 %v2090_v42, %s12230_s2 }
 0x255   : > { %2359 = vrot.lane.b32.xlu1 %v12952_v14, %s12223_s18 }
 0x25b   : > { %2143 = vrot.lane.b32.xlu2 %v12935_v3, %s15499_s1 }
 0x25c   : > { %2357 = vrot.lane.b32.xlu0 %v12935_v3, %s12223_s18 }
 0x25d   : > { %2321 = vrot.lane.b32.xlu1 %v12952_v14, %s12222_s16 }
 0x260   : > { %v2099_v47 = vpop.permute.xlu0 %2098 }
 0x261   : > { %v12988_v49 = vsel %vm2110_vm9, %v2097_v45, %v2099_v47 }
 0x263   : > { %2397 = vrot.lane.b32.xlu2 %v12952_v14, %s12225_s23 }
 0x264   : > { %2285 = vrot.lane.b32.xlu0 %v12952_v14, %s12221_s15 }
 0x265   : > { %2213 = vrot.lane.b32.xlu1 %v12935_v3, %s12226_s26 }
 0x26b   : > { %2361 = vrot.lane.b32.xlu2 %v12973_v46, %s12223_s18 }
 0x26c   : > { %2250 = vrot.lane.b32.xlu0 %v12952_v14, %s12224_s22 }
 0x26d   : > { %2180 = vrot.lane.b32.xlu1 %v12952_v14, %s15501_s28 }
 0x273   : > { %2323 = vrot.lane.b32.xlu2 %v12973_v46, %s12222_s16 }
 0x274   : > { %2178 = vrot.lane.b32.xlu0 %v12935_v3, %s15501_s28 }
 0x275   : > { %2287 = vrot.lane.b32.xlu1 %v12973_v46, %s12221_s15 }
 0x27a   : > { %v2103_v50 = vpop.permute.xlu2 %2102 }
 0x27b   : > { %2325 = vrot.lane.b32.xlu2 %v12988_v49, %s12222_s16 }
 0x27c   : > { %2145 = vrot.lane.b32.xlu0 %v12952_v14, %s15499_s1 }
 0x27d   : > { %2252 = vrot.lane.b32.xlu1 %v12973_v46, %s12224_s22 }
 0x283   : > { %2182 = vrot.lane.b32.xlu2 %v12973_v46, %s15501_s28 }
 0x284   : > { %2395 = vrot.lane.b32.xlu0 %v12935_v3, %s12225_s23 }
 0x285   : > { %2289 = vrot.lane.b32.xlu1 %v12988_v49, %s12221_s15 }
 0x28c   : > { %2363 = vrot.lane.b32.xlu0 %v12988_v49, %s12223_s18 }
 0x28d   : > { %2147 = vrot.lane.b32.xlu1 %v12973_v46, %s15499_s1 }
 0x292   : > { %v2101_v19 = vpop.permute.xlu1 %2100 }
 0x293   : > { %v13007_v52 = vsel %vm2110_vm9, %v2099_v47, %v2101_v19  ;;  %v13022_v18 = vsel %vm2110_vm9, %v2101_v19, %v2103_v50 }
 0x294   : > { %2217 = vrot.lane.b32.xlu0 %v12973_v46, %s12226_s26  ;;  %2291 = vrot.lane.b32.xlu2 %v13007_v52, %s12221_s15 }
 0x295   : > { %2219 = vrot.lane.b32.xlu1 %v12988_v49, %s12226_s26  ;;  %v2320_v34 = vpop.permute.xlu2 %2319 }
 0x29c   : > { %2254 = vrot.lane.b32.xlu0 %v12988_v49, %s12224_s22  ;;  %2221 = vrot.lane.b32.xlu2 %v13007_v52, %s12226_s26 }
 0x29d   : > { %2149 = vrot.lane.b32.xlu1 %v12988_v49, %s15499_s1  ;;  %v2284_v54 = vpop.permute.xlu2 %2283 }
 0x2a4   : > { %2399 = vrot.lane.b32.xlu0 %v12973_v46, %s12225_s23  ;;  %2329 = vrot.lane.b32.xlu2 %v13022_v18, %s12222_s16 }
 0x2a5   : > { %2401 = vrot.lane.b32.xlu1 %v12988_v49, %s12225_s23  ;;  %v2249_v55 = vpop.permute.xlu2 %2248 }
 0x2ac   : > { %2184 = vrot.lane.b32.xlu0 %v12988_v49, %s15501_s28  ;;  %2151 = vrot.lane.b32.xlu2 %v13007_v52, %s15499_s1 }
 0x2ad   : > { %2365 = vrot.lane.b32.xlu1 %v13007_v52, %s12223_s18  ;;  %v13034_v56 = vpop.permute.xlu2 %2215 }
 0x2b4   : > { %2327 = vrot.lane.b32.xlu0 %v13007_v52, %s12222_s16  ;;  %2258 = vrot.lane.b32.xlu2 %v13022_v18, %s12224_s22 }
 0x2b5   : > { %2256 = vrot.lane.b32.xlu1 %v13007_v52, %s12224_s22  ;;  %v13042_v57 = vpop.permute.xlu2 %2143 }
 0x2bc   : > { %2293 = vrot.lane.b32.xlu0 %v13022_v18, %s12221_s15  ;;  %2403 = vrot.lane.b32.xlu2 %v13007_v52, %s12225_s23 }
 0x2bd   : > { %2367 = vrot.lane.b32.xlu1 %v13022_v18, %s12223_s18  ;;  %v13050_v11 = vpop.permute.xlu2 %2397 }
 0x2be   : > { %v2105_v8 = vpop.permute.xlu0 %2104 }
 0x2bf   : > { %v2109_v58 = vpop.permute.xlu1 %2108  ;;  %v13063_v62 = vsel %vm2110_vm9, %v2103_v50, %v2105_v8 }
 0x2c4   : > { %2188 = vrot.lane.b32.xlu0 %v13022_v18, %s15501_s28  ;;  %2223 = vrot.lane.b32.xlu2 %v13022_v18, %s12226_s26 }
 0x2c5   : > { %2186 = vrot.lane.b32.xlu1 %v13007_v52, %s15501_s28  ;;  %v13058_v59 = vpop.permute.xlu2 %2361 }
 0x2c6   : > { %v2107_v48 = vpop.permute.xlu0 %2106 }
 0x2c7   : > { %v2360_v60 = vpop.permute.xlu1 %2359  ;;  %v13085_v7 = vsel %vm2110_vm9, %v2105_v8, %v2107_v48  ;;  %v2118_v24 = vsel %vm2110_vm9, %v2107_v48, %v2109_v58 }
 0x2c8   : > { %v2378_v61 = vsel %vm1656_vm0, %v2360_v60, %v13058_v59  ;;  %v13115_v25 = vsel %vm2131_vm10, %v2118_v24, 0 }
 0x2c9   : > { %2483 = vmatpush.bf16.msrb.mxu3 %v2378_v61 }
 0x2cc   : > { %2331 = vrot.lane.b32.xlu0 %v13063_v62, %s12222_s16  ;;  %2405 = vrot.lane.b32.xlu2 %v13022_v18, %s12225_s23 }
 0x2cd   : > { %2153 = vrot.lane.b32.xlu1 %v13022_v18, %s15499_s1  ;;  %v13072_v23 = vpop.permute.xlu2 %2323 }
 0x2ce   : > { %v2358_v35 = vpop.permute.xlu0 %2357 }
 0x2cf   : > { %v2377_v63 = vsel %vm1656_vm0, %v2358_v35, %v2360_v60  ;;  %v2322_v0 = vpop.permute.xlu1 %2321 }
 0x2d0   : > { %2455 = vmatpush.bf16.msra.mxu0 %v2377_v63  ;;  %v2340_v3 = vsel %vm1617_vm2, %v2322_v0, %v13072_v23  ;;  %v2339_v4 = vsel %vm1617_vm2, %v2320_v34, %v2322_v0 }
 0x2d1   : > { %2484 = vmatpush.bf16.msrb.mxu3 %v2340_v3  ;;  %v2138_v3 = vld [vmem:[%s12287_s25 + $0x8] sm:$0xff] }
 0x2d4   : > { %2260 = vrot.lane.b32.xlu0 %v13063_v62, %s12224_s22  ;;  %2456 = vmatpush.bf16.msra.mxu0 %v2339_v4 }
 0x2d5   : > { %2369 = vrot.lane.b32.xlu2 %v13063_v62, %s12223_s18  ;;  %2295 = vrot.lane.b32.xlu1 %v13063_v62, %s12221_s15  ;;  %v13089_v10 = vpop.permute.xlu2 %2325 }
 0x2d6   : > { %v2286_v44 = vpop.permute.xlu0 %2285  ;;  %v2341_v45 = vsel %vm1617_vm2, %v13072_v23, %v13089_v10  ;;  %v2137_v23 = vld [vmem:[%s12287_s25] sm:$0xff] }
 0x2d7   : > { %v2301_v6 = vsel %vm1576_vm3, %v2284_v54, %v2286_v44  ;;  %v2214_v5 = vpop.permute.xlu1 %2213 }
 0x2d8   : > { %2457 = vmatpush.bf16.msra.mxu0 %v2301_v6  ;;  %v2231_v53 = vsel %vm1504_vm6, %v2214_v5, %v13034_v56 }
 0x2dc   : > { %2371 = vrot.lane.b32.xlu0 %v13085_v7, %s12223_s18 }
 0x2dd   : > { %2297 = vrot.lane.b32.xlu2 %v13085_v7, %s12221_s15  ;;  %2333 = vrot.lane.b32.xlu1 %v13085_v7, %s12222_s16  ;;  %v13108_v17 = vpop.permute.xlu2 %2182 }
 0x2de   : > { %v2251_v9 = vpop.permute.xlu0 %2250 }
 0x2df   : > { %v2266_v13 = vsel %vm1540_vm5, %v2249_v55, %v2251_v9  ;;  %v13096_v33 = vpop.permute.xlu1 %2180 }
 0x2e0   : > { %2458 = vmatpush.bf16.msra.mxu0 %v2266_v13  ;;  %v2197_v55 = vsel %vm1468_vm7, %v13096_v33, %v13108_v17 }
 0x2e4   : > { %2225 = vrot.lane.b32.xlu0 %v13063_v62, %s12226_s26  ;;  %2459 = vmatpush.bf16.msra.mxu0 %v2231_v53 }
 0x2e5   : > { %2155 = vrot.lane.b32.xlu2 %v13063_v62, %s15499_s1  ;;  %2190 = vrot.lane.b32.xlu1 %v13063_v62, %s15501_s28 }
 0x2e6   : > { %v2179_v16 = vpop.permute.xlu0 %2178 }
 0x2e7   : > { %v2196_v22 = vsel %vm1468_vm7, %v2179_v16, %v13096_v33  ;;  %v2288_v20 = vpop.permute.xlu1 %2287 }
 0x2e8   : > { %2460 = vmatpush.bf16.msra.mxu0 %v2196_v22  ;;  %v2302_v21 = vsel %vm1576_vm3, %v2286_v44, %v2288_v20 }
 0x2e9   : > { %2485 = vmatpush.bf16.msrb.mxu3 %v2302_v21 }
 0x2ec   : > { %2262 = vrot.lane.b32.xlu0 %v13085_v7, %s12224_s22 }
 0x2ed   : > { %2335 = vrot.lane.b32.xlu2 %v13115_v25, %s12222_s16  ;;  %2227 = vrot.lane.b32.xlu1 %v13085_v7, %s12226_s26 }
 0x2ee   : > { %v2146_v15 = vpop.permute.xlu0 %2145  ;;  %v13123_v2 = vpop.permute.xlu2 %2291 }
 0x2ef   : > { %v2161_v26 = vsel %vm1432_vm8, %v13042_v57, %v2146_v15  ;;  %v2253_v27 = vpop.permute.xlu1 %2252 }
 0x2f0   : > { %2461 = vmatpush.bf16.msra.mxu0 %v2161_v26  ;;  %v2267_v31 = vsel %vm1540_vm5, %v2251_v9, %v2253_v27 }
 0x2f1   : > { %2486 = vmatpush.bf16.msrb.mxu3 %v2267_v31 }
 0x2f4   : > { %2407 = vrot.lane.b32.xlu0 %v13063_v62, %s12225_s23  ;;  %9908 = vmatpush.bf16.msk.msra.mxu0 %vm9907_vm11, %v12931_v1  ;;  %vm6841_vm11 = vcmask 236544  }
 0x2f5   : > { %2229 = vrot.lane.b32.xlu2 %v13115_v25, %s12226_s26  ;;  %2373 = vrot.lane.b32.xlu1 %v13115_v25, %s12223_s18 }
 0x2f6   : > { %v2396_v38 = vpop.permute.xlu0 %2395  ;;  %v13147_v30 = vpop.permute.xlu2 %2221 }
 0x2f7   : > { %v2415_v12 = vsel %vm1695_vm1, %v2396_v38, %v13050_v11  ;;  %2463 = vmatmul.bf16.vlgmr.msra.gmra.mxu0 %v13132_v32  ;;  %v13145_v1 = vpop.permute.xlu1 %2289 }
 0x2f8   : > { %2476 = vmatpush.bf16.msra.mxu1 %v2415_v12  ;;  %v2303_v19 = vsel %vm1576_vm3, %v2288_v20, %v13145_v1 }
 0x2fb   : > { %9909 = vmatmul.msk.bf16.vlgmr.msra.gmra.mxu1 %vm1733_vm4, %v13142_v39 }
 0x2fc   : > { %2299 = vrot.lane.b32.xlu0 %v13115_v25, %s12221_s15 }
 0x2fd   : > { %2194 = vrot.lane.b32.xlu2 %v13115_v25, %s15501_s28  ;;  %2264 = vrot.lane.b32.xlu1 %v13115_v25, %s12224_s22  ;;  %s12235_s22 = smov 90  }
 0x2fe   : > { %v2364_v40 = vpop.permute.xlu0 %2363  ;;  %v13159_v43 = vpop.permute.xlu2 %2329 }
 0x2ff   : > { %v2379_v41 = vsel %vm1656_vm0, %v13058_v59, %v2364_v40  ;;  %v2148_v42 = vpop.permute.xlu1 %2147 }
 0x300   : > { %2511 = vmatpush.bf16.msrb.mxu1 %v2379_v41 }
 0x304   : > { %2375 = vrot.lane.b32.xlu0 %v12229_v51, %s12223_s18  ;;  %2512 = vmatpush.bf16.msrb.mxu1 %v2341_v45  ;;  %s12234_s18 = smov 110  }
 0x305   : > { %2159 = vrot.lane.b32.xlu2 %v13115_v25, %s15499_s1  ;;  %2192 = vrot.lane.b32.xlu1 %v13085_v7, %s15501_s28 }
 0x306   : > { %v2218_v47 = vpop.permute.xlu0 %2217  ;;  %v13176_v54 = vpop.permute.xlu2 %2151 }
 0x307   : > { %v2232_v50 = vsel %vm1504_vm6, %v13034_v56, %v2218_v47  ;;  %v13174_v34 = vpop.permute.xlu1 %2219  ;;  %v2162_v56 = vsel %vm1432_vm8, %v2146_v15, %v2148_v42 }
 0x308   : > { %2487 = vmatpush.bf16.msrb.mxu3 %v2232_v50  ;;  %2513 = vmatpush.bf16.msrb.mxu1 %v2303_v19  ;;  %v2233_v59 = vsel %vm1504_vm6, %v2218_v47, %v13174_v34  ;;  %v2234_v26 = vsel %vm1504_vm6, %v13174_v34, %v13147_v30 }
 0x30c   : > { %2337 = vrot.lane.b32.xlu0 %v12229_v51, %s12222_s16  ;;  %2488 = vmatpush.bf16.msrb.mxu3 %v2197_v55  ;;  %s12233_s16 = smov 109  }
 0x30d   : > { %2157 = vrot.lane.b32.xlu1 %v13085_v7, %s15499_s1  ;;  %2413 = vrot.lane.b32.xlu2 %v12229_v51, %s12225_s23 }
 0x30e   : > { %v2255_v57 = vpop.permute.xlu0 %2254  ;;  %v13191_v48 = vpop.permute.xlu2 %2258 }
 0x30f   : > { %v2268_v8 = vsel %vm1540_vm5, %v2253_v27, %v2255_v57  ;;  %v13189_v58 = vpop.permute.xlu1 %2149 }
 0x310   : > { %2489 = vmatpush.bf16.msrb.mxu3 %v2162_v56  ;;  %2514 = vmatpush.bf16.msrb.mxu1 %v2268_v8  ;;  %v2163_v9 = vsel %vm1432_vm8, %v2148_v42, %v13189_v58  ;;  %v2164_v38 = vsel %vm1432_vm8, %v13189_v58, %v13176_v54 }
 0x314   : > { %2409 = vrot.lane.b32.xlu0 %v13085_v7, %s12225_s23  ;;  %2490 = vmatpush.bf16.msrb.mxu3 %v12952_v14 }
 0x315   : > { %2515 = vmatpush.bf16.msrb.mxu1 %v2233_v59  ;;  %2411 = vrot.lane.b32.xlu1 %v13115_v25, %s12225_s23  ;;  %s12236_s23 = smov 19  }
 0x316   : > { %v2400_v60 = vpop.permute.xlu0 %2399  ;;  %v2404_v63 = vpop.permute.xlu2 %2403 }
 0x317   : > { %2491 = vmatmul.bf16.vlgmr.msrb.gmra.mxu3 %v13132_v32  ;;  %v2416_v61 = vsel %vm1695_vm1, %v13050_v11, %v2400_v60  ;;  %v2402_v35 = vpop.permute.xlu1 %2401 }
 0x318   : > { %2504 = vmatpush.bf16.msrb.mxu2 %v2416_v61  ;;  %v2417_v14 = vsel %vm1695_vm1, %v2400_v60, %v2402_v35  ;;  %v2418_v0 = vsel %vm1695_vm1, %v2402_v35, %v2404_v63 }
 0x319   : > { %2532 = vmatpush.bf16.msrb.mxu0 %v2417_v14  ;;  %2560 = vmatpush.bf16.msra.mxu3 %v2418_v0 }
 0x31b   : > { %9910 = vmatmul.msk.bf16.vlgmr.msrb.gmra.mxu2 %vm1733_vm4, %v13142_v39 }
 0x31c   : > { %2435 = vperm.xlu0 %11924, %v2137_v23   ;;  %9911 = vmatmul.msk.bf16.vlgmr.msrb.gmra.mxu0 %vm1733_vm4, %v13142_v39 }
 0x31d   : > { %2440 = vperm.xlu1 %11925, %v2138_v3  }
 0x31e   : > { %v2185_v4 = vpop.permute.xlu0 %2184  ;;  %v13213_v6 = vpop.permute.xlu2 %2223 }
 0x31f   : > { %v2198_v11 = vsel %vm1468_vm7, %v13108_v17, %v2185_v4  ;;  %v2366_v44 = vpop.permute.xlu1 %2365  ;;  %v2304_v17 = vsel %vm1576_vm3, %v13145_v1, %v13123_v2 }
 0x320   : > { %2516 = vmatpush.bf16.msrb.mxu1 %v2198_v11  ;;  %v2380_v5 = vsel %vm1656_vm0, %v2364_v40, %v2366_v44  ;;  %v2235_v40 = vsel %vm1504_vm6, %v13147_v30, %v13213_v6 }
 0x321   : > { %2539 = vmatpush.bf16.msra.mxu2 %v2380_v5 }
 0x324   : > { %2517 = vmatpush.bf16.msrb.mxu1 %v2163_v9 }
 0x326   : > { %v2328_v13 = vpop.permute.xlu0 %2327  ;;  %v13223_v16 = vpop.permute.xlu2 %2405 }
 0x327   : > { %v2342_v33 = vsel %vm1617_vm2, %v13089_v10, %v2328_v13  ;;  %9912 = vmatmul.msk.bf16.vlgmr.msra.gmra.mxu3 %vm1733_vm4, %v13142_v39  ;;  %v2257_v53 = vpop.permute.xlu1 %2256  ;;  %v2419_v22 = vsel %vm1695_vm1, %v2404_v63, %v13223_v16  ;;  %v2343_v28 = vsel %vm1617_vm2, %v2328_v13, %v13159_v43 }
 0x328   : > { %2518 = vmatpush.bf16.msrb.mxu1 %v12973_v46  ;;  %2540 = vmatpush.bf16.msra.mxu2 %v2342_v33  ;;  %v2269_v20 = vsel %vm1540_vm5, %v2255_v57, %v2257_v53  ;;  %v2270_v12 = vsel %vm1540_vm5, %v2257_v53, %v13191_v48 }
 0x32b   : > { %2519 = vmatmul.bf16.vlgmr.msrb.gmra.mxu1 %v13132_v32 }
 0x32c   : > { %2588 = vmatpush.bf16.msra.mxu1 %v2419_v22  ;;  %2541 = vmatpush.bf16.msra.mxu2 %v2304_v17 }
 0x32e   : > { %v2294_v10 = vpop.permute.xlu0 %2293 }
 0x32f   : > { %v2368_v46 = vpop.permute.xlu1 %2367  ;;  %v2370_v21 = vpop.permute.xlu2 %2369  ;;  %v2305_v36 = vsel %vm1576_vm3, %v13123_v2, %v2294_v10 }
 0x330   : > { %2542 = vmatpush.bf16.msra.mxu2 %v2269_v20  ;;  %v2381_v24 = vsel %vm1656_vm0, %v2366_v44, %v2368_v46  ;;  %v2382_v15 = vsel %vm1656_vm0, %v2368_v46, %v2370_v21 }
 0x331   : > { %2567 = vmatpush.bf16.msra.mxu0 %v2381_v24  ;;  %2595 = vmatpush.bf16.msrb.mxu3 %v2382_v15 }
 0x334   : > { %2543 = vmatpush.bf16.msra.mxu2 %v2234_v26 }
 0x335   : > { %2568 = vmatpush.bf16.msra.mxu0 %v2343_v28 }
 0x336   : > { %v2189_v27 = vpop.permute.xlu0 %2188 }
 0x337   : > { %v2187_v29 = vpop.permute.xlu1 %2186  ;;  %v2298_v50 = vpop.permute.xlu2 %2297 }
 0x338   : > { %v2199_v31 = vsel %vm1468_vm7, %v2185_v4, %v2187_v29  ;;  %v2200_v42 = vsel %vm1468_vm7, %v2187_v29, %v2189_v27 }
 0x339   : > { %2544 = vmatpush.bf16.msra.mxu2 %v2199_v31  ;;  %2569 = vmatpush.bf16.msra.mxu0 %v2305_v36 }
 0x33b   : > { %9913 = vmatmul.msk.bf16.vlgmr.msra.gmra.mxu1 %vm1733_vm4, %v13142_v39 }
 0x33d   : > { %2545 = vmatpush.bf16.msra.mxu2 %v2164_v38  ;;  %2570 = vmatpush.bf16.msra.mxu0 %v2270_v12 }
 0x33e   : > { %v2332_v37 = vpop.permute.xlu0 %2331 }
 0x33f   : > { %v2344_v1 = vsel %vm1617_vm2, %v13159_v43, %v2332_v37  ;;  %v2154_v2 = vpop.permute.xlu1 %2153  ;;  %v2156_v57 = vpop.permute.xlu2 %2155 }
 0x340   : > { %2596 = vmatpush.bf16.msrb.mxu3 %v2344_v1  ;;  %v2165_v47 = vsel %vm1432_vm8, %v13176_v54, %v2154_v2  ;;  %v2166_v59 = vsel %vm1432_vm8, %v2154_v2, %v2156_v57 }
 0x341   : > { %2546 = vmatpush.bf16.msra.mxu2 %v12988_v49  ;;  %2571 = vmatpush.bf16.msra.mxu0 %v2235_v40 }
 0x344   : > { %2547 = vmatmul.bf16.vlgmr.msra.gmra.mxu2 %v13132_v32 }
 0x345   : > { %2572 = vmatpush.bf16.msra.mxu0 %v2200_v42 }
 0x346   : > { %v2261_v41 = vpop.permute.xlu0 %2260 }
 0x347   : > { %v2296_v45 = vpop.permute.xlu1 %2295  ;;  %v2271_v49 = vsel %vm1540_vm5, %v13191_v48, %v2261_v41  ;;  %v2336_v61 = vpop.permute.xlu2 %2335 }
 0x348   : > { %v2306_v43 = vsel %vm1576_vm3, %v2294_v10, %v2296_v45  ;;  %v2307_v8 = vsel %vm1576_vm3, %v2296_v45, %v2298_v50 }
 0x349   : > { %2573 = vmatpush.bf16.msra.mxu0 %v2165_v47  ;;  %2597 = vmatpush.bf16.msrb.mxu3 %v2306_v43 }
 0x34d   : > { %2574 = vmatpush.bf16.msra.mxu0 %v13007_v52  ;;  %2598 = vmatpush.bf16.msrb.mxu3 %v2271_v49 }
 0x34e   : > { %v2372_v19 = vpop.permute.xlu0 %2371 }
 0x34f   : > { %v2383_v30 = vsel %vm1656_vm0, %v2370_v21, %v2372_v19  ;;  %v2334_v34 = vpop.permute.xlu1 %2333  ;;  %v2230_v4 = vpop.permute.xlu2 %2229 }
 0x350   : > { %2623 = vmatpush.bf16.msrb.mxu1 %v2383_v30  ;;  %2575 = vmatmul.bf16.vlgmr.msra.gmra.mxu0 %v13132_v32  ;;  %v2345_v54 = vsel %vm1617_vm2, %v2332_v37, %v2334_v34  ;;  %v2346_v44 = vsel %vm1617_vm2, %v2334_v34, %v2336_v61 }
 0x354   : > { %2624 = vmatpush.bf16.msrb.mxu1 %v2345_v54 }
 0x356   : > { %v2226_v55 = vpop.permute.xlu0 %2225 }
 0x357   : > { %v2236_v56 = vsel %vm1504_vm6, %v13213_v6, %v2226_v55  ;;  %v2191_v52 = vpop.permute.xlu1 %2190  ;;  %v2195_v5 = vpop.permute.xlu2 %2194 }
 0x358   : > { %2599 = vmatpush.bf16.msrb.mxu3 %v2236_v56  ;;  %2625 = vmatpush.bf16.msrb.mxu1 %v2307_v8  ;;  %v2201_v58 = vsel %vm1468_vm7, %v2189_v27, %v2191_v52 }
 0x35c   : > { %2600 = vmatpush.bf16.msrb.mxu3 %v2201_v58 }
 0x35e   : > { %v2263_v48 = vpop.permute.xlu0 %2262 }
 0x35f   : > { %v2272_v60 = vsel %vm1540_vm5, %v2261_v41, %v2263_v48  ;;  %v2228_v35 = vpop.permute.xlu1 %2227  ;;  %v2160_v17 = vpop.permute.xlu2 %2159 }
 0x360   : > { %2601 = vmatpush.bf16.msrb.mxu3 %v2166_v59  ;;  %2626 = vmatpush.bf16.msrb.mxu1 %v2272_v60  ;;  %v2237_v63 = vsel %vm1504_vm6, %v2226_v55, %v2228_v35 }
 0x364   : > { %2602 = vmatpush.bf16.msrb.mxu3 %v13022_v18  ;;  %2627 = vmatpush.bf16.msrb.mxu1 %v2237_v63 }
 0x366   : > { %v2408_v23 = vpop.permute.xlu0 %2407 }
 0x367   : > { %2603 = vmatmul.bf16.vlgmr.msrb.gmra.mxu3 %v13132_v32  ;;  %v2420_v14 = vsel %vm1695_vm1, %v13223_v16, %v2408_v23  ;;  %v2374_v0 = vpop.permute.xlu1 %2373  ;;  %v2238_v16 = vsel %vm1504_vm6, %v2228_v35, %v2230_v4  ;;  %v2414_v26 = vpop.permute.xlu2 %2413 }
 0x368   : > { %2616 = vmatpush.bf16.msrb.mxu2 %v2420_v14  ;;  %v2384_v3 = vsel %vm1656_vm0, %v2372_v19, %v2374_v0 }
 0x36b   : > { %9914 = vmatmul.msk.bf16.vlgmr.msrb.gmra.mxu2 %vm1733_vm4, %v13142_v39 }
 0x36c   : > { %2651 = vmatpush.bf16.msra.mxu2 %v2384_v3 }
 0x36e   : > { %v2300_v11 = vpop.permute.xlu0 %2299 }
 0x36f   : > { %v2265_v18 = vpop.permute.xlu1 %2264  ;;  %v2308_v6 = vsel %vm1576_vm3, %v2298_v50, %v2300_v11  ;;  %v13311_v50 = vld [vmem:[%s12292_s29] sm:$0xff] }
 0x370   : > { %2652 = vmatpush.bf16.msra.mxu2 %v2346_v44  ;;  %v2273_v13 = vsel %vm1540_vm5, %v2263_v48, %v2265_v18  ;;  %v2728_v30 = vperm.slane %v13311_v50, 1  ;;  %v2727_v34 = vperm.slane %v13311_v50, 0  ;;  %vm5219_vm5 = vcmask 400384  }
 0x374   : > { %2653 = vmatpush.bf16.msra.mxu2 %v2308_v6 }
 0x376   : > { %v2376_v9 = vpop.permute.xlu0 %2375 }
 0x377   : > { %v2193_v33 = vpop.permute.xlu1 %2192  ;;  %v2385_v27 = vsel %vm1656_vm0, %v2374_v0, %v2376_v9  ;;  %vm4998_vm0 = vcmask 900096  }
 0x378   : > { %2654 = vmatpush.bf16.msra.mxu2 %v2273_v13  ;;  %v2202_v53 = vsel %vm1468_vm7, %v2191_v52, %v2193_v33  ;;  %v2203_v10 = vsel %vm1468_vm7, %v2193_v33, %v2195_v5  ;;  %v2478_v36 = vpop.f32.mrf.mxu1 }
 0x379   : > { %2628 = vmatpush.bf16.msrb.mxu1 %v2202_v53 }
 0x37c   : > { %2655 = vmatpush.bf16.msra.mxu2 %v2238_v16 }
 0x37e   : > { %v2338_v22 = vpop.permute.xlu0 %2337 }
 0x37f   : > { %v2158_v20 = vpop.permute.xlu1 %2157 }
 0x380   : > { %2656 = vmatpush.bf16.msra.mxu2 %v2203_v10  ;;  %v2167_v46 = vsel %vm1432_vm8, %v2156_v57, %v2158_v20  ;;  %v2168_v21 = vsel %vm1432_vm8, %v2158_v20, %v2160_v17  ;;  %v2480_v47 = vpop.f32.mrf.mxu1 }
 0x381   : > { %2629 = vmatpush.bf16.msrb.mxu1 %v2167_v46 }
 0x384   : > { %2657 = vmatpush.bf16.msra.mxu2 %v2168_v21  ;;  %v2729_v21 = vperm.slane %v13311_v50, 2 }
 0x385   : > { %2630 = vmatpush.bf16.msrb.mxu1 %v13063_v62  ;;  %v2347_v62 = vsel %vm1617_vm2, %v2336_v61, %v2338_v22  ;;  %vm5211_vm2 = vcmask 154624  }
 0x386   : > { %v2410_v24 = vpop.permute.xlu0 %2409 }
 0x387   : > { %v2421_v15 = vsel %vm1695_vm1, %v2408_v23, %v2410_v24  ;;  %v2412_v28 = vpop.permute.xlu1 %2411 }
 0x388   : > { %2658 = vmatpush.bf16.msra.mxu2 %v13085_v7  ;;  %2644 = vmatpush.bf16.msrb.mxu0 %v2421_v15  ;;  %v2423_v29 = vsel %vm1695_vm1, %v2412_v28, %v2414_v26  ;;  %v2422_v31 = vsel %vm1695_vm1, %v2410_v24, %v2412_v28  ;;  %v2464_v7 = vpop.f32.mrf.mxu0  ;;  %vm5057_vm1 = vcmask 736256  }
 0x389   : > { %2631 = vmatmul.bf16.vlgmr.msrb.gmra.mxu1 %v13132_v32  ;;  %2672 = vmatpush.bf16.msra.mxu3 %v2422_v31 }
 0x38a   : > { %2700 = vmatpush.bf16.msra.mxu1 %v2423_v29 }
 0x38b   : > { %2659 = vmatmul.bf16.vlgmr.msra.gmra.mxu2 %v13132_v32  ;;  %9915 = vmatmul.msk.bf16.vlgmr.msrb.gmra.mxu0 %vm1733_vm4, %v13142_v39 }
 0x38c   : > { %2679 = vmatpush.bf16.msra.mxu0 %v2385_v27  ;;  %9916 = vmatmul.msk.bf16.vlgmr.msra.gmra.mxu3 %vm1733_vm4, %v13142_v39 }
 0x38e   : > { %v13301_v37 = vpop.permute.xlu0 %2435 }
 0x38f   : > { %v13305_v12 = vpop.permute.xlu1 %2440  ;;  %v2465_v40 = vadd.f32 %v2464_v7, %v13301_v37 }
 0x390   : > { %2680 = vmatpush.bf16.msra.mxu0 %v2347_v62  ;;  %v2466_v1 = vpop.f32.mrf.mxu0 }
 0x391   : > { %v2467_v42 = vadd.f32 %v2466_v1, %v13305_v12  ;;  %v2479_v43 = vadd.f32 %v2478_v36, %v2465_v40 }
 0x393   : > { %v2481_v49 = vadd.f32 %v2480_v47, %v2467_v42  ;;  %v2707_v54 = vmax.f32 %v2479_v43, 0.0 }
 0x394   : > { %2681 = vmatpush.bf16.msra.mxu0 %v2300_v11 }
 0x395   : > { %v2716_v56 = vmax.f32 %v2481_v49, 0.0  ;;  %v2745_v58 = vmul.f32 %v2727_v34, %v2707_v54 }
 0x397   : > { %v2754_v59 = vmul.f32 %v2727_v34, %v2716_v56 }
 0x398   : > { %2682 = vmatpush.bf16.msra.mxu0 %v2265_v18 }
 0x399   : > { %9917 = vmatmul.msk.bf16.vlgmr.msra.gmra.mxu1 %vm1733_vm4, %v13142_v39  ;;  %v2534_v11 = vpop.f32.mrf.mxu0 }
 0x39a   : > { %v2492_v38 = vpop.f32.mrf.mxu3 }
 0x39b   : > { %v2493_v2 = vadd.f32 %v2492_v38, %v13301_v37 }
 0x39c   : > { %2683 = vmatpush.bf16.msra.mxu0 %v2230_v4 }
 0x39e   : > { %v2506_v41 = vpop.f32.mrf.mxu2 }
 0x39f   : > { %v2507_v45 = vadd.f32 %v2506_v41, %v2493_v2 }
 0x3a0   : > { %2684 = vmatpush.bf16.msra.mxu0 %v2195_v5 }
 0x3a1   : > { %v2708_v39 = vmax.f32 %v2507_v45, 0.0  ;;  %v2536_v33 = vpop.f32.mrf.mxu0 }
 0x3a2   : > { %v2494_v19 = vpop.f32.mrf.mxu3 }
 0x3a3   : > { %v2495_v55 = vadd.f32 %v2494_v19, %v13305_v12  ;;  %v2746_v8 = vmul.f32 %v2728_v30, %v2708_v39 }
 0x3a4   : > { %2685 = vmatpush.bf16.msra.mxu0 %v2160_v17  ;;  %v2730_v17 = vperm.slane %v13311_v50, 3 }
 0x3a5   : > { %v2763_v60 = vpack.c.bf16 %v2746_v8, %v2745_v58  ;;  %v2732_v58 = vperm.slane %v13311_v50, 5 }
 0x3a6   : > { %v2508_v57 = vpop.f32.mrf.mxu2 }
 0x3a7   : > { %v2509_v52 = vadd.f32 %v2508_v57, %v2495_v55  ;;  %v2783_v63 = vunpack.c.l.b16 %v2763_v60  ;;  %v2784_v23 = vunpack.c.h.b16 %v2763_v60 }
 0x3a8   : > { %2686 = vmatpush.bf16.msra.mxu0 %v13115_v25  ;;  %v2520_v25 = vpop.f32.mrf.mxu1 }
 0x3a9   : > { %v2717_v48 = vmax.f32 %v2509_v52, 0.0  ;;  %v2521_v6 = vadd.f32 %v2520_v25, %v13301_v37 }
 0x3aa   : > { %v2562_v44 = vpop.f32.mrf.mxu3 }
 0x3ab   : > { %2687 = vmatmul.bf16.vlgmr.msra.gmra.mxu0 %v13132_v32  ;;  %v2755_v61 = vmul.f32 %v2728_v30, %v2717_v48  ;;  %v2535_v53 = vadd.f32 %v2534_v11, %v2521_v6 }
 0x3ad   : > { %v2768_v35 = vpack.c.bf16 %v2755_v61, %v2754_v59  ;;  %v2709_v46 = vmax.f32 %v2535_v53, 0.0  ;;  %v2731_v59 = vperm.slane %v13311_v50, 4 }
 0x3af   : > { %v2792_v14 = vunpack.c.l.b16 %v2768_v35  ;;  %v2793_v0 = vunpack.c.h.b16 %v2768_v35  ;;  %v2747_v28 = vmul.f32 %v2729_v21, %v2709_v46 }
 0x3b0   : > { %v2522_v32 = vpop.f32.mrf.mxu1 }
 0x3b1   : > { %v2802_v3 = vpack.c.b16 %v2793_v0, %v2784_v23  ;;  %v2801_v4 = vpack.c.b16 %v2792_v14, %v2783_v63  ;;  %v2523_v9 = vadd.f32 %v2522_v32, %v13305_v12 }
 0x3b2   : > { %v2564_v20 = vpop.f32.mrf.mxu3 }
 0x3b3   : > { %2812 = vrot.lane.b32.xlu0 %v2802_v3, %s12230_s2  ;;  %2810 = vrot.lane.b32.xlu2 %v2801_v4, %s12230_s2  ;;  %v2537_v16 = vadd.f32 %v2536_v33, %v2523_v9 }
 0x3b5   : > { %v2718_v15 = vmax.f32 %v2537_v16, 0.0 }
 0x3b7   : > { %v2756_v31 = vmul.f32 %v2729_v21, %v2718_v15 }
 0x3b8   : > { %v2590_v47 = vpop.f32.mrf.mxu1 }
 0x3c0   : > { %v2592_v55 = vpop.f32.mrf.mxu1 }
 0x3c7   : > { %v2548_v18 = vpop.f32.mrf.mxu2 }
 0x3c8   : > { %v2549_v5 = vadd.f32 %v2548_v18, %v13301_v37 }
 0x3ca   : > { %v2563_v13 = vadd.f32 %v2562_v44, %v2549_v5 }
 0x3cc   : > { %v2710_v22 = vmax.f32 %v2563_v13, 0.0 }
 0x3cd   : > { %v2576_v45 = vpop.f32.mrf.mxu0 }
 0x3ce   : > { %v2748_v26 = vmul.f32 %v2730_v17, %v2710_v22  ;;  %v2577_v49 = vadd.f32 %v2576_v45, %v13301_v37 }
 0x3cf   : > { %v2550_v10 = vpop.f32.mrf.mxu2 }
 0x3d0   : > { %v2551_v24 = vadd.f32 %v2550_v10, %v13305_v12  ;;  %v2764_v62 = vpack.c.bf16 %v2748_v26, %v2747_v28  ;;  %v2591_v57 = vadd.f32 %v2590_v47, %v2577_v49 }
 0x3d2   : > { %v2565_v27 = vadd.f32 %v2564_v20, %v2551_v24  ;;  %v2785_v38 = vunpack.c.l.b16 %v2764_v62  ;;  %v2786_v1 = vunpack.c.h.b16 %v2764_v62  ;;  %v2711_v48 = vmax.f32 %v2591_v57, 0.0 }
 0x3d4   : > { %v2719_v29 = vmax.f32 %v2565_v27, 0.0  ;;  %v2749_v14 = vmul.f32 %v2731_v59, %v2711_v48  ;;  %v2734_v27 = vperm.slane %v13311_v50, 7 }
 0x3d5   : > { %v2578_v19 = vpop.f32.mrf.mxu0 }
 0x3d6   : > { %v2757_v7 = vmul.f32 %v2730_v17, %v2719_v29  ;;  %v2579_v34 = vadd.f32 %v2578_v19, %v13305_v12 }
 0x3d8   : > { %v2769_v36 = vpack.c.bf16 %v2757_v7, %v2756_v31  ;;  %v2593_v8 = vadd.f32 %v2592_v55, %v2579_v34  ;;  %v2733_v31 = vperm.slane %v13311_v50, 6 }
 0x3da   : > { %v2794_v2 = vunpack.c.l.b16 %v2769_v36  ;;  %v2795_v40 = vunpack.c.h.b16 %v2769_v36  ;;  %v2720_v35 = vmax.f32 %v2593_v8, 0.0 }
 0x3dc   : > { %v2804_v41 = vpack.c.b16 %v2795_v40, %v2786_v1  ;;  %v2803_v42 = vpack.c.b16 %v2794_v2, %v2785_v38  ;;  %v2758_v3 = vmul.f32 %v2731_v59, %v2720_v35  ;;  %v12158_v35 = vld [vmem:[%s12292_s29 + $0x8] ss:$0 sm:$0xff] }
 0x3de   : > { %2816 = vrot.lane.b32.xlu2 %v2804_v41, %s12230_s2  ;;  %2814 = vrot.lane.b32.xlu1 %v2803_v42, %s12230_s2 }
 0x3ea   : > { %v2604_v43 = vpop.f32.mrf.mxu3 }
 0x3eb   : > { %v2605_v39 = vadd.f32 %v2604_v43, %v13301_v37 }
 0x3ee   : > { %v2618_v30 = vpop.f32.mrf.mxu2 }
 0x3ef   : > { %v2619_v54 = vadd.f32 %v2618_v30, %v2605_v39 }
 0x3f1   : > { %v2712_v52 = vmax.f32 %v2619_v54, 0.0 }
 0x3f2   : > { %v2606_v56 = vpop.f32.mrf.mxu3 }
 0x3f3   : > { %v2607_v60 = vadd.f32 %v2606_v56, %v13305_v12  ;;  %v2750_v63 = vmul.f32 %v2732_v58, %v2712_v52 }
 0x3f5   : > { %v2765_v4 = vpack.c.bf16 %v2750_v63, %v2749_v14 }
 0x3f6   : > { %v2620_v61 = vpop.f32.mrf.mxu2 }
 0x3f7   : > { %v2621_v23 = vadd.f32 %v2620_v61, %v2607_v60  ;;  %v2787_v44 = vunpack.c.l.b16 %v2765_v4  ;;  %v2788_v32 = vunpack.c.h.b16 %v2765_v4 }
 0x3f9   : > { %v2721_v0 = vmax.f32 %v2621_v23, 0.0 }
 0x3fb   : > { %v2759_v25 = vmul.f32 %v2732_v58, %v2721_v0 }
 0x3fd   : > { %v2770_v11 = vpack.c.bf16 %v2759_v25, %v2758_v3 }
 0x3ff   : > { %v2796_v18 = vunpack.c.l.b16 %v2770_v11  ;;  %v2797_v6 = vunpack.c.h.b16 %v2770_v11 }
 0x401   : > { %v2806_v5 = vpack.c.b16 %v2797_v6, %v2788_v32  ;;  %v2805_v9 = vpack.c.b16 %v2796_v18, %v2787_v44 }
 0x403   : > { %2820 = vrot.lane.b32.xlu1 %v2806_v5, %s12230_s2  ;;  %2818 = vrot.lane.b32.xlu0 %v2805_v9, %s12230_s2 }
 0x406   : > { %v2632_v13 = vpop.f32.mrf.mxu1 }
 0x407   : > { %v2633_v22 = vadd.f32 %v2632_v13, %v13301_v37 }
 0x408   : > { %v2646_v33 = vpop.f32.mrf.mxu0 }
 0x409   : > { %v2647_v24 = vadd.f32 %v2646_v33, %v2633_v22 }
 0x40b   : > { %v2713_v29 = vmax.f32 %v2647_v24, 0.0 }
 0x40d   : > { %v2751_v2 = vmul.f32 %v2733_v31, %v2713_v29  ;;  %v2811_v30 = vpop.permute.xlu2 %2810 }
 0x40e   : > { %v2660_v53 = vpop.f32.mrf.mxu2  ;;  %v2634_v16 = vpop.f32.mrf.mxu1  ;;  %v13349_v52 = vsel %vm2110_vm9, 0, %v2811_v30 }
 0x40f   : > { %v2661_v17 = vadd.f32 %v2660_v53, %v13301_v37  ;;  %v2674_v10 = vpop.f32.mrf.mxu3  ;;  %v2635_v20 = vadd.f32 %v2634_v16, %v13305_v12  ;;  %v3131_v59 = vunpack.c.l.bf16 %v13349_v52 }
 0x410   : > { %v2648_v21 = vpop.f32.mrf.mxu0 }
 0x411   : > { %v2675_v46 = vadd.f32 %v2674_v10, %v2661_v17  ;;  %v2649_v15 = vadd.f32 %v2648_v21, %v2635_v20 }
 0x413   : > { %v2714_v26 = vmax.f32 %v2675_v46, 0.0  ;;  %v2722_v36 = vmax.f32 %v2649_v15, 0.0  ;;  %v3141_v46 = vunpack.c.h.bf16 %v13349_v52 }
 0x415   : > { %v2752_v38 = vmul.f32 %v2734_v27, %v2714_v26  ;;  %v2760_v41 = vmul.f32 %v2733_v31, %v2722_v36 }
 0x416   : > { %v2662_v28 = vpop.f32.mrf.mxu2  ;;  %v2702_v34 = vpop.f32.mrf.mxu1 }
 0x417   : > { %v2663_v62 = vadd.f32 %v2662_v28, %v13305_v12  ;;  %v2676_v7 = vpop.f32.mrf.mxu3  ;;  %v2766_v42 = vpack.c.bf16 %v2752_v38, %v2751_v2 }
 0x419   : > { %v2677_v1 = vadd.f32 %v2676_v7, %v2663_v62  ;;  %v2789_v43 = vunpack.c.l.b16 %v2766_v42  ;;  %v2790_v19 = vunpack.c.h.b16 %v2766_v42  ;;  %v13420_v42 = vunpack.c.h.bf16 %v12229_v51 }
 0x41b   : > { %v2723_v40 = vmax.f32 %v2677_v1, 0.0 }
 0x41d   : > { %v2761_v45 = vmul.f32 %v2734_v27, %v2723_v40 }
 0x41e   : > { %v2704_v23 = vpop.f32.mrf.mxu1 }
 0x41f   : > { %v2771_v47 = vpack.c.bf16 %v2761_v45, %v2760_v41  ;;  %v13417_v41 = vunpack.c.l.bf16 %v12229_v51 }
 0x421   : > { %v2798_v49 = vunpack.c.l.b16 %v2771_v47  ;;  %v2799_v39 = vunpack.c.h.b16 %v2771_v47  ;;  %v11971_v47 = vpack.i.bf16 %v13420_v42, %v13417_v41 }
 0x423   : > { %v2808_v50 = vpack.c.b16 %v2799_v39, %v2790_v19  ;;  %v2807_v54 = vpack.c.b16 %v2798_v49, %v2789_v43 }
 0x425   : > { %v2813_v55 = vpop.permute.xlu0 %2812  ;;  %2824 = vrot.lane.b32.xlu0 %v2808_v50, %s12230_s2  ;;  %2822 = vrot.lane.b32.xlu2 %v2807_v54, %s12230_s2 }
 0x426   : > { %v13343_v56 = vsel %vm2110_vm9, %v2811_v30, %v2813_v55 }
 0x427   : > { %v3132_v58 = vunpack.c.l.bf16 %v13343_v56  ;;  %v3142_v13 = vunpack.c.h.bf16 %v13343_v56 }
 0x428   : > { %v2688_v57 = vpop.f32.mrf.mxu0 }
 0x429   : > { %v2689_v8 = vadd.f32 %v2688_v57, %v13301_v37  ;;  %v11926_v60 = vpack.i.bf16 %v3132_v58, %v3131_v59 }
 0x42b   : > { %v2703_v48 = vadd.f32 %v2702_v34, %v2689_v8 }
 0x42d   : > { %v2715_v61 = vmax.f32 %v2703_v48, 0.0  ;;  %11927 = vrot.lane.b32.xlu2 %v11926_v60, %s15499_s1 }
 0x42f   : > { %v2753_v14 = vmul.f32 %v12158_v35, %v2715_v61 }
 0x430   : > { %v2690_v37 = vpop.f32.mrf.mxu0 }
 0x431   : > { %v2691_v63 = vadd.f32 %v2690_v37, %v13305_v12  ;;  %v2767_v4 = vpack.c.bf16 %v2753_v14, %v2753_v14 }
 0x433   : > { %v2705_v0 = vadd.f32 %v2704_v23, %v2691_v63  ;;  %v2791_v44 = vunpack.c.l.b16 %v2767_v4 }
 0x435   : > { %v2724_v3 = vmax.f32 %v2705_v0, 0.0 }
 0x437   : > { %v2762_v25 = vmul.f32 %v12158_v35, %v2724_v3 }
 0x438   : > { %v2817_v6 = vpop.permute.xlu2 %2816 }
 0x439   : > { %v2772_v11 = vpack.c.bf16 %v2762_v25, %v2762_v25 }
 0x43b   : > { %v2800_v32 = vunpack.c.l.b16 %v2772_v11 }
 0x43d   : > { %v2809_v18 = vpack.c.b16 %v2800_v32, %v2791_v44 }
 0x43f   : > { %2826 = vrot.lane.b32.xlu1 %v2809_v18, %s12230_s2  ;;  %s15497_s2 = smov 116  }
 0x450   : > { %v2815_v5 = vpop.permute.xlu1 %2814 }
 0x451   : > { %v13362_v9 = vsel %vm2110_vm9, %v2813_v55, %v2815_v5  ;;  %v13365_v12 = vsel %vm2110_vm9, %v2815_v5, %v2817_v6 }
 0x452   : > { %v3133_v33 = vunpack.c.l.bf16 %v13362_v9  ;;  %v3143_v53 = vunpack.c.h.bf16 %v13362_v9  ;;  %v3134_v16 = vunpack.c.l.bf16 %v13365_v12  ;;  %v3144_v21 = vunpack.c.h.bf16 %v13365_v12 }
 0x454   : > { %v11936_v22 = vpack.i.bf16 %v3143_v53, %v3142_v13  ;;  %v11931_v17 = vpack.i.bf16 %v3134_v16, %v3133_v33 }
 0x456   : > { %11937 = vrot.lane.b32.xlu2 %v11936_v22, %s15499_s1  ;;  %11932 = vrot.lane.b32.xlu0 %v11931_v17, %s15499_s1 }
 0x475   : > { %v2819_v10 = vpop.permute.xlu0 %2818  ;;  %v2821_v28 = vpop.permute.xlu1 %2820 }
 0x476   : > { %v13382_v20 = vsel %vm2110_vm9, %v2817_v6, %v2819_v10  ;;  %v13399_v29 = vsel %vm2110_vm9, %v2819_v10, %v2821_v28 }
 0x477   : > { %v3135_v24 = vunpack.c.l.bf16 %v13382_v20  ;;  %v3145_v15 = vunpack.c.h.bf16 %v13382_v20  ;;  %v3136_v7 = vunpack.c.l.bf16 %v13399_v29  ;;  %v3146_v36 = vunpack.c.h.bf16 %v13399_v29  ;;  %v11513_v29 = vld [vmem:[%s15581_s3 + $0x170] sm:$0xf0] }
 0x479   : > { %v11941_v26 = vpack.i.bf16 %v3141_v46, %v3135_v24  ;;  %v11946_v27 = vpack.i.bf16 %v3145_v15, %v3144_v21 }
 0x47b   : > { %11942 = vrot.lane.b32.xlu1 %v11941_v26, %s15499_s1  ;;  %11947 = vrot.lane.b32.xlu0 %v11946_v27, %s15499_s1 }
 0x47f   : > { %v2823_v31 = vpop.permute.xlu2 %2822 }
 0x480   : > { %v13402_v62 = vsel %vm2110_vm9, %v2821_v28, %v2823_v31 }
 0x481   : > { %v3147_v38 = vunpack.c.h.bf16 %v13402_v62  ;;  %v3137_v1 = vunpack.c.l.bf16 %v13402_v62 }
 0x483   : > { %v11956_v2 = vpack.i.bf16 %v3147_v38, %v3146_v36  ;;  %v11951_v40 = vpack.i.bf16 %v3137_v1, %v3136_v7 }
 0x485   : > { %11957 = vrot.lane.b32.xlu2 %v11956_v2, %s15499_s1  ;;  %11952 = vrot.lane.b32.xlu1 %v11951_v40, %s15499_s1 }
 0x487   : > { %v11928_v8 = vpop.permute.xlu2 %11927 }
 0x488   : > { %v11930_v35 = vunpack.i.h.bf16 %v11928_v8  ;;  %v11929_v37 = vunpack.i.l.bf16 %v11928_v8 }
 0x48a   : > { %v3212_v3 = vsel %vm1432_vm8, %v11929_v37, %v11930_v35 }
 0x48b   : > { %v13458_v32 = vmax.f32 %v3131_v59, %v3212_v3 }
 0x48d   : > { %11972 = vrot.lane.b32.xlu2 %v11971_v47, %s15499_s1 }
 0x497   : > { %v2825_v45 = vpop.permute.xlu0 %2824 }
 0x498   : > { %v13425_v43 = vsel %vm2110_vm9, %v2823_v31, %v2825_v45 }
 0x499   : > { %v3138_v30 = vunpack.c.l.bf16 %v13425_v43  ;;  %v3148_v34 = vunpack.c.h.bf16 %v13425_v43 }
 0x4b0   : > { %v11938_v60 = vpop.permute.xlu2 %11937 }
 0x4b1   : > { %v2827_v19 = vpop.permute.xlu1 %2826  ;;  %v11940_v63 = vunpack.i.h.bf16 %v11938_v60  ;;  %v11939_v23 = vunpack.i.l.bf16 %v11938_v60  ;;  %v11489_v60 = vld [vmem:[%s15581_s3 + $0xb0] sm:$0xf0] }
 0x4b2   : > { %v2835_v49 = vsel %vm2110_vm9, %v2825_v45, %v2827_v19  ;;  %vm6464_vm9 = vcmask 1044480  }
 0x4b3   : > { %v13430_v39 = vsel %vm2131_vm10, %v2835_v49, 0  ;;  %v3222_v11 = vsel %vm1432_vm8, %v11939_v23, %v11940_v63 }
 0x4b4   : > { %v3139_v50 = vunpack.c.l.bf16 %v13430_v39  ;;  %v3149_v54 = vunpack.c.h.bf16 %v13430_v39 }
 0x4b6   : > { %v11966_v55 = vpack.i.bf16 %v3149_v54, %v3148_v34  ;;  %v11961_v57 = vpack.i.bf16 %v3139_v50, %v3138_v30 }
 0x4b8   : > { %11962 = vrot.lane.b32.xlu0 %v11961_v57, %s15499_s1  ;;  %11967 = vrot.lane.b32.xlu1 %v11966_v55, %s15499_s1 }
 0x4c8   : > { %v11933_v48 = vpop.permute.xlu0 %11932 }
 0x4c9   : > { %v11934_v61 = vunpack.i.l.bf16 %v11933_v48  ;;  %v11935_v14 = vunpack.i.h.bf16 %v11933_v48 }
 0x4cb   : > { %v3213_v0 = vsel %vm1432_vm8, %v11930_v35, %v11934_v61  ;;  %v3214_v44 = vsel %vm1432_vm8, %v11934_v61, %v11935_v14  ;;  %v10196_v61 = vld [vmem:[%s15581_s3 + $0x228] sm:$0xf]  ;;  %v11537_v35 = vld [vmem:[%s15581_s3 + $0x230] sm:$0xf0] }
 0x4cc   : > { %v13452_v25 = vmax.f32 %v3132_v58, %v3213_v0  ;;  %v13464_v58 = vmax.f32 %v3142_v13, %v3222_v11  ;;  %v13468_v28 = vmax.f32 %v3133_v33, %v3214_v44  ;;  %v9992_v0 = vld [vmem:[%s15581_s3 + $0x90] sm:$0xf]  ;;  %v11486_v11 = vld [vmem:[%s15581_s3 + $0x98] sm:$0xf0] }
 0x4cd   : > { %v10184_v44 = vld [vmem:[%s15581_s3 + $0x210] sm:$0xf] }
 0x4df   : > { %v13448_v4 = vpop.permute.xlu2 %11957 }
 0x4e0   : > { %v11960_v18 = vunpack.i.h.bf16 %v13448_v4  ;;  %v11959_v6 = vunpack.i.l.bf16 %v13448_v4 }
 0x4e2   : > { %v3226_v47 = vsel %vm1432_vm8, %v11959_v6, %v11960_v18 }
 0x4e3   : > { %v13498_v52 = vmax.f32 %v3146_v36, %v3226_v47  ;;  %v10280_v47 = vld [vmem:[%s15581_s3 + $0x2d0] sm:$0xf] }
 0x4ed   : > { %v11943_v5 = vpop.permute.xlu1 %11942  ;;  %v11948_v22 = vpop.permute.xlu0 %11947 }
 0x4ee   : > { %v11945_v17 = vunpack.i.h.bf16 %v11943_v5  ;;  %v11944_v10 = vunpack.i.l.bf16 %v11943_v5  ;;  %v11950_v26 = vunpack.i.h.bf16 %v11948_v22  ;;  %v11949_v27 = vunpack.i.l.bf16 %v11948_v22 }
 0x4ef   : > { %v9993_v5 = vor.u32 %v11486_v11, %v9992_v0  ;;  %v9968_v11 = vld [vmem:[%s15581_s3 + $0x60] sm:$0xf] }
 0x4f0   : > { %v3215_v59 = vsel %vm1432_vm8, %v11935_v14, %v11944_v10  ;;  %v3221_v31 = vsel %vm1432_vm8, %v11945_v17, %v11939_v23  ;;  %v3223_v2 = vsel %vm1432_vm8, %v11940_v63, %v11949_v27  ;;  %v3224_v40 = vsel %vm1432_vm8, %v11949_v27, %v11950_v26  ;;  %v10088_v23 = vld [vmem:[%s15581_s3 + $0x150] sm:$0xf]  ;;  %v11510_v14 = vld [vmem:[%s15581_s3 + $0x158] sm:$0xf0]  ;;  %v10292_v17 = vld [vmem:[%s15581_s3 + $0x2e8] sm:$0xf] }
 0x4f1   : > { %v13476_v45 = vmax.f32 %v3134_v16, %v3215_v59  ;;  %v13480_v56 = vmax.f32 %v3141_v46, %v3221_v31  ;;  %v3225_v13 = vsel %vm1432_vm8, %v11950_v26, %v11959_v6  ;;  %v13485_v33 = vmax.f32 %v3143_v53, %v3223_v2  ;;  %v11534_v6 = vld [vmem:[%s15581_s3 + $0x218] sm:$0xf0]  ;;  %v10076_v26 = vld [vmem:[%s15581_s3 + $0x138] sm:$0xf]  ;;  %v11507_v59 = vld [vmem:[%s15581_s3 + $0x140] sm:$0xf0] }
 0x4f2   : > { %v13492_v19 = vmax.f32 %v3144_v21, %v3224_v40  ;;  %v13496_v16 = vmax.f32 %v3145_v15, %v3225_v13  ;;  %v11976_v46 = vpack.i.bf16 %v13468_v28, %v13452_v25  ;;  %v10197_v63 = vor.u32 %v11537_v35, %v10196_v61  ;;  %v9980_v31 = vld [vmem:[%s15581_s3 + $0x78] sm:$0xf]  ;;  %v11483_v2 = vld [vmem:[%s15581_s3 + $0x80] sm:$0xf0] }
 0x4f3   : > { %v11981_v53 = vpack.i.bf16 %v13485_v33, %v13464_v58  ;;  %v11996_v8 = vpack.i.bf16 %v13480_v56, %v13458_v32  ;;  %v10089_v3 = vor.u32 %v11510_v14, %v10088_v23  ;;  %v10185_v22 = vor.u32 %v11534_v6, %v10184_v44  ;;  %v10172_v40 = vld [vmem:[%s15581_s3 + $0x1f8] sm:$0xf]  ;;  %v11531_v13 = vld [vmem:[%s15581_s3 + $0x200] sm:$0xf0]  ;;  %v11480_v44 = vld [vmem:[%s15581_s3 + $0x68] sm:$0xf0] }
 0x4f4   : > { %11977 = vrot.lane.b32.xlu0 %v11976_v46, %s12226_s26  ;;  %v11991_v57 = vpack.i.bf16 %v13496_v16, %v13492_v19  ;;  %4595 = vmatpush.bf16.msrb.mxu1 %v10197_v63  ;;  %v11973_v46 = vpop.permute.xlu2 %11972  ;;  %v10160_v6 = vld [vmem:[%s15581_s3 + $0x1e0] sm:$0xf] }
 0x4f5   : > { %11982 = vrot.lane.b32.xlu1 %v11981_v53, %s12226_s26  ;;  %v10077_v53 = vor.u32 %v11507_v59, %v10076_v26  ;;  %v10052_v59 = vld [vmem:[%s15581_s3 + $0x108] sm:$0xf] }
 0x4f7   : > { %v13502_v9 = vpop.permute.xlu1 %11952 }
 0x4f8   : > { %v11955_v12 = vunpack.i.h.bf16 %v13502_v9  ;;  %v11954_v21 = vunpack.i.l.bf16 %v13502_v9  ;;  %4596 = vmatpush.bf16.msrb.mxu1 %v10185_v22  ;;  %v11528_v22 = vld [vmem:[%s15581_s3 + $0x1e8] sm:$0xf0] }
 0x4f9   : > { %v10161_v26 = vor.u32 %v11528_v22, %v10160_v6  ;;  %v9920_v6 = vld [vmem:[%s15581_s3] sm:$0xf]  ;;  %v11468_v22 = vld [vmem:[%s15581_s3 + $0x8] sm:$0xf0] }
 0x4fa   : > { %v3216_v15 = vsel %vm1432_vm8, %v11944_v10, %v11954_v21  ;;  %v3217_v36 = vsel %vm1432_vm8, %v11954_v21, %v11955_v12  ;;  %v11561_v10 = vld [vmem:[%s15581_s3 + $0x2f0] sm:$0xf0]  ;;  %v11558_v21 = vld [vmem:[%s15581_s3 + $0x2d8] sm:$0xf0] }
 0x4fb   : > { %v13516_v49 = vmax.f32 %v3135_v24, %v3216_v15  ;;  %v13520_v55 = vmax.f32 %v3136_v7, %v3217_v36  ;;  %v10100_v24 = vld [vmem:[%s15581_s3 + $0x168] sm:$0xf]  ;;  %v10293_v27 = vor.u32 %v11561_v10, %v10292_v17  ;;  %v9981_v15 = vor.u32 %v11483_v2, %v9980_v31  ;;  %v10268_v17 = vld [vmem:[%s15581_s3 + $0x2b8] sm:$0xf]  ;;  %v11555_v10 = vld [vmem:[%s15581_s3 + $0x2c0] sm:$0xf0] }
 0x4fc   : > { %11992 = vrot.lane.b32.xlu0 %v11991_v57, %s12226_s26  ;;  %v10004_v7 = vld [vmem:[%s15581_s3 + $0xa8] sm:$0xf]  ;;  %v10101_v48 = vor.u32 %v11513_v29, %v10100_v24  ;;  %v10173_v36 = vor.u32 %v11531_v13, %v10172_v40  ;;  %v10281_v57 = vor.u32 %v11558_v21, %v10280_v47  ;;  %v11975_v29 = vunpack.i.h.bf16 %v11973_v46  ;;  %v11501_v31 = vld [vmem:[%s15581_s3 + $0x110] sm:$0xf0] }
 0x4fd   : > { %11997 = vrot.lane.b32.xlu1 %v11996_v8, %s12226_s26  ;;  %v11986_v20 = vpack.i.bf16 %v13516_v49, %v13476_v45  ;;  %v10005_v37 = vor.u32 %v11489_v60, %v10004_v7  ;;  %4609 = vmatpush.bf16.msrb.mxu0 %v10293_v27  ;;  %v11974_v8 = vunpack.i.l.bf16 %v11973_v46  ;;  %v10269_v27 = vor.u32 %v11555_v10, %v10268_v17  ;;  %v9956_v2 = vld [vmem:[%s15581_s3 + $0x48] sm:$0xf]  ;;  %v11477_v13 = vld [vmem:[%s15581_s3 + $0x50] sm:$0xf0]  ;;  %v10112_v17 = vld [vmem:[%s15581_s3 + $0x180] sm:$0xf] }
 0x4fe   : > { %4581 = vmatpush.bf16.msrb.mxu2 %v10101_v48  ;;  %4597 = vmatpush.bf16.msrb.mxu1 %v10173_v36  ;;  %v10053_v40 = vor.u32 %v11501_v31, %v10052_v59  ;;  %v10148_v47 = vld [vmem:[%s15581_s3 + $0x1c8] sm:$0xf]  ;;  %v11525_v46 = vld [vmem:[%s15581_s3 + $0x1d0] sm:$0xf0]  ;;  %v11552_v36 = vld [vmem:[%s15581_s3 + $0x2a8] sm:$0xf0] }
 0x4ff   : > { %11987 = vrot.lane.b32.xlu2 %v11986_v20, %s12226_s26  ;;  %4567 = vmatpush.bf16.msrb.mxu3 %v10005_v37  ;;  %v3259_v35 = vmax.f32 %v13417_v41, %v11974_v8  ;;  %v10149_v21 = vor.u32 %v11525_v46, %v10148_v47  ;;  %v11516_v10 = vld [vmem:[%s15581_s3 + $0x188] sm:$0xf0]  ;;  %v10220_v59 = vld [vmem:[%s15581_s3 + $0x258] sm:$0xf]  ;;  %v11543_v31 = vld [vmem:[%s15581_s3 + $0x260] sm:$0xf0] }
 0x500   : > { %v10484_v47 = vld [vmem:[%s15581_s3 + $0x468] sm:$0xf]  ;;  %v11609_v46 = vld [vmem:[%s15581_s3 + $0x470] sm:$0xf0] }
 0x501   : > { %4610 = vmatpush.bf16.msrb.mxu0 %v10281_v57  ;;  %v10040_v57 = vld [vmem:[%s15581_s3 + $0xf0] sm:$0xf] }
 0x502   : > { %4582 = vmatpush.bf16.msrb.mxu2 %v10089_v3  ;;  %4598 = vmatpush.bf16.msrb.mxu1 %v10161_v26  ;;  %v9921_v26 = vor.u32 %v11468_v22, %v9920_v6  ;;  %v10352_v6 = vld [vmem:[%s15581_s3 + $0x360] sm:$0xf]  ;;  %v11576_v22 = vld [vmem:[%s15581_s3 + $0x368] sm:$0xf0] }
 0x503   : > { %4568 = vmatpush.bf16.msrb.mxu3 %v9993_v5  ;;  %v9969_v5 = vor.u32 %v11480_v44, %v9968_v11  ;;  %v10016_v11 = vld [vmem:[%s15581_s3 + $0xc0] sm:$0xf]  ;;  %v11492_v44 = vld [vmem:[%s15581_s3 + $0xc8] sm:$0xf0] }
 0x505   : > { %4611 = vmatpush.bf16.msrb.mxu0 %v10269_v27  ;;  %v10113_v27 = vor.u32 %v11516_v10, %v10112_v17  ;;  %v10448_v17 = vld [vmem:[%s15581_s3 + $0x420] sm:$0xf]  ;;  %v11600_v10 = vld [vmem:[%s15581_s3 + $0x428] sm:$0xf0] }
 0x506   : > { %4583 = vmatpush.bf16.msrb.mxu2 %v10077_v53  ;;  %v9957_v53 = vor.u32 %v11477_v13, %v9956_v2  ;;  %4599 = vmatpush.bf16.msrb.mxu1 %v10149_v21  ;;  %v10388_v2 = vld [vmem:[%s15581_s3 + $0x3a8] sm:$0xf]  ;;  %v11585_v13 = vld [vmem:[%s15581_s3 + $0x3b0] sm:$0xf0]  ;;  %v10485_v21 = vor.u32 %v11609_v46, %v10484_v47 }
 0x507   : > { %4569 = vmatpush.bf16.msrb.mxu3 %v9981_v15  ;;  %v10256_v15 = vld [vmem:[%s15581_s3 + $0x2a0] sm:$0xf]  ;;  %v10340_v47 = vld [vmem:[%s15581_s3 + $0x348] sm:$0xf]  ;;  %v11573_v46 = vld [vmem:[%s15581_s3 + $0x350] sm:$0xf0] }
 0x50b   : > { %4570 = vmatpush.bf16.msrb.mxu3 %v9969_v5  ;;  %v10017_v5 = vor.u32 %v11492_v44, %v10016_v11  ;;  %v10664_v11 = vld [vmem:[%s15581_s3 + $0x5d0] sm:$0xf]  ;;  %v11654_v44 = vld [vmem:[%s15581_s3 + $0x5d8] sm:$0xf0] }
 0x50f   : > { %4571 = vmatpush.bf16.msrb.mxu3 %v9957_v53  ;;  %v10389_v53 = vor.u32 %v11585_v13, %v10388_v2  ;;  %v10652_v2 = vld [vmem:[%s15581_s3 + $0x5b8] sm:$0xf]  ;;  %v11651_v13 = vld [vmem:[%s15581_s3 + $0x5c0] sm:$0xf0] }
 0x52a   : > { %v11963_v20 = vpop.permute.xlu0 %11962  ;;  %v11968_v24 = vpop.permute.xlu1 %11967 }
 0x52b   : > { %v11965_v7 = vunpack.i.h.bf16 %v11963_v20  ;;  %v11964_v48 = vunpack.i.l.bf16 %v11963_v20  ;;  %v11970_v60 = vunpack.i.h.bf16 %v11968_v24  ;;  %v11969_v61 = vunpack.i.l.bf16 %v11968_v24  ;;  %v11498_v20 = vld [vmem:[%s15581_s3 + $0xf8] sm:$0xf0]  ;;  %v9944_v24 = vld [vmem:[%s15581_s3 + $0x30] sm:$0xf] }
 0x52d   : > { %v3218_v37 = vsel %vm1432_vm8, %v11955_v12, %v11964_v48  ;;  %v3219_v63 = vsel %vm1432_vm8, %v11964_v48, %v11965_v7  ;;  %v3227_v23 = vsel %vm1432_vm8, %v11960_v18, %v11969_v61  ;;  %v3228_v14 = vsel %vm1432_vm8, %v11969_v61, %v11970_v60  ;;  %v10136_v48 = vld [vmem:[%s15581_s3 + $0x1b0] sm:$0xf]  ;;  %v10244_v61 = vld [vmem:[%s15581_s3 + $0x288] sm:$0xf] }
 0x52e   : > { %v13564_v0 = vmax.f32 %v3137_v1, %v3218_v37  ;;  %v13568_v3 = vmax.f32 %v3138_v30, %v3219_v63  ;;  %v13572_v41 = vmax.f32 %v3147_v38, %v3227_v23  ;;  %v13576_v9 = vmax.f32 %v3148_v34, %v3228_v14  ;;  %v11549_v37 = vld [vmem:[%s15581_s3 + $0x290] sm:$0xf0]  ;;  %v10028_v14 = vld [vmem:[%s15581_s3 + $0xd8] sm:$0xf] }
 0x52f   : > { %v3229_v4 = vsel %vm1432_vm8, %v11970_v60, %v11975_v29  ;;  %v3269_v18 = vmax.f32 %v13420_v42, %v11975_v29  ;;  %v3220_v1 = vsel %vm1432_vm8, %v11965_v7, %v11974_v8  ;;  %v10257_v8 = vor.u32 %v11552_v36, %v10256_v15  ;;  %v11474_v29 = vld [vmem:[%s15581_s3 + $0x38] sm:$0xf0]  ;;  %v10580_v15 = vld [vmem:[%s15581_s3 + $0x528] sm:$0xf]  ;;  %v11633_v36 = vld [vmem:[%s15581_s3 + $0x530] sm:$0xf0] }
 0x530   : > { %v13583_v30 = vmax.f32 %v3149_v54, %v3229_v4  ;;  %v13587_v62 = vmax.f32 %v3139_v50, %v3220_v1  ;;  %v12001_v38 = vpack.i.bf16 %v13564_v0, %v13520_v55  ;;  %v12006_v43 = vpack.i.bf16 %v13572_v41, %v13498_v52  ;;  %v10064_v50 = vld [vmem:[%s15581_s3 + $0x120] sm:$0xf]  ;;  %v11504_v54 = vld [vmem:[%s15581_s3 + $0x128] sm:$0xf0]  ;;  %v11522_v60 = vld [vmem:[%s15581_s3 + $0x1b8] sm:$0xf0] }
 0x531   : > { %v12021_v34 = vpack.i.bf16 %v3269_v18, %v3259_v35  ;;  %v10065_v12 = vor.u32 %v11504_v54, %v10064_v50  ;;  %v10041_v7 = vor.u32 %v11498_v20, %v10040_v57  ;;  %v9945_v35 = vor.u32 %v11474_v29, %v9944_v24  ;;  %4612 = vmatpush.bf16.msrb.mxu0 %v10257_v8  ;;  %v11495_v4 = vld [vmem:[%s15581_s3 + $0xe0] sm:$0xf0]  ;;  %v9932_v1 = vld [vmem:[%s15581_s3 + $0x18] sm:$0xf]  ;;  %v11546_v50 = vld [vmem:[%s15581_s3 + $0x278] sm:$0xf0] }
 0x532   : > { %12002 = vrot.lane.b32.xlu2 %v12001_v38, %s12226_s26  ;;  %12007 = vrot.lane.b32.xlu0 %v12006_v43, %s12226_s26  ;;  %v12011_v42 = vpack.i.bf16 %v13587_v62, %v13568_v3  ;;  %v12016_v39 = vpack.i.bf16 %v13583_v30, %v13576_v9  ;;  %v10137_v63 = vor.u32 %v11522_v60, %v10136_v48  ;;  %v11471_v38 = vld [vmem:[%s15581_s3 + $0x20] sm:$0xf0]  ;;  %v10124_v43 = vld [vmem:[%s15581_s3 + $0x198] sm:$0xf] }
 0x533   : > { %4584 = vmatpush.bf16.msrb.mxu2 %v10065_v12  ;;  %v10245_v23 = vor.u32 %v11549_v37, %v10244_v61  ;;  %4572 = vmatpush.bf16.msrb.mxu3 %v9945_v35  ;;  %v10029_v18 = vor.u32 %v11495_v4, %v10028_v14  ;;  %v10581_v57 = vor.u32 %v11633_v36, %v10580_v15  ;;  %v10208_v8 = vld [vmem:[%s15581_s3 + $0x240] sm:$0xf]  ;;  %v11540_v20 = vld [vmem:[%s15581_s3 + $0x248] sm:$0xf0]  ;;  %v10376_v29 = vld [vmem:[%s15581_s3 + $0x390] sm:$0xf] }
 0x534   : > { %12012 = vrot.lane.b32.xlu1 %v12011_v42, %s12226_s26  ;;  %4600 = vmatpush.bf16.msrb.mxu1 %v10137_v63  ;;  %v9933_v42 = vor.u32 %v11471_v38, %v9932_v1  ;;  %v10209_v24 = vor.u32 %v11540_v20, %v10208_v8  ;;  %v10472_v48 = vld [vmem:[%s15581_s3 + $0x450] sm:$0xf]  ;;  %v11606_v61 = vld [vmem:[%s15581_s3 + $0x458] sm:$0xf0]  ;;  %v10676_v14 = vld [vmem:[%s15581_s3 + $0x5e8] sm:$0xf] }
 0x535   : > { %4613 = vmatpush.bf16.msrb.mxu0 %v10245_v23  ;;  %v10568_v35 = vld [vmem:[%s15581_s3 + $0x510] sm:$0xf]  ;;  %v11630_v37 = vld [vmem:[%s15581_s3 + $0x518] sm:$0xf0]  ;;  %v10473_v63 = vor.u32 %v11606_v61, %v10472_v48  ;;  %v11657_v4 = vld [vmem:[%s15581_s3 + $0x5f0] sm:$0xf0] }
 0x536   : > { %v10569_v23 = vor.u32 %v11630_v37, %v10568_v35  ;;  %v10364_v1 = vld [vmem:[%s15581_s3 + $0x378] sm:$0xf]  ;;  %v11579_v38 = vld [vmem:[%s15581_s3 + $0x380] sm:$0xf0]  ;;  %v11597_v15 = vld [vmem:[%s15581_s3 + $0x410] sm:$0xf0] }
 0x537   : > { %4585 = vmatpush.bf16.msrb.mxu2 %v10053_v40  ;;  %4573 = vmatpush.bf16.msrb.mxu3 %v9933_v42  ;;  %v10221_v40 = vor.u32 %v11543_v31, %v10220_v59  ;;  %v10365_v42 = vor.u32 %v11579_v38, %v10364_v1  ;;  %v10544_v59 = vld [vmem:[%s15581_s3 + $0x4e0] sm:$0xf]  ;;  %v11624_v31 = vld [vmem:[%s15581_s3 + $0x4e8] sm:$0xf0]  ;;  %v10532_v36 = vld [vmem:[%s15581_s3 + $0x4c8] sm:$0xf] }
 0x538   : > { %v10640_v8 = vld [vmem:[%s15581_s3 + $0x5a0] sm:$0xf]  ;;  %v11648_v20 = vld [vmem:[%s15581_s3 + $0x5a8] sm:$0xf0]  ;;  %v11570_v48 = vld [vmem:[%s15581_s3 + $0x338] sm:$0xf0] }
 0x539   : > { %v10641_v61 = vor.u32 %v11648_v20, %v10640_v8  ;;  %v10424_v35 = vld [vmem:[%s15581_s3 + $0x3f0] sm:$0xf]  ;;  %v11594_v37 = vld [vmem:[%s15581_s3 + $0x3f8] sm:$0xf0]  ;;  %v10316_v38 = vld [vmem:[%s15581_s3 + $0x318] sm:$0xf] }
 0x53a   : > { %12017 = vrot.lane.b32.xlu2 %v12016_v39, %s12226_s26  ;;  %12022 = vrot.lane.b32.xlu0 %v12021_v34, %s12226_s26  ;;  %v11519_v39 = vld [vmem:[%s15581_s3 + $0x1a0] sm:$0xf0]  ;;  %v10232_v34 = vld [vmem:[%s15581_s3 + $0x270] sm:$0xf]  ;;  %v10425_v1 = vor.u32 %v11594_v37, %v10424_v35  ;;  %s15585_s26 = sld [smem:[#allocation11_spill]] }
 0x53b   : > { %4586 = vmatpush.bf16.msrb.mxu2 %v10041_v7  ;;  %v10125_v54 = vor.u32 %v11519_v39, %v10124_v43  ;;  %v10233_v12 = vor.u32 %v11546_v50, %v10232_v34  ;;  %4574 = vmatpush.bf16.msrb.mxu3 %v9921_v26  ;;  %v11582_v7 = vld [vmem:[%s15581_s3 + $0x398] sm:$0xf0]  ;;  %v10460_v43 = vld [vmem:[%s15581_s3 + $0x438] sm:$0xf]  ;;  %v11603_v39 = vld [vmem:[%s15581_s3 + $0x440] sm:$0xf0]  ;;  %v10353_v26 = vor.u32 %v11576_v22, %v10352_v6 }
 0x53c   : > { %v10377_v60 = vor.u32 %v11582_v7, %v10376_v29  ;;  %v10556_v34 = vld [vmem:[%s15581_s3 + $0x4f8] sm:$0xf]  ;;  %v11627_v50 = vld [vmem:[%s15581_s3 + $0x500] sm:$0xf0]  ;;  %v10328_v7 = vld [vmem:[%s15581_s3 + $0x330] sm:$0xf] }
 0x53d   : > { %4601 = vmatpush.bf16.msrb.mxu1 %v10125_v54  ;;  %4614 = vmatpush.bf16.msrb.mxu0 %v10233_v12  ;;  %v10461_v54 = vor.u32 %v11603_v39, %v10460_v43  ;;  %v10557_v12 = vor.u32 %v11627_v50, %v10556_v34  ;;  %v11567_v43 = vld [vmem:[%s15581_s3 + $0x320] sm:$0xf0]  ;;  %v10412_v50 = vld [vmem:[%s15581_s3 + $0x3d8] sm:$0xf]  ;;  %v11642_v6 = vld [vmem:[%s15581_s3 + $0x578] sm:$0xf0] }
 0x53e   : > { %v10604_v35 = vld [vmem:[%s15581_s3 + $0x558] sm:$0xf]  ;;  %v11639_v37 = vld [vmem:[%s15581_s3 + $0x560] sm:$0xf0] }
 0x53f   : > { %4587 = vmatpush.bf16.msrb.mxu2 %v10029_v18  ;;  %4623 = vmatpush.bf16.msra.mxu3 %v10389_v53  ;;  %v10677_v18 = vor.u32 %v11657_v4, %v10676_v14  ;;  %v10653_v53 = vor.u32 %v11651_v13, %v10652_v2  ;;  %v10628_v14 = vld [vmem:[%s15581_s3 + $0x588] sm:$0xf]  ;;  %v11645_v4 = vld [vmem:[%s15581_s3 + $0x590] sm:$0xf0] }
 0x540   : > { %v10629_v34 = vor.u32 %v11645_v4, %v10628_v14  ;;  %v10605_v14 = vor.u32 %v11639_v37, %v10604_v35  ;;  %v11479_v35 = vld [vmem:[%s15581_s3 + $0x64] sm:$0xf]  ;;  %v9970_v37 = vld [vmem:[%s15581_s3 + $0x6c] sm:$0xf0] }
 0x541   : > { %4602 = vmatpush.bf16.msrb.mxu1 %v10113_v27  ;;  %4615 = vmatpush.bf16.msrb.mxu0 %v10221_v40  ;;  %v10449_v27 = vor.u32 %v11600_v10, %v10448_v17  ;;  %v10545_v40 = vor.u32 %v11624_v31, %v10544_v59  ;;  %v10317_v10 = vor.u32 %v11567_v43, %v10316_v38  ;;  %v11512_v38 = vld [vmem:[%s15581_s3 + $0x16c] sm:$0xf]  ;;  %v10592_v43 = vld [vmem:[%s15581_s3 + $0x540] sm:$0xf] }
 0x543   : > { %4588 = vmatpush.bf16.msrb.mxu2 %v10017_v5  ;;  %4624 = vmatpush.bf16.msra.mxu3 %v10377_v60  ;;  %v10665_v5 = vor.u32 %v11654_v44, %v10664_v11  ;;  %v11615_v11 = vld [vmem:[%s15581_s3 + $0x4a0] sm:$0xf0]  ;;  %v10616_v44 = vld [vmem:[%s15581_s3 + $0x570] sm:$0xf] }
 0x545   : > { %4651 = vmatpush.bf16.msra.mxu1 %v10581_v57  ;;  %4616 = vmatpush.bf16.msrb.mxu0 %v10209_v24  ;;  %v11621_v57 = vld [vmem:[%s15581_s3 + $0x4d0] sm:$0xf0]  ;;  %v10341_v24 = vor.u32 %v11573_v46, %v10340_v47 }
 0x546   : > { %v10533_v60 = vor.u32 %v11621_v57, %v10532_v36  ;;  %v11564_v36 = vld [vmem:[%s15581_s3 + $0x308] sm:$0xf0]  ;;  %v10400_v57 = vld [vmem:[%s15581_s3 + $0x3c0] sm:$0xf] }
 0x547   : > { %4637 = vmatpush.bf16.msra.mxu2 %v10485_v21  ;;  %4625 = vmatpush.bf16.msra.mxu3 %v10365_v42  ;;  %v10436_v21 = vld [vmem:[%s15581_s3 + $0x408] sm:$0xf] }
 0x548   : > { %v10437_v29 = vor.u32 %v11597_v15, %v10436_v21  ;;  %v10304_v15 = vld [vmem:[%s15581_s3 + $0x300] sm:$0xf] }
 0x549   : > { %4652 = vmatpush.bf16.msra.mxu1 %v10569_v23  ;;  %4665 = vmatpush.bf16.msra.mxu0 %v10677_v18  ;;  %v11618_v23 = vld [vmem:[%s15581_s3 + $0x4b8] sm:$0xf0]  ;;  %v10329_v18 = vor.u32 %v11570_v48, %v10328_v7  ;;  %v11612_v7 = vld [vmem:[%s15581_s3 + $0x488] sm:$0xf0] }
 0x54b   : > { %4638 = vmatpush.bf16.msra.mxu2 %v10473_v63  ;;  %4626 = vmatpush.bf16.msra.mxu3 %v10353_v26  ;;  %v10520_v63 = vld [vmem:[%s15581_s3 + $0x4b0] sm:$0xf] }
 0x54c   : > { %v10521_v39 = vor.u32 %v11618_v23, %v10520_v63  ;;  %v11488_v63 = vld [vmem:[%s15581_s3 + $0xac] sm:$0xf] }
 0x54d   : > { %4653 = vmatpush.bf16.msra.mxu1 %v10557_v12  ;;  %4666 = vmatpush.bf16.msra.mxu0 %v10665_v5  ;;  %v10508_v12 = vld [vmem:[%s15581_s3 + $0x498] sm:$0xf] }
 0x54e   : > { %v10509_v2 = vor.u32 %v11615_v11, %v10508_v12  ;;  %v13743_v12 = vld [vmem:[%s15581_s3 + $0x690] sm:$0x11] }
 0x54f   : > { %4639 = vmatpush.bf16.msra.mxu2 %v10461_v54  ;;  %4627 = vmatpush.bf16.msra.mxu3 %v10341_v24  ;;  %v11591_v54 = vld [vmem:[%s15581_s3 + $0x3e0] sm:$0xf0]  ;;  %v10305_v24 = vor.u32 %v11564_v36, %v10304_v15 }
 0x550   : > { %v10413_v26 = vor.u32 %v11591_v54, %v10412_v50 }
 0x551   : > { %4654 = vmatpush.bf16.msra.mxu1 %v10545_v40  ;;  %4667 = vmatpush.bf16.msra.mxu0 %v10653_v53  ;;  %v10617_v40 = vor.u32 %v11642_v6, %v10616_v44 }
 0x553   : > { %4640 = vmatpush.bf16.msra.mxu2 %v10449_v27  ;;  %4628 = vmatpush.bf16.msra.mxu3 %v10329_v18 }
 0x555   : > { %4655 = vmatpush.bf16.msra.mxu1 %v10533_v60  ;;  %4668 = vmatpush.bf16.msra.mxu0 %v10641_v61 }
 0x557   : > { %4641 = vmatpush.bf16.msra.mxu2 %v10437_v29  ;;  %4629 = vmatpush.bf16.msra.mxu3 %v10317_v10  ;;  %v11588_v29 = vld [vmem:[%s15581_s3 + $0x3c8] sm:$0xf0]  ;;  %v11485_v10 = vld [vmem:[%s15581_s3 + $0x94] sm:$0xf] }
 0x558   : > { %v10401_v60 = vor.u32 %v11588_v29, %v10400_v57 }
 0x559   : > { %v13692_v42 = vpop.permute.xlu2 %11987  ;;  %4656 = vmatpush.bf16.msra.mxu1 %v10521_v39  ;;  %4669 = vmatpush.bf16.msra.mxu0 %v10629_v34 }
 0x55a   : > { %v11990_v5 = vunpack.i.h.bf16 %v13692_v42  ;;  %v11989_v22 = vunpack.i.l.bf16 %v13692_v42 }
 0x55b   : > { %4642 = vmatpush.bf16.msra.mxu2 %v10425_v1  ;;  %4630 = vmatpush.bf16.msra.mxu3 %v10305_v24  ;;  %v11482_v24 = vld [vmem:[%s15581_s3 + $0x7c] sm:$0xf] }
 0x55c   : > { %v3364_v8 = vsel %vm1504_vm6, %v11989_v22, %v11990_v5 }
 0x55d   : > { %4657 = vmatpush.bf16.msra.mxu1 %v10509_v2  ;;  %4670 = vmatpush.bf16.msra.mxu0 %v10617_v40  ;;  %v3400_v4 = vmax.f32 %v13476_v45, %v3364_v8  ;;  %v11636_v45 = vld [vmem:[%s15581_s3 + $0x548] sm:$0xf0]  ;;  %v10294_v40 = vld [vmem:[%s15581_s3 + $0x2f4] sm:$0xf0] }
 0x55e   : > { %v10593_v6 = vor.u32 %v11636_v45, %v10592_v43  ;;  %v11560_v2 = vld [vmem:[%s15581_s3 + $0x2ec] sm:$0xf]  ;;  %v10270_v43 = vld [vmem:[%s15581_s3 + $0x2c4] sm:$0xf0] }
 0x55f   : > { %4643 = vmatpush.bf16.msra.mxu2 %v10413_v26  ;;  %v9994_v26 = vld [vmem:[%s15581_s3 + $0x9c] sm:$0xf0]  ;;  %v11476_v45 = vld [vmem:[%s15581_s3 + $0x4c] sm:$0xf] }
 0x561   : > { %4671 = vmatpush.bf16.msra.mxu0 %v10605_v14 }
 0x563   : > { %4644 = vmatpush.bf16.msra.mxu2 %v10401_v60  ;;  %v11675_v60 = vld [vmem:[%s15581_s3 + $0x680] sm:$0xf0] }
 0x565   : > { %4672 = vmatpush.bf16.msra.mxu0 %v10593_v6 }
 0x566   : > { %v13702_v17 = vpop.permute.xlu0 %11977 }
 0x567   : > { %v13704_v27 = vpop.permute.xlu1 %11982  ;;  %v11980_v59 = vunpack.i.h.bf16 %v13702_v17  ;;  %v11979_v31 = vunpack.i.l.bf16 %v13702_v17  ;;  %v10297_v17 = vor.u32 %v11560_v2, %v10294_v40  ;;  %v11669_v2 = vld [vmem:[%s15581_s3 + $0x650] sm:$0xf0] }
 0x568   : > { %v11985_v13 = vunpack.i.h.bf16 %v13704_v27  ;;  %v11984_v47 = vunpack.i.l.bf16 %v13704_v27 }
 0x569   : > { %v3362_v46 = vsel %vm1504_vm6, %v11979_v31, %v11980_v59  ;;  %v3363_v48 = vsel %vm1504_vm6, %v11980_v59, %v11989_v22  ;;  %v4126_v22 = vunpack.c.l.b16 %v13743_v12 }
 0x56a   : > { %v3371_v53 = vsel %vm1504_vm6, %v11984_v47, %v11985_v13  ;;  %v3398_v21 = vmax.f32 %v13452_v25, %v3362_v46  ;;  %v10496_v25 = vld [vmem:[%s15581_s3 + $0x480] sm:$0xf]  ;;  %v3399_v39 = vmax.f32 %v13468_v28, %v3363_v48  ;;  %v10102_v28 = vld [vmem:[%s15581_s3 + $0x174] sm:$0xf0]  ;;  %v13756_v46 = vsel %vm4555_vm12, 65535, %v12229_v51 }
 0x56b   : > { %v3407_v20 = vmax.f32 %v13464_v58, %v3371_v53  ;;  %v10497_v61 = vor.u32 %v11612_v7, %v10496_v25  ;;  %v10006_v58 = vld [vmem:[%s15581_s3 + $0xb4] sm:$0xf0]  ;;  %v9997_v53 = vor.u32 %v11485_v10, %v9994_v26  ;;  %v10105_v8 = vor.u32 %v11512_v38, %v10102_v28  ;;  %v10282_v7 = vld [vmem:[%s15581_s3 + $0x2dc] sm:$0xf0]  ;;  %v11554_v38 = vld [vmem:[%s15581_s3 + $0x2bc] sm:$0xf] }
 0x56c   : > { %v10009_v1 = vor.u32 %v11488_v63, %v10006_v58  ;;  %v10748_v48 = vld [vmem:[%s15581_s3 + $0x678] sm:$0xf]  ;;  %v10273_v28 = vor.u32 %v11554_v38, %v10270_v43  ;;  %v10066_v10 = vld [vmem:[%s15581_s3 + $0x12c] sm:$0xf0]  ;;  %v11551_v26 = vld [vmem:[%s15581_s3 + $0x2a4] sm:$0xf] }
 0x56d   : > { %v13729_v23 = vpack.c.bf16 %v3407_v20, %v3398_v21  ;;  %4658 = vmatpush.bf16.msra.mxu1 %v10497_v61  ;;  %v4339_v20 = vpack.c.b16 %v4126_v22, %v4126_v22  ;;  %v10749_v58 = vor.u32 %v11675_v60, %v10748_v48  ;;  %v11503_v22 = vld [vmem:[%s15581_s3 + $0x124] sm:$0xf]  ;;  %v10042_v48 = vld [vmem:[%s15581_s3 + $0xfc] sm:$0xf0]  ;;  %v11545_v60 = vld [vmem:[%s15581_s3 + $0x274] sm:$0xf] }
 0x56e   : > { %v13733_v18 = vpop.permute.xlu0 %11992  ;;  %vm7123_vm12 = vcmask 523264  }
 0x56f   : > { %v11995_v34 = vunpack.i.h.bf16 %v13733_v18  ;;  %v11994_v50 = vunpack.i.l.bf16 %v13733_v18  ;;  %4589 = vmatmul.bf16.vlgmr.msrb.gmra.mxu2 %v13729_v23  ;;  %v11998_v54 = vpop.permute.xlu1 %11997  ;;  %v11536_v18 = vld [vmem:[%s15581_s3 + $0x22c] sm:$0xf] }
 0x570   : > { %v12000_v11 = vunpack.i.h.bf16 %v11998_v54  ;;  %v11999_v44 = vunpack.i.l.bf16 %v11998_v54  ;;  %4693 = vmatpush.bf16.msrb.mxu2 %v10009_v1  ;;  %v10078_v1 = vld [vmem:[%s15581_s3 + $0x144] sm:$0xf0]  ;;  %v9973_v54 = vor.u32 %v11479_v35, %v9970_v37  ;;  %v10234_v35 = vld [vmem:[%s15581_s3 + $0x27c] sm:$0xf0]  ;;  %v10700_v37 = vld [vmem:[%s15581_s3 + $0x618] sm:$0xf] }
 0x571   : > { %v3372_v27 = vsel %vm1504_vm6, %v11985_v13, %v11994_v50  ;;  %v3373_v59 = vsel %vm1504_vm6, %v11994_v50, %v11995_v34  ;;  %v11672_v50 = vld [vmem:[%s15581_s3 + $0x668] sm:$0xf0]  ;;  %v10237_v38 = vor.u32 %v11545_v60, %v10234_v35 }
 0x572   : > { %v3408_v21 = vmax.f32 %v13485_v33, %v3372_v27  ;;  %v3409_v15 = vmax.f32 %v13492_v19, %v3373_v59  ;;  %v3370_v36 = vsel %vm1504_vm6, %v12000_v11, %v11984_v47  ;;  %v3361_v13 = vsel %vm1504_vm6, %v11999_v44, %v11979_v31  ;;  %v11509_v33 = vld [vmem:[%s15581_s3 + $0x154] sm:$0xf]  ;;  %v10090_v31 = vld [vmem:[%s15581_s3 + $0x15c] sm:$0xf0]  ;;  %v9982_v47 = vld [vmem:[%s15581_s3 + $0x84] sm:$0xf0] }
 0x573   : > { %v3406_v57 = vmax.f32 %v13480_v56, %v3370_v36  ;;  %v3397_v51 = vmax.f32 %v13458_v32, %v3361_v13  ;;  %v11557_v56 = vld [vmem:[%s15581_s3 + $0x2d4] sm:$0xf]  ;;  %v4559_v32 = vand.u32 %v13756_v46, %v4339_v20  ;;  %v9985_v61 = vor.u32 %v11482_v24, %v9982_v47  ;;  %v9958_v11 = vld [vmem:[%s15581_s3 + $0x54] sm:$0xf0]  ;;  %v10258_v27 = vld [vmem:[%s15581_s3 + $0x2ac] sm:$0xf0] }
 0x574   : > { %v13768_v29 = vpack.c.bf16 %v3408_v21, %v3399_v39  ;;  %v13770_v19 = vpack.c.bf16 %v3409_v15, %v3400_v4  ;;  %4694 = vmatpush.bf16.msrb.mxu2 %v9997_v53  ;;  %v10093_v63 = vor.u32 %v11509_v33, %v10090_v31  ;;  %v10285_v14 = vor.u32 %v11557_v56, %v10282_v7  ;;  %v11506_v4 = vld [vmem:[%s15581_s3 + $0x13c] sm:$0xf]  ;;  %v10736_v39 = vld [vmem:[%s15581_s3 + $0x660] sm:$0xf]  ;;  %v10724_v59 = vld [vmem:[%s15581_s3 + $0x648] sm:$0xf] }
 0x575   : > { %v13775_v25 = vpack.c.bf16 %v3406_v57, %v3397_v51  ;;  %v10081_v44 = vor.u32 %v11506_v4, %v10078_v1  ;;  %v10737_v6 = vor.u32 %v11672_v50, %v10736_v39  ;;  %v9961_v40 = vor.u32 %v11476_v45, %v9958_v11  ;;  %v11473_v53 = vld [vmem:[%s15581_s3 + $0x34] sm:$0xf]  ;;  %v9946_v21 = vld [vmem:[%s15581_s3 + $0x3c] sm:$0xf0]  ;;  %v11500_v57 = vld [vmem:[%s15581_s3 + $0x10c] sm:$0xf] }
 0x576   : > { %4603 = vmatmul.bf16.vlgmr.msrb.gmra.mxu1 %v13768_v29  ;;  %4617 = vmatmul.bf16.vlgmr.msrb.gmra.mxu0 %v13770_v19  ;;  %v10069_v15 = vor.u32 %v11503_v22, %v10066_v10  ;;  %v10261_v36 = vor.u32 %v11551_v26, %v10258_v27  ;;  %v10725_v13 = vor.u32 %v11669_v2, %v10724_v59  ;;  %v10054_v51 = vld [vmem:[%s15581_s3 + $0x114] sm:$0xf0]  ;;  %v10712_v33 = vld [vmem:[%s15581_s3 + $0x630] sm:$0xf]  ;;  %v11666_v24 = vld [vmem:[%s15581_s3 + $0x638] sm:$0xf0] }
 0x577   : > { %4575 = vmatmul.bf16.vlgmr.msrb.gmra.mxu3 %v13775_v25  ;;  %4707 = vmatpush.bf16.msrb.mxu1 %v10105_v8  ;;  %v11548_v8 = vld [vmem:[%s15581_s3 + $0x28c] sm:$0xf]  ;;  %v10246_v20 = vld [vmem:[%s15581_s3 + $0x294] sm:$0xf0]  ;;  %v10057_v31 = vor.u32 %v11500_v57, %v10054_v51  ;;  %v11497_v56 = vld [vmem:[%s15581_s3 + $0xf4] sm:$0xf]  ;;  %v10713_v7 = vor.u32 %v11666_v24, %v10712_v33 }
 0x578   : > { %4735 = vmatpush.bf16.msrb.mxu3 %v10297_v17  ;;  %4680 = vmatpush.bf16.msrb.mxu0 %v4559_v32  ;;  %v9949_v17 = vor.u32 %v11473_v53, %v9946_v21  ;;  %v11470_v47 = vld [vmem:[%s15581_s3 + $0x1c] sm:$0xf]  ;;  %v10249_v32 = vor.u32 %v11548_v8, %v10246_v20  ;;  %v11467_v1 = vld [vmem:[%s15581_s3 + $0x4] sm:$0xf]  ;;  %v10030_v39 = vld [vmem:[%s15581_s3 + $0xe4] sm:$0xf0] }
 0x579   : > { %4695 = vmatpush.bf16.msrb.mxu2 %v9985_v61  ;;  %v9934_v61 = vld [vmem:[%s15581_s3 + $0x24] sm:$0xf0]  ;;  %v11494_v4 = vld [vmem:[%s15581_s3 + $0xdc] sm:$0xf]  ;;  %v10688_v11 = vld [vmem:[%s15581_s3 + $0x600] sm:$0xf] }
 0x57a   : > { %v11542_v50 = vld [vmem:[%s15581_s3 + $0x25c] sm:$0xf]  ;;  %v10222_v45 = vld [vmem:[%s15581_s3 + $0x264] sm:$0xf0]  ;;  %v11491_v26 = vld [vmem:[%s15581_s3 + $0xc4] sm:$0xf] }
 0x57b   : > { %4708 = vmatpush.bf16.msrb.mxu1 %v10093_v63  ;;  %v11663_v63 = vld [vmem:[%s15581_s3 + $0x620] sm:$0xf0]  ;;  %v10225_v22 = vor.u32 %v11542_v50, %v10222_v45  ;;  %v10018_v27 = vld [vmem:[%s15581_s3 + $0xcc] sm:$0xf0]  ;;  %v11653_v45 = vld [vmem:[%s15581_s3 + $0x5d4] sm:$0xf] }
 0x57c   : > { %4736 = vmatpush.bf16.msrb.mxu3 %v10285_v14  ;;  %4681 = vmatpush.bf16.msrb.mxu0 %v10749_v58  ;;  %v9937_v14 = vor.u32 %v11470_v47, %v9934_v61  ;;  %v10045_v58 = vor.u32 %v11497_v56, %v10042_v48  ;;  %v10701_v43 = vor.u32 %v11663_v63, %v10700_v37  ;;  %v11539_v59 = vld [vmem:[%s15581_s3 + $0x244] sm:$0xf]  ;;  %v10210_v2 = vld [vmem:[%s15581_s3 + $0x24c] sm:$0xf0] }
 0x57d   : > { %4696 = vmatpush.bf16.msrb.mxu2 %v9973_v54  ;;  %v9922_v54 = vld [vmem:[%s15581_s3 + $0xc] sm:$0xf0]  ;;  %v10213_v53 = vor.u32 %v11539_v59, %v10210_v2 }
 0x57f   : > { %4709 = vmatpush.bf16.msrb.mxu1 %v10081_v44  ;;  %v11660_v44 = vld [vmem:[%s15581_s3 + $0x608] sm:$0xf0] }
 0x580   : > { %4737 = vmatpush.bf16.msrb.mxu3 %v10273_v28  ;;  %4682 = vmatpush.bf16.msrb.mxu0 %v10737_v6  ;;  %v9925_v28 = vor.u32 %v11467_v1, %v9922_v54  ;;  %v10033_v6 = vor.u32 %v11494_v4, %v10030_v39  ;;  %v10689_v10 = vor.u32 %v11660_v44, %v10688_v11  ;;  %v10486_v1 = vld [vmem:[%s15581_s3 + $0x474] sm:$0xf0]  ;;  %v10378_v39 = vld [vmem:[%s15581_s3 + $0x39c] sm:$0xf0] }
 0x581   : > { %4697 = vmatpush.bf16.msrb.mxu2 %v9961_v40  ;;  %v10021_v40 = vor.u32 %v11491_v26, %v10018_v27  ;;  %v10186_v26 = vld [vmem:[%s15581_s3 + $0x21c] sm:$0xf0] }
 0x583   : > { %4710 = vmatpush.bf16.msrb.mxu1 %v10069_v15 }
 0x584   : > { %4738 = vmatpush.bf16.msrb.mxu3 %v10261_v36  ;;  %4683 = vmatpush.bf16.msrb.mxu0 %v10725_v13 }
 0x585   : > { %4698 = vmatpush.bf16.msrb.mxu2 %v9949_v17 }
 0x587   : > { %4711 = vmatpush.bf16.msrb.mxu1 %v10057_v31  ;;  %v11584_v31 = vld [vmem:[%s15581_s3 + $0x3ac] sm:$0xf] }
 0x588   : > { %4739 = vmatpush.bf16.msrb.mxu3 %v10249_v32  ;;  %4684 = vmatpush.bf16.msrb.mxu0 %v10713_v7  ;;  %v11656_v32 = vld [vmem:[%s15581_s3 + $0x5ec] sm:$0xf]  ;;  %v10678_v7 = vld [vmem:[%s15581_s3 + $0x5f4] sm:$0xf0] }
 0x589   : > { %4699 = vmatpush.bf16.msrb.mxu2 %v9937_v14  ;;  %v10198_v14 = vld [vmem:[%s15581_s3 + $0x234] sm:$0xf0] }
 0x58b   : > { %4712 = vmatpush.bf16.msrb.mxu1 %v10045_v58  ;;  %v11608_v58 = vld [vmem:[%s15581_s3 + $0x46c] sm:$0xf] }
 0x58c   : > { %4740 = vmatpush.bf16.msrb.mxu3 %v10237_v38  ;;  %4685 = vmatpush.bf16.msrb.mxu0 %v10701_v43  ;;  %v12003_v21 = vpop.permute.xlu2 %12002  ;;  %v10681_v38 = vor.u32 %v11656_v32, %v10678_v7  ;;  %v11581_v43 = vld [vmem:[%s15581_s3 + $0x394] sm:$0xf]  ;;  %v10354_v7 = vld [vmem:[%s15581_s3 + $0x36c] sm:$0xf0] }
 0x58d   : > { %4700 = vmatpush.bf16.msrb.mxu2 %v9925_v28  ;;  %v12005_v15 = vunpack.i.h.bf16 %v12003_v21  ;;  %v12004_v36 = vunpack.i.l.bf16 %v12003_v21  ;;  %v10381_v27 = vor.u32 %v11581_v43, %v10378_v39  ;;  %v11650_v21 = vld [vmem:[%s15581_s3 + $0x5bc] sm:$0xf]  ;;  %v11644_v43 = vld [vmem:[%s15581_s3 + $0x58c] sm:$0xf]  ;;  %v10630_v39 = vld [vmem:[%s15581_s3 + $0x594] sm:$0xf0] }
 0x58f   : > { %4713 = vmatpush.bf16.msrb.mxu1 %v10033_v6  ;;  %v3365_v57 = vsel %vm1504_vm6, %v11990_v5, %v12004_v36  ;;  %v3366_v51 = vsel %vm1504_vm6, %v12004_v36, %v12005_v15  ;;  %v10390_v5 = vld [vmem:[%s15581_s3 + $0x3b4] sm:$0xf0]  ;;  %v10201_v6 = vor.u32 %v11536_v18, %v10198_v14  ;;  %v11599_v18 = vld [vmem:[%s15581_s3 + $0x424] sm:$0xf]  ;;  %v10450_v14 = vld [vmem:[%s15581_s3 + $0x42c] sm:$0xf0] }
 0x590   : > { %4741 = vmatpush.bf16.msrb.mxu3 %v10225_v22  ;;  %4686 = vmatpush.bf16.msrb.mxu0 %v10689_v10  ;;  %v3401_v56 = vmax.f32 %v13516_v49, %v3365_v57  ;;  %v3402_v47 = vmax.f32 %v13520_v55, %v3366_v51  ;;  %v10393_v4 = vor.u32 %v11584_v31, %v10390_v5  ;;  %v11533_v10 = vld [vmem:[%s15581_s3 + $0x214] sm:$0xf]  ;;  %v10462_v31 = vld [vmem:[%s15581_s3 + $0x444] sm:$0xf0] }
 0x591   : > { %v10489_v22 = vor.u32 %v11608_v58, %v10486_v1  ;;  %v10189_v57 = vor.u32 %v11533_v10, %v10186_v26  ;;  %v11572_v1 = vld [vmem:[%s15581_s3 + $0x34c] sm:$0xf]  ;;  %v10618_v10 = vld [vmem:[%s15581_s3 + $0x57c] sm:$0xf0]  ;;  %v11521_v26 = vld [vmem:[%s15581_s3 + $0x1b4] sm:$0xf] }
 0x593   : > { %4714 = vmatpush.bf16.msrb.mxu1 %v10021_v40  ;;  %v11578_v40 = vld [vmem:[%s15581_s3 + $0x37c] sm:$0xf] }
 0x594   : > { %4742 = vmatpush.bf16.msrb.mxu3 %v10213_v53  ;;  %v13828_v13 = vpop.permute.xlu2 %12017  ;;  %v10366_v53 = vld [vmem:[%s15581_s3 + $0x384] sm:$0xf0] }
 0x595   : > { %v12020_v8 = vunpack.i.h.bf16 %v13828_v13  ;;  %v12019_v20 = vunpack.i.l.bf16 %v13828_v13 }
 0x597   : > { %v3377_v55 = vsel %vm1504_vm6, %v12019_v20, %v12020_v8 }
 0x598   : > { %v3413_v11 = vmax.f32 %v13576_v9, %v3377_v55 }
 0x5a4   : > { %v12008_v33 = vpop.permute.xlu0 %12007 }
 0x5a5   : > { %v12010_v24 = vunpack.i.h.bf16 %v12008_v33  ;;  %v12009_v17 = vunpack.i.l.bf16 %v12008_v33  ;;  %v10174_v33 = vld [vmem:[%s15581_s3 + $0x204] sm:$0xf0] }
 0x5a6   : > { %v13839_v42 = vpop.permute.xlu1 %12012 }
 0x5a7   : > { %v3376_v48 = vsel %vm1504_vm6, %v12010_v24, %v12019_v20  ;;  %v3374_v60 = vsel %vm1504_vm6, %v11995_v34, %v12009_v17  ;;  %v3375_v61 = vsel %vm1504_vm6, %v12009_v17, %v12010_v24  ;;  %v12015_v49 = vunpack.i.h.bf16 %v13839_v42  ;;  %v11530_v20 = vld [vmem:[%s15581_s3 + $0x1fc] sm:$0xf] }
 0x5a8   : > { %v3410_v35 = vmax.f32 %v13496_v16, %v3374_v60  ;;  %v3411_v37 = vmax.f32 %v13498_v52, %v3375_v61  ;;  %v12014_v63 = vunpack.i.l.bf16 %v13839_v42  ;;  %v3412_v34 = vmax.f32 %v13572_v41, %v3376_v48  ;;  %v10666_v41 = vld [vmem:[%s15581_s3 + $0x5dc] sm:$0xf0]  ;;  %v11602_v17 = vld [vmem:[%s15581_s3 + $0x43c] sm:$0xf]  ;;  %v11647_v48 = vld [vmem:[%s15581_s3 + $0x5a4] sm:$0xf] }
 0x5a9   : > { %v10669_v2 = vor.u32 %v11653_v45, %v10666_v41  ;;  %v10369_v24 = vor.u32 %v11578_v40, %v10366_v53  ;;  %v10642_v60 = vld [vmem:[%s15581_s3 + $0x5ac] sm:$0xf0]  ;;  %v10177_v61 = vor.u32 %v11530_v20, %v10174_v33  ;;  %v10465_v55 = vor.u32 %v11602_v17, %v10462_v31  ;;  %v11596_v45 = vld [vmem:[%s15581_s3 + $0x40c] sm:$0xf]  ;;  %v10438_v41 = vld [vmem:[%s15581_s3 + $0x414] sm:$0xf0] }
 0x5aa   : > { %v3367_v16 = vsel %vm1504_vm6, %v12005_v15, %v12014_v63  ;;  %v3368_v52 = vsel %vm1504_vm6, %v12014_v63, %v12015_v49  ;;  %v13867_v50 = vpack.c.bf16 %v3410_v35, %v3401_v56  ;;  %v13869_v54 = vpack.c.bf16 %v3411_v37, %v3402_v47  ;;  %v10654_v15 = vld [vmem:[%s15581_s3 + $0x5c4] sm:$0xf0]  ;;  %v11575_v47 = vld [vmem:[%s15581_s3 + $0x364] sm:$0xf]  ;;  %v10162_v37 = vld [vmem:[%s15581_s3 + $0x1ec] sm:$0xf0] }
 0x5ab   : > { %v3403_v44 = vmax.f32 %v13564_v0, %v3367_v16  ;;  %v3404_v28 = vmax.f32 %v13568_v3, %v3368_v52  ;;  %v11605_v0 = vld [vmem:[%s15581_s3 + $0x454] sm:$0xf]  ;;  %v10474_v3 = vld [vmem:[%s15581_s3 + $0x45c] sm:$0xf0]  ;;  %v10657_v56 = vor.u32 %v11650_v21, %v10654_v15  ;;  %v11527_v35 = vld [vmem:[%s15581_s3 + $0x1e4] sm:$0xf]  ;;  %v10357_v63 = vor.u32 %v11575_v47, %v10354_v7 }
 0x5ac   : > { %4631 = vmatmul.bf16.vlgmr.msra.gmra.mxu3 %v13867_v50  ;;  %4645 = vmatmul.bf16.vlgmr.msra.gmra.mxu2 %v13869_v54  ;;  %v12023_v36 = vpop.permute.xlu0 %12022  ;;  %v10477_v51 = vor.u32 %v11605_v0, %v10474_v3  ;;  %v10645_v58 = vor.u32 %v11647_v48, %v10642_v60  ;;  %v10165_v13 = vor.u32 %v11527_v35, %v10162_v37  ;;  %v11524_v52 = vld [vmem:[%s15581_s3 + $0x1cc] sm:$0xf]  ;;  %v10138_v0 = vld [vmem:[%s15581_s3 + $0x1bc] sm:$0xf0]  ;;  %v11593_v3 = vld [vmem:[%s15581_s3 + $0x3f4] sm:$0xf] }
 0x5ad   : > { %v13880_v59 = vpack.c.bf16 %v3412_v34, %v3403_v44  ;;  %v13882_v9 = vpack.c.bf16 %v3413_v11, %v3404_v28  ;;  %4749 = vmatpush.bf16.msra.mxu2 %v10393_v4  ;;  %4791 = vmatpush.bf16.msra.mxu3 %v10681_v38  ;;  %v12025_v5 = vunpack.i.h.bf16 %v12023_v36  ;;  %v12024_v32 = vunpack.i.l.bf16 %v12023_v36  ;;  %v10342_v38 = vld [vmem:[%s15581_s3 + $0x354] sm:$0xf0]  ;;  %v11569_v28 = vld [vmem:[%s15581_s3 + $0x334] sm:$0xf]  ;;  %v11566_v21 = vld [vmem:[%s15581_s3 + $0x31c] sm:$0xf] }
 0x5ae   : > { %v10453_v16 = vor.u32 %v11599_v18, %v10450_v14  ;;  %v10345_v11 = vor.u32 %v11572_v1, %v10342_v38  ;;  %v10633_v44 = vor.u32 %v11644_v43, %v10630_v39  ;;  %v10318_v15 = vld [vmem:[%s15581_s3 + $0x324] sm:$0xf0]  ;;  %v11638_v36 = vld [vmem:[%s15581_s3 + $0x55c] sm:$0xf]  ;;  %v10141_v20 = vor.u32 %v11521_v26, %v10138_v0  ;;  %v10306_v7 = vld [vmem:[%s15581_s3 + $0x30c] sm:$0xf0] }
 0x5af   : > { %4659 = vmatmul.bf16.vlgmr.msra.gmra.mxu1 %v13880_v59  ;;  %4673 = vmatmul.bf16.vlgmr.msra.gmra.mxu0 %v13882_v9  ;;  %v3378_v34 = vsel %vm1504_vm6, %v12020_v8, %v12025_v5  ;;  %v3369_v4 = vsel %vm1504_vm6, %v12015_v49, %v12024_v32  ;;  %v10150_v49 = vld [vmem:[%s15581_s3 + $0x1d4] sm:$0xf0]  ;;  %v10126_v17 = vld [vmem:[%s15581_s3 + $0x1a4] sm:$0xf0]  ;;  %v11590_v31 = vld [vmem:[%s15581_s3 + $0x3dc] sm:$0xf]  ;;  %v10321_v47 = vor.u32 %v11566_v21, %v10318_v15 }
 0x5b0   : > { %4721 = vmatpush.bf16.msra.mxu0 %v10201_v6  ;;  %4763 = vmatpush.bf16.msra.mxu1 %v10489_v22  ;;  %v3414_v8 = vmax.f32 %v13583_v30, %v3378_v34  ;;  %v3405_v42 = vmax.f32 %v13587_v62, %v3369_v4  ;;  %v10330_v6 = vld [vmem:[%s15581_s3 + $0x33c] sm:$0xf0]  ;;  %v11641_v22 = vld [vmem:[%s15581_s3 + $0x574] sm:$0xf]  ;;  %v10153_v30 = vor.u32 %v11524_v52, %v10150_v49  ;;  %v11515_v32 = vld [vmem:[%s15581_s3 + $0x184] sm:$0xf] }
 0x5b1   : > { %4750 = vmatpush.bf16.msra.mxu2 %v10381_v27  ;;  %4792 = vmatpush.bf16.msra.mxu3 %v10669_v2  ;;  %v10441_v62 = vor.u32 %v11596_v45, %v10438_v41  ;;  %v10426_v2 = vld [vmem:[%s15581_s3 + $0x3fc] sm:$0xf0]  ;;  %v10333_v40 = vor.u32 %v11569_v28, %v10330_v6  ;;  %v10621_v53 = vor.u32 %v11641_v22, %v10618_v10  ;;  %v11635_v48 = vld [vmem:[%s15581_s3 + $0x544] sm:$0xf]  ;;  %v10594_v60 = vld [vmem:[%s15581_s3 + $0x54c] sm:$0xf0] }
 0x5b2   : > { %v13925_v27 = vpack.c.bf16 %v3414_v8, %v3405_v42  ;;  %v10429_v33 = vor.u32 %v11593_v3, %v10426_v2  ;;  %v10114_v37 = vld [vmem:[%s15581_s3 + $0x18c] sm:$0xf0]  ;;  %v11538_v18 = vld [vmem:[%s15581_s3 + $0x238] sm:$0xf0]  ;;  %v11587_v14 = vld [vmem:[%s15581_s3 + $0x3c4] sm:$0xf]  ;;  %v10597_v1 = vor.u32 %v11635_v48, %v10594_v60 }
 0x5b3   : > { %v11632_v34 = vld [vmem:[%s15581_s3 + $0x52c] sm:$0xf]  ;;  %v10582_v38 = vld [vmem:[%s15581_s3 + $0x534] sm:$0xf0]  ;;  %v10012_v43 = vld [vmem:[%s15581_s3 + $0xb0] sm:$0xf]  ;;  %v10117_v52 = vor.u32 %v11515_v32, %v10114_v37 }
 0x5b4   : > { %4722 = vmatpush.bf16.msra.mxu0 %v10189_v57  ;;  %4764 = vmatpush.bf16.msra.mxu1 %v10477_v51  ;;  %v10606_v57 = vld [vmem:[%s15581_s3 + $0x564] sm:$0xf0]  ;;  %v4127_v51 = vunpack.c.h.b16 %v13743_v12  ;;  %v11563_v12 = vld [vmem:[%s15581_s3 + $0x304] sm:$0xf]  ;;  %v11490_v39 = vld [vmem:[%s15581_s3 + $0xb8] sm:$0xf0]  ;;  %v10585_v45 = vor.u32 %v11632_v34, %v10582_v38 }
 0x5b5   : > { %4751 = vmatpush.bf16.msra.mxu2 %v10369_v24  ;;  %4793 = vmatpush.bf16.msra.mxu3 %v10657_v56  ;;  %v11518_v24 = vld [vmem:[%s15581_s3 + $0x19c] sm:$0xf]  ;;  %v10414_v56 = vld [vmem:[%s15581_s3 + $0x3e4] sm:$0xf0]  ;;  %v10609_v5 = vor.u32 %v11638_v36, %v10606_v57  ;;  %v10309_v4 = vor.u32 %v11563_v12, %v10306_v7  ;;  %v11629_v42 = vld [vmem:[%s15581_s3 + $0x514] sm:$0xf]  ;;  %v10013_v41 = vor.u32 %v11490_v39, %v10012_v43 }
 0x5b6   : > { %v10417_v35 = vor.u32 %v11590_v31, %v10414_v56  ;;  %v11674_v49 = vld [vmem:[%s15581_s3 + $0x67c] sm:$0xf]  ;;  %v11535_v28 = vld [vmem:[%s15581_s3 + $0x220] sm:$0xf0]  ;;  %v10570_v6 = vld [vmem:[%s15581_s3 + $0x51c] sm:$0xf0] }
 0x5b7   : > { %v10000_v22 = vld [vmem:[%s15581_s3 + $0x98] sm:$0xf]  ;;  %v11487_v10 = vld [vmem:[%s15581_s3 + $0xa0] sm:$0xf0]  ;;  %v11626_v26 = vld [vmem:[%s15581_s3 + $0x4fc] sm:$0xf]  ;;  %v10573_v3 = vor.u32 %v11629_v42, %v10570_v6 }
 0x5b8   : > { %4723 = vmatpush.bf16.msra.mxu0 %v10177_v61  ;;  %4765 = vmatpush.bf16.msra.mxu1 %v10465_v55  ;;  %v4340_v61 = vpack.c.b16 %v4127_v51, %v4127_v51  ;;  %v10129_v55 = vor.u32 %v11518_v24, %v10126_v17  ;;  %v11671_v0 = vld [vmem:[%s15581_s3 + $0x664] sm:$0xf]  ;;  %v10001_v2 = vor.u32 %v11487_v10, %v10000_v22  ;;  %v11532_v21 = vld [vmem:[%s15581_s3 + $0x208] sm:$0xf0]  ;;  %v10558_v15 = vld [vmem:[%s15581_s3 + $0x504] sm:$0xf0] }
 0x5b9   : > { %4752 = vmatpush.bf16.msra.mxu2 %v10357_v63  ;;  %4794 = vmatpush.bf16.msra.mxu3 %v10645_v58  ;;  %v10204_v63 = vld [vmem:[%s15581_s3 + $0x230] sm:$0xf]  ;;  %v9988_v36 = vld [vmem:[%s15581_s3 + $0x80] sm:$0xf]  ;;  %v11484_v57 = vld [vmem:[%s15581_s3 + $0x88] sm:$0xf0]  ;;  %v10561_v17 = vor.u32 %v11626_v26, %v10558_v15 }
 0x5ba   : > { %v10402_v58 = vld [vmem:[%s15581_s3 + $0x3cc] sm:$0xf0]  ;;  %v11668_v24 = vld [vmem:[%s15581_s3 + $0x64c] sm:$0xf]  ;;  %v9989_v31 = vor.u32 %v11484_v57, %v9988_v36  ;;  %v10726_v56 = vld [vmem:[%s15581_s3 + $0x654] sm:$0xf0] }
 0x5bb   : > { %v10405_v8 = vor.u32 %v11587_v14, %v10402_v58  ;;  %v10546_v12 = vld [vmem:[%s15581_s3 + $0x4ec] sm:$0xf0]  ;;  %v9976_v32 = vld [vmem:[%s15581_s3 + $0x68] sm:$0xf]  ;;  %v11481_v7 = vld [vmem:[%s15581_s3 + $0x70] sm:$0xf0]  ;;  %v10729_v48 = vor.u32 %v11668_v24, %v10726_v56 }
 0x5bc   : > { %4724 = vmatpush.bf16.msra.mxu0 %v10165_v13  ;;  %4766 = vmatpush.bf16.msra.mxu1 %v10453_v16  ;;  %v4562_v13 = vand.u32 %v13756_v46, %v4340_v61  ;;  %v10205_v16 = vor.u32 %v11538_v18, %v10204_v63  ;;  %v11620_v61 = vld [vmem:[%s15581_s3 + $0x4cc] sm:$0xf]  ;;  %v9977_v37 = vor.u32 %v11481_v7, %v9976_v32  ;;  %v10714_v63 = vld [vmem:[%s15581_s3 + $0x63c] sm:$0xf0]  ;;  %v10156_v18 = vld [vmem:[%s15581_s3 + $0x1d0] sm:$0xf] }
 0x5bd   : > { %4701 = vmatmul.bf16.vlgmr.msrb.gmra.mxu2 %v13775_v25  ;;  %4743 = vmatmul.bf16.vlgmr.msrb.gmra.mxu3 %v13770_v19  ;;  %v11526_v14 = vld [vmem:[%s15581_s3 + $0x1d8] sm:$0xf0]  ;;  %v10534_v58 = vld [vmem:[%s15581_s3 + $0x4d4] sm:$0xf0]  ;;  %v9964_v34 = vld [vmem:[%s15581_s3 + $0x50] sm:$0xf] }
 0x5be   : > { %4753 = vmatpush.bf16.msra.mxu2 %v10345_v11  ;;  %4795 = vmatpush.bf16.msra.mxu3 %v10633_v44  ;;  %v10750_v11 = vld [vmem:[%s15581_s3 + $0x684] sm:$0xf0]  ;;  %v10192_v44 = vld [vmem:[%s15581_s3 + $0x218] sm:$0xf]  ;;  %v10157_v38 = vor.u32 %v11526_v14, %v10156_v18  ;;  %v11617_v43 = vld [vmem:[%s15581_s3 + $0x4b4] sm:$0xf] }
 0x5bf   : > { %10758 = vmatmul.msk.bf16.vlgmr.msrb.gmra.mxu0 %vm2131_vm10, %v13925_v27  ;;  %4715 = vmatmul.bf16.vlgmr.msrb.gmra.mxu1 %v13729_v23  ;;  %v11662_v39 = vld [vmem:[%s15581_s3 + $0x61c] sm:$0xf]  ;;  %v11523_v42 = vld [vmem:[%s15581_s3 + $0x1c0] sm:$0xf0]  ;;  %v11520_v26 = vld [vmem:[%s15581_s3 + $0x1a8] sm:$0xf0] }
 0x5c0   : > { %4725 = vmatpush.bf16.msra.mxu0 %v10153_v30  ;;  %4767 = vmatpush.bf16.msra.mxu1 %v10441_v62  ;;  %v10753_v30 = vor.u32 %v11674_v49, %v10750_v11  ;;  %v10193_v62 = vor.u32 %v11535_v28, %v10192_v44  ;;  %v10522_v49 = vld [vmem:[%s15581_s3 + $0x4bc] sm:$0xf0]  ;;  %v11614_v28 = vld [vmem:[%s15581_s3 + $0x49c] sm:$0xf]  ;;  %v11659_v6 = vld [vmem:[%s15581_s3 + $0x604] sm:$0xf] }
 0x5c1   : > { %v10525_v22 = vor.u32 %v11617_v43, %v10522_v49  ;;  %v11611_v36 = vld [vmem:[%s15581_s3 + $0x484] sm:$0xf]  ;;  %v10498_v57 = vld [vmem:[%s15581_s3 + $0x48c] sm:$0xf0]  ;;  %v10120_v24 = vld [vmem:[%s15581_s3 + $0x188] sm:$0xf] }
 0x5c2   : > { %4754 = vmatpush.bf16.msra.mxu2 %v10333_v40  ;;  %4796 = vmatpush.bf16.msra.mxu3 %v10621_v53  ;;  %v10738_v40 = vld [vmem:[%s15581_s3 + $0x66c] sm:$0xf0]  ;;  %v10180_v53 = vld [vmem:[%s15581_s3 + $0x200] sm:$0xf]  ;;  %v11469_v56 = vld [vmem:[%s15581_s3 + $0x10] sm:$0xf0] }
 0x5c3   : > { %v10741_v51 = vor.u32 %v11671_v0, %v10738_v40  ;;  %v10510_v0 = vld [vmem:[%s15581_s3 + $0x4a4] sm:$0xf0]  ;;  %v10300_v40 = vld [vmem:[%s15581_s3 + $0x2f0] sm:$0xf]  ;;  %v11559_v32 = vld [vmem:[%s15581_s3 + $0x2e0] sm:$0xf0] }
 0x5c4   : > { %4726 = vmatpush.bf16.msra.mxu0 %v10141_v20  ;;  %4768 = vmatpush.bf16.msra.mxu1 %v10429_v33  ;;  %v10181_v20 = vor.u32 %v11532_v21, %v10180_v53  ;;  %v11623_v33 = vld [vmem:[%s15581_s3 + $0x4e4] sm:$0xf]  ;;  %v11562_v53 = vld [vmem:[%s15581_s3 + $0x2f8] sm:$0xf0]  ;;  %v10396_v7 = vld [vmem:[%s15581_s3 + $0x3b0] sm:$0xf] }
 0x5c5   : > { %v10096_v14 = vld [vmem:[%s15581_s3 + $0x158] sm:$0xf]  ;;  %v11508_v49 = vld [vmem:[%s15581_s3 + $0x148] sm:$0xf0]  ;;  %vm5924_vm6 = vcmask 728064  }
 0x5c6   : > { %4755 = vmatpush.bf16.msra.mxu2 %v10321_v47  ;;  %4797 = vmatpush.bf16.msra.mxu3 %v10609_v5  ;;  %v10168_v47 = vld [vmem:[%s15581_s3 + $0x1e8] sm:$0xf]  ;;  %v11529_v5 = vld [vmem:[%s15581_s3 + $0x1f0] sm:$0xf0]  ;;  %v10384_v43 = vld [vmem:[%s15581_s3 + $0x398] sm:$0xf] }
 0x5c7   : > { %v10169_v60 = vor.u32 %v11529_v5, %v10168_v47  ;;  %v10108_v47 = vld [vmem:[%s15581_s3 + $0x170] sm:$0xf]  ;;  %v11514_v5 = vld [vmem:[%s15581_s3 + $0x178] sm:$0xf0] }
 0x5c8   : > { %4727 = vmatpush.bf16.msra.mxu0 %v10129_v55  ;;  %4769 = vmatpush.bf16.msra.mxu1 %v10417_v35  ;;  %v11665_v55 = vld [vmem:[%s15581_s3 + $0x634] sm:$0xf]  ;;  %v10549_v35 = vor.u32 %v11623_v33, %v10546_v12  ;;  %v9928_v33 = vld [vmem:[%s15581_s3 + $0x8] sm:$0xf]  ;;  %v10288_v12 = vld [vmem:[%s15581_s3 + $0x2d8] sm:$0xf] }
 0x5c9   : > { %v10289_v18 = vor.u32 %v11559_v32, %v10288_v12  ;;  %v11622_v12 = vld [vmem:[%s15581_s3 + $0x4d8] sm:$0xf0] }
 0x5ca   : > { %4756 = vmatpush.bf16.msra.mxu2 %v10309_v4  ;;  %4798 = vmatpush.bf16.msra.mxu3 %v10597_v1  ;;  %v11478_v4 = vld [vmem:[%s15581_s3 + $0x58] sm:$0xf0]  ;;  %v10717_v1 = vor.u32 %v11665_v55, %v10714_v63  ;;  %v10109_v63 = vor.u32 %v11514_v5, %v10108_v47  ;;  %v10540_v5 = vld [vmem:[%s15581_s3 + $0x4d0] sm:$0xf] }
 0x5cb   : > { %v11634_v55 = vld [vmem:[%s15581_s3 + $0x538] sm:$0xf0] }
 0x5cc   : > { %4728 = vmatpush.bf16.msra.mxu0 %v10117_v52  ;;  %4770 = vmatpush.bf16.msra.mxu1 %v10405_v8  ;;  %v10702_v52 = vld [vmem:[%s15581_s3 + $0x624] sm:$0xf0]  ;;  %v10144_v8 = vld [vmem:[%s15581_s3 + $0x1b8] sm:$0xf]  ;;  %v11574_v47 = vld [vmem:[%s15581_s3 + $0x358] sm:$0xf0] }
 0x5cd   : > { %4757 = vmatmul.bf16.vlgmr.msra.gmra.mxu2 %v13867_v50  ;;  %4799 = vmatmul.bf16.vlgmr.msra.gmra.mxu3 %v13882_v9  ;;  %v10705_v11 = vor.u32 %v11662_v39, %v10702_v52  ;;  %v10145_v44 = vor.u32 %v11523_v42, %v10144_v8  ;;  %v11583_v39 = vld [vmem:[%s15581_s3 + $0x3a0] sm:$0xf0]  ;;  %v10084_v42 = vld [vmem:[%s15581_s3 + $0x140] sm:$0xf] }
 0x5ce   : > { %4806 = vmatpush.bf16.msrb.mxu2 %v4562_v13  ;;  %4847 = vmatpush.bf16.msrb.mxu3 %v10205_v16  ;;  %v10537_v13 = vor.u32 %v11620_v61, %v10534_v58  ;;  %v9965_v16 = vor.u32 %v11478_v4, %v9964_v34  ;;  %v10588_v61 = vld [vmem:[%s15581_s3 + $0x530] sm:$0xf]  ;;  %v11511_v58 = vld [vmem:[%s15581_s3 + $0x160] sm:$0xf0] }
 0x5cf   : > { %4729 = vmatmul.bf16.vlgmr.msra.gmra.mxu0 %v13768_v29  ;;  %4771 = vmatmul.bf16.vlgmr.msra.gmra.mxu1 %v13869_v54  ;;  %v10589_v4 = vor.u32 %v11634_v55, %v10588_v61  ;;  %v10097_v52 = vor.u32 %v11511_v58, %v10096_v14  ;;  %v10541_v55 = vor.u32 %v11622_v12, %v10540_v5  ;;  %v10528_v14 = vld [vmem:[%s15581_s3 + $0x4b8] sm:$0xf]  ;;  %v11619_v58 = vld [vmem:[%s15581_s3 + $0x4c0] sm:$0xf0]  ;;  %v10756_v5 = vld [vmem:[%s15581_s3 + $0x680] sm:$0xf] }
 0x5d0   : > { %4777 = vmatpush.bf16.msrb.mxu0 %v10585_v45  ;;  %4819 = vmatpush.bf16.msrb.mxu1 %v10013_v41  ;;  %v9952_v45 = vld [vmem:[%s15581_s3 + $0x38] sm:$0xf]  ;;  %v11475_v41 = vld [vmem:[%s15581_s3 + $0x40] sm:$0xf0]  ;;  %v11676_v12 = vld [vmem:[%s15581_s3 + $0x688] sm:$0xf0] }
 0x5d1   : > { %v9953_v10 = vor.u32 %v11475_v41, %v9952_v45  ;;  %v10385_v45 = vor.u32 %v11583_v39, %v10384_v43  ;;  %v3130_v43 = vld [vmem:[%s15581_s3 + $0x698] sm:$0x1] }
 0x5d2   : > { %4807 = vmatpush.bf16.msrb.mxu2 %v10753_v30  ;;  %4848 = vmatpush.bf16.msrb.mxu3 %v10193_v62  ;;  %v10690_v30 = vld [vmem:[%s15581_s3 + $0x60c] sm:$0xf0]  ;;  %v10132_v62 = vld [vmem:[%s15581_s3 + $0x1a0] sm:$0xf] }
 0x5d3   : > { %v10693_v21 = vor.u32 %v11659_v6, %v10690_v30  ;;  %v10133_v15 = vor.u32 %v11520_v26, %v10132_v62  ;;  %v11580_v6 = vld [vmem:[%s15581_s3 + $0x388] sm:$0xf0]  ;;  %v10085_v30 = vor.u32 %v11508_v49, %v10084_v42  ;;  %v10072_v26 = vld [vmem:[%s15581_s3 + $0x128] sm:$0xf]  ;;  %v10516_v49 = vld [vmem:[%s15581_s3 + $0x4a0] sm:$0xf] }
 0x5d4   : > { %4778 = vmatpush.bf16.msrb.mxu0 %v10573_v3  ;;  %4820 = vmatpush.bf16.msrb.mxu1 %v10001_v2  ;;  %v9940_v3 = vld [vmem:[%s15581_s3 + $0x20] sm:$0xf]  ;;  %v11472_v2 = vld [vmem:[%s15581_s3 + $0x28] sm:$0xf0] }
 0x5d5   : > { %v11568_v42 = vld [vmem:[%s15581_s3 + $0x328] sm:$0xf0] }
 0x5d6   : > { %4808 = vmatpush.bf16.msrb.mxu2 %v10741_v51  ;;  %4849 = vmatpush.bf16.msrb.mxu3 %v10181_v20  ;;  %v10513_v51 = vor.u32 %v11614_v28, %v10510_v0  ;;  %v9941_v20 = vor.u32 %v11472_v2, %v9940_v3  ;;  %v10372_v28 = vld [vmem:[%s15581_s3 + $0x380] sm:$0xf]  ;;  %v11505_v0 = vld [vmem:[%s15581_s3 + $0x130] sm:$0xf0]  ;;  %v10252_v2 = vld [vmem:[%s15581_s3 + $0x290] sm:$0xf] }
 0x5d8   : > { %4779 = vmatpush.bf16.msrb.mxu0 %v10561_v17  ;;  %4821 = vmatpush.bf16.msrb.mxu1 %v9989_v31  ;;  %v11517_v17 = vld [vmem:[%s15581_s3 + $0x190] sm:$0xf0]  ;;  %v10301_v31 = vor.u32 %v11562_v53, %v10300_v40  ;;  %v11550_v40 = vld [vmem:[%s15581_s3 + $0x298] sm:$0xf0]  ;;  %v10360_v53 = vld [vmem:[%s15581_s3 + $0x368] sm:$0xf] }
 0x5da   : > { %4809 = vmatpush.bf16.msrb.mxu2 %v10729_v48  ;;  %4850 = vmatpush.bf16.msrb.mxu3 %v10169_v60  ;;  %v10121_v48 = vor.u32 %v11517_v17, %v10120_v24  ;;  %v11586_v60 = vld [vmem:[%s15581_s3 + $0x3b8] sm:$0xf0]  ;;  %v10240_v17 = vld [vmem:[%s15581_s3 + $0x278] sm:$0xf] }
 0x5db   : > { %v10397_v34 = vor.u32 %v11586_v60, %v10396_v7  ;;  %v11499_v60 = vld [vmem:[%s15581_s3 + $0x100] sm:$0xf0] }
 0x5dc   : > { %4780 = vmatpush.bf16.msrb.mxu0 %v10549_v35  ;;  %4822 = vmatpush.bf16.msrb.mxu1 %v9977_v37  ;;  %v10501_v35 = vor.u32 %v11611_v36, %v10498_v57  ;;  %v9929_v37 = vor.u32 %v11469_v56, %v9928_v33  ;;  %v10073_v36 = vor.u32 %v11505_v0, %v10072_v26  ;;  %v10348_v56 = vld [vmem:[%s15581_s3 + $0x350] sm:$0xf]  ;;  %v10312_v26 = vld [vmem:[%s15581_s3 + $0x308] sm:$0xf]  ;;  %v11565_v0 = vld [vmem:[%s15581_s3 + $0x310] sm:$0xf0] }
 0x5dd   : > { %v10253_v57 = vor.u32 %v11550_v40, %v10252_v2  ;;  %v10349_v61 = vor.u32 %v11574_v47, %v10348_v56  ;;  %v11613_v2 = vld [vmem:[%s15581_s3 + $0x490] sm:$0xf0]  ;;  %v10492_v40 = vld [vmem:[%s15581_s3 + $0x470] sm:$0xf]  ;;  %v10660_v56 = vld [vmem:[%s15581_s3 + $0x5c0] sm:$0xf] }
 0x5de   : > { %4810 = vmatpush.bf16.msrb.mxu2 %v10717_v1  ;;  %4851 = vmatpush.bf16.msrb.mxu3 %v10157_v38  ;;  %v10276_v1 = vld [vmem:[%s15581_s3 + $0x2c0] sm:$0xf]  ;;  %v11556_v38 = vld [vmem:[%s15581_s3 + $0x2c8] sm:$0xf0] }
 0x5df   : > { %v10277_v8 = vor.u32 %v11556_v38, %v10276_v1  ;;  %v10036_v1 = vld [vmem:[%s15581_s3 + $0xe0] sm:$0xf]  ;;  %v11496_v38 = vld [vmem:[%s15581_s3 + $0xe8] sm:$0xf0] }
 0x5e0   : > { %4781 = vmatpush.bf16.msrb.mxu0 %v10537_v13  ;;  %4823 = vmatpush.bf16.msrb.mxu1 %v9965_v16  ;;  %v10576_v13 = vld [vmem:[%s15581_s3 + $0x518] sm:$0xf]  ;;  %v11631_v16 = vld [vmem:[%s15581_s3 + $0x520] sm:$0xf0]  ;;  %v11652_v47 = vld [vmem:[%s15581_s3 + $0x5c8] sm:$0xf0] }
 0x5e1   : > { %v10577_v41 = vor.u32 %v11631_v16, %v10576_v13  ;;  %v10529_v13 = vor.u32 %v11619_v58, %v10528_v14  ;;  %v10216_v16 = vld [vmem:[%s15581_s3 + $0x248] sm:$0xf]  ;;  %v11601_v58 = vld [vmem:[%s15581_s3 + $0x430] sm:$0xf0] }
 0x5e2   : > { %4811 = vmatpush.bf16.msrb.mxu2 %v10705_v11  ;;  %4852 = vmatpush.bf16.msrb.mxu3 %v10145_v44  ;;  %v10264_v11 = vld [vmem:[%s15581_s3 + $0x2a8] sm:$0xf]  ;;  %v11553_v44 = vld [vmem:[%s15581_s3 + $0x2b0] sm:$0xf0] }
 0x5e3   : > { %v10265_v62 = vor.u32 %v11553_v44, %v10264_v11  ;;  %v11658_v11 = vld [vmem:[%s15581_s3 + $0x5f8] sm:$0xf0]  ;;  %v4128_v44 = vunpack.c.l.b16 %v3130_v43  ;;  %v10444_v43 = vld [vmem:[%s15581_s3 + $0x410] sm:$0xf] }
 0x5e4   : > { %4782 = vmatpush.bf16.msrb.mxu0 %v10525_v22  ;;  %4824 = vmatpush.bf16.msrb.mxu1 %v9953_v10  ;;  %v10564_v22 = vld [vmem:[%s15581_s3 + $0x500] sm:$0xf]  ;;  %v11628_v10 = vld [vmem:[%s15581_s3 + $0x508] sm:$0xf0] }
 0x5e5   : > { %v10565_v3 = vor.u32 %v11628_v10, %v10564_v22  ;;  %v10024_v22 = vld [vmem:[%s15581_s3 + $0xc8] sm:$0xf] }
 0x5e6   : > { %4812 = vmatpush.bf16.msrb.mxu2 %v10693_v21  ;;  %4853 = vmatpush.bf16.msrb.mxu3 %v10133_v15  ;;  %v10552_v21 = vld [vmem:[%s15581_s3 + $0x4e8] sm:$0xf]  ;;  %v11625_v15 = vld [vmem:[%s15581_s3 + $0x4f0] sm:$0xf0] }
 0x5e7   : > { %v10553_v24 = vor.u32 %v11625_v15, %v10552_v21  ;;  %v11655_v21 = vld [vmem:[%s15581_s3 + $0x5e0] sm:$0xf0]  ;;  %v4341_v15 = vpack.c.b16 %v4128_v44, %v4128_v44 }
 0x5e8   : > { %4783 = vmatpush.bf16.msrb.mxu0 %v10513_v51  ;;  %4825 = vmatpush.bf16.msrb.mxu1 %v9941_v20  ;;  %v10060_v51 = vld [vmem:[%s15581_s3 + $0x110] sm:$0xf]  ;;  %v11502_v20 = vld [vmem:[%s15581_s3 + $0x118] sm:$0xf0]  ;;  %v11595_v44 = vld [vmem:[%s15581_s3 + $0x400] sm:$0xf0] }
 0x5e9   : > { %10759 = vmatmul.msk.bf16.vlgmr.msrb.gmra.mxu2 %vm2131_vm10, %v13925_v27  ;;  %v10061_v32 = vor.u32 %v11502_v20, %v10060_v51 }
 0x5ea   : > { %4861 = vmatpush.bf16.msra.mxu2 %v10301_v31  ;;  %4854 = vmatpush.bf16.msrb.mxu3 %v10121_v48  ;;  %v11547_v31 = vld [vmem:[%s15581_s3 + $0x280] sm:$0xf0]  ;;  %v10048_v48 = vld [vmem:[%s15581_s3 + $0xf8] sm:$0xf] }
 0x5eb   : > { %v10241_v7 = vor.u32 %v11547_v31, %v10240_v17  ;;  %v4565_v17 = vand.u32 %v13756_v46, %v4341_v15  ;;  %v11607_v31 = vld [vmem:[%s15581_s3 + $0x460] sm:$0xf0] }
 0x5ec   : > { %4784 = vmatpush.bf16.msrb.mxu0 %v10501_v35  ;;  %4826 = vmatpush.bf16.msrb.mxu1 %v9929_v37  ;;  %v10228_v35 = vld [vmem:[%s15581_s3 + $0x260] sm:$0xf]  ;;  %v11544_v37 = vld [vmem:[%s15581_s3 + $0x268] sm:$0xf0] }
 0x5ed   : > { %4855 = vmatmul.bf16.vlgmr.msrb.gmra.mxu3 %v13768_v29  ;;  %v11577_v29 = vld [vmem:[%s15581_s3 + $0x370] sm:$0xf0] }
 0x5ee   : > { %4862 = vmatpush.bf16.msra.mxu2 %v10289_v18  ;;  %4903 = vmatpush.bf16.msra.mxu3 %v10589_v4  ;;  %v10361_v33 = vor.u32 %v11577_v29, %v10360_v53  ;;  %v11571_v18 = vld [vmem:[%s15581_s3 + $0x340] sm:$0xf0]  ;;  %v10229_v4 = vor.u32 %v11544_v37, %v10228_v35  ;;  %v11610_v53 = vld [vmem:[%s15581_s3 + $0x478] sm:$0xf0]  ;;  %v10672_v29 = vld [vmem:[%s15581_s3 + $0x5d8] sm:$0xf] }
 0x5ef   : > { %4785 = vmatmul.bf16.vlgmr.msrb.gmra.mxu0 %v13880_v59  ;;  %4827 = vmatmul.bf16.vlgmr.msrb.gmra.mxu1 %v13775_v25  ;;  %v10373_v25 = vor.u32 %v11580_v6, %v10372_v28  ;;  %v10037_v28 = vor.u32 %v11496_v38, %v10036_v1  ;;  %v10493_v20 = vor.u32 %v11610_v53, %v10492_v40  ;;  %v10744_v35 = vld [vmem:[%s15581_s3 + $0x668] sm:$0xf]  ;;  %v11673_v37 = vld [vmem:[%s15581_s3 + $0x670] sm:$0xf0] }
 0x5f0   : > { %4833 = vmatpush.bf16.msra.mxu0 %v10109_v63  ;;  %4875 = vmatpush.bf16.msra.mxu1 %v10397_v34  ;;  %v10336_v63 = vld [vmem:[%s15581_s3 + $0x338] sm:$0xf]  ;;  %v10049_v34 = vor.u32 %v11499_v60, %v10048_v48  ;;  %v10757_v48 = vor.u32 %v11676_v12, %v10756_v5  ;;  %v11604_v60 = vld [vmem:[%s15581_s3 + $0x448] sm:$0xf0]  ;;  %v10745_v14 = vor.u32 %v11673_v37, %v10744_v35  ;;  %v10696_v40 = vld [vmem:[%s15581_s3 + $0x608] sm:$0xf] }
 0x5f1   : > { %v10337_v39 = vor.u32 %v11571_v18, %v10336_v63  ;;  %v10456_v18 = vld [vmem:[%s15581_s3 + $0x428] sm:$0xf]  ;;  %v11661_v53 = vld [vmem:[%s15581_s3 + $0x610] sm:$0xf0] }
 0x5f2   : > { %4863 = vmatpush.bf16.msra.mxu2 %v10277_v8  ;;  %4904 = vmatpush.bf16.msra.mxu3 %v10577_v41  ;;  %v10324_v8 = vld [vmem:[%s15581_s3 + $0x320] sm:$0xf]  ;;  %v10684_v41 = vld [vmem:[%s15581_s3 + $0x5f0] sm:$0xf]  ;;  %v10457_v1 = vor.u32 %v11601_v58, %v10456_v18 }
 0x5f3   : > { %v10325_v10 = vor.u32 %v11568_v42, %v10324_v8  ;;  %v10720_v8 = vld [vmem:[%s15581_s3 + $0x638] sm:$0xf]  ;;  %v11667_v42 = vld [vmem:[%s15581_s3 + $0x640] sm:$0xf0]  ;;  %v4618_v15 = vpop.f32.mrf.mxu0 }
 0x5f4   : > { %4834 = vmatpush.bf16.msra.mxu0 %v10097_v52  ;;  %4876 = vmatpush.bf16.msra.mxu1 %v10385_v45  ;;  %v11541_v52 = vld [vmem:[%s15581_s3 + $0x250] sm:$0xf0]  ;;  %v11616_v45 = vld [vmem:[%s15581_s3 + $0x4a8] sm:$0xf0] }
 0x5f5   : > { %v10217_v6 = vor.u32 %v11541_v52, %v10216_v16  ;;  %v10624_v16 = vld [vmem:[%s15581_s3 + $0x578] sm:$0xf]  ;;  %v11643_v52 = vld [vmem:[%s15581_s3 + $0x580] sm:$0xf0] }
 0x5f6   : > { %4864 = vmatpush.bf16.msra.mxu2 %v10265_v62  ;;  %4905 = vmatpush.bf16.msra.mxu3 %v10565_v3  ;;  %v11493_v62 = vld [vmem:[%s15581_s3 + $0xd0] sm:$0xf0]  ;;  %v10504_v3 = vld [vmem:[%s15581_s3 + $0x488] sm:$0xf] }
 0x5f7   : > { %v10505_v51 = vor.u32 %v11613_v2, %v10504_v3  ;;  %v10600_v3 = vld [vmem:[%s15581_s3 + $0x548] sm:$0xf]  ;;  %v11637_v2 = vld [vmem:[%s15581_s3 + $0x550] sm:$0xf0] }
 0x5f8   : > { %4835 = vmatpush.bf16.msra.mxu0 %v10085_v30  ;;  %4877 = vmatpush.bf16.msra.mxu1 %v10373_v25  ;;  %v10517_v30 = vor.u32 %v11616_v45, %v10516_v49  ;;  %v10685_v25 = vor.u32 %v11658_v11, %v10684_v41  ;;  %v10625_v45 = vor.u32 %v11643_v52, %v10624_v16  ;;  %v10432_v41 = vld [vmem:[%s15581_s3 + $0x3f8] sm:$0xf] }
 0x5f9   : > { %v10721_v11 = vor.u32 %v11667_v42, %v10720_v8 }
 0x5fa   : > { %4865 = vmatpush.bf16.msra.mxu2 %v10253_v57  ;;  %4906 = vmatpush.bf16.msra.mxu3 %v10553_v24  ;;  %v10313_v57 = vor.u32 %v11565_v0, %v10312_v26  ;;  %v10480_v24 = vld [vmem:[%s15581_s3 + $0x458] sm:$0xf]  ;;  %v10420_v26 = vld [vmem:[%s15581_s3 + $0x3e0] sm:$0xf] }
 0x5fc   : > { %4836 = vmatpush.bf16.msra.mxu0 %v10073_v36  ;;  %4878 = vmatpush.bf16.msra.mxu1 %v10361_v33  ;;  %v10025_v36 = vor.u32 %v11493_v62, %v10024_v22  ;;  %v10673_v33 = vor.u32 %v11655_v21, %v10672_v29  ;;  %v10708_v22 = vld [vmem:[%s15581_s3 + $0x620] sm:$0xf]  ;;  %v10601_v21 = vor.u32 %v11637_v2, %v10600_v3 }
 0x5fe   : > { %4866 = vmatpush.bf16.msra.mxu2 %v10241_v7  ;;  %4907 = vmatpush.bf16.msra.mxu3 %v10541_v55  ;;  %v10661_v7 = vor.u32 %v11652_v47, %v10660_v56  ;;  %v11649_v55 = vld [vmem:[%s15581_s3 + $0x5b0] sm:$0xf0]  ;;  %v4576_v56 = vpop.f32.mrf.mxu3 }
 0x600   : > { %4837 = vmatpush.bf16.msra.mxu0 %v10061_v32  ;;  %4879 = vmatpush.bf16.msra.mxu1 %v10349_v61  ;;  %v10481_v32 = vor.u32 %v11607_v31, %v10480_v24  ;;  %v10648_v61 = vld [vmem:[%s15581_s3 + $0x5a8] sm:$0xf]  ;;  %v4620_v24 = vpop.f32.mrf.mxu0  ;;  %v4604_v31 = vpop.f32.mrf.mxu1 }
 0x602   : > { %4867 = vmatpush.bf16.msra.mxu2 %v10229_v4  ;;  %4908 = vmatpush.bf16.msra.mxu3 %v10529_v13  ;;  %v10732_v4 = vld [vmem:[%s15581_s3 + $0x650] sm:$0xf]  ;;  %v11598_v13 = vld [vmem:[%s15581_s3 + $0x418] sm:$0xf0] }
 0x603   : > { %v10445_v49 = vor.u32 %v11598_v13, %v10444_v43 }
 0x604   : > { %4838 = vmatpush.bf16.msra.mxu0 %v10049_v34  ;;  %4880 = vmatpush.bf16.msra.mxu1 %v10337_v39  ;;  %v10636_v34 = vld [vmem:[%s15581_s3 + $0x590] sm:$0xf] }
 0x606   : > { %4868 = vmatpush.bf16.msra.mxu2 %v10217_v6  ;;  %4909 = vmatpush.bf16.msra.mxu3 %v10517_v30  ;;  %v11640_v6 = vld [vmem:[%s15581_s3 + $0x568] sm:$0xf0]  ;;  %v10433_v30 = vor.u32 %v11595_v44, %v10432_v41 }
 0x608   : > { %4839 = vmatpush.bf16.msra.mxu0 %v10037_v28  ;;  %4881 = vmatpush.bf16.msra.mxu1 %v10325_v10  ;;  %v10612_v28 = vld [vmem:[%s15581_s3 + $0x560] sm:$0xf]  ;;  %v11664_v10 = vld [vmem:[%s15581_s3 + $0x628] sm:$0xf0]  ;;  %v4606_v12 = vpop.f32.mrf.mxu1 }
 0x609   : > { %4869 = vmatmul.bf16.vlgmr.msra.gmra.mxu2 %v13770_v19  ;;  %v10468_v19 = vld [vmem:[%s15581_s3 + $0x440] sm:$0xf]  ;;  %v10613_v62 = vor.u32 %v11640_v6, %v10612_v28  ;;  %v10709_v0 = vor.u32 %v11664_v10, %v10708_v22 }
 0x60a   : > { %4917 = vmatpush.bf16.msrb.mxu2 %v10685_v25  ;;  %4910 = vmatpush.bf16.msra.mxu3 %v10505_v51  ;;  %v10469_v63 = vor.u32 %v11604_v60, %v10468_v19  ;;  %v11592_v25 = vld [vmem:[%s15581_s3 + $0x3e8] sm:$0xf0]  ;;  %v11589_v51 = vld [vmem:[%s15581_s3 + $0x3d0] sm:$0xf0] }
 0x60b   : > { %v10421_v29 = vor.u32 %v11592_v25, %v10420_v26 }
 0x60c   : > { %4840 = vmatpush.bf16.msra.mxu0 %v10025_v36  ;;  %4882 = vmatpush.bf16.msra.mxu1 %v10313_v57  ;;  %v10697_v36 = vor.u32 %v11661_v53, %v10696_v40  ;;  %v10408_v57 = vld [vmem:[%s15581_s3 + $0x3c8] sm:$0xf] }
 0x60d   : > { %4911 = vmatmul.bf16.vlgmr.msra.gmra.mxu3 %v13880_v59  ;;  %v11670_v59 = vld [vmem:[%s15581_s3 + $0x658] sm:$0xf0] }
 0x60e   : > { %4918 = vmatpush.bf16.msrb.mxu2 %v10673_v33  ;;  %v10733_v39 = vor.u32 %v11670_v59, %v10732_v4  ;;  %v10409_v33 = vor.u32 %v11589_v51, %v10408_v57 }
 0x60f   : > { %4841 = vmatmul.bf16.vlgmr.msra.gmra.mxu0 %v13729_v23  ;;  %4883 = vmatmul.bf16.vlgmr.msra.gmra.mxu1 %v13867_v50  ;;  %v10649_v23 = vor.u32 %v11649_v55, %v10648_v61  ;;  %v11646_v50 = vld [vmem:[%s15581_s3 + $0x598] sm:$0xf0]  ;;  %s15598_s3 = smov 127  }
 0x610   : > { %4889 = vmatpush.bf16.msrb.mxu0 %v10493_v20  ;;  %4932 = vmatpush.bf16.msrb.mxu1 %v4565_v17  ;;  %v10637_v38 = vor.u32 %v11646_v50, %v10636_v34  ;;  %v4590_v20 = vpop.f32.mrf.mxu2 }
 0x611   : > { %v4591_v58 = vadd.f32 %v4590_v20, %v4576_v56 }
 0x612   : > { %4919 = vmatpush.bf16.msrb.mxu2 %v10661_v7 }
 0x614   : > { %4890 = vmatpush.bf16.msrb.mxu0 %v10481_v32  ;;  %4933 = vmatpush.bf16.msrb.mxu1 %v10757_v48  ;;  %v4578_v32 = vpop.f32.mrf.mxu3 }
 0x616   : > { %4920 = vmatpush.bf16.msrb.mxu2 %v10649_v23 }
 0x618   : > { %4891 = vmatpush.bf16.msrb.mxu0 %v10469_v63  ;;  %4934 = vmatpush.bf16.msrb.mxu1 %v10745_v14  ;;  %v4592_v17 = vpop.f32.mrf.mxu2 }
 0x619   : > { %v4593_v50 = vadd.f32 %v4592_v17, %v4578_v32 }
 0x61a   : > { %4921 = vmatpush.bf16.msrb.mxu2 %v10637_v38 }
 0x61b   : > { %v4607_v43 = vadd.f32 %v4606_v12, %v4593_v50 }
 0x61c   : > { %4892 = vmatpush.bf16.msrb.mxu0 %v10457_v1  ;;  %4935 = vmatpush.bf16.msrb.mxu1 %v10733_v39  ;;  %v4605_v1 = vadd.f32 %v4604_v31, %v4591_v58 }
 0x61e   : > { %4922 = vmatpush.bf16.msrb.mxu2 %v10625_v45  ;;  %v4619_v16 = vadd.f32 %v4618_v15, %v4605_v1  ;;  %v4621_v45 = vadd.f32 %v4620_v24, %v4607_v43 }
 0x620   : > { %4893 = vmatpush.bf16.msrb.mxu0 %v10445_v49  ;;  %4936 = vmatpush.bf16.msrb.mxu1 %v10721_v11 }
 0x622   : > { %4923 = vmatpush.bf16.msrb.mxu2 %v10613_v62 }
 0x624   : > { %4894 = vmatpush.bf16.msrb.mxu0 %v10433_v30  ;;  %4937 = vmatpush.bf16.msrb.mxu1 %v10709_v0 }
 0x626   : > { %4924 = vmatpush.bf16.msrb.mxu2 %v10601_v21 }
 0x628   : > { %4895 = vmatpush.bf16.msrb.mxu0 %v10421_v29  ;;  %4938 = vmatpush.bf16.msrb.mxu1 %v10697_v36 }
 0x629   : > { %4925 = vmatmul.bf16.vlgmr.msrb.gmra.mxu2 %v13882_v9 }
 0x62b   : > { %10760 = vmatmul.msk.bf16.vlgmr.msrb.gmra.mxu1 %vm2131_vm10, %v13925_v27  ;;  %vm6832_vm10 = vcmask 56320  }
 0x62c   : > { %4896 = vmatpush.bf16.msrb.mxu0 %v10409_v33  ;;  %v4674_v47 = vpop.f32.mrf.mxu0  ;;  %v4660_v48 = vpop.f32.mrf.mxu1 }
 0x62f   : > { %4897 = vmatmul.bf16.vlgmr.msrb.gmra.mxu0 %v13869_v54  ;;  %v4646_v5 = vpop.f32.mrf.mxu2  ;;  %v4632_v60 = vpop.f32.mrf.mxu3 }
 0x630   : > { %v4633_v49 = vadd.f32 %v4632_v60, %v4619_v16 }
 0x632   : > { %v4647_v22 = vadd.f32 %v4646_v5, %v4633_v49 }
 0x634   : > { %v4676_v7 = vpop.f32.mrf.mxu0  ;;  %v4662_v55 = vpop.f32.mrf.mxu1  ;;  %v4661_v25 = vadd.f32 %v4660_v48, %v4647_v22 }
 0x636   : > { %v4675_v21 = vadd.f32 %v4674_v47, %v4661_v25  ;;  %v4951_v25 = vld [vmem:[%s15577_s14] sm:$0xff] }
 0x637   : > { %v4648_v19 = vpop.f32.mrf.mxu2  ;;  %v4634_v35 = vpop.f32.mrf.mxu3 }
 0x638   : > { %v4635_v11 = vadd.f32 %v4634_v35, %v4621_v45 }
 0x63a   : > { %v4649_v26 = vadd.f32 %v4648_v19, %v4635_v11 }
 0x63c   : > { %v4688_v61 = vpop.f32.mrf.mxu0  ;;  %v4716_v63 = vpop.f32.mrf.mxu1  ;;  %v4663_v40 = vadd.f32 %v4662_v55, %v4649_v26 }
 0x63d   : > { %v4689_v51 = vadd.f32 %v4688_v61, %v4675_v21 }
 0x63e   : > { %v4677_v20 = vadd.f32 %v4676_v7, %v4663_v40 }
 0x640   : > { %v4702_v9 = vpop.f32.mrf.mxu2  ;;  %v4744_v23 = vpop.f32.mrf.mxu3 }
 0x641   : > { %v4717_v34 = vadd.f32 %v4716_v63, %v4702_v9 }
 0x644   : > { %v4690_v27 = vpop.f32.mrf.mxu0  ;;  %v4718_v14 = vpop.f32.mrf.mxu1 }
 0x645   : > { %v4691_v17 = vadd.f32 %v4690_v27, %v4677_v20 }
 0x648   : > { %v4704_v37 = vpop.f32.mrf.mxu2  ;;  %v4746_v59 = vpop.f32.mrf.mxu3 }
 0x649   : > { %v4719_v52 = vadd.f32 %v4718_v14, %v4704_v37 }
 0x64c   : > { %v4730_v54 = vpop.f32.mrf.mxu0  ;;  %v4772_v42 = vpop.f32.mrf.mxu1 }
 0x64d   : > { %v4731_v4 = vadd.f32 %v4730_v54, %v4717_v34 }
 0x64f   : > { %v4745_v39 = vadd.f32 %v4744_v23, %v4731_v4 }
 0x650   : > { %v4758_v18 = vpop.f32.mrf.mxu2  ;;  %v4800_v28 = vpop.f32.mrf.mxu3 }
 0x651   : > { %v4759_v8 = vadd.f32 %v4758_v18, %v4745_v39 }
 0x653   : > { %v4773_v44 = vadd.f32 %v4772_v42, %v4759_v8 }
 0x654   : > { %v4732_v38 = vpop.f32.mrf.mxu0  ;;  %v4774_v2 = vpop.f32.mrf.mxu1 }
 0x655   : > { %v4733_v41 = vadd.f32 %v4732_v38, %v4719_v52 }
 0x657   : > { %v4747_v10 = vadd.f32 %v4746_v59, %v4733_v41 }
 0x658   : > { %v4760_v13 = vpop.f32.mrf.mxu2  ;;  %v4802_v57 = vpop.f32.mrf.mxu3 }
 0x659   : > { %v4761_v0 = vadd.f32 %v4760_v13, %v4747_v10 }
 0x65b   : > { %v4775_v53 = vadd.f32 %v4774_v2, %v4761_v0 }
 0x66c   : > { %v4786_v6 = vpop.f32.mrf.mxu0  ;;  %v4814_v62 = vpop.f32.mrf.mxu2 }
 0x66d   : > { %v4787_v30 = vadd.f32 %v4786_v6, %v4773_v44  ;;  %v4828_v47 = vpop.f32.mrf.mxu1 }
 0x66f   : > { %v4801_v3 = vadd.f32 %v4800_v28, %v4787_v30 }
 0x670   : > { %v4856_v61 = vpop.f32.mrf.mxu3 }
 0x671   : > { %v4815_v15 = vadd.f32 %v4814_v62, %v4801_v3 }
 0x673   : > { %v4945_v31 = vpack.c.bf16 %v4815_v15, %v4689_v51 }
 0x674   : > { %v4788_v29 = vpop.f32.mrf.mxu0  ;;  %v4816_v24 = vpop.f32.mrf.mxu2 }
 0x675   : > { %v4789_v36 = vadd.f32 %v4788_v29, %v4775_v53  ;;  %v4958_v12 = vunpack.c.l.b16 %v4945_v31  ;;  %v4959_v32 = vunpack.c.h.b16 %v4945_v31  ;;  %v4830_v7 = vpop.f32.mrf.mxu1 }
 0x677   : > { %v4803_v33 = vadd.f32 %v4802_v57, %v4789_v36 }
 0x678   : > { %v4858_v23 = vpop.f32.mrf.mxu3 }
 0x679   : > { %v4817_v56 = vadd.f32 %v4816_v24, %v4803_v33 }
 0x67b   : > { %v4947_v5 = vpack.c.bf16 %v4817_v56, %v4691_v17 }
 0x67d   : > { %v4961_v19 = vunpack.c.l.b16 %v4947_v5  ;;  %v4962_v48 = vunpack.c.h.b16 %v4947_v5 }
 0x67f   : > { %v14140_v60 = vpack.c.b16 %v4961_v19, %v4958_v12  ;;  %v14142_v9 = vpack.c.b16 %v4962_v48, %v4959_v32 }
 0x681   : > { %5041 = vrot.lane.b32.xlu2 %v14142_v9, %s12231_s0  ;;  %5039 = vrot.lane.b32.xlu1 %v14140_v60, %s12231_s0 }
 0x689   : > { %5030 = vrot.lane.b32.xlu2 %v14142_v9, %s12221_s15  ;;  %5028 = vrot.lane.b32.xlu1 %v14140_v60, %s12221_s15 }
 0x68c   : > { %v4842_v55 = vpop.f32.mrf.mxu0  ;;  %v4870_v35 = vpop.f32.mrf.mxu2 }
 0x68d   : > { %v4884_v27 = vpop.f32.mrf.mxu1  ;;  %v4843_v37 = vadd.f32 %v4842_v55, %v4828_v47  ;;  %v10765_v55 = vld [vmem:[%s15580_s8 + $0x8] sm:$0xf0] }
 0x68f   : > { %v4857_v63 = vadd.f32 %v4856_v61, %v4843_v37  ;;  %v11677_v61 = vld [vmem:[%s15580_s8 + $0x4] sm:$0xf] }
 0x690   : > { %v4912_v59 = vpop.f32.mrf.mxu3 }
 0x691   : > { %5018 = vrot.lane.b32.xlu2 %v14142_v9, %s15503_s11  ;;  %5016 = vrot.lane.b32.xlu1 %v14140_v60, %s15503_s11  ;;  %v4871_v14 = vadd.f32 %v4870_v35, %v4857_v63  ;;  %v10768_v35 = vor.u32 %v11677_v61, %v10765_v55 }
 0x693   : > { %v4885_v4 = vadd.f32 %v4884_v27, %v4871_v14 }
 0x694   : > { %v4844_v54 = vpop.f32.mrf.mxu0  ;;  %v4872_v18 = vpop.f32.mrf.mxu2 }
 0x695   : > { %v4845_v58 = vadd.f32 %v4844_v54, %v4830_v7  ;;  %v4886_v34 = vpop.f32.mrf.mxu1 }
 0x697   : > { %v4859_v50 = vadd.f32 %v4858_v23, %v4845_v58 }
 0x698   : > { %v4914_v45 = vpop.f32.mrf.mxu3 }
 0x699   : > { %5006 = vrot.lane.b32.xlu2 %v14142_v9, %s12233_s16  ;;  %5004 = vrot.lane.b32.xlu1 %v14140_v60, %s12233_s16  ;;  %v4873_v39 = vadd.f32 %v4872_v18, %v4859_v50 }
 0x69b   : > { %v4887_v8 = vadd.f32 %v4886_v34, %v4873_v39  ;;  %v11678_v39 = vld [vmem:[%s15580_s8 + $0x4] sm:$0xf0] }
 0x6a1   : > { %4994 = vrot.lane.b32.xlu2 %v14142_v9, %s12234_s18  ;;  %4992 = vrot.lane.b32.xlu1 %v14140_v60, %s12234_s18 }
 0x6a8   : > { %v4940_v16 = vpop.f32.mrf.mxu1 }
 0x6a9   : > { %4983 = vrot.lane.b32.xlu2 %v14142_v9, %s15501_s28  ;;  %4981 = vrot.lane.b32.xlu1 %v14140_v60, %s15501_s28 }
 0x6ac   : > { %v4898_v1 = vpop.f32.mrf.mxu0  ;;  %v4926_v43 = vpop.f32.mrf.mxu2 }
 0x6ad   : > { %v4899_v38 = vadd.f32 %v4898_v1, %v4885_v4  ;;  %v4952_v4 = vld [vmem:[%s15577_s14 + $0x8] sm:$0xff]  ;;  %s15613_s14 = sld [smem:[#allocation23_spill]] }
 0x6af   : > { %v4913_v13 = vadd.f32 %v4912_v59, %v4899_v38 }
 0x6b0   : > { %v4942_v6 = vpop.f32.mrf.mxu1 }
 0x6b1   : > { %v4927_v52 = vadd.f32 %v4926_v43, %v4913_v13  ;;  %5053 = vrot.lane.b32.xlu2 %v14142_v9, %s12235_s22  ;;  %5051 = vrot.lane.b32.xlu1 %v14140_v60, %s12235_s22  ;;  %v10763_v43 = vld [vmem:[%s15580_s8] sm:$0xf]  ;;  %s15521_s8 = smov 120  }
 0x6b3   : > { %v4941_v41 = vadd.f32 %v4940_v16, %v4927_v52  ;;  %v10764_v16 = vor.u32 %v11678_v39, %v10763_v43 }
 0x6b4   : > { %v4900_v42 = vpop.f32.mrf.mxu0  ;;  %v4928_v44 = vpop.f32.mrf.mxu2 }
 0x6b5   : > { %v4901_v49 = vadd.f32 %v4900_v42, %v4887_v8  ;;  %v4946_v22 = vpack.c.bf16 %v4941_v41, %v4941_v41 }
 0x6b7   : > { %v4915_v11 = vadd.f32 %v4914_v45, %v4901_v49  ;;  %v4960_v62 = vunpack.c.l.b16 %v4946_v22 }
 0x6b9   : > { %v4929_v28 = vadd.f32 %v4928_v44, %v4915_v11  ;;  %4972 = vrot.lane.b32.xlu1 %v14142_v9, %s15499_s1 }
 0x6bb   : > { %v4943_v10 = vadd.f32 %v4942_v6, %v4929_v28 }
 0x6bd   : > { %v4948_v30 = vpack.c.bf16 %v4943_v10, %v4943_v10 }
 0x6bf   : > { %v4963_v26 = vunpack.c.l.b16 %v4948_v30  ;;  %v4953_v30 = vld [vmem:[%s12312_s19] sm:$0x7] }
 0x6c1   : > { %v14174_v0 = vpack.c.b16 %v4963_v26, %v4960_v62  ;;  %5065 = vperm.xlu1 %11925, %v4951_v25   ;;  %v5177_v26 = vperm.slane %v4953_v30, 1 }
 0x6c3   : > { %5043 = vrot.lane.b32.xlu0 %v14174_v0, %s12231_s0  ;;  %4974 = vrot.lane.b32.xlu2 %v14174_v0, %s15499_s1 }
 0x6cb   : > { %5032 = vrot.lane.b32.xlu0 %v14174_v0, %s12221_s15  ;;  %5070 = vperm.xlu2 %12026, %v4952_v4  }
 0x6d3   : > { %5020 = vrot.lane.b32.xlu0 %v14174_v0, %s15503_s11 }
 0x6db   : > { %5008 = vrot.lane.b32.xlu0 %v14174_v0, %s12233_s16  ;;  %v5042_v3 = vpop.permute.xlu2 %5041 }
 0x6e3   : > { %4996 = vrot.lane.b32.xlu0 %v14174_v0, %s12234_s18  ;;  %v5031_v2 = vpop.permute.xlu2 %5030 }
 0x6eb   : > { %4985 = vrot.lane.b32.xlu0 %v14174_v0, %s15501_s28  ;;  %v5019_v29 = vpop.permute.xlu2 %5018 }
 0x6f3   : > { %4970 = vrot.lane.b32.xlu0 %v14140_v60, %s15499_s1  ;;  %v5040_v40 = vpop.permute.xlu1 %5039  ;;  %v5007_v51 = vpop.permute.xlu2 %5006 }
 0x6f4   : > { %v5046_v53 = vsel %vm5045_vm13, %v5040_v40, %v5042_v3 }
 0x6f5   : > { %5085 = vmatpush.bf16.msra.mxu0 %v5046_v53 }
 0x6fb   : > { %5055 = vrot.lane.b32.xlu0 %v14174_v0, %s12235_s22  ;;  %v5029_v21 = vpop.permute.xlu1 %5028  ;;  %v4995_v24 = vpop.permute.xlu2 %4994 }
 0x6fc   : > { %v5034_v15 = vsel %vm1576_vm3, %v5029_v21, %v5031_v2 }
 0x6fd   : > { %5086 = vmatpush.bf16.msra.mxu0 %v5034_v15 }
 0x703   : > { %v5017_v36 = vpop.permute.xlu1 %5016  ;;  %v4984_v56 = vpop.permute.xlu2 %4983 }
 0x704   : > { %v5023_v57 = vsel %vm5022_vm14, %v5017_v36, %v5019_v29 }
 0x705   : > { %5087 = vmatpush.bf16.msra.mxu0 %v5023_v57 }
 0x70b   : > { %v5005_v20 = vpop.permute.xlu1 %5004  ;;  %v5054_v32 = vpop.permute.xlu2 %5053 }
 0x70c   : > { %v5011_v33 = vsel %vm5010_vm15, %v5005_v20, %v5007_v51 }
 0x70d   : > { %5088 = vmatpush.bf16.msra.mxu0 %v5011_v33 }
 0x713   : > { %v4993_v17 = vpop.permute.xlu1 %4992 }
 0x714   : > { %v4999_v31 = vsel %vm4998_vm0, %v4993_v17, %v4995_v24 }
 0x715   : > { %5089 = vmatpush.bf16.msra.mxu0 %v4999_v31 }
 0x71b   : > { %v4982_v5 = vpop.permute.xlu1 %4981 }
 0x71c   : > { %v4987_v12 = vsel %vm1468_vm7, %v4982_v5, %v4984_v56 }
 0x71d   : > { %5090 = vmatpush.bf16.msra.mxu0 %v4987_v12  ;;  %v4975_v1 = vpop.permute.xlu2 %4974 }
 0x723   : > { %v5052_v19 = vpop.permute.xlu1 %5051 }
 0x724   : > { %v5058_v48 = vsel %vm5057_vm1, %v5052_v19, %v5054_v32 }
 0x725   : > { %5106 = vmatpush.bf16.msrb.mxu3 %v5058_v48  ;;  %v5071_v10 = vpop.permute.xlu2 %5070 }
 0x728   : > { %10769 = vmatmul.msk.bf16.vlgmr.msrb.gmra.mxu3 %vm1733_vm4, %v10768_v35 }
 0x72b   : > { %v4973_v59 = vpop.permute.xlu1 %4972 }
 0x72c   : > { %v4977_v38 = vsel %vm1432_vm8, %v4973_v59, %v4975_v1 }
 0x733   : > { %v5066_v11 = vpop.permute.xlu1 %5065 }
 0x735   : > { %v5044_v47 = vpop.permute.xlu0 %5043 }
 0x736   : > { %5141 = vmatpush.bf16.msra.mxu3 %v5044_v47  ;;  %v5047_v7 = vsel %vm5045_vm13, %v5042_v3, %v5044_v47  ;;  %v5178_v47 = vperm.slane %v4953_v30, 2 }
 0x737   : > { %5113 = vmatpush.bf16.msra.mxu2 %v5047_v7 }
 0x73d   : > { %v5033_v27 = vpop.permute.xlu0 %5032 }
 0x73e   : > { %5142 = vmatpush.bf16.msra.mxu3 %v5033_v27  ;;  %v5035_v37 = vsel %vm1576_vm3, %v5031_v2, %v5033_v27  ;;  %v5176_v2 = vperm.slane %v4953_v30, 0 }
 0x73f   : > { %5114 = vmatpush.bf16.msra.mxu2 %v5035_v37 }
 0x745   : > { %v5021_v63 = vpop.permute.xlu0 %5020 }
 0x746   : > { %5143 = vmatpush.bf16.msra.mxu3 %v5021_v63  ;;  %v5024_v23 = vsel %vm5022_vm14, %v5019_v29, %v5021_v63 }
 0x747   : > { %5115 = vmatpush.bf16.msra.mxu2 %v5024_v23 }
 0x74d   : > { %v5009_v54 = vpop.permute.xlu0 %5008 }
 0x74e   : > { %5144 = vmatpush.bf16.msra.mxu3 %v5009_v54  ;;  %v5012_v18 = vsel %vm5010_vm15, %v5007_v51, %v5009_v54 }
 0x74f   : > { %5116 = vmatpush.bf16.msra.mxu2 %v5012_v18 }
 0x755   : > { %v4997_v14 = vpop.permute.xlu0 %4996 }
 0x756   : > { %5145 = vmatpush.bf16.msra.mxu3 %v4997_v14  ;;  %v5000_v58 = vsel %vm4998_vm0, %v4995_v24, %v4997_v14 }
 0x757   : > { %5117 = vmatpush.bf16.msra.mxu2 %v5000_v58 }
 0x75d   : > { %v4986_v34 = vpop.permute.xlu0 %4985 }
 0x75e   : > { %5146 = vmatpush.bf16.msra.mxu3 %v4986_v34  ;;  %v4988_v50 = vsel %vm1468_vm7, %v4984_v56, %v4986_v34 }
 0x75f   : > { %5118 = vmatpush.bf16.msra.mxu2 %v4988_v50 }
 0x762   : > { %5147 = vmatpush.bf16.msra.mxu3 %v4975_v1 }
 0x763   : > { %5119 = vmatpush.bf16.msra.mxu2 %v4977_v38 }
 0x765   : > { %v4971_v13 = vpop.permute.xlu0 %4970 }
 0x766   : > { %5148 = vmatpush.bf16.msra.mxu3 %v14174_v0  ;;  %v4976_v52 = vsel %vm1432_vm8, %v4971_v13, %v4973_v59 }
 0x767   : > { %5091 = vmatpush.bf16.msra.mxu0 %v4976_v52  ;;  %5120 = vmatpush.bf16.msra.mxu2 %v14142_v9 }
 0x769   : > { %5149 = vmatmul.bf16.vlgmr.msra.gmra.mxu3 %v10764_v16 }
 0x76a   : > { %5121 = vmatmul.bf16.vlgmr.msra.gmra.mxu2 %v10764_v16 }
 0x76b   : > { %5092 = vmatpush.bf16.msra.mxu0 %v14140_v60 }
 0x76d   : > { %v5056_v8 = vpop.permute.xlu0 %5055 }
 0x76e   : > { %5093 = vmatmul.bf16.vlgmr.msra.gmra.mxu0 %v10764_v16  ;;  %v5059_v42 = vsel %vm5057_vm1, %v5054_v32, %v5056_v8 }
 0x76f   : > { %5162 = vmatpush.bf16.msrb.mxu0 %v5056_v8  ;;  %5134 = vmatpush.bf16.msra.mxu1 %v5059_v42  ;;  %v5225_v42 = vld [vmem:[%s12322_s30] sm:$0xff] }
 0x772   : > { %10770 = vmatmul.msk.bf16.vlgmr.msra.gmra.mxu1 %vm1733_vm4, %v10768_v35 }
 0x77e   : > { %10771 = vmatmul.msk.bf16.vlgmr.msrb.gmra.mxu0 %vm1733_vm4, %v10768_v35 }
 0x7ab   : > { %v5108_v49 = vpop.f32.mrf.mxu3 }
 0x7b3   : > { %v5110_v45 = vpop.f32.mrf.mxu3 }
 0x7eb   : > { %v5094_v41 = vpop.f32.mrf.mxu0 }
 0x7ec   : > { %v5095_v9 = vadd.f32 %v5094_v41, %v5066_v11  ;;  %v5150_v40 = vpop.f32.mrf.mxu3 }
 0x7ed   : > { %v5122_v44 = vpop.f32.mrf.mxu2  ;;  %v5151_v33 = vadd.f32 %v5150_v40, %v5066_v11 }
 0x7ee   : > { %v5123_v28 = vadd.f32 %v5122_v44, %v5066_v11  ;;  %v5109_v22 = vadd.f32 %v5108_v49, %v5095_v9  ;;  %v5226_v49 = vld [vmem:[%s12322_s30 + $0x8] sm:$0xff] }
 0x7ef   : > { %v5136_v6 = vpop.f32.mrf.mxu1 }
 0x7f0   : > { %v5137_v60 = vadd.f32 %v5136_v6, %v5123_v28  ;;  %v5169_v3 = vmax.f32 %v5109_v22, 0.0 }
 0x7f2   : > { %v5170_v62 = vmax.f32 %v5137_v60, 0.0  ;;  %v5182_v20 = vmul.f32 %v5176_v2, %v5169_v3 }
 0x7f3   : > { %v5096_v0 = vpop.f32.mrf.mxu0 }
 0x7f4   : > { %v5097_v25 = vadd.f32 %v5096_v0, %v5071_v10  ;;  %v5183_v15 = vmul.f32 %v5177_v26, %v5170_v62  ;;  %v5152_v48 = vpop.f32.mrf.mxu3 }
 0x7f5   : > { %v5124_v53 = vpop.f32.mrf.mxu2  ;;  %v5153_v27 = vadd.f32 %v5152_v48, %v5071_v10 }
 0x7f6   : > { %v5111_v29 = vadd.f32 %v5110_v45, %v5097_v25  ;;  %v5125_v21 = vadd.f32 %v5124_v53, %v5071_v10  ;;  %v5188_v17 = vpack.c.bf16 %v5183_v15, %v5182_v20  ;;  %v11679_v20 = vld [vmem:[%s12317_s24 + $0x4] sm:$0xf] }
 0x7f7   : > { %v5138_v36 = vpop.f32.mrf.mxu1 }
 0x7f8   : > { %v5172_v57 = vmax.f32 %v5111_v29, 0.0  ;;  %v5139_v51 = vadd.f32 %v5138_v36, %v5125_v21  ;;  %v5196_v19 = vunpack.c.l.b16 %v5188_v17  ;;  %v5197_v7 = vunpack.c.h.b16 %v5188_v17 }
 0x7fa   : > { %v5173_v24 = vmax.f32 %v5139_v51, 0.0  ;;  %v5185_v56 = vmul.f32 %v5176_v2, %v5172_v57 }
 0x7fb   : > { %v5164_v31 = vpop.f32.mrf.mxu0 }
 0x7fc   : > { %v5186_v5 = vmul.f32 %v5177_v26, %v5173_v24  ;;  %v5165_v12 = vadd.f32 %v5164_v31, %v5151_v33  ;;  %v10776_v33 = vld [vmem:[%s12317_s24 + $0x8] sm:$0xf0] }
 0x7fe   : > { %v5190_v32 = vpack.c.bf16 %v5186_v5, %v5185_v56  ;;  %v5171_v35 = vmax.f32 %v5165_v12, 0.0 }
 0x800   : > { %v5199_v61 = vunpack.c.l.b16 %v5190_v32  ;;  %v5200_v55 = vunpack.c.h.b16 %v5190_v32  ;;  %v5184_v54 = vmul.f32 %v5178_v47, %v5171_v35  ;;  %v10779_v32 = vor.u32 %v11679_v20, %v10776_v33  ;;  %v11680_v35 = vld [vmem:[%s12317_s24 + $0x4] sm:$0xf0] }
 0x802   : > { %v5203_v37 = vpack.c.b16 %v5200_v55, %v5197_v7  ;;  %v5202_v63 = vpack.c.b16 %v5199_v61, %v5196_v19  ;;  %v5189_v58 = vpack.c.bf16 %v5184_v54, %v5184_v54  ;;  %v10774_v55 = vld [vmem:[%s12317_s24] sm:$0xf] }
 0x803   : > { %v5166_v23 = vpop.f32.mrf.mxu0 }
 0x804   : > { %v5167_v18 = vadd.f32 %v5166_v23, %v5153_v27  ;;  %5207 = vrot.lane.b32.xlu1 %v5203_v37, %s12236_s23  ;;  %5205 = vrot.lane.b32.xlu0 %v5202_v63, %s12236_s23  ;;  %v5198_v4 = vunpack.c.l.b16 %v5189_v58  ;;  %v10775_v27 = vor.u32 %v11680_v35, %v10774_v55 }
 0x806   : > { %v5174_v14 = vmax.f32 %v5167_v18, 0.0 }
 0x808   : > { %v5187_v34 = vmul.f32 %v5178_v47, %v5174_v14 }
 0x80a   : > { %v5191_v50 = vpack.c.bf16 %v5187_v34, %v5187_v34 }
 0x80c   : > { %v5201_v59 = vunpack.c.l.b16 %v5191_v50 }
 0x80e   : > { %v5204_v1 = vpack.c.b16 %v5201_v59, %v5198_v4 }
 0x810   : > { %5209 = vrot.lane.b32.xlu2 %v5204_v1, %s12236_s23 }
 0x86a   : > { %v5210_v16 = vpop.permute.xlu2 %5209 }
 0x876   : > { %v5208_v38 = vpop.permute.xlu1 %5207  ;;  %v14226_v43 = vpop.permute.xlu0 %5205 }
 0x877   : > { %v14230_v39 = vsel %vm5211_vm2, %v14226_v43, %v5208_v38  ;;  %v5217_v13 = vsel %vm5211_vm2, 0, %v14226_v43  ;;  %v5213_v52 = vsel %vm5211_vm2, %v5208_v38, %v5210_v16 }
 0x878   : > { %5285 = vrot.lane.b32.xlu2 %v5217_v13, %s12221_s15  ;;  %5296 = vrot.lane.b32.xlu0 %v5217_v13, %s12231_s0  ;;  %v14249_v8 = vsel %vm5219_vm5, %v5213_v52, 0  ;;  %v5227_v52 = vld [vmem:[%s15583_s6] sm:$0x7]  ;;  %s15512_s6 = smov 115  }
 0x879   : > { %5298 = vrot.lane.b32.xlu1 %v14230_v39, %s12231_s0 }
 0x880   : > { %5276 = vrot.lane.b32.xlu2 %v14230_v39, %s15503_s11  ;;  %5287 = vrot.lane.b32.xlu0 %v14230_v39, %s12221_s15 }
 0x881   : > { %5274 = vrot.lane.b32.xlu1 %v5217_v13, %s15503_s11 }
 0x888   : > { %5265 = vrot.lane.b32.xlu2 %v14230_v39, %s12233_s16  ;;  %5307 = vrot.lane.b32.xlu0 %v5217_v13, %s12235_s22 }
 0x889   : > { %5263 = vrot.lane.b32.xlu1 %v5217_v13, %s12233_s16 }
 0x890   : > { %5254 = vrot.lane.b32.xlu2 %v14230_v39, %s12234_s18  ;;  %5300 = vrot.lane.b32.xlu0 %v14249_v8, %s12231_s0  ;;  %s15495_s0 = smov 107  }
 0x891   : > { %5252 = vrot.lane.b32.xlu1 %v5217_v13, %s12234_s18 }
 0x898   : > { %5243 = vrot.lane.b32.xlu2 %v14230_v39, %s15501_s28  ;;  %5289 = vrot.lane.b32.xlu0 %v14249_v8, %s12221_s15  ;;  %s15584_s15 = sld [smem:[#allocation9_spill]] }
 0x899   : > { %5241 = vrot.lane.b32.xlu1 %v5217_v13, %s15501_s28 }
 0x8a0   : > { %5267 = vrot.lane.b32.xlu2 %v14249_v8, %s12233_s16  ;;  %5278 = vrot.lane.b32.xlu0 %v14249_v8, %s15503_s11  ;;  %s15493_s16 = smov 118  }
 0x8a1   : > { %5309 = vrot.lane.b32.xlu1 %v14230_v39, %s12235_s22 }
 0x8a8   : > { %5256 = vrot.lane.b32.xlu2 %v14249_v8, %s12234_s18  ;;  %5230 = vrot.lane.b32.xlu0 %v5217_v13, %s15499_s1 }
 0x8a9   : > { %5232 = vrot.lane.b32.xlu1 %v14230_v39, %s15499_s1 }
 0x8b0   : > { %5311 = vrot.lane.b32.xlu2 %v14249_v8, %s12235_s22  ;;  %5245 = vrot.lane.b32.xlu0 %v14249_v8, %s15501_s28  ;;  %s15489_s22 = smov 106  }
 0x8b1   : > { %5234 = vrot.lane.b32.xlu1 %v14249_v8, %s15499_s1 }
 0x8b8   : > { %5320 = vperm.xlu0 %11924, %v5225_v42  }
 0x8b9   : > { %5325 = vperm.xlu1 %11925, %v5226_v49  }
 0x8d2   : > { %v5286_v45 = vpop.permute.xlu2 %5285 }
 0x8da   : > { %v5277_v41 = vpop.permute.xlu2 %5276 }
 0x8e2   : > { %v5266_v11 = vpop.permute.xlu2 %5265 }
 0x8ea   : > { %v5297_v9 = vpop.permute.xlu0 %5296  ;;  %v5255_v44 = vpop.permute.xlu2 %5254 }
 0x8eb   : > { %v5299_v28 = vpop.permute.xlu1 %5298 }
 0x8ec   : > { %v5302_v6 = vsel %vm5045_vm13, %v5297_v9, %v5299_v28 }
 0x8ed   : > { %5340 = vmatpush.bf16.msrb.mxu1 %v5302_v6 }
 0x8f2   : > { %v5288_v60 = vpop.permute.xlu0 %5287  ;;  %v5244_v30 = vpop.permute.xlu2 %5243 }
 0x8f3   : > { %v5275_v22 = vpop.permute.xlu1 %5274  ;;  %v5291_v10 = vsel %vm1576_vm3, %v5286_v45, %v5288_v60 }
 0x8f4   : > { %5341 = vmatpush.bf16.msrb.mxu1 %v5291_v10  ;;  %v5280_v62 = vsel %vm5022_vm14, %v5275_v22, %v5277_v41 }
 0x8f8   : > { %5342 = vmatpush.bf16.msrb.mxu1 %v5280_v62 }
 0x8fa   : > { %v5308_v26 = vpop.permute.xlu0 %5307  ;;  %v5268_v3 = vpop.permute.xlu2 %5267 }
 0x8fb   : > { %v5264_v0 = vpop.permute.xlu1 %5263  ;;  %v5270_v19 = vsel %vm5010_vm15, %v5266_v11, %v5268_v3 }
 0x8fc   : > { %v5269_v25 = vsel %vm5010_vm15, %v5264_v0, %v5266_v11  ;;  %vm8537_vm15 = vcmask 39936  }
 0x8fd   : > { %5343 = vmatpush.bf16.msrb.mxu1 %v5269_v25 }
 0x902   : > { %v5301_v2 = vpop.permute.xlu0 %5300  ;;  %v5257_v21 = vpop.permute.xlu2 %5256 }
 0x903   : > { %v5253_v40 = vpop.permute.xlu1 %5252  ;;  %v5303_v53 = vsel %vm5045_vm13, %v5299_v28, %v5301_v2  ;;  %v5259_v7 = vsel %vm4998_vm0, %v5255_v44, %v5257_v21  ;;  %vm7988_vm13 = vcmask 1045504  }
 0x904   : > { %v5258_v29 = vsel %vm4998_vm0, %v5253_v40, %v5255_v44  ;;  %5368 = vmatpush.bf16.msra.mxu0 %v5303_v53 }
 0x905   : > { %5344 = vmatpush.bf16.msrb.mxu1 %v5258_v29  ;;  %v5433_v29 = vperm.slane %v5227_v52, 2 }
 0x90a   : > { %v5290_v15 = vpop.permute.xlu0 %5289  ;;  %v5312_v17 = vpop.permute.xlu2 %5311 }
 0x90b   : > { %v5242_v36 = vpop.permute.xlu1 %5241  ;;  %v5292_v57 = vsel %vm1576_vm3, %v5288_v60, %v5290_v15  ;;  %vm10780_vm3 = vmneg %vm5211_vm2 }
 0x90c   : > { %v5247_v51 = vsel %vm1468_vm7, %v5242_v36, %v5244_v30  ;;  %5369 = vmatpush.bf16.msra.mxu0 %v5292_v57 }
 0x90d   : > { %5345 = vmatpush.bf16.msrb.mxu1 %v5247_v51 }
 0x912   : > { %v5279_v24 = vpop.permute.xlu0 %5278 }
 0x913   : > { %v5310_v31 = vpop.permute.xlu1 %5309  ;;  %v5281_v56 = vsel %vm5022_vm14, %v5277_v41, %v5279_v24  ;;  %v5431_v41 = vperm.slane %v5227_v52, 0  ;;  %vm7989_vm14 = vcmask 1046528  }
 0x914   : > { %v5313_v5 = vsel %vm5057_vm1, %v5308_v26, %v5310_v31  ;;  %5370 = vmatpush.bf16.msra.mxu0 %v5281_v56  ;;  %v5314_v12 = vsel %vm5057_vm1, %v5310_v31, %v5312_v17 }
 0x915   : > { %5361 = vmatpush.bf16.msrb.mxu2 %v5313_v5  ;;  %5389 = vmatpush.bf16.msrb.mxu3 %v5314_v12 }
 0x918   : > { %5371 = vmatpush.bf16.msra.mxu0 %v5270_v19  ;;  %10782 = vmatmul.msk.bf16.vlgmr.msrb.gmra.mxu2 %vm1733_vm4, %v10779_v32 }
 0x919   : > { %5396 = vmatpush.bf16.msra.mxu2 %v5301_v2  ;;  %10783 = vmatmul.msk.bf16.vlgmr.msrb.gmra.mxu3 %vm1733_vm4, %v10779_v32 }
 0x91a   : > { %v5231_v48 = vpop.permute.xlu0 %5230 }
 0x91b   : > { %v5233_v47 = vpop.permute.xlu1 %5232 }
 0x91c   : > { %v5236_v61 = vsel %vm1432_vm8, %v5231_v48, %v5233_v47  ;;  %5372 = vmatpush.bf16.msra.mxu0 %v5259_v7 }
 0x91d   : > { %5397 = vmatpush.bf16.msra.mxu2 %v5290_v15  ;;  %5346 = vmatpush.bf16.msrb.mxu1 %v5236_v61 }
 0x921   : > { %5398 = vmatpush.bf16.msra.mxu2 %v5279_v24  ;;  %10781 = vmatpush.bf16.msk.msrb.mxu1 %vm10780_vm3, %v14226_v43 }
 0x922   : > { %v5246_v37 = vpop.permute.xlu0 %5245 }
 0x923   : > { %v5248_v63 = vsel %vm1468_vm7, %v5244_v30, %v5246_v37  ;;  %v5235_v23 = vpop.permute.xlu1 %5234  ;;  %vm6042_vm7 = vcmask 261120  }
 0x924   : > { %5348 = vmatmul.bf16.vlgmr.msrb.gmra.mxu1 %v10775_v27  ;;  %5373 = vmatpush.bf16.msra.mxu0 %v5248_v63  ;;  %v5237_v54 = vsel %vm1432_vm8, %v5233_v47, %v5235_v23 }
 0x925   : > { %5399 = vmatpush.bf16.msra.mxu2 %v5268_v3  ;;  %5417 = vmatpush.bf16.msra.mxu1 %v5312_v17 }
 0x928   : > { %5374 = vmatpush.bf16.msra.mxu0 %v5237_v54 }
 0x929   : > { %5400 = vmatpush.bf16.msra.mxu2 %v5257_v21 }
 0x92a   : > { %v5321_v34 = vpop.permute.xlu0 %5320 }
 0x92b   : > { %v5326_v38 = vpop.permute.xlu1 %5325 }
 0x92c   : > { %5375 = vmatpush.bf16.msra.mxu0 %v14230_v39 }
 0x92d   : > { %5401 = vmatpush.bf16.msra.mxu2 %v5246_v37 }
 0x92f   : > { %5376 = vmatmul.bf16.vlgmr.msra.gmra.mxu0 %v10775_v27 }
 0x931   : > { %5402 = vmatpush.bf16.msra.mxu2 %v5235_v23 }
 0x934   : > { %10784 = vmatmul.msk.bf16.vlgmr.msra.gmra.mxu1 %vm1733_vm4, %v10779_v32 }
 0x935   : > { %5403 = vmatpush.bf16.msra.mxu2 %v14249_v8  ;;  %v5432_v8 = vperm.slane %v5227_v52, 1 }
 0x938   : > { %5404 = vmatmul.bf16.vlgmr.msra.gmra.mxu2 %v10775_v27 }
 0x99b   : > { %v5363_v14 = vpop.f32.mrf.mxu2 }
 0x99c   : > { %v5391_v58 = vpop.f32.mrf.mxu3 }
 0x9a1   : > { %v5349_v18 = vpop.f32.mrf.mxu1 }
 0x9a2   : > { %v5350_v50 = vadd.f32 %v5349_v18, %v5321_v34 }
 0x9a3   : > { %v5365_v16 = vpop.f32.mrf.mxu2 }
 0x9a4   : > { %v5364_v39 = vadd.f32 %v5363_v14, %v5350_v50  ;;  %v5393_v9 = vpop.f32.mrf.mxu3 }
 0x9a6   : > { %v5424_v45 = vmax.f32 %v5364_v39, 0.0 }
 0x9a8   : > { %v5437_v22 = vmul.f32 %v5431_v41, %v5424_v45 }
 0x9a9   : > { %v5351_v4 = vpop.f32.mrf.mxu1 }
 0x9aa   : > { %v5352_v43 = vadd.f32 %v5351_v4, %v5326_v38 }
 0x9ac   : > { %v5377_v59 = vpop.f32.mrf.mxu0  ;;  %v5366_v49 = vadd.f32 %v5365_v16, %v5352_v43 }
 0x9ad   : > { %v5378_v1 = vadd.f32 %v5377_v59, %v5321_v34 }
 0x9ae   : > { %v5427_v6 = vmax.f32 %v5366_v49, 0.0 }
 0x9af   : > { %v5392_v13 = vadd.f32 %v5391_v58, %v5378_v1 }
 0x9b0   : > { %v5440_v25 = vmul.f32 %v5431_v41, %v5427_v6 }
 0x9b1   : > { %v5425_v42 = vmax.f32 %v5392_v13, 0.0  ;;  %v5419_v10 = vpop.f32.mrf.mxu1 }
 0x9b3   : > { %v5438_v28 = vmul.f32 %v5432_v8, %v5425_v42 }
 0x9b4   : > { %v5379_v11 = vpop.f32.mrf.mxu0 }
 0x9b5   : > { %v5380_v44 = vadd.f32 %v5379_v11, %v5326_v38  ;;  %v5443_v0 = vpack.c.bf16 %v5438_v28, %v5437_v22 }
 0x9b7   : > { %v5394_v60 = vadd.f32 %v5393_v9, %v5380_v44  ;;  %v5451_v53 = vunpack.c.l.b16 %v5443_v0  ;;  %v5452_v21 = vunpack.c.h.b16 %v5443_v0  ;;  %v11688_v0 = vld [vmem:[%s15584_s15 + $0x38] sm:$0xff] }
 0x9b8   : > { %5725 = vmatpush.bf16.msra.mxu3 %v11688_v0 }
 0x9b9   : > { %v5428_v62 = vmax.f32 %v5394_v60, 0.0  ;;  %v5421_v17 = vpop.f32.mrf.mxu1 }
 0x9bb   : > { %v5405_v30 = vpop.f32.mrf.mxu2  ;;  %v5441_v3 = vmul.f32 %v5432_v8, %v5428_v62 }
 0x9bc   : > { %v5406_v26 = vadd.f32 %v5405_v30, %v5321_v34 }
 0x9bd   : > { %v5445_v40 = vpack.c.bf16 %v5441_v3, %v5440_v25  ;;  %v11696_v25 = vld [vmem:[%s15584_s15 + $0x78] sm:$0xff]  ;;  %v11687_v3 = vld [vmem:[%s15584_s15 + $0x30] sm:$0xff] }
 0x9be   : > { %v5420_v2 = vadd.f32 %v5419_v10, %v5406_v26  ;;  %5739 = vmatpush.bf16.msrb.mxu0 %v11696_v25  ;;  %5726 = vmatpush.bf16.msra.mxu3 %v11687_v3 }
 0x9bf   : > { %v5454_v15 = vunpack.c.l.b16 %v5445_v40  ;;  %v5455_v36 = vunpack.c.h.b16 %v5445_v40  ;;  %v11686_v40 = vld [vmem:[%s15584_s15 + $0x28] sm:$0xff] }
 0x9c0   : > { %v5426_v57 = vmax.f32 %v5420_v2, 0.0  ;;  %v11695_v2 = vld [vmem:[%s15584_s15 + $0x70] sm:$0xff] }
 0x9c1   : > { %v5458_v33 = vpack.c.b16 %v5455_v36, %v5452_v21  ;;  %v5457_v24 = vpack.c.b16 %v5454_v15, %v5451_v53  ;;  %v11694_v53 = vld [vmem:[%s15584_s15 + $0x68] sm:$0xff]  ;;  %v11685_v36 = vld [vmem:[%s15584_s15 + $0x20] sm:$0xff] }
 0x9c2   : > { %v5439_v31 = vmul.f32 %v5433_v29, %v5426_v57  ;;  %5740 = vmatpush.bf16.msrb.mxu0 %v11695_v2  ;;  %5727 = vmatpush.bf16.msra.mxu3 %v11686_v40  ;;  %v11693_v57 = vld [vmem:[%s15584_s15 + $0x60] sm:$0xff] }
 0x9c3   : > { %v5407_v51 = vpop.f32.mrf.mxu2  ;;  %5462 = vrot.lane.b32.xlu2 %v5458_v33, %s12236_s23  ;;  %5460 = vrot.lane.b32.xlu1 %v5457_v24, %s12236_s23  ;;  %v11684_v33 = vld [vmem:[%s15584_s15 + $0x18] sm:$0xff] }
 0x9c4   : > { %v5408_v20 = vadd.f32 %v5407_v51, %v5326_v38  ;;  %v5444_v12 = vpack.c.bf16 %v5439_v31, %v5439_v31  ;;  %v11692_v24 = vld [vmem:[%s15584_s15 + $0x58] sm:$0xff]  ;;  %v11683_v31 = vld [vmem:[%s15584_s15 + $0x10] sm:$0xff] }
 0x9c6   : > { %v5422_v56 = vadd.f32 %v5421_v17, %v5408_v20  ;;  %v5453_v48 = vunpack.c.l.b16 %v5444_v12  ;;  %5741 = vmatpush.bf16.msrb.mxu0 %v11694_v53  ;;  %v11699_v20 = vld [vmem:[%s15584_s15 + $0x90] sm:$0xff]  ;;  %5728 = vmatpush.bf16.msra.mxu3 %v11685_v36  ;;  %v11698_v17 = vld [vmem:[%s15584_s15 + $0x88] sm:$0xff]  ;;  %v11697_v12 = vld [vmem:[%s15584_s15 + $0x80] sm:$0xff] }
 0x9c8   : > { %v5429_v5 = vmax.f32 %v5422_v56, 0.0  ;;  %v11691_v56 = vld [vmem:[%s15584_s15 + $0x50] sm:$0xff] }
 0x9ca   : > { %v5442_v32 = vmul.f32 %v5433_v29, %v5429_v5  ;;  %v5513_v29 = vld [vmem:[%s15584_s15 + $0x98] sm:$0x1]  ;;  %5742 = vmatpush.bf16.msrb.mxu0 %v11693_v57  ;;  %5729 = vmatpush.bf16.msra.mxu3 %v11684_v33  ;;  %v11690_v5 = vld [vmem:[%s15584_s15 + $0x48] sm:$0xff] }
 0x9cb   : > { %v5679_v21 = vunpack.c.l.b16 %v5513_v29 }
 0x9cc   : > { %v5446_v19 = vpack.c.bf16 %v5442_v32, %v5442_v32  ;;  %v11681_v32 = vld [vmem:[%s15584_s15] sm:$0xff] }
 0x9cd   : > { %v5699_v15 = vpack.c.b16 %v5679_v21, %v5679_v21 }
 0x9ce   : > { %v5456_v47 = vunpack.c.l.b16 %v5446_v19  ;;  %5743 = vmatpush.bf16.msrb.mxu0 %v11692_v24  ;;  %5730 = vmatpush.bf16.msra.mxu3 %v11683_v31  ;;  %v11689_v19 = vld [vmem:[%s15584_s15 + $0x40] sm:$0xff] }
 0x9cf   : > { %v5723_v51 = vand.u32 %v5699_v15, %v13756_v46  ;;  %v11682_v46 = vld [vmem:[%s15584_s15 + $0x8] sm:$0xff] }
 0x9d0   : > { %v5459_v7 = vpack.c.b16 %v5456_v47, %v5453_v48 }
 0x9d1   : > { %5757 = vmatpush.bf16.msrb.mxu1 %v5723_v51 }
 0x9d2   : > { %5464 = vrot.lane.b32.xlu0 %v5459_v7, %s12236_s23  ;;  %5744 = vmatpush.bf16.msrb.mxu0 %v11691_v56  ;;  %s15586_s23 = sld [smem:[#allocation10_spill]] }
 0x9d3   : > { %5731 = vmatpush.bf16.msra.mxu3 %v11682_v46 }
 0x9d5   : > { %5758 = vmatpush.bf16.msrb.mxu1 %v11699_v20 }
 0x9d6   : > { %5745 = vmatpush.bf16.msrb.mxu0 %v11690_v5 }
 0x9d7   : > { %5732 = vmatpush.bf16.msra.mxu3 %v11681_v32 }
 0x9d8   : > { %v11700_v53 = vld [vmem:[%s15586_s23 + $0x4] sm:$0xf]  ;;  %v10866_v29 = vld [vmem:[%s15586_s23 + $0x8] sm:$0xf0]  ;;  %v10864_v51 = vld [vmem:[%s15586_s23] sm:$0xf] }
 0x9d9   : > { %5759 = vmatpush.bf16.msrb.mxu1 %v11698_v17  ;;  %v10869_v36 = vor.u32 %v11700_v53, %v10866_v29  ;;  %v11701_v20 = vld [vmem:[%s15586_s23 + $0x4] sm:$0xf0]  ;;  %v11702_v24 = vld [vmem:[%s15586_s23 + $0x14] sm:$0xf]  ;;  %v10874_v17 = vld [vmem:[%s15586_s23 + $0x18] sm:$0xf0] }
 0x9da   : > { %5746 = vmatpush.bf16.msrb.mxu0 %v11689_v19  ;;  %v10865_v33 = vor.u32 %v11701_v20, %v10864_v51  ;;  %v10877_v31 = vor.u32 %v11702_v24, %v10874_v17  ;;  %v10872_v56 = vld [vmem:[%s15586_s23 + $0x10] sm:$0xf]  ;;  %v11703_v46 = vld [vmem:[%s15586_s23 + $0x14] sm:$0xf0] }
 0x9db   : > { %v10873_v5 = vor.u32 %v11703_v46, %v10872_v56 }
 0x9dd   : > { %5760 = vmatpush.bf16.msrb.mxu1 %v11697_v12 }
 0xa1d   : > { %v5463_v61 = vpop.permute.xlu2 %5462 }
 0xa35   : > { %v5461_v55 = vpop.permute.xlu1 %5460 }
 0xa36   : > { %v5466_v35 = vsel %vm5211_vm2, %v5461_v55, %v5463_v61  ;;  %v5470_v27 = vsel %vm5211_vm2, 0, %v5461_v55 }
 0xa37   : > { %v5514_v37 = vunpack.c.l.bf16 %v5470_v27  ;;  %v5515_v63 = vunpack.c.l.bf16 %v5466_v35  ;;  %v5517_v58 = vunpack.c.h.bf16 %v5470_v27  ;;  %v5518_v34 = vunpack.c.h.bf16 %v5466_v35 }
 0xa39   : > { %v12027_v23 = vpack.i.bf16 %v5515_v63, %v5514_v37 }
 0xa3b   : > { %12028 = vrot.lane.b32.xlu2 %v12027_v23, %s15499_s1 }
 0xa44   : > { %v5465_v54 = vpop.permute.xlu0 %5464 }
 0xa45   : > { %v5467_v18 = vsel %vm5211_vm2, %v5463_v61, %v5465_v54 }
 0xa46   : > { %v5473_v14 = vsel %vm5219_vm5, %v5467_v18, 0 }
 0xa47   : > { %v5516_v50 = vunpack.c.l.bf16 %v5473_v14  ;;  %v5519_v4 = vunpack.c.h.bf16 %v5473_v14 }
 0xa49   : > { %v12032_v59 = vpack.i.bf16 %v5517_v58, %v5516_v50  ;;  %v12037_v1 = vpack.i.bf16 %v5519_v4, %v5518_v34 }
 0xa4b   : > { %12033 = vrot.lane.b32.xlu0 %v12032_v59, %s15499_s1  ;;  %12038 = vrot.lane.b32.xlu1 %v12037_v1, %s15499_s1 }
 0xa95   : > { %v12029_v38 = vpop.permute.xlu2 %12028 }
 0xa96   : > { %v12031_v43 = vunpack.i.h.bf16 %v12029_v38  ;;  %v12030_v13 = vunpack.i.l.bf16 %v12029_v38 }
 0xa98   : > { %v5538_v39 = vsel %vm1432_vm8, %v12030_v13, %v12031_v43 }
 0xa99   : > { %v14325_v28 = vmax.f32 %v5514_v37, %v5538_v39 }
 0xabd   : > { %v12034_v16 = vpop.permute.xlu0 %12033  ;;  %v12039_v52 = vpop.permute.xlu1 %12038 }
 0xabe   : > { %v12036_v42 = vunpack.i.h.bf16 %v12034_v16  ;;  %v12035_v8 = vunpack.i.l.bf16 %v12034_v16  ;;  %v12041_v49 = vunpack.i.h.bf16 %v12039_v52  ;;  %v12040_v45 = vunpack.i.l.bf16 %v12039_v52 }
 0xac0   : > { %v5539_v41 = vsel %vm1432_vm8, %v12031_v43, %v12035_v8  ;;  %v14320_v11 = vmax.f32 %v5516_v50, %v12035_v8  ;;  %v14322_v9 = vmax.f32 %v5519_v4, %v12041_v49  ;;  %v5540_v44 = vsel %vm1432_vm8, %v12036_v42, %v12040_v45 }
 0xac1   : > { %v14327_v6 = vmax.f32 %v5515_v63, %v5539_v41  ;;  %v5541_v60 = vsel %vm1432_vm8, %v12040_v45, %v12041_v49  ;;  %v14330_v22 = vmax.f32 %v5517_v58, %v5540_v44  ;;  %vm6463_vm8 = vcmask 1043456  }
 0xac2   : > { %v14332_v10 = vmax.f32 %v5518_v34, %v5541_v60  ;;  %v12052_v30 = vpack.i.bf16 %v14322_v9, %v14320_v11 }
 0xac3   : > { %v12042_v62 = vpack.i.bf16 %v14327_v6, %v14325_v28 }
 0xac4   : > { %12053 = vrot.lane.b32.xlu1 %v12052_v30, %s12234_s18  ;;  %v12047_v26 = vpack.i.bf16 %v14332_v10, %v14330_v22  ;;  %v5774_v30 = vld [vmem:[%s15585_s26 + $0x8] sm:$0xff] }
 0xac5   : > { %12043 = vrot.lane.b32.xlu2 %v12042_v62, %s12234_s18  ;;  %v5773_v62 = vld [vmem:[%s15585_s26] sm:$0xff] }
 0xac6   : > { %12048 = vrot.lane.b32.xlu0 %v12047_v26, %s12234_s18  ;;  %s15491_s18 = smov 117   ;;  %v5776_v26 = vld [vmem:[%s15585_s26 + $0x18] sm:$0xff] }
 0xb1f   : > { %v12044_v48 = vpop.permute.xlu2 %12043 }
 0xb20   : > { %v12046_v47 = vunpack.i.h.bf16 %v12044_v48  ;;  %v12045_v7 = vunpack.i.l.bf16 %v12044_v48 }
 0xb22   : > { %v5583_v18 = vsel %vm4998_vm0, %v12045_v7, %v12046_v47 }
 0xb23   : > { %v5593_v1 = vmax.f32 %v14325_v28, %v5583_v18 }
 0xb36   : > { %v12054_v61 = vpop.permute.xlu1 %12053 }
 0xb37   : > { %v12056_v55 = vunpack.i.h.bf16 %v12054_v61  ;;  %v12055_v35 = vunpack.i.l.bf16 %v12054_v61 }
 0xb38   : > { %v12049_v27 = vpop.permute.xlu0 %12048 }
 0xb39   : > { %v5598_v37 = vmax.f32 %v14322_v9, %v12056_v55  ;;  %v5584_v63 = vsel %vm4998_vm0, %v12046_v47, %v12055_v35  ;;  %v5595_v23 = vmax.f32 %v14320_v11, %v12055_v35  ;;  %v12051_v54 = vunpack.i.h.bf16 %v12049_v27 }
 0xb3a   : > { %v5594_v14 = vmax.f32 %v14327_v6, %v5584_v63  ;;  %v12050_v58 = vunpack.i.l.bf16 %v12049_v27 }
 0xb3b   : > { %v5601_v34 = vpack.c.bf16 %v5598_v37, %v5595_v23  ;;  %v5586_v50 = vsel %vm4998_vm0, %v12051_v54, %v12056_v55 }
 0xb3c   : > { %v5597_v4 = vmax.f32 %v14332_v10, %v5586_v50  ;;  %v5585_v59 = vsel %vm4998_vm0, %v12050_v58, %v12051_v54  ;;  %v5775_v10 = vld [vmem:[%s15585_s26 + $0x10] sm:$0xff]  ;;  %vm9725_vm0 = vcmask 68608  }
 0xb3d   : > { %v5596_v38 = vmax.f32 %v14330_v22, %v5585_v59  ;;  %10861 = vmatmul.msk.bf16.vlgmr.msrb.gmra.mxu1 %vm5219_vm5, %v5601_v34 }
 0xb3e   : > { %v5600_v43 = vpack.c.bf16 %v5597_v4, %v5594_v14 }
 0xb3f   : > { %v5599_v13 = vpack.c.bf16 %v5596_v38, %v5593_v1 }
 0xb40   : > { %5747 = vmatmul.bf16.vlgmr.msrb.gmra.mxu0 %v5600_v43 }
 0xb41   : > { %5733 = vmatmul.bf16.vlgmr.msra.gmra.mxu3 %v5599_v13 }
 0xbba   : > { %v5762_v16 = vpop.f32.mrf.mxu1 }
 0xbbd   : > { %v5748_v39 = vpop.f32.mrf.mxu0 }
 0xbc2   : > { %v5764_v11 = vpop.f32.mrf.mxu1 }
 0xbc4   : > { %v5734_v52 = vpop.f32.mrf.mxu3 }
 0xbc5   : > { %v5749_v42 = vadd.f32 %v5748_v39, %v5734_v52  ;;  %v5750_v49 = vpop.f32.mrf.mxu0 }
 0xbc7   : > { %v5763_v8 = vadd.f32 %v5762_v16, %v5749_v42 }
 0xbc9   : > { %v5767_v9 = vpack.c.bf16 %v5763_v8, %v5763_v8 }
 0xbcb   : > { %v5780_v6 = vunpack.c.l.b16 %v5767_v9 }
 0xbcc   : > { %v5736_v45 = vpop.f32.mrf.mxu3 }
 0xbcd   : > { %v5751_v41 = vadd.f32 %v5750_v49, %v5736_v45 }
 0xbcf   : > { %v5765_v44 = vadd.f32 %v5764_v11, %v5751_v41 }
 0xbd1   : > { %v5768_v28 = vpack.c.bf16 %v5765_v44, %v5765_v44 }
 0xbd3   : > { %v5781_v60 = vunpack.c.l.b16 %v5768_v28 }
 0xbd5   : > { %v5782_v22 = vpack.c.b16 %v5781_v60, %v5780_v6 }
 0xbd7   : > { %5796 = vrot.lane.b32.xlu1 %v5782_v22, %s15497_s2  ;;  %5799 = vrot.lane.b32.xlu0 %v5782_v22, %s15503_s11 }
 0xbd8   : > { %5802 = vrot.lane.b32.xlu2 %v5782_v22, %s15495_s0 }
 0xbdf   : > { %5787 = vrot.lane.b32.xlu1 %v5782_v22, %s15501_s28  ;;  %5790 = vrot.lane.b32.xlu0 %v5782_v22, %s15493_s16 }
 0xbe0   : > { %5793 = vrot.lane.b32.xlu2 %v5782_v22, %s15491_s18  ;;  %s15505_s18 = smov 11  }
 0xbe7   : > { %5820 = vperm.xlu1 %11925, %v5775_v10   ;;  %5805 = vrot.lane.b32.xlu0 %v5782_v22, %s15489_s22  ;;  %s15587_s22 = sld [smem:[#allocation12_spill]] }
 0xbe8   : > { %5784 = vrot.lane.b32.xlu2 %v5782_v22, %s15499_s1 }
 0xbed   : > { %v12159_v35 = vld [vmem:[%s15587_s22] ss:$0 sm:$0xff]  ;;  %s15588_s22 = sld [smem:[#allocation14_spill]] }
 0xbef   : > { %5815 = vperm.xlu1 %11925, %v5774_v30   ;;  %5810 = vperm.xlu0 %11924, %v5773_v62  }
 0xbf0   : > { %5825 = vperm.xlu2 %12026, %v5776_v26  }
 0xc32   : > { %v5803_v0 = vpop.permute.xlu2 %5802 }
 0xc33   : > { %5852 = vmatpush.bf16.msrb.mxu2 %v5803_v0 }
 0xc3a   : > { %v5794_v2 = vpop.permute.xlu2 %5793 }
 0xc42   : > { %v5785_v57 = vpop.permute.xlu2 %5784 }
 0xc49   : > { %v5800_v25 = vpop.permute.xlu0 %5799  ;;  %v5797_v3 = vpop.permute.xlu1 %5796 }
 0xc4a   : > { %5853 = vmatpush.bf16.msrb.mxu2 %v5800_v25  ;;  %v5826_v16 = vpop.permute.xlu2 %5825  ;;  %v5940_v25 = vld [vmem:[%s15588_s22 + $0x18] sm:$0xff] }
 0xc4e   : > { %5854 = vmatpush.bf16.msrb.mxu2 %v5797_v3  ;;  %v5939_v3 = vld [vmem:[%s15588_s22 + $0x10] sm:$0xff] }
 0xc51   : > { %v5791_v40 = vpop.permute.xlu0 %5790  ;;  %v5788_v21 = vpop.permute.xlu1 %5787 }
 0xc52   : > { %5855 = vmatpush.bf16.msrb.mxu2 %v5794_v2  ;;  %v5937_v2 = vld [vmem:[%s15588_s22] sm:$0xff] }
 0xc56   : > { %5856 = vmatpush.bf16.msrb.mxu2 %v5791_v40  ;;  %v5938_v40 = vld [vmem:[%s15588_s22 + $0x8] sm:$0xff] }
 0xc59   : > { %v5806_v15 = vpop.permute.xlu0 %5805  ;;  %v5821_v32 = vpop.permute.xlu1 %5820 }
 0xc5a   : > { %5857 = vmatpush.bf16.msrb.mxu2 %v5788_v21  ;;  %5878 = vmatpush.bf16.msra.mxu1 %v5806_v15 }
 0xc5d   : > { %10878 = vmatmul.msk.bf16.vlgmr.msra.gmra.mxu1 %vm1733_vm4, %v10869_v36 }
 0xc5e   : > { %5858 = vmatpush.bf16.msrb.mxu2 %v5785_v57 }
 0xc61   : > { %v5811_v19 = vpop.permute.xlu0 %5810  ;;  %v5816_v27 = vpop.permute.xlu1 %5815 }
 0xc62   : > { %5859 = vmatpush.bf16.msrb.mxu2 %v5782_v22 }
 0xc65   : > { %5860 = vmatmul.bf16.vlgmr.msrb.gmra.mxu2 %v10865_v33 }
 0xc6d   : > { %10879 = vmatmul.msk.bf16.gmra.mxu1 %vm1733_vm4, %v10877_v31  ;;  %vm5919_vm4 = vcmask 89088  }
 0xc75   : > { %5865 = vmatmul.bf16.gmra.mxu2 %v10873_v5 }
 0xcda   : > { %v5880_v12 = vpop.f32.mrf.mxu1 }
 0xce2   : > { %v5882_v61 = vpop.f32.mrf.mxu1 }
 0xce8   : > { %v5861_v48 = vpop.f32.mrf.mxu2 }
 0xce9   : > { %v5862_v47 = vadd.f32 %v5861_v48, %v5811_v19 }
 0xcea   : > { %v5885_v34 = vpop.f32.mrf.mxu1 }
 0xceb   : > { %v5881_v7 = vadd.f32 %v5880_v12, %v5862_v47 }
 0xced   : > { %v5890_v55 = vmax.f32 %v5881_v7, 0.0 }
 0xcef   : > { %v5897_v23 = vmul.f32 %v12159_v35, %v5890_v55 }
 0xcf0   : > { %v5863_v37 = vpop.f32.mrf.mxu2 }
 0xcf1   : > { %v5864_v63 = vadd.f32 %v5863_v37, %v5816_v27  ;;  %v5901_v14 = vpack.c.bf16 %v5897_v23, %v5897_v23 }
 0xcf2   : > { %v5887_v8 = vpop.f32.mrf.mxu1 }
 0xcf3   : > { %v5883_v54 = vadd.f32 %v5882_v61, %v5864_v63  ;;  %v5909_v1 = vunpack.c.l.b16 %v5901_v14 }
 0xcf5   : > { %v5891_v18 = vmax.f32 %v5883_v54, 0.0 }
 0xcf7   : > { %v5898_v58 = vmul.f32 %v12159_v35, %v5891_v18 }
 0xcf8   : > { %v5866_v50 = vpop.f32.mrf.mxu2 }
 0xcf9   : > { %v5902_v4 = vpack.c.bf16 %v5898_v58, %v5898_v58  ;;  %v5867_v59 = vadd.f32 %v5866_v50, %v5821_v32 }
 0xcfb   : > { %v5910_v38 = vunpack.c.l.b16 %v5902_v4  ;;  %v5886_v43 = vadd.f32 %v5885_v34, %v5867_v59 }
 0xcfd   : > { %v5913_v13 = vpack.c.b16 %v5910_v38, %v5909_v1  ;;  %v5892_v39 = vmax.f32 %v5886_v43, 0.0 }
 0xcff   : > { %5915 = vrot.lane.b32.xlu0 %v5913_v13, %s15505_s18  ;;  %v5899_v49 = vmul.f32 %v12159_v35, %v5892_v39 }
 0xd00   : > { %v5868_v52 = vpop.f32.mrf.mxu2 }
 0xd01   : > { %v5869_v42 = vadd.f32 %v5868_v52, %v5826_v16  ;;  %v5903_v11 = vpack.c.bf16 %v5899_v49, %v5899_v49 }
 0xd03   : > { %v5888_v45 = vadd.f32 %v5887_v8, %v5869_v42  ;;  %v5911_v28 = vunpack.c.l.b16 %v5903_v11 }
 0xd05   : > { %v5893_v41 = vmax.f32 %v5888_v45, 0.0 }
 0xd07   : > { %v5900_v9 = vmul.f32 %v12159_v35, %v5893_v41 }
 0xd09   : > { %v5904_v44 = vpack.c.bf16 %v5900_v9, %v5900_v9 }
 0xd0b   : > { %v5912_v6 = vunpack.c.l.b16 %v5904_v44 }
 0xd0d   : > { %v5914_v60 = vpack.c.b16 %v5912_v6, %v5911_v28 }
 0xd0f   : > { %5917 = vrot.lane.b32.xlu2 %v5914_v60, %s15505_s18 }
 0xd69   : > { %v5918_v22 = vpop.permute.xlu2 %5917 }
 0xd6a   : > { %v5923_v10 = vsel %vm5919_vm4, 0, %v5918_v22 }
 0xd6b   : > { %v5927_v30 = vsel %vm5924_vm6, %v5923_v10, 0 }
 0xd6c   : > { %5952 = vrot.lane.b32.xlu0 %v5927_v30, %s15501_s28  ;;  %5958 = vrot.lane.b32.xlu1 %v5927_v30, %s15493_s16 }
 0xd71   : > { %v5916_v62 = vpop.permute.xlu0 %5915 }
 0xd72   : > { %v5921_v26 = vsel %vm5919_vm4, 0, %v5916_v62 }
 0xd73   : > { %v5925_v0 = vsel %vm5924_vm6, %v5921_v26, 0 }
 0xd74   : > { %5956 = vrot.lane.b32.xlu2 %v5925_v0, %s15493_s16  ;;  %5980 = vrot.lane.b32.xlu0 %v5925_v0, %s15495_s0  ;;  %s15589_s16 = smov 117  }
 0xd75   : > { %5982 = vrot.lane.b32.xlu1 %v5927_v30, %s15495_s0  ;;  %s15590_s0 = smov 106  }
 0xd7c   : > { %5950 = vrot.lane.b32.xlu2 %v5925_v0, %s15501_s28  ;;  %5944 = vrot.lane.b32.xlu0 %v5925_v0, %s15499_s1  ;;  %s15594_s28 = sld [smem:[#allocation17_spill]] }
 0xd7d   : > { %5946 = vrot.lane.b32.xlu1 %v5927_v30, %s15499_s1  ;;  %s15592_s1 = sld [smem:[#allocation15_spill]] }
 0xd83   : > { %v12160_v49 = vld [vmem:[%s15592_s1] ss:$0 sm:$0xff]  ;;  %s15593_s1 = smov 118  }
 0xd84   : > { %5976 = vrot.lane.b32.xlu2 %v5927_v30, %s15503_s11  ;;  %5968 = vrot.lane.b32.xlu0 %v5925_v0, %s15497_s2 }
 0xd85   : > { %5974 = vrot.lane.b32.xlu1 %v5925_v0, %s15503_s11  ;;  %s15595_s11 = smov 107  }
 0xd8c   : > { %5970 = vrot.lane.b32.xlu2 %v5927_v30, %s15497_s2  ;;  %5962 = vrot.lane.b32.xlu0 %v5925_v0, %s15589_s16  ;;  %s15591_s2 = sld [smem:[#allocation13_spill]] }
 0xd8d   : > { %5964 = vrot.lane.b32.xlu1 %v5927_v30, %s15589_s16 }
 0xd92   : > { %v10882_v56 = vld [vmem:[%s15591_s2] sm:$0xf]  ;;  %v11705_v46 = vld [vmem:[%s15591_s2 + $0x8] sm:$0xf0]  ;;  %v11704_v19 = vld [vmem:[%s15591_s2 + $0x4] sm:$0xf] }
 0xd93   : > { %v10883_v5 = vor.u32 %v11705_v46, %v10882_v56  ;;  %v10884_v48 = vld [vmem:[%s15591_s2 + $0xc] sm:$0xf0]  ;;  %v10890_v47 = vld [vmem:[%s15591_s2 + $0x8] sm:$0xf]  ;;  %v11706_v7 = vld [vmem:[%s15591_s2 + $0x10] sm:$0xf0] }
 0xd94   : > { %5988 = vrot.lane.b32.xlu2 %v5927_v30, %s15590_s0  ;;  %6009 = vperm.xlu0 %11924, %v5940_v25   ;;  %v10887_v35 = vor.u32 %v11704_v19, %v10884_v48  ;;  %v10891_v27 = vor.u32 %v11706_v7, %v10890_v47  ;;  %v10894_v37 = vld [vmem:[%s15591_s2 + $0x18] sm:$0xf]  ;;  %v11708_v63 = vld [vmem:[%s15591_s2 + $0x20] sm:$0xf0]  ;;  %v11707_v54 = vld [vmem:[%s15591_s2 + $0x1c] sm:$0xf] }
 0xd95   : > { %5986 = vrot.lane.b32.xlu1 %v5925_v0, %s15590_s0  ;;  %v10895_v23 = vor.u32 %v11708_v63, %v10894_v37  ;;  %v10896_v18 = vld [vmem:[%s15591_s2 + $0x24] sm:$0xf0]  ;;  %v10902_v14 = vld [vmem:[%s15591_s2 + $0x20] sm:$0xf]  ;;  %v11709_v58 = vld [vmem:[%s15591_s2 + $0x28] sm:$0xf0] }
 0xd96   : > { %v10899_v34 = vor.u32 %v11707_v54, %v10896_v18  ;;  %v10903_v50 = vor.u32 %v11709_v58, %v10902_v14  ;;  %s15597_s2 = smov 126   ;;  %v6154_v37 = vld [vmem:[%s15594_s28 + $0x18] sm:$0xff]  ;;  %v6153_v63 = vld [vmem:[%s15594_s28 + $0x10] sm:$0xff] }
 0xd9c   : > { %6004 = vperm.xlu2 %12026, %v5939_v3  }
 0xd9d   : > { %5994 = vperm.xlu1 %11925, %v5937_v2  }
 0xda4   : > { %5999 = vperm.xlu2 %12026, %v5938_v40  }
 0xdce   : > { %v5957_v53 = vpop.permute.xlu2 %5956 }
 0xdd6   : > { %v5951_v29 = vpop.permute.xlu2 %5950 }
 0xdde   : > { %v5959_v21 = vpop.permute.xlu1 %5958  ;;  %v5953_v15 = vpop.permute.xlu0 %5952 }
 0xddf   : > { %v5977_v36 = vpop.permute.xlu2 %5976  ;;  %6049 = vmatpush.bf16.msrb.mxu3 %v5959_v21 }
 0xde3   : > { %6050 = vmatpush.bf16.msrb.mxu3 %v5957_v53 }
 0xde6   : > { %v5981_v20 = vpop.permute.xlu0 %5980 }
 0xde7   : > { %v5983_v57 = vpop.permute.xlu1 %5982  ;;  %v5971_v51 = vpop.permute.xlu2 %5970  ;;  %6051 = vmatpush.bf16.msrb.mxu3 %v5953_v15 }
 0xde8   : > { %6068 = vmatpush.bf16.msra.mxu0 %v5983_v57 }
 0xdeb   : > { %6052 = vmatpush.bf16.msrb.mxu3 %v5951_v29 }
 0xdec   : > { %6069 = vmatpush.bf16.msra.mxu0 %v5981_v20 }
 0xdee   : > { %v5945_v17 = vpop.permute.xlu0 %5944 }
 0xdef   : > { %v5947_v33 = vpop.permute.xlu1 %5946  ;;  %v5989_v24 = vpop.permute.xlu2 %5988 }
 0xdf0   : > { %6053 = vmatpush.bf16.msrb.mxu3 %v5947_v33  ;;  %6070 = vmatpush.bf16.msra.mxu0 %v5977_v36 }
 0xdf1   : > { %6093 = vmatpush.bf16.msrb.mxu1 %v5989_v24 }
 0xdf4   : > { %6054 = vmatpush.bf16.msrb.mxu3 %v5945_v17 }
 0xdf6   : > { %v5969_v12 = vpop.permute.xlu0 %5968 }
 0xdf7   : > { %v5975_v31 = vpop.permute.xlu1 %5974  ;;  %v6005_v59 = vpop.permute.xlu2 %6004 }
 0xdf8   : > { %6055 = vmatpush.bf16.msrb.mxu3 %v5927_v30  ;;  %6071 = vmatpush.bf16.msra.mxu0 %v5975_v31 }
 0xdfc   : > { %6056 = vmatpush.bf16.msrb.mxu3 %v5925_v0  ;;  %6072 = vmatpush.bf16.msra.mxu0 %v5971_v51 }
 0xdfe   : > { %v5963_v61 = vpop.permute.xlu0 %5962 }
 0xdff   : > { %v5965_v32 = vpop.permute.xlu1 %5964  ;;  %6057 = vmatmul.bf16.vlgmr.msrb.gmra.mxu3 %v10883_v5  ;;  %v6000_v42 = vpop.permute.xlu2 %5999 }
 0xe00   : > { %6073 = vmatpush.bf16.msra.mxu0 %v5969_v12 }
 0xe04   : > { %6074 = vmatpush.bf16.msra.mxu0 %v5965_v32 }
 0xe06   : > { %v6010_v21 = vpop.permute.xlu0 %6009 }
 0xe07   : > { %v5987_v55 = vpop.permute.xlu1 %5986 }
 0xe08   : > { %6075 = vmatpush.bf16.msra.mxu0 %v5963_v61  ;;  %6094 = vmatpush.bf16.msrb.mxu1 %v5987_v55 }
 0xe0b   : > { %6076 = vmatmul.bf16.vlgmr.msra.gmra.mxu0 %v10887_v35  ;;  %10904 = vmatmul.msk.bf16.vlgmr.msrb.gmra.mxu1 %vm6042_vm7, %v10891_v27  ;;  %v6152_v35 = vld [vmem:[%s15594_s28 + $0x8] sm:$0xff]  ;;  %v6151_v27 = vld [vmem:[%s15594_s28] sm:$0xff] }
 0xe0f   : > { %6062 = vmatmul.bf16.gmra.mxu3 %v10895_v23  ;;  %v5995_v1 = vpop.permute.xlu1 %5994 }
 0xe1b   : > { %6081 = vmatmul.bf16.gmra.mxu0 %v10899_v34  ;;  %10905 = vmatmul.msk.bf16.gmra.mxu1 %vm6042_vm7, %v10903_v50 }
 0xe82   : > { %v6058_v4 = vpop.f32.mrf.mxu3 }
 0xe83   : > { %v6059_v38 = vadd.f32 %v6058_v4, %v5995_v1 }
 0xe88   : > { %v6077_v43 = vpop.f32.mrf.mxu0  ;;  %v6096_v13 = vpop.f32.mrf.mxu1 }
 0xe89   : > { %v6078_v39 = vadd.f32 %v6077_v43, %v6059_v38 }
 0xe8a   : > { %v6060_v16 = vpop.f32.mrf.mxu3 }
 0xe8b   : > { %v6097_v52 = vadd.f32 %v6096_v13, %v6078_v39  ;;  %v6061_v45 = vadd.f32 %v6060_v16, %v6000_v42 }
 0xe8d   : > { %v6106_v8 = vmax.f32 %v6097_v52, 0.0 }
 0xe8f   : > { %v6113_v28 = vmul.f32 %v12160_v49, %v6106_v8 }
 0xe90   : > { %v6079_v41 = vpop.f32.mrf.mxu0  ;;  %v6098_v11 = vpop.f32.mrf.mxu1 }
 0xe91   : > { %v6080_v9 = vadd.f32 %v6079_v41, %v6061_v45  ;;  %v6117_v22 = vpack.c.bf16 %v6113_v28, %v6113_v28 }
 0xe92   : > { %v6063_v44 = vpop.f32.mrf.mxu3 }
 0xe93   : > { %v6099_v6 = vadd.f32 %v6098_v11, %v6080_v9  ;;  %v6064_v30 = vadd.f32 %v6063_v44, %v6005_v59  ;;  %v6125_v3 = vunpack.c.l.b16 %v6117_v22 }
 0xe95   : > { %v6107_v60 = vmax.f32 %v6099_v6, 0.0 }
 0xe97   : > { %v6114_v10 = vmul.f32 %v12160_v49, %v6107_v60 }
 0xe98   : > { %v6082_v62 = vpop.f32.mrf.mxu0  ;;  %v6101_v26 = vpop.f32.mrf.mxu1 }
 0xe99   : > { %v6118_v0 = vpack.c.bf16 %v6114_v10, %v6114_v10  ;;  %v6083_v25 = vadd.f32 %v6082_v62, %v6064_v30 }
 0xe9a   : > { %v6065_v53 = vpop.f32.mrf.mxu3 }
 0xe9b   : > { %v6126_v2 = vunpack.c.l.b16 %v6118_v0  ;;  %v6102_v40 = vadd.f32 %v6101_v26, %v6083_v25  ;;  %v6066_v36 = vadd.f32 %v6065_v53, %v6010_v21 }
 0xe9d   : > { %v6129_v29 = vpack.c.b16 %v6126_v2, %v6125_v3  ;;  %v6108_v15 = vmax.f32 %v6102_v40, 0.0 }
 0xe9f   : > { %6131 = vrot.lane.b32.xlu1 %v6129_v29, %s15505_s18  ;;  %v6115_v33 = vmul.f32 %v12160_v49, %v6108_v15 }
 0xea0   : > { %v6084_v57 = vpop.f32.mrf.mxu0  ;;  %v6103_v20 = vpop.f32.mrf.mxu1 }
 0xea1   : > { %v6085_v51 = vadd.f32 %v6084_v57, %v6066_v36  ;;  %v6119_v31 = vpack.c.bf16 %v6115_v33, %v6115_v33 }
 0xea3   : > { %v6104_v24 = vadd.f32 %v6103_v20, %v6085_v51  ;;  %v6127_v5 = vunpack.c.l.b16 %v6119_v31 }
 0xea5   : > { %v6109_v17 = vmax.f32 %v6104_v24, 0.0 }
 0xea7   : > { %v6116_v56 = vmul.f32 %v12160_v49, %v6109_v17 }
 0xea9   : > { %v6120_v46 = vpack.c.bf16 %v6116_v56, %v6116_v56 }
 0xeab   : > { %v6128_v12 = vunpack.c.l.b16 %v6120_v46 }
 0xead   : > { %v6130_v32 = vpack.c.b16 %v6128_v12, %v6127_v5 }
 0xeaf   : > { %6133 = vrot.lane.b32.xlu0 %v6130_v32, %s15505_s18  ;;  %s15596_s18 = smov 108  }
 0xf11   : > { %v6132_v19 = vpop.permute.xlu1 %6131 }
 0xf12   : > { %v6136_v48 = vsel %vm5919_vm4, 0, %v6132_v19 }
 0xf13   : > { %v14443_v47 = vsel %vm5924_vm6, %v6136_v48, 0 }
 0xf14   : > { %6170 = vrot.lane.b32.xlu1 %v14443_v47, %s15593_s1 }
 0xf21   : > { %v6134_v7 = vpop.permute.xlu0 %6133 }
 0xf22   : > { %v6138_v61 = vsel %vm5919_vm4, 0, %v6134_v7 }
 0xf23   : > { %v6141_v55 = vsel %vm5924_vm6, %v6138_v61, 0 }
 0xf24   : > { %6196 = vrot.lane.b32.xlu0 %v6141_v55, %s15595_s11  ;;  %6172 = vrot.lane.b32.xlu2 %v6141_v55, %s15593_s1 }
 0xf25   : > { %6190 = vrot.lane.b32.xlu1 %v6141_v55, %s15596_s18 }
 0xf2c   : > { %6166 = vrot.lane.b32.xlu0 %v6141_v55, %s15597_s2  ;;  %6194 = vrot.lane.b32.xlu2 %v14443_v47, %s15595_s11  ;;  %s15600_s11 = sld [smem:[#allocation16_spill]] }
 0xf2d   : > { %6160 = vrot.lane.b32.xlu1 %v6141_v55, %s15598_s3 }
 0xf32   : > { %v10916_v16 = vld [vmem:[%s15600_s11 + $0x8] sm:$0xf]  ;;  %v11712_v52 = vld [vmem:[%s15600_s11 + $0x10] sm:$0xf0]  ;;  %v10908_v42 = vld [vmem:[%s15600_s11] sm:$0xf] }
 0xf33   : > { %v11711_v49 = vld [vmem:[%s15600_s11 + $0x8] sm:$0xf0]  ;;  %v11710_v45 = vld [vmem:[%s15600_s11 + $0x4] sm:$0xf]  ;;  %v10910_v41 = vld [vmem:[%s15600_s11 + $0xc] sm:$0xf0]  ;;  %v10917_v11 = vor.u32 %v11712_v52, %v10916_v16 }
 0xf34   : > { %6188 = vrot.lane.b32.xlu0 %v14443_v47, %s15596_s18  ;;  %6164 = vrot.lane.b32.xlu2 %v14443_v47, %s15597_s2  ;;  %v10909_v44 = vor.u32 %v11711_v49, %v10908_v42  ;;  %v10913_v28 = vor.u32 %v11710_v45, %v10910_v41  ;;  %v10928_v6 = vld [vmem:[%s15600_s11 + $0x20] sm:$0xf]  ;;  %v11715_v60 = vld [vmem:[%s15600_s11 + $0x28] sm:$0xf0]  ;;  %s15603_s18 = sld [smem:[#allocation19_spill]] }
 0xf35   : > { %6182 = vrot.lane.b32.xlu1 %v14443_v47, %s15599_s5  ;;  %v10920_v22 = vld [vmem:[%s15600_s11 + $0x18] sm:$0xf]  ;;  %v11714_v10 = vld [vmem:[%s15600_s11 + $0x20] sm:$0xf0]  ;;  %v11713_v30 = vld [vmem:[%s15600_s11 + $0x1c] sm:$0xf]  ;;  %v10929_v26 = vor.u32 %v11715_v60, %v10928_v6 }
 0xf36   : > { %v10922_v62 = vld [vmem:[%s15600_s11 + $0x24] sm:$0xf0]  ;;  %v10921_v0 = vor.u32 %v11714_v10, %v10920_v22  ;;  %s15611_s11 = smov 121  }
 0xf37   : > { %v10925_v25 = vor.u32 %v11713_v30, %v10922_v62 }
 0xf3a   : > { %v10954_v30 = vld [vmem:[%s15603_s18 + $0x28] sm:$0xf]  ;;  %v11721_v62 = vld [vmem:[%s15603_s18 + $0x28] sm:$0x10] }
 0xf3c   : > { %6158 = vrot.lane.b32.xlu0 %v14443_v47, %s15598_s3  ;;  %6184 = vrot.lane.b32.xlu2 %v6141_v55, %s15599_s5 }
 0xf3d   : > { %6202 = vrot.lane.b32.xlu1 %v6141_v55, %s15590_s0 }
 0xf44   : > { %6176 = vrot.lane.b32.xlu0 %v14443_v47, %s15589_s16  ;;  %6178 = vrot.lane.b32.xlu2 %v6141_v55, %s15589_s16  ;;  %s15602_s16 = smov 11  }
 0xf45   : > { %6213 = vperm.xlu1 %11925, %v6152_v35  }
 0xf4c   : > { %6208 = vperm.xlu0 %11924, %v6151_v27   ;;  %6200 = vrot.lane.b32.xlu2 %v14443_v47, %s15590_s0  ;;  %s15601_s0 = sld [smem:[#allocation18_spill]] }
 0xf52   : > { %v12161_v24 = vld [vmem:[%s15601_s0] ss:$0 sm:$0xff]  ;;  %s15510_s0 = smov 122  }
 0xf54   : > { %6223 = vperm.xlu0 %11924, %v6154_v37   ;;  %6218 = vperm.xlu2 %12026, %v6153_v63  }
 0xf7e   : > { %v6173_v23 = vpop.permute.xlu2 %6172 }
 0xf7f   : > { %6262 = vmatpush.bf16.msra.mxu2 %v6173_v23 }
 0xf86   : > { %v6171_v54 = vpop.permute.xlu1 %6170  ;;  %v6195_v18 = vpop.permute.xlu2 %6194 }
 0xf87   : > { %6263 = vmatpush.bf16.msra.mxu2 %v6171_v54 }
 0xf8e   : > { %v6165_v14 = vpop.permute.xlu2 %6164 }
 0xf96   : > { %v6197_v58 = vpop.permute.xlu0 %6196  ;;  %v6185_v4 = vpop.permute.xlu2 %6184 }
 0xf97   : > { %v6191_v34 = vpop.permute.xlu1 %6190  ;;  %6281 = vmatpush.bf16.msra.mxu3 %v6197_v58 }
 0xf9b   : > { %6282 = vmatpush.bf16.msra.mxu3 %v6195_v18 }
 0xf9e   : > { %v6167_v50 = vpop.permute.xlu0 %6166  ;;  %v6179_v43 = vpop.permute.xlu2 %6178 }
 0xf9f   : > { %v6161_v59 = vpop.permute.xlu1 %6160  ;;  %6264 = vmatpush.bf16.msra.mxu2 %v6167_v50  ;;  %6283 = vmatpush.bf16.msra.mxu3 %v6191_v34 }
 0xfa3   : > { %6265 = vmatpush.bf16.msra.mxu2 %v6165_v14 }
 0xfa6   : > { %v6189_v1 = vpop.permute.xlu0 %6188  ;;  %v6201_v8 = vpop.permute.xlu2 %6200 }
 0xfa7   : > { %v6183_v38 = vpop.permute.xlu1 %6182  ;;  %6266 = vmatpush.bf16.msra.mxu2 %v6161_v59  ;;  %6284 = vmatpush.bf16.msra.mxu3 %v6189_v1 }
 0xfab   : > { %6285 = vmatpush.bf16.msra.mxu3 %v6185_v4 }
 0xfae   : > { %v6159_v13 = vpop.permute.xlu0 %6158  ;;  %v6219_v5 = vpop.permute.xlu2 %6218 }
 0xfaf   : > { %v6203_v39 = vpop.permute.xlu1 %6202  ;;  %6267 = vmatpush.bf16.msra.mxu2 %v6159_v13  ;;  %6286 = vmatpush.bf16.msra.mxu3 %v6183_v38 }
 0xfb0   : > { %6306 = vmatpush.bf16.msrb.mxu0 %v6203_v39 }
 0xfb3   : > { %6268 = vmatpush.bf16.msra.mxu2 %v6141_v55  ;;  %6287 = vmatpush.bf16.msra.mxu3 %v6179_v43 }
 0xfb4   : > { %6307 = vmatpush.bf16.msrb.mxu0 %v6201_v8 }
 0xfb6   : > { %v6177_v9 = vpop.permute.xlu0 %6176 }
 0xfb7   : > { %6269 = vmatpush.bf16.msra.mxu2 %v14443_v47  ;;  %6288 = vmatpush.bf16.msra.mxu3 %v6177_v9  ;;  %v6214_v36 = vpop.permute.xlu1 %6213 }
 0xfb8   : > { %10930 = vmatmul.msk.bf16.vlgmr.msrb.gmra.mxu0 %vm6042_vm7, %v10917_v11 }
 0xfba   : > { %6270 = vmatmul.bf16.vlgmr.msra.gmra.mxu2 %v10909_v44  ;;  %6289 = vmatmul.bf16.vlgmr.msra.gmra.mxu3 %v10913_v28 }
 0xfbe   : > { %v6209_v2 = vpop.permute.xlu0 %6208 }
 0xfc6   : > { %v6224_v54 = vpop.permute.xlu0 %6223 }
 0xfc8   : > { %10931 = vmatmul.msk.bf16.gmra.mxu0 %vm6042_vm7, %v10929_v26  ;;  %v10955_v26 = vor.u32 %v11721_v62, %v10954_v30 }
 0xfca   : > { %6275 = vmatmul.bf16.gmra.mxu2 %v10921_v0  ;;  %6294 = vmatmul.bf16.gmra.mxu3 %v10925_v25  ;;  %v12243_v0 = vmov 65535  }
 0xfcb   : > { %v6465_v25 = vsel %vm6463_vm8, 4294967295, %v12243_v0 }
0x1035   : > { %v6309_v3 = vpop.f32.mrf.mxu0 }
0x103d   : > { %v6271_v40 = vpop.f32.mrf.mxu2  ;;  %v6290_v53 = vpop.f32.mrf.mxu3 }
0x103e   : > { %v6272_v29 = vadd.f32 %v6271_v40, %v6209_v2  ;;  %v6311_v57 = vpop.f32.mrf.mxu0  ;;  %v11720_v40 = vld [vmem:[%s15603_s18 + $0x20] sm:$0xff] }
0x1040   : > { %v6291_v21 = vadd.f32 %v6290_v53, %v6272_v29  ;;  %v11719_v53 = vld [vmem:[%s15603_s18 + $0x18] sm:$0xff] }
0x1042   : > { %v6310_v15 = vadd.f32 %v6309_v3, %v6291_v21  ;;  %v6466_v3 = vsel %vm6464_vm9, %v6465_v25, 0 }
0x1043   : > { %v6468_v2 = vand.u32 %v10955_v26, %v6466_v3 }
0x1044   : > { %v6319_v33 = vmax.f32 %v6310_v15, 0.0 }
0x1045   : > { %v6273_v51 = vpop.f32.mrf.mxu2  ;;  %v6292_v20 = vpop.f32.mrf.mxu3  ;;  %6472 = vmatpush.bf16.msra.mxu1 %v6468_v2 }
0x1046   : > { %v6274_v17 = vadd.f32 %v6273_v51, %v6214_v36  ;;  %v6326_v56 = vmul.f32 %v12161_v24, %v6319_v33  ;;  %v6314_v61 = vpop.f32.mrf.mxu0  ;;  %v11718_v36 = vld [vmem:[%s15603_s18 + $0x10] sm:$0xff] }
0x1048   : > { %v6293_v31 = vadd.f32 %v6292_v20, %v6274_v17  ;;  %v6330_v48 = vpack.c.bf16 %v6326_v56, %v6326_v56  ;;  %v11717_v20 = vld [vmem:[%s15603_s18 + $0x8] sm:$0xff] }
0x1049   : > { %6473 = vmatpush.bf16.msra.mxu1 %v11720_v40 }
0x104a   : > { %v6312_v46 = vadd.f32 %v6311_v57, %v6293_v31  ;;  %v6338_v27 = vunpack.c.l.b16 %v6330_v48 }
0x104c   : > { %v6320_v12 = vmax.f32 %v6312_v46, 0.0 }
0x104d   : > { %v6276_v32 = vpop.f32.mrf.mxu2  ;;  %v6295_v19 = vpop.f32.mrf.mxu3  ;;  %6474 = vmatpush.bf16.msra.mxu1 %v11719_v53 }
0x104e   : > { %v6327_v47 = vmul.f32 %v12161_v24, %v6320_v12  ;;  %v6277_v7 = vadd.f32 %v6276_v32, %v6219_v5  ;;  %v6316_v4 = vpop.f32.mrf.mxu0  ;;  %v11716_v12 = vld [vmem:[%s15603_s18] sm:$0xff] }
0x1050   : > { %v6331_v55 = vpack.c.bf16 %v6327_v47, %v6327_v47  ;;  %v6296_v35 = vadd.f32 %v6295_v19, %v6277_v7 }
0x1051   : > { %6475 = vmatpush.bf16.msra.mxu1 %v11718_v36 }
0x1052   : > { %v6339_v37 = vunpack.c.l.b16 %v6331_v55  ;;  %v6315_v63 = vadd.f32 %v6314_v61, %v6296_v35 }
0x1054   : > { %v6342_v23 = vpack.c.b16 %v6339_v37, %v6338_v27  ;;  %v6321_v14 = vmax.f32 %v6315_v63, 0.0 }
0x1055   : > { %v6278_v18 = vpop.f32.mrf.mxu2  ;;  %v6297_v34 = vpop.f32.mrf.mxu3  ;;  %6476 = vmatpush.bf16.msra.mxu1 %v11717_v20 }
0x1056   : > { %v6279_v58 = vadd.f32 %v6278_v18, %v6224_v54  ;;  %6344 = vrot.lane.b32.xlu1 %v6342_v23, %s15602_s16  ;;  %v6328_v59 = vmul.f32 %v12161_v24, %v6321_v14 }
0x1058   : > { %v6298_v50 = vadd.f32 %v6297_v34, %v6279_v58  ;;  %v6332_v43 = vpack.c.bf16 %v6328_v59, %v6328_v59 }
0x1059   : > { %6477 = vmatpush.bf16.msra.mxu1 %v11716_v12 }
0x105a   : > { %v6317_v1 = vadd.f32 %v6316_v4, %v6298_v50  ;;  %v6340_v16 = vunpack.c.l.b16 %v6332_v43 }
0x105c   : > { %v6322_v38 = vmax.f32 %v6317_v1, 0.0 }
0x105e   : > { %v6329_v13 = vmul.f32 %v12161_v24, %v6322_v38 }
0x1060   : > { %v6333_v39 = vpack.c.bf16 %v6329_v13, %v6329_v13 }
0x1062   : > { %v6341_v52 = vunpack.c.l.b16 %v6333_v39 }
0x1064   : > { %v6343_v42 = vpack.c.b16 %v6341_v52, %v6340_v16 }
0x1066   : > { %6346 = vrot.lane.b32.xlu2 %v6343_v42, %s15602_s16  ;;  %s15604_s16 = sld [smem:[#allocation21_spill]] }
0x106c   : > { %v6516_v52 = vld [vmem:[%s15604_s16 + $0x38] sm:$0xff]  ;;  %v6511_v42 = vld [vmem:[%s15604_s16 + $0x10] sm:$0xff] }
0x10c0   : > { %v6347_v8 = vpop.permute.xlu2 %6346 }
0x10c1   : > { %v6351_v49 = vsel %vm5919_vm4, 0, %v6347_v8  ;;  %v6515_v8 = vld [vmem:[%s15604_s16 + $0x30] sm:$0xff] }
0x10c2   : > { %v6354_v45 = vsel %vm5924_vm6, %v6351_v49, 0  ;;  %v6510_v49 = vld [vmem:[%s15604_s16 + $0x8] sm:$0xff] }
0x10c3   : > { %v6370_v41 = vunpack.c.l.bf16 %v6354_v45  ;;  %v6371_v11 = vunpack.c.h.bf16 %v6354_v45  ;;  %v6514_v45 = vld [vmem:[%s15604_s16 + $0x28] sm:$0xff] }
0x10c5   : > { %v12062_v9 = vpack.i.bf16 %v6371_v11, %v6370_v41 }
0x10c7   : > { %12063 = vrot.lane.b32.xlu1 %v12062_v9, %s15598_s3  ;;  %v6512_v9 = vld [vmem:[%s15604_s16 + $0x18] sm:$0xff] }
0x10c8   : > { %v6345_v44 = vpop.permute.xlu1 %6344 }
0x10c9   : > { %v6349_v28 = vsel %vm5919_vm4, 0, %v6345_v44 }
0x10ca   : > { %v6352_v6 = vsel %vm5924_vm6, %v6349_v28, 0 }
0x10cb   : > { %v6368_v60 = vunpack.c.l.bf16 %v6352_v6  ;;  %v6369_v22 = vunpack.c.h.bf16 %v6352_v6 }
0x10cd   : > { %v12057_v10 = vpack.i.bf16 %v6369_v22, %v6368_v60 }
0x10cf   : > { %12058 = vrot.lane.b32.xlu0 %v12057_v10, %s15598_s3 }
0x1139   : > { %v12064_v29 = vpop.permute.xlu1 %12063 }
0x113a   : > { %v12066_v21 = vunpack.i.h.bf16 %v12064_v29  ;;  %v12065_v15 = vunpack.i.l.bf16 %v12064_v29 }
0x113c   : > { %v6391_v57 = vmax.f32 %v6371_v11, %v12066_v21  ;;  %v6390_v51 = vmax.f32 %v6370_v41, %v12065_v15  ;;  %v6513_v41 = vld [vmem:[%s15604_s16 + $0x20] sm:$0xff] }
0x113d   : > { %v6509_v11 = vld [vmem:[%s15604_s16] sm:$0xff] }
0x113e   : > { %v12072_v31 = vpack.i.bf16 %v6391_v57, %v6390_v51 }
0x1140   : > { %12073 = vrot.lane.b32.xlu0 %v12072_v31, %s15593_s1 }
0x1141   : > { %v12059_v33 = vpop.permute.xlu0 %12058 }
0x1142   : > { %v12061_v24 = vunpack.i.h.bf16 %v12059_v33  ;;  %v12060_v17 = vunpack.i.l.bf16 %v12059_v33 }
0x1144   : > { %v6389_v56 = vmax.f32 %v6369_v22, %v12061_v24  ;;  %v6388_v46 = vmax.f32 %v6368_v60, %v12060_v17 }
0x1146   : > { %v12067_v5 = vpack.i.bf16 %v6389_v56, %v6388_v46 }
0x1148   : > { %12068 = vrot.lane.b32.xlu2 %v12067_v5, %s15593_s1 }
0x11a2   : > { %v12069_v32 = vpop.permute.xlu2 %12068 }
0x11a3   : > { %v12071_v19 = vunpack.i.h.bf16 %v12069_v32  ;;  %v12070_v48 = vunpack.i.l.bf16 %v12069_v32 }
0x11a5   : > { %v6417_v47 = vmax.f32 %v6389_v56, %v12071_v19  ;;  %v6416_v7 = vmax.f32 %v6388_v46, %v12070_v48 }
0x11a7   : > { %v6420_v61 = vpack.c.bf16 %v6417_v47, %v6416_v7 }
0x11a9   : > { %10956 = vmatmul.msk.bf16.vlgmr.msra.gmra.mxu1 %vm5924_vm6, %v6420_v61 }
0x11b2   : > { %v12074_v55 = vpop.permute.xlu0 %12073 }
0x11b3   : > { %v12076_v35 = vunpack.i.h.bf16 %v12074_v55  ;;  %v12075_v27 = vunpack.i.l.bf16 %v12074_v55 }
0x11b5   : > { %v6419_v37 = vmax.f32 %v6391_v57, %v12076_v35  ;;  %v6418_v63 = vmax.f32 %v6390_v51, %v12075_v27 }
0x11b7   : > { %v6421_v23 = vpack.c.bf16 %v6419_v37, %v6418_v63 }
0x11b9   : > { %10957 = vmatmul.msk.bf16.gmra.mxu1 %vm5924_vm6, %v6421_v23 }
0x1226   : > { %v6479_v54 = vpop.f32.mrf.mxu1 }
0x1227   : > { %v6489_v18 = vpack.c.bf16 %v6479_v54, %v6479_v54 }
0x1229   : > { %v6522_v34 = vunpack.c.l.b16 %v6489_v18 }
0x122e   : > { %v6481_v14 = vpop.f32.mrf.mxu1 }
0x122f   : > { %v6490_v58 = vpack.c.bf16 %v6481_v14, %v6481_v14 }
0x1231   : > { %v6523_v50 = vunpack.c.l.b16 %v6490_v58 }
0x1233   : > { %v14512_v4 = vpack.c.b16 %v6523_v50, %v6522_v34 }
0x1235   : > { %6542 = vrot.lane.b32.xlu0 %v14512_v4, %s15510_s0 }
0x1236   : > { %v6484_v59 = vpop.f32.mrf.mxu1 }
0x1237   : > { %v6491_v1 = vpack.c.bf16 %v6484_v59, %v6484_v59 }
0x1239   : > { %v6524_v13 = vunpack.c.l.b16 %v6491_v1 }
0x123e   : > { %v6486_v38 = vpop.f32.mrf.mxu1 }
0x123f   : > { %v6492_v43 = vpack.c.bf16 %v6486_v38, %v6486_v38 }
0x1241   : > { %v6525_v39 = vunpack.c.l.b16 %v6492_v43 }
0x1243   : > { %v6527_v16 = vpack.c.b16 %v6525_v39, %v6524_v13 }
0x1245   : > { %6562 = vrot.lane.b32.xlu0 %v6527_v16, %s15599_s5  ;;  %6568 = vrot.lane.b32.xlu2 %v6527_v16, %s15512_s6 }
0x1246   : > { %6544 = vrot.lane.b32.xlu1 %v6527_v16, %s15510_s0  ;;  %s15514_s0 = smov 114  }
0x124d   : > { %6532 = vrot.lane.b32.xlu0 %v6527_v16, %s15598_s3  ;;  %6538 = vrot.lane.b32.xlu2 %v6527_v16, %s15597_s2 }
0x124e   : > { %6566 = vrot.lane.b32.xlu1 %v14512_v4, %s15512_s6  ;;  %s15516_s6 = smov 121  }
0x1255   : > { %6554 = vrot.lane.b32.xlu0 %v14512_v4, %s15521_s8  ;;  %6560 = vrot.lane.b32.xlu2 %v14512_v4, %s15599_s5 }
0x1256   : > { %6536 = vrot.lane.b32.xlu1 %v14512_v4, %s15597_s2 }
0x125d   : > { %6574 = vrot.lane.b32.xlu0 %v6527_v16, %s15514_s0  ;;  %6530 = vrot.lane.b32.xlu2 %v14512_v4, %s15598_s3 }
0x125e   : > { %6556 = vrot.lane.b32.xlu1 %v6527_v16, %s15521_s8 }
0x1265   : > { %6615 = vperm.xlu0 %11924, %v6516_v52   ;;  %6548 = vrot.lane.b32.xlu2 %v14512_v4, %s15516_s6 }
0x1266   : > { %6550 = vrot.lane.b32.xlu1 %v6527_v16, %s15516_s6  ;;  %s15606_s6 = sld [smem:[#allocation22_spill]] }
0x126d   : > { %6590 = vperm.xlu0 %11924, %v6511_v42   ;;  %6610 = vperm.xlu2 %12026, %v6515_v8  }
0x126e   : > { %6572 = vrot.lane.b32.xlu1 %v14512_v4, %s15514_s0  ;;  %s15605_s0 = sld [smem:[#allocation20_spill]] }
0x1274   : > { %v10960_v53 = vld [vmem:[%s15605_s0] sm:$0xf]  ;;  %v11723_v29 = vld [vmem:[%s15605_s0 + $0x8] sm:$0xf0]  ;;  %v11722_v36 = vld [vmem:[%s15605_s0 + $0x4] sm:$0xf] }
0x1275   : > { %6585 = vperm.xlu0 %11924, %v6510_v49   ;;  %6605 = vperm.xlu2 %12026, %v6514_v45   ;;  %v10961_v15 = vor.u32 %v11723_v29, %v10960_v53  ;;  %v10962_v57 = vld [vmem:[%s15605_s0 + $0xc] sm:$0xf0]  ;;  %v10968_v33 = vld [vmem:[%s15605_s0 + $0x8] sm:$0xf]  ;;  %v11724_v24 = vld [vmem:[%s15605_s0 + $0x10] sm:$0xf0] }
0x1276   : > { %6600 = vperm.xlu1 %11925, %v6513_v41   ;;  %v10965_v20 = vor.u32 %v11722_v36, %v10962_v57  ;;  %v10969_v31 = vor.u32 %v11724_v24, %v10968_v33  ;;  %v10972_v56 = vld [vmem:[%s15605_s0 + $0x18] sm:$0xf]  ;;  %v11726_v46 = vld [vmem:[%s15605_s0 + $0x20] sm:$0xf0]  ;;  %v11725_v12 = vld [vmem:[%s15605_s0 + $0x1c] sm:$0xf] }
0x1277   : > { %v10973_v5 = vor.u32 %v11726_v46, %v10972_v56  ;;  %v10974_v32 = vld [vmem:[%s15605_s0 + $0x24] sm:$0xf0]  ;;  %v10980_v48 = vld [vmem:[%s15605_s0 + $0x20] sm:$0xf]  ;;  %v11727_v47 = vld [vmem:[%s15605_s0 + $0x28] sm:$0xf0] }
0x1278   : > { %v10977_v19 = vor.u32 %v11725_v12, %v10974_v32  ;;  %v10981_v7 = vor.u32 %v11727_v47, %v10980_v48  ;;  %v10984_v61 = vld [vmem:[%s15605_s0 + $0x30] sm:$0xf]  ;;  %v11729_v55 = vld [vmem:[%s15605_s0 + $0x38] sm:$0xf0]  ;;  %v11728_v27 = vld [vmem:[%s15605_s0 + $0x34] sm:$0xf] }
0x1279   : > { %v10985_v35 = vor.u32 %v11729_v55, %v10984_v61  ;;  %v10986_v37 = vld [vmem:[%s15605_s0 + $0x3c] sm:$0xf0]  ;;  %v10992_v23 = vld [vmem:[%s15605_s0 + $0x38] sm:$0xf]  ;;  %v11730_v54 = vld [vmem:[%s15605_s0 + $0x40] sm:$0xf0] }
0x127a   : > { %v10989_v63 = vor.u32 %v11728_v27, %v10986_v37  ;;  %v10993_v18 = vor.u32 %v11730_v54, %v10992_v23  ;;  %v10996_v14 = vld [vmem:[%s15605_s0 + $0x48] sm:$0xf]  ;;  %v11732_v58 = vld [vmem:[%s15605_s0 + $0x50] sm:$0xf0]  ;;  %v11731_v50 = vld [vmem:[%s15605_s0 + $0x4c] sm:$0xf] }
0x127b   : > { %v10997_v34 = vor.u32 %v11732_v58, %v10996_v14  ;;  %v11004_v1 = vld [vmem:[%s15605_s0 + $0x50] sm:$0xf]  ;;  %v11733_v38 = vld [vmem:[%s15605_s0 + $0x58] sm:$0xf0] }
0x127c   : > { %v11005_v43 = vor.u32 %v11733_v38, %v11004_v1 }
0x127d   : > { %6580 = vperm.xlu2 %12026, %v6509_v11  }
0x127e   : > { %6595 = vperm.xlu1 %11925, %v6512_v9  }
0x129f   : > { %v6569_v44 = vpop.permute.xlu2 %6568 }
0x12a0   : > { %6719 = vmatpush.bf16.msrb.mxu3 %v6569_v44 }
0x12a7   : > { %v6543_v28 = vpop.permute.xlu0 %6542  ;;  %v6539_v22 = vpop.permute.xlu2 %6538 }
0x12af   : > { %v6561_v62 = vpop.permute.xlu2 %6560 }
0x12b7   : > { %v6563_v6 = vpop.permute.xlu0 %6562  ;;  %v6531_v2 = vpop.permute.xlu2 %6530 }
0x12b8   : > { %v6545_v60 = vpop.permute.xlu1 %6544 }
0x12b9   : > { %6690 = vmatpush.bf16.msrb.mxu2 %v6545_v60 }
0x12bd   : > { %6691 = vmatpush.bf16.msrb.mxu2 %v6543_v28 }
0x12bf   : > { %v6533_v10 = vpop.permute.xlu0 %6532  ;;  %v6549_v51 = vpop.permute.xlu2 %6548 }
0x12c0   : > { %v6567_v30 = vpop.permute.xlu1 %6566 }
0x12c1   : > { %6692 = vmatpush.bf16.msrb.mxu2 %v6539_v22  ;;  %6720 = vmatpush.bf16.msrb.mxu3 %v6567_v30 }
0x12c5   : > { %6721 = vmatpush.bf16.msrb.mxu3 %v6563_v6 }
0x12c7   : > { %v6555_v26 = vpop.permute.xlu0 %6554  ;;  %v6611_v13 = vpop.permute.xlu2 %6610 }
0x12c8   : > { %v6537_v25 = vpop.permute.xlu1 %6536 }
0x12c9   : > { %6693 = vmatpush.bf16.msrb.mxu2 %v6537_v25  ;;  %6722 = vmatpush.bf16.msrb.mxu3 %v6561_v62 }
0x12cd   : > { %6694 = vmatpush.bf16.msrb.mxu2 %v6533_v10 }
0x12cf   : > { %v6575_v3 = vpop.permute.xlu0 %6574  ;;  %v6606_v39 = vpop.permute.xlu2 %6605 }
0x12d0   : > { %v6557_v40 = vpop.permute.xlu1 %6556  ;;  %6754 = vmatpush.bf16.msra.mxu0 %v6575_v3 }
0x12d1   : > { %6695 = vmatpush.bf16.msrb.mxu2 %v6531_v2  ;;  %6723 = vmatpush.bf16.msrb.mxu3 %v6557_v40 }
0x12d5   : > { %6696 = vmatpush.bf16.msrb.mxu2 %v6527_v16  ;;  %6724 = vmatpush.bf16.msrb.mxu3 %v6555_v26 }
0x12d7   : > { %v6581_v52 = vpop.permute.xlu2 %6580  ;;  %v14577_v11 = vpop.permute.xlu0 %6615 }
0x12d8   : > { %v6551_v21 = vpop.permute.xlu1 %6550 }
0x12d9   : > { %6697 = vmatpush.bf16.msrb.mxu2 %v14512_v4  ;;  %6725 = vmatpush.bf16.msrb.mxu3 %v6551_v21  ;;  %v10998_v4 = vld [vmem:[%s15605_s0 + $0x54] sm:$0xf0]  ;;  %s15608_s0 = smov 122  }
0x12da   : > { %v11001_v59 = vor.u32 %v11731_v50, %v10998_v4 }
0x12dc   : > { %6698 = vmatmul.bf16.vlgmr.msrb.gmra.mxu2 %v10961_v15  ;;  %v12162_v15 = vld [vmem:[%s15606_s6] ss:$0 sm:$0xff]  ;;  %s15518_s6 = smov 7  }
0x12dd   : > { %6726 = vmatpush.bf16.msrb.mxu3 %v6549_v51 }
0x12df   : > { %v6591_v22 = vpop.permute.xlu0 %6590 }
0x12e0   : > { %6727 = vmatmul.bf16.vlgmr.msrb.gmra.mxu3 %v10965_v20  ;;  %v6573_v17 = vpop.permute.xlu1 %6572 }
0x12e1   : > { %6755 = vmatpush.bf16.msra.mxu0 %v6573_v17 }
0x12e4   : > { %11006 = vmatmul.msk.bf16.vlgmr.msra.gmra.mxu0 %vm6042_vm7, %v10969_v31 }
0x12e7   : > { %v6586_v38 = vpop.permute.xlu0 %6585 }
0x12e8   : > { %v6601_v6 = vpop.permute.xlu1 %6600 }
0x12ec   : > { %6703 = vmatmul.bf16.gmra.mxu2 %v10973_v5 }
0x12f0   : > { %6732 = vmatmul.bf16.gmra.mxu3 %v10977_v19  ;;  %v6596_v2 = vpop.permute.xlu1 %6595 }
0x12f4   : > { %11007 = vmatmul.msk.bf16.gmra.mxu0 %vm6042_vm7, %v10981_v7 }
0x12fc   : > { %6708 = vmatmul.bf16.gmra.mxu2 %v10985_v35 }
0x1300   : > { %6737 = vmatmul.bf16.gmra.mxu3 %v10989_v63 }
0x1304   : > { %11008 = vmatmul.msk.bf16.gmra.mxu0 %vm6042_vm7, %v10993_v18 }
0x130c   : > { %6713 = vmatmul.bf16.gmra.mxu2 %v10997_v34 }
0x1310   : > { %6742 = vmatmul.bf16.gmra.mxu3 %v11001_v59 }
0x1314   : > { %11009 = vmatmul.msk.bf16.gmra.mxu0 %vm6042_vm7, %v11005_v43 }
0x135f   : > { %v6699_v16 = vpop.f32.mrf.mxu2 }
0x1360   : > { %v6700_v8 = vadd.f32 %v6699_v16, %v6581_v52 }
0x1361   : > { %v6757_v42 = vpop.f32.mrf.mxu0 }
0x1363   : > { %v6728_v49 = vpop.f32.mrf.mxu3 }
0x1364   : > { %v6729_v45 = vadd.f32 %v6728_v49, %v6700_v8 }
0x1366   : > { %v14575_v41 = vadd.f32 %v6757_v42, %v6729_v45 }
0x1367   : > { %v6701_v9 = vpop.f32.mrf.mxu2 }
0x1368   : > { %v6702_v43 = vadd.f32 %v6701_v9, %v6586_v38  ;;  %v11736_v38 = vld [vmem:[%s15613_s14 + $0x10] sm:$0xf0] }
0x1369   : > { %v14579_v44 = vpop.f32.mrf.mxu0 }
0x136b   : > { %v6730_v28 = vpop.f32.mrf.mxu3 }
0x136c   : > { %v6731_v8 = vadd.f32 %v6730_v28, %v6702_v43 }
0x136f   : > { %v6704_v60 = vpop.f32.mrf.mxu2 }
0x1370   : > { %v6705_v30 = vadd.f32 %v6704_v60, %v6591_v22 }
0x1371   : > { %v6762_v10 = vpop.f32.mrf.mxu0 }
0x1373   : > { %v6733_v62 = vpop.f32.mrf.mxu3 }
0x1374   : > { %v6734_v26 = vadd.f32 %v6733_v62, %v6705_v30 }
0x1376   : > { %v6763_v25 = vadd.f32 %v6762_v10, %v6734_v26 }
0x1377   : > { %v6706_v3 = vpop.f32.mrf.mxu2 }
0x1378   : > { %v6779_v53 = vmax.f32 %v6763_v25, 0.0  ;;  %v6707_v29 = vadd.f32 %v6706_v3, %v6596_v2  ;;  %v6777_v25 = vmax.f32 %v14575_v41, 0.0 }
0x1379   : > { %v6764_v40 = vpop.f32.mrf.mxu0 }
0x137a   : > { %v6790_v57 = vmul.f32 %v12162_v15, %v6779_v53  ;;  %v6788_v53 = vmul.f32 %v12162_v15, %v6777_v25  ;;  %v11746_v25 = vld [vmem:[%s15613_s14 + $0x60] sm:$0xf0] }
0x137b   : > { %v6735_v21 = vpop.f32.mrf.mxu3 }
0x137c   : > { %v6736_v36 = vadd.f32 %v6735_v21, %v6707_v29  ;;  %v6798_v17 = vpack.c.bf16 %v6790_v57, %v6790_v57  ;;  %v6796_v57 = vpack.c.bf16 %v6788_v53, %v6788_v53 }
0x137e   : > { %v6765_v51 = vadd.f32 %v6764_v40, %v6736_v36  ;;  %v6814_v32 = vunpack.c.l.b16 %v6798_v17 }
0x137f   : > { %v6709_v20 = vpop.f32.mrf.mxu2 }
0x1380   : > { %v6780_v33 = vmax.f32 %v6765_v51, 0.0  ;;  %v6710_v56 = vadd.f32 %v6709_v20, %v6601_v6  ;;  %v6812_v51 = vunpack.c.l.b16 %v6796_v57  ;;  %v11014_v57 = vld [vmem:[%s15613_s14 + $0x14] sm:$0xf0] }
0x1381   : > { %v6767_v24 = vpop.f32.mrf.mxu0 }
0x1382   : > { %v6791_v31 = vmul.f32 %v12162_v15, %v6780_v33 }
0x1383   : > { %v6738_v46 = vpop.f32.mrf.mxu3 }
0x1384   : > { %v6799_v5 = vpack.c.bf16 %v6791_v31, %v6791_v31  ;;  %v6739_v12 = vadd.f32 %v6738_v46, %v6710_v56 }
0x1386   : > { %v6815_v19 = vunpack.c.l.b16 %v6799_v5  ;;  %v6768_v48 = vadd.f32 %v6767_v24, %v6739_v12 }
0x1387   : > { %v6711_v47 = vpop.f32.mrf.mxu2 }
0x1388   : > { %v6821_v7 = vpack.c.b16 %v6815_v19, %v6814_v32  ;;  %v6781_v55 = vmax.f32 %v6768_v48, 0.0  ;;  %v6712_v35 = vadd.f32 %v6711_v47, %v6606_v39 }
0x1389   : > { %v6769_v61 = vpop.f32.mrf.mxu0 }
0x138a   : > { %6826 = vrot.lane.b32.xlu0 %v6821_v7, %s15518_s6  ;;  %v6792_v63 = vmul.f32 %v12162_v15, %v6781_v55 }
0x138b   : > { %v6740_v27 = vpop.f32.mrf.mxu3 }
0x138c   : > { %v6741_v37 = vadd.f32 %v6740_v27, %v6712_v35  ;;  %v6800_v14 = vpack.c.bf16 %v6792_v63, %v6792_v63 }
0x138e   : > { %v6770_v23 = vadd.f32 %v6769_v61, %v6741_v37  ;;  %v6816_v16 = vunpack.c.l.b16 %v6800_v14 }
0x138f   : > { %v6714_v54 = vpop.f32.mrf.mxu2 }
0x1390   : > { %v6782_v18 = vmax.f32 %v6770_v23, 0.0  ;;  %v6715_v34 = vadd.f32 %v6714_v54, %v6611_v13  ;;  %v6760_v13 = vadd.f32 %v14579_v44, %v6731_v8 }
0x1391   : > { %v6772_v50 = vpop.f32.mrf.mxu0 }
0x1392   : > { %v6793_v58 = vmul.f32 %v12162_v15, %v6782_v18  ;;  %v6778_v26 = vmax.f32 %v6760_v13, 0.0 }
0x1393   : > { %v6743_v4 = vpop.f32.mrf.mxu3 }
0x1394   : > { %v6801_v59 = vpack.c.bf16 %v6793_v58, %v6793_v58  ;;  %v6744_v1 = vadd.f32 %v6743_v4, %v6715_v34  ;;  %v6789_v28 = vmul.f32 %v12162_v15, %v6778_v26 }
0x1396   : > { %v6817_v39 = vunpack.c.l.b16 %v6801_v59  ;;  %v6773_v52 = vadd.f32 %v6772_v50, %v6744_v1  ;;  %v6797_v21 = vpack.c.bf16 %v6789_v28, %v6789_v28  ;;  %v11012_v1 = vld [vmem:[%s15613_s14] sm:$0xf] }
0x1397   : > { %v6716_v42 = vpop.f32.mrf.mxu2  ;;  %v11013_v43 = vor.u32 %v11736_v38, %v11012_v1  ;;  %v11745_v38 = vld [vmem:[%s15613_s14 + $0x5c] sm:$0xf] }
0x1398   : > { %v6822_v49 = vpack.c.b16 %v6817_v39, %v6816_v16  ;;  %v6783_v45 = vmax.f32 %v6773_v52, 0.0  ;;  %v6717_v6 = vadd.f32 %v6716_v42, %v14577_v11  ;;  %v6813_v44 = vunpack.c.l.b16 %v6797_v21  ;;  %v11751_v21 = vld [vmem:[%s15613_s14 + $0x88] sm:$0xf0] }
0x1399   : > { %v6774_v10 = vpop.f32.mrf.mxu0 }
0x139a   : > { %6828 = vrot.lane.b32.xlu2 %v6822_v49, %s15518_s6  ;;  %v6794_v30 = vmul.f32 %v12162_v15, %v6783_v45  ;;  %v6820_v20 = vpack.c.b16 %v6813_v44, %v6812_v51  ;;  %v11032_v45 = vld [vmem:[%s15613_s14 + $0x28] sm:$0xf]  ;;  %v11737_v51 = vld [vmem:[%s15613_s14 + $0x18] sm:$0xf0] }
0x139b   : > { %v6745_v60 = vpop.f32.mrf.mxu3  ;;  %v11020_v44 = vld [vmem:[%s15613_s14 + $0x8] sm:$0xf] }
0x139c   : > { %v6746_v22 = vadd.f32 %v6745_v60, %v6717_v6  ;;  %v6802_v3 = vpack.c.bf16 %v6794_v30, %v6794_v30  ;;  %v11741_v6 = vld [vmem:[%s15613_s14 + $0x38] sm:$0xf0] }
0x139d   : > { %v11033_v60 = vor.u32 %v11741_v6, %v11032_v45  ;;  %v11752_v45 = vld [vmem:[%s15613_s14 + $0x90] sm:$0xf0] }
0x139e   : > { %v6775_v62 = vadd.f32 %v6774_v10, %v6746_v22  ;;  %v6818_v29 = vunpack.c.l.b16 %v6802_v3 }
0x13a0   : > { %v6784_v9 = vmax.f32 %v6775_v62, 0.0 }
0x13a2   : > { %v6795_v2 = vmul.f32 %v12162_v15, %v6784_v9  ;;  %v11052_v9 = vld [vmem:[%s15613_s14 + $0x50] sm:$0xf] }
0x13a3   : > { %v11053_v3 = vor.u32 %v11746_v25, %v11052_v9 }
0x13a4   : > { %v6803_v40 = vpack.c.bf16 %v6795_v2, %v6795_v2 }
0x13a6   : > { %v6819_v11 = vunpack.c.l.b16 %v6803_v40 }
0x13a8   : > { %v6823_v36 = vpack.c.b16 %v6819_v11, %v6818_v29  ;;  %v11072_v29 = vld [vmem:[%s15613_s14 + $0x78] sm:$0xf] }
0x13aa   : > { %6830 = vrot.lane.b32.xlu1 %v6823_v36, %s15518_s6  ;;  %v11734_v36 = vld [vmem:[%s15613_s14 + $0x4] sm:$0xf] }
0x13b2   : > { %6824 = vrot.lane.b32.xlu1 %v6820_v20, %s15518_s6  ;;  %s15607_s6 = smov 115   ;;  %v11073_v20 = vor.u32 %v11751_v21, %v11072_v29 }
0x13f4   : > { %v6829_v41 = vpop.permute.xlu2 %6828 }
0x13f5   : > { %v6838_v33 = vsel %vm6832_vm10, 0, %v6829_v41  ;;  %v11017_v41 = vor.u32 %v11734_v36, %v11014_v57 }
0x13f6   : > { %v14591_v24 = vsel %vm6841_vm11, %v6838_v33, 0  ;;  %v11021_v33 = vor.u32 %v11737_v51, %v11020_v44 }
0x13f7   : > { %6891 = vrot.lane.b32.xlu0 %v14591_v24, %s15598_s3 }
0x13fc   : > { %v6827_v15 = vpop.permute.xlu0 %6826 }
0x13fd   : > { %v6836_v17 = vsel %vm6832_vm10, 0, %v6827_v15 }
0x13fe   : > { %v14597_v31 = vsel %vm6841_vm11, %v6836_v17, 0  ;;  %v11735_v17 = vld [vmem:[%s15613_s14 + $0xc] sm:$0xf] }
0x13ff   : > { %6939 = vrot.lane.b32.xlu0 %v14591_v24, %s15521_s8  ;;  %6889 = vrot.lane.b32.xlu1 %v14597_v31, %s15598_s3  ;;  %s15609_s8 = sld [smem:[#allocation24_spill]] }
0x1405   : > { %v6878_v48 = vld [vmem:[%s15609_s8 + $0x20] sm:$0xff]  ;;  %v6877_v47 = vld [vmem:[%s15609_s8 + $0x18] sm:$0xff]  ;;  %v6880_v7 = vld [vmem:[%s15609_s8 + $0x30] sm:$0xff] }
0x1406   : > { %v6879_v61 = vld [vmem:[%s15609_s8 + $0x28] sm:$0xff]  ;;  %v6874_v35 = vld [vmem:[%s15609_s8] sm:$0xff]  ;;  %v6881_v27 = vld [vmem:[%s15609_s8 + $0x38] sm:$0xff] }
0x1407   : > { %6963 = vrot.lane.b32.xlu0 %v14591_v24, %s15607_s6  ;;  %6913 = vrot.lane.b32.xlu1 %v14597_v31, %s15608_s0  ;;  %v6876_v23 = vld [vmem:[%s15609_s8 + $0x10] sm:$0xff]  ;;  %v6875_v14 = vld [vmem:[%s15609_s8 + $0x8] sm:$0xff]  ;;  %s15614_s8 = sld [smem:[#allocation25_spill]] }
0x140f   : > { %6961 = vrot.lane.b32.xlu0 %v14597_v31, %s15607_s6 }
0x141c   : > { %v6831_v56 = vpop.permute.xlu1 %6830 }
0x141d   : > { %v6840_v46 = vsel %vm6832_vm10, 0, %v6831_v56 }
0x141e   : > { %v6848_v5 = vsel %vm6841_vm11, %v6840_v46, 0 }
0x141f   : > { %6893 = vrot.lane.b32.xlu2 %v6848_v5, %s15598_s3 }
0x1424   : > { %v6825_v12 = vpop.permute.xlu1 %6824 }
0x1425   : > { %v6834_v32 = vsel %vm6832_vm10, 0, %v6825_v12  ;;  %v11739_v12 = vld [vmem:[%s15613_s14 + $0x2c] sm:$0xf] }
0x1426   : > { %v6842_v19 = vsel %vm6841_vm11, %v6834_v32, 0  ;;  %v11034_v32 = vld [vmem:[%s15613_s14 + $0x3c] sm:$0xf0] }
0x1427   : > { %6959 = vrot.lane.b32.xlu0 %v6842_v19, %s15607_s6  ;;  %6911 = vrot.lane.b32.xlu1 %v6842_v19, %s15608_s0 }
0x1428   : > { %6887 = vrot.lane.b32.xlu2 %v6842_v19, %s15598_s3 }
0x142f   : > { %6917 = vrot.lane.b32.xlu0 %v6848_v5, %s15608_s0  ;;  %6903 = vrot.lane.b32.xlu1 %v14591_v24, %s15597_s2 }
0x1430   : > { %6915 = vrot.lane.b32.xlu2 %v14591_v24, %s15608_s0 }
0x1437   : > { %6965 = vrot.lane.b32.xlu0 %v6848_v5, %s15607_s6  ;;  %6941 = vrot.lane.b32.xlu1 %v6848_v5, %s15610_s9 }
0x1438   : > { %6937 = vrot.lane.b32.xlu2 %v14597_v31, %s15610_s9 }
0x143f   : > { %6923 = vrot.lane.b32.xlu0 %v6842_v19, %s15611_s11  ;;  %6901 = vrot.lane.b32.xlu1 %v14597_v31, %s15597_s2 }
0x1440   : > { %6935 = vrot.lane.b32.xlu2 %v6842_v19, %s15610_s9 }
0x1447   : > { %6953 = vrot.lane.b32.xlu0 %v6848_v5, %s15599_s5  ;;  %6905 = vrot.lane.b32.xlu1 %v6848_v5, %s15597_s2 }
0x1448   : > { %6927 = vrot.lane.b32.xlu2 %v14591_v24, %s15611_s11 }
0x144f   : > { %6949 = vrot.lane.b32.xlu0 %v14597_v31, %s15599_s5  ;;  %6899 = vrot.lane.b32.xlu1 %v6842_v19, %s15597_s2 }
0x1450   : > { %6925 = vrot.lane.b32.xlu2 %v14597_v31, %s15611_s11 }
0x1457   : > { %6971 = vrot.lane.b32.xlu0 %v6842_v19, %s15612_s13  ;;  %6951 = vrot.lane.b32.xlu1 %v14591_v24, %s15599_s5 }
0x1458   : > { %6929 = vrot.lane.b32.xlu2 %v6848_v5, %s15611_s11 }
0x145f   : > { %7005 = vperm.xlu0 %11924, %v6878_v48   ;;  %6973 = vrot.lane.b32.xlu1 %v14597_v31, %s15612_s13  ;;  %v11738_v48 = vld [vmem:[%s15613_s14 + $0x20] sm:$0xf0] }
0x1460   : > { %6977 = vrot.lane.b32.xlu2 %v6848_v5, %s15612_s13 }
0x1467   : > { %7000 = vperm.xlu0 %11924, %v6877_v47   ;;  %7015 = vperm.xlu1 %11925, %v6880_v7   ;;  %v11040_v47 = vld [vmem:[%s15613_s14 + $0x30] sm:$0xf]  ;;  %v11742_v7 = vld [vmem:[%s15613_s14 + $0x40] sm:$0xf0] }
0x1468   : > { %6975 = vrot.lane.b32.xlu2 %v14591_v24, %s15612_s13 }
0x1469   : > { %v6892_v55 = vpop.permute.xlu0 %6891 }
0x146f   : > { %7010 = vperm.xlu1 %11925, %v6879_v61  }
0x1470   : > { %6947 = vrot.lane.b32.xlu2 %v6842_v19, %s15599_s5 }
0x1471   : > { %v6940_v63 = vpop.permute.xlu0 %6939  ;;  %v6890_v54 = vpop.permute.xlu1 %6889 }
0x1477   : > { %6985 = vperm.xlu1 %11925, %v6874_v35  }
0x1478   : > { %7020 = vperm.xlu2 %12026, %v6881_v27   ;;  %v11041_v27 = vor.u32 %v11742_v7, %v11040_v47 }
0x1479   : > { %v6894_v37 = vpop.permute.xlu2 %6893  ;;  %v6964_v58 = vpop.permute.xlu0 %6963 }
0x147a   : > { %7136 = vmatpush.bf16.msrb.mxu1 %v6894_v37  ;;  %v6914_v50 = vpop.permute.xlu1 %6913  ;;  %v11740_v37 = vld [vmem:[%s15613_s14 + $0x34] sm:$0xf] }
0x147e   : > { %7137 = vmatpush.bf16.msrb.mxu1 %v6892_v55  ;;  %v11037_v55 = vor.u32 %v11739_v12, %v11034_v32 }
0x1480   : > { %6995 = vperm.xlu2 %12026, %v6876_v23  }
0x1481   : > { %v6962_v4 = vpop.permute.xlu0 %6961 }
0x1482   : > { %v6888_v18 = vpop.permute.xlu2 %6887  ;;  %7138 = vmatpush.bf16.msrb.mxu1 %v6890_v54  ;;  %v11744_v54 = vld [vmem:[%s15613_s14 + $0x54] sm:$0xf] }
0x1486   : > { %7139 = vmatpush.bf16.msrb.mxu1 %v6888_v18  ;;  %v11054_v18 = vld [vmem:[%s15613_s14 + $0x64] sm:$0xf0] }
0x1488   : > { %6990 = vperm.xlu2 %12026, %v6875_v14   ;;  %v11048_v14 = vld [vmem:[%s15613_s14 + $0x38] sm:$0xf] }
0x148a   : > { %v6916_v34 = vpop.permute.xlu2 %6915  ;;  %7140 = vmatpush.bf16.msrb.mxu1 %v6848_v5 }
0x148e   : > { %7141 = vmatpush.bf16.msrb.mxu1 %v14591_v24 }
0x1492   : > { %v6938_v59 = vpop.permute.xlu2 %6937  ;;  %7142 = vmatpush.bf16.msrb.mxu1 %v14597_v31  ;;  %v11022_v31 = vld [vmem:[%s15613_s14 + $0x1c] sm:$0xf0] }
0x1493   : > { %v11025_v5 = vor.u32 %v11735_v17, %v11022_v31 }
0x1496   : > { %7143 = vmatpush.bf16.msrb.mxu1 %v6842_v19  ;;  %v11028_v19 = vld [vmem:[%s15613_s14 + $0x10] sm:$0xf] }
0x1497   : > { %v11029_v35 = vor.u32 %v11738_v48, %v11028_v19 }
0x1499   : > { %v6960_v16 = vpop.permute.xlu0 %6959  ;;  %7144 = vmatmul.bf16.vlgmr.msrb.gmra.mxu1 %v11013_v43  ;;  %v6912_v39 = vpop.permute.xlu1 %6911  ;;  %v11062_v43 = vld [vmem:[%s15613_s14 + $0x6c] sm:$0xf0] }
0x149a   : > { %v6936_v52 = vpop.permute.xlu2 %6935 }
0x14a1   : > { %v6918_v42 = vpop.permute.xlu0 %6917  ;;  %v6904_v8 = vpop.permute.xlu1 %6903 }
0x14a2   : > { %v6928_v49 = vpop.permute.xlu2 %6927  ;;  %7165 = vmatpush.bf16.msra.mxu2 %v6918_v42  ;;  %v11068_v42 = vld [vmem:[%s15613_s14 + $0x60] sm:$0xf] }
0x14a6   : > { %7166 = vmatpush.bf16.msra.mxu2 %v6916_v34  ;;  %v11060_v34 = vld [vmem:[%s15613_s14 + $0x58] sm:$0xf] }
0x14a9   : > { %v6966_v13 = vpop.permute.xlu0 %6965  ;;  %7149 = vmatmul.bf16.gmra.mxu1 %v11033_v60  ;;  %v6942_v22 = vpop.permute.xlu1 %6941 }
0x14aa   : > { %v6926_v10 = vpop.permute.xlu2 %6925  ;;  %7167 = vmatpush.bf16.msra.mxu2 %v6914_v50  ;;  %7194 = vmatpush.bf16.msra.mxu3 %v6942_v22  ;;  %v11747_v50 = vld [vmem:[%s15613_s14 + $0x68] sm:$0xf0]  ;;  %v11750_v22 = vld [vmem:[%s15613_s14 + $0x84] sm:$0xf] }
0x14ab   : > { %7223 = vmatpush.bf16.msrb.mxu0 %v6966_v13  ;;  %v11061_v1 = vor.u32 %v11747_v50, %v11060_v34 }
0x14ae   : > { %7168 = vmatpush.bf16.msra.mxu2 %v6912_v39  ;;  %7195 = vmatpush.bf16.msra.mxu3 %v6940_v63  ;;  %v11042_v63 = vld [vmem:[%s15613_s14 + $0x44] sm:$0xf0]  ;;  %v11749_v39 = vld [vmem:[%s15613_s14 + $0x7c] sm:$0xf] }
0x14af   : > { %7224 = vmatpush.bf16.msrb.mxu0 %v6964_v58  ;;  %v11045_v23 = vor.u32 %v11740_v37, %v11042_v63  ;;  %v11743_v58 = vld [vmem:[%s15613_s14 + $0x48] sm:$0xf0] }
0x14b1   : > { %v6924_v30 = vpop.permute.xlu0 %6923  ;;  %v6902_v62 = vpop.permute.xlu1 %6901 }
0x14b2   : > { %v6930_v26 = vpop.permute.xlu2 %6929  ;;  %7196 = vmatpush.bf16.msra.mxu3 %v6938_v59  ;;  %v11049_v59 = vor.u32 %v11743_v58, %v11048_v14 }
0x14b3   : > { %7225 = vmatpush.bf16.msrb.mxu0 %v6962_v4  ;;  %v11057_v4 = vor.u32 %v11744_v54, %v11054_v18 }
0x14b6   : > { %7197 = vmatpush.bf16.msra.mxu3 %v6936_v52  ;;  %v11074_v52 = vld [vmem:[%s15613_s14 + $0x8c] sm:$0xf0] }
0x14b7   : > { %7226 = vmatpush.bf16.msrb.mxu0 %v6960_v16  ;;  %v11065_v16 = vor.u32 %v11745_v38, %v11062_v43  ;;  %v11077_v6 = vor.u32 %v11749_v39, %v11074_v52  ;;  %v14724_v43 = vld [vmem:[%s15614_s8] ss:$0 sm:$0xff]  ;;  %s15615_s8 = smov 7  }
0x14b9   : > { %v6954_v2 = vpop.permute.xlu0 %6953  ;;  %7154 = vmatmul.bf16.gmra.mxu1 %v11053_v3  ;;  %v6906_v28 = vpop.permute.xlu1 %6905 }
0x14ba   : > { %v6978_v40 = vpop.permute.xlu2 %6977  ;;  %7169 = vmatpush.bf16.msra.mxu2 %v6906_v28  ;;  %7198 = vmatpush.bf16.msra.mxu3 %v6930_v26  ;;  %v11753_v26 = vld [vmem:[%s15613_s14 + $0x98] sm:$0xf0] }
0x14bb   : > { %7227 = vmatpush.bf16.msrb.mxu0 %v6954_v2  ;;  %7256 = vmatpush.bf16.msra.mxu1 %v6978_v40 }
0x14be   : > { %7170 = vmatpush.bf16.msra.mxu2 %v6904_v8  ;;  %7199 = vmatpush.bf16.msra.mxu3 %v6928_v49  ;;  %v11748_v8 = vld [vmem:[%s15613_s14 + $0x70] sm:$0xf0]  ;;  %v11080_v49 = vld [vmem:[%s15613_s14 + $0x80] sm:$0xf] }
0x14bf   : > { %v11069_v60 = vor.u32 %v11748_v8, %v11068_v42  ;;  %v11081_v13 = vor.u32 %v11752_v45, %v11080_v49 }
0x14c1   : > { %v6900_v53 = vpop.permute.xlu1 %6899  ;;  %v6950_v15 = vpop.permute.xlu0 %6949 }
0x14c2   : > { %v6976_v11 = vpop.permute.xlu2 %6975  ;;  %7171 = vmatpush.bf16.msra.mxu2 %v6902_v62  ;;  %7200 = vmatpush.bf16.msra.mxu3 %v6926_v10  ;;  %v11082_v10 = vld [vmem:[%s15613_s14 + $0x94] sm:$0xf0]  ;;  %v11088_v62 = vld [vmem:[%s15613_s14 + $0x88] sm:$0xf]  ;;  %s15616_s14 = sld [smem:[#allocation27_spill]] }
0x14c3   : > { %7257 = vmatpush.bf16.msra.mxu1 %v6976_v11  ;;  %v11089_v9 = vor.u32 %v11753_v26, %v11088_v62 }
0x14c6   : > { %7172 = vmatpush.bf16.msra.mxu2 %v6900_v53  ;;  %7201 = vmatpush.bf16.msra.mxu3 %v6924_v30  ;;  %v11085_v30 = vor.u32 %v11750_v22, %v11082_v10 }
0x14c9   : > { %7159 = vmatmul.bf16.gmra.mxu1 %v11073_v20  ;;  %7173 = vmatmul.bf16.vlgmr.msra.gmra.mxu2 %v11017_v41  ;;  %v6952_v24 = vpop.permute.xlu1 %6951  ;;  %v6972_v61 = vpop.permute.xlu0 %6971 }
0x14ca   : > { %7202 = vmatmul.bf16.vlgmr.msra.gmra.mxu3 %v11021_v33  ;;  %7228 = vmatpush.bf16.msrb.mxu0 %v6952_v24  ;;  %v6948_v56 = vpop.permute.xlu2 %6947 }
0x14ce   : > { %7229 = vmatpush.bf16.msrb.mxu0 %v6950_v15 }
0x14d1   : > { %v6974_v46 = vpop.permute.xlu1 %6973  ;;  %v7006_v12 = vpop.permute.xlu0 %7005 }
0x14d2   : > { %7230 = vmatpush.bf16.msrb.mxu0 %v6948_v56  ;;  %7258 = vmatpush.bf16.msra.mxu1 %v6974_v46  ;;  %v14711_v24 = vpop.permute.xlu2 %7020 }
0x14d5   : > { %7231 = vmatmul.bf16.vlgmr.msrb.gmra.mxu0 %v11025_v5 }
0x14d6   : > { %7259 = vmatpush.bf16.msra.mxu1 %v6972_v61 }
0x14d9   : > { %7178 = vmatmul.bf16.gmra.mxu2 %v11037_v55  ;;  %11090 = vmatmul.msk.bf16.vlgmr.msra.gmra.mxu1 %vm7123_vm12, %v11029_v35  ;;  %v14705_v40 = vpop.permute.xlu1 %7015  ;;  %v7001_v37 = vpop.permute.xlu0 %7000 }
0x14da   : > { %7207 = vmatmul.bf16.gmra.mxu3 %v11041_v27  ;;  %v6996_v19 = vpop.permute.xlu2 %6995 }
0x14e1   : > { %v7011_v11 = vpop.permute.xlu1 %7010 }
0x14e5   : > { %7236 = vmatmul.bf16.gmra.mxu0 %v11045_v23 }
0x14e9   : > { %7183 = vmatmul.bf16.gmra.mxu2 %v11057_v4  ;;  %11091 = vmatmul.msk.bf16.gmra.mxu1 %vm7123_vm12, %v11049_v59  ;;  %v6986_v36 = vpop.permute.xlu1 %6985 }
0x14ea   : > { %7212 = vmatmul.bf16.gmra.mxu3 %v11061_v1 }
0x14f5   : > { %7241 = vmatmul.bf16.gmra.mxu0 %v11065_v16 }
0x14f9   : > { %7188 = vmatmul.bf16.gmra.mxu2 %v11077_v6  ;;  %11092 = vmatmul.msk.bf16.gmra.mxu1 %vm7123_vm12, %v11069_v60 }
0x14fa   : > { %7217 = vmatmul.bf16.gmra.mxu3 %v11081_v13 }
0x1505   : > { %7246 = vmatmul.bf16.gmra.mxu0 %v11085_v30 }
0x1509   : > { %11093 = vmatmul.msk.bf16.gmra.mxu1 %vm7123_vm12, %v11089_v9 }
0x1516   : > { %v7145_v25 = vpop.f32.mrf.mxu1 }
0x1517   : > { %v7146_v57 = vadd.f32 %v7145_v25, %v6986_v36 }
0x151e   : > { %v14703_v3 = vpop.f32.mrf.mxu1 }
0x1526   : > { %v7150_v2 = vpop.f32.mrf.mxu1 }
0x1527   : > { %v7151_v47 = vadd.f32 %v7150_v2, %v6996_v19 }
0x152e   : > { %v7152_v28 = vpop.f32.mrf.mxu1 }
0x152f   : > { %v7153_v23 = vadd.f32 %v7152_v28, %v7001_v37 }
0x1536   : > { %v7155_v53 = vpop.f32.mrf.mxu1 }
0x1537   : > { %v7156_v38 = vadd.f32 %v7155_v53, %v7006_v12 }
0x153e   : > { %v7157_v29 = vpop.f32.mrf.mxu1 }
0x153f   : > { %v7158_v30 = vadd.f32 %v7157_v29, %v7011_v11 }
0x1546   : > { %v14707_v21 = vpop.f32.mrf.mxu1 }
0x154c   : > { %v7174_v44 = vpop.f32.mrf.mxu2 }
0x154d   : > { %v7175_v51 = vadd.f32 %v7174_v44, %v7146_v57  ;;  %v7203_v20 = vpop.f32.mrf.mxu3 }
0x154e   : > { %v14709_v41 = vpop.f32.mrf.mxu1 }
0x154f   : > { %v7204_v33 = vadd.f32 %v7203_v20, %v7175_v51 }
0x1552   : > { %v7232_v15 = vpop.f32.mrf.mxu0 }
0x1553   : > { %v7233_v17 = vadd.f32 %v7232_v15, %v7204_v33  ;;  %v7161_v15 = vadd.f32 %v14707_v21, %v14705_v40  ;;  %v7163_v40 = vadd.f32 %v14709_v41, %v14711_v24 }
0x1554   : > { %v14713_v31 = vpop.f32.mrf.mxu2 }
0x1555   : > { %v14715_v56 = vpop.f32.mrf.mxu3 }
0x1556   : > { %v7261_v46 = vpop.f32.mrf.mxu1 }
0x1557   : > { %v14717_v5 = vadd.f32 %v7261_v46, %v7233_v17 }
0x155a   : > { %v14719_v32 = vpop.f32.mrf.mxu0 }
0x155c   : > { %v7179_v48 = vpop.f32.mrf.mxu2 }
0x155d   : > { %v7208_v7 = vpop.f32.mrf.mxu3  ;;  %v7180_v55 = vadd.f32 %v7179_v48, %v7151_v47  ;;  %v6991_v47 = vpop.permute.xlu2 %6990 }
0x155e   : > { %v14721_v61 = vpop.f32.mrf.mxu1 }
0x155f   : > { %v7209_v27 = vadd.f32 %v7208_v7, %v7180_v55  ;;  %v7148_v55 = vadd.f32 %v14703_v3, %v6991_v47  ;;  %v7377_v47 = vld [vmem:[%s15616_s14 + $0x8] sm:$0xff] }
0x1561   : > { %v7177_v21 = vadd.f32 %v14713_v31, %v7148_v55 }
0x1562   : > { %v7237_v35 = vpop.f32.mrf.mxu0 }
0x1563   : > { %v7238_v54 = vadd.f32 %v7237_v35, %v7209_v27 }
0x1564   : > { %v7181_v63 = vpop.f32.mrf.mxu2 }
0x1565   : > { %v7210_v18 = vpop.f32.mrf.mxu3  ;;  %v7182_v58 = vadd.f32 %v7181_v63, %v7153_v23 }
0x1566   : > { %v7266_v14 = vpop.f32.mrf.mxu1 }
0x1567   : > { %v7267_v34 = vadd.f32 %v7266_v14, %v7238_v54  ;;  %v7211_v4 = vadd.f32 %v7210_v18, %v7182_v58 }
0x1569   : > { %v7283_v59 = vmax.f32 %v7267_v34, 0.0 }
0x156a   : > { %v7239_v50 = vpop.f32.mrf.mxu0 }
0x156b   : > { %v7240_v16 = vadd.f32 %v7239_v50, %v7211_v4  ;;  %v7294_v42 = vmul.f32 %v14724_v43, %v7283_v59  ;;  %v7206_v4 = vadd.f32 %v14715_v56, %v7177_v21  ;;  %v7281_v56 = vmax.f32 %v14717_v5, 0.0 }
0x156c   : > { %v7184_v1 = vpop.f32.mrf.mxu2 }
0x156d   : > { %v7213_v39 = vpop.f32.mrf.mxu3  ;;  %v7185_v8 = vadd.f32 %v7184_v1, %v7156_v38  ;;  %v7302_v60 = vpack.c.bf16 %v7294_v42, %v7294_v42  ;;  %v7235_v38 = vadd.f32 %v14719_v32, %v7206_v4 }
0x156e   : > { %v7268_v52 = vpop.f32.mrf.mxu1 }
0x156f   : > { %v7269_v49 = vadd.f32 %v7268_v52, %v7240_v16  ;;  %v7214_v13 = vadd.f32 %v7213_v39, %v7185_v8  ;;  %v7318_v2 = vunpack.c.l.b16 %v7302_v60  ;;  %v7264_v41 = vadd.f32 %v14721_v61, %v7235_v38 }
0x1571   : > { %v7284_v45 = vmax.f32 %v7269_v49, 0.0  ;;  %v7282_v8 = vmax.f32 %v7264_v41, 0.0 }
0x1572   : > { %v7242_v6 = vpop.f32.mrf.mxu0 }
0x1573   : > { %v7295_v22 = vmul.f32 %v14724_v43, %v7284_v45  ;;  %v7243_v26 = vadd.f32 %v7242_v6, %v7214_v13  ;;  %v7293_v32 = vmul.f32 %v14724_v43, %v7282_v8  ;;  %v7292_v13 = vmul.f32 %v14724_v43, %v7281_v56 }
0x1574   : > { %v7186_v10 = vpop.f32.mrf.mxu2 }
0x1575   : > { %v7303_v62 = vpack.c.bf16 %v7295_v22, %v7295_v22  ;;  %v7215_v9 = vpop.f32.mrf.mxu3  ;;  %v7187_v53 = vadd.f32 %v7186_v10, %v7158_v30  ;;  %v7301_v61 = vpack.c.bf16 %v7293_v32, %v7293_v32 }
0x1576   : > { %v7271_v25 = vpop.f32.mrf.mxu1 }
0x1577   : > { %v7319_v28 = vunpack.c.l.b16 %v7303_v62  ;;  %v7272_v36 = vadd.f32 %v7271_v25, %v7243_v26  ;;  %v7216_v51 = vadd.f32 %v7215_v9, %v7187_v53  ;;  %v7300_v62 = vpack.c.bf16 %v7292_v13, %v7292_v13 }
0x1578   : > { %v7317_v26 = vunpack.c.l.b16 %v7301_v61 }
0x1579   : > { %v7325_v57 = vpack.c.b16 %v7319_v28, %v7318_v2  ;;  %v7285_v20 = vmax.f32 %v7272_v36, 0.0  ;;  %v7316_v9 = vunpack.c.l.b16 %v7300_v62 }
0x157a   : > { %v7244_v44 = vpop.f32.mrf.mxu0 }
0x157b   : > { %7330 = vrot.lane.b32.xlu2 %v7325_v57, %s15615_s8  ;;  %v7245_v17 = vadd.f32 %v7244_v44, %v7216_v51  ;;  %v7296_v11 = vmul.f32 %v14724_v43, %v7285_v20  ;;  %v7324_v25 = vpack.c.b16 %v7317_v26, %v7316_v9 }
0x157c   : > { %v7189_v33 = vpop.f32.mrf.mxu2 }
0x157d   : > { %v7190_v46 = vadd.f32 %v7189_v33, %v7161_v15  ;;  %v7218_v19 = vpop.f32.mrf.mxu3  ;;  %v7304_v35 = vpack.c.bf16 %v7296_v11, %v7296_v11  ;;  %v7382_v11 = vld [vmem:[%s15616_s14 + $0x30] sm:$0xff] }
0x157e   : > { %v7273_v29 = vpop.f32.mrf.mxu1 }
0x157f   : > { %v7274_v12 = vadd.f32 %v7273_v29, %v7245_v17  ;;  %v7219_v27 = vadd.f32 %v7218_v19, %v7190_v46  ;;  %v7320_v14 = vunpack.c.l.b16 %v7304_v35  ;;  %v7376_v17 = vld [vmem:[%s15616_s14] sm:$0xff]  ;;  %v7379_v29 = vld [vmem:[%s15616_s14 + $0x18] sm:$0xff]  ;;  %v7378_v46 = vld [vmem:[%s15616_s14 + $0x10] sm:$0xff] }
0x1580   : > { %v7381_v19 = vld [vmem:[%s15616_s14 + $0x28] sm:$0xff]  ;;  %v7380_v35 = vld [vmem:[%s15616_s14 + $0x20] sm:$0xff] }
0x1581   : > { %v7286_v48 = vmax.f32 %v7274_v12, 0.0 }
0x1582   : > { %v7247_v7 = vpop.f32.mrf.mxu0 }
0x1583   : > { %v7297_v37 = vmul.f32 %v14724_v43, %v7286_v48  ;;  %v7248_v54 = vadd.f32 %v7247_v7, %v7219_v27 }
0x1584   : > { %v7191_v63 = vpop.f32.mrf.mxu2 }
0x1585   : > { %v7305_v23 = vpack.c.bf16 %v7297_v37, %v7297_v37  ;;  %v7192_v34 = vadd.f32 %v7191_v63, %v7163_v40  ;;  %v7220_v59 = vpop.f32.mrf.mxu3  ;;  %v7383_v63 = vld [vmem:[%s15616_s14 + $0x38] sm:$0xff] }
0x1586   : > { %v7276_v18 = vpop.f32.mrf.mxu1 }
0x1587   : > { %v7321_v58 = vunpack.c.l.b16 %v7305_v23  ;;  %v7277_v50 = vadd.f32 %v7276_v18, %v7248_v54  ;;  %v7221_v16 = vadd.f32 %v7220_v59, %v7192_v34 }
0x1589   : > { %v7326_v3 = vpack.c.b16 %v7321_v58, %v7320_v14  ;;  %v7287_v39 = vmax.f32 %v7277_v50, 0.0 }
0x158a   : > { %v7249_v1 = vpop.f32.mrf.mxu0 }
0x158b   : > { %7332 = vrot.lane.b32.xlu1 %v7326_v3, %s15615_s8  ;;  %v7250_v24 = vadd.f32 %v7249_v1, %v7221_v16  ;;  %v7298_v52 = vmul.f32 %v14724_v43, %v7287_v39 }
0x158d   : > { %v7306_v45 = vpack.c.bf16 %v7298_v52, %v7298_v52 }
0x158e   : > { %v7278_v31 = vpop.f32.mrf.mxu1 }
0x158f   : > { %v7279_v42 = vadd.f32 %v7278_v31, %v7250_v24  ;;  %v7322_v22 = vunpack.c.l.b16 %v7306_v45 }
0x1591   : > { %v7288_v49 = vmax.f32 %v7279_v42, 0.0 }
0x1593   : > { %v7299_v6 = vmul.f32 %v14724_v43, %v7288_v49 }
0x1595   : > { %v7307_v60 = vpack.c.bf16 %v7299_v6, %v7299_v6 }
0x1597   : > { %v7323_v10 = vunpack.c.l.b16 %v7307_v60 }
0x1599   : > { %v7327_v30 = vpack.c.b16 %v7323_v10, %v7322_v22 }
0x159b   : > { %7334 = vrot.lane.b32.xlu0 %v7327_v30, %s15615_s8 }
0x15a3   : > { %7328 = vrot.lane.b32.xlu0 %v7324_v25, %s15615_s8 }
0x15d5   : > { %v7331_v5 = vpop.permute.xlu2 %7330 }
0x15d6   : > { %v7339_v2 = vsel %vm6832_vm10, 0, %v7331_v5 }
0x15d7   : > { %v14750_v28 = vsel %vm6841_vm11, %v7339_v2, 0 }
0x15d8   : > { %7391 = vrot.lane.b32.xlu0 %v14750_v28, %s15598_s3 }
0x15fd   : > { %v7333_v43 = vpop.permute.xlu1 %7332 }
0x15fe   : > { %v7341_v53 = vsel %vm6832_vm10, 0, %v7333_v43 }
0x15ff   : > { %v14756_v36 = vsel %vm6841_vm11, %v7341_v53, 0 }
0x1600   : > { %7417 = vrot.lane.b32.xlu0 %v14756_v36, %s15608_s0  ;;  %7393 = vrot.lane.b32.xlu2 %v14756_v36, %s15598_s3 }
0x1608   : > { %7465 = vrot.lane.b32.xlu0 %v14756_v36, %s15607_s6  ;;  %7441 = vrot.lane.b32.xlu2 %v14756_v36, %s15610_s9 }
0x160d   : > { %v7335_v57 = vpop.permute.xlu0 %7334 }
0x160e   : > { %v7343_v44 = vsel %vm6832_vm10, 0, %v7335_v57 }
0x160f   : > { %v14768_v51 = vsel %vm6841_vm11, %v7343_v44, 0 }
0x1610   : > { %7395 = vrot.lane.b32.xlu1 %v14768_v51, %s15598_s3  ;;  %7463 = vrot.lane.b32.xlu0 %v14750_v28, %s15607_s6 }
0x1611   : > { %7439 = vrot.lane.b32.xlu2 %v14750_v28, %s15610_s9 }
0x1615   : > { %v7329_v20 = vpop.permute.xlu0 %7328 }
0x1616   : > { %v7337_v33 = vsel %vm6832_vm10, 0, %v7329_v20 }
0x1617   : > { %v14778_v15 = vsel %vm6841_vm11, %v7337_v33, 0 }
0x1618   : > { %7389 = vrot.lane.b32.xlu1 %v14778_v15, %s15598_s3  ;;  %7461 = vrot.lane.b32.xlu0 %v14778_v15, %s15607_s6 }
0x1619   : > { %7437 = vrot.lane.b32.xlu2 %v14778_v15, %s15610_s9 }
0x1620   : > { %7415 = vrot.lane.b32.xlu1 %v14750_v28, %s15608_s0  ;;  %7401 = vrot.lane.b32.xlu0 %v14778_v15, %s15597_s2 }
0x1621   : > { %7403 = vrot.lane.b32.xlu2 %v14750_v28, %s15597_s2 }
0x1628   : > { %7413 = vrot.lane.b32.xlu1 %v14778_v15, %s15608_s0  ;;  %7467 = vrot.lane.b32.xlu0 %v14768_v51, %s15607_s6  ;;  %s15529_s6 = smov 119  }
0x1629   : > { %7419 = vrot.lane.b32.xlu2 %v14768_v51, %s15608_s0 }
0x1630   : > { %7405 = vrot.lane.b32.xlu1 %v14756_v36, %s15597_s2  ;;  %7431 = vrot.lane.b32.xlu0 %v14768_v51, %s15611_s11 }
0x1631   : > { %7443 = vrot.lane.b32.xlu2 %v14768_v51, %s15610_s9 }
0x1638   : > { %7429 = vrot.lane.b32.xlu1 %v14756_v36, %s15611_s11  ;;  %7475 = vrot.lane.b32.xlu0 %v14750_v28, %s15612_s13 }
0x1639   : > { %7477 = vrot.lane.b32.xlu2 %v14756_v36, %s15612_s13 }
0x1640   : > { %7407 = vrot.lane.b32.xlu1 %v14768_v51, %s15597_s2  ;;  %7473 = vrot.lane.b32.xlu0 %v14778_v15, %s15612_s13 }
0x1641   : > { %7453 = vrot.lane.b32.xlu2 %v14756_v36, %s15599_s5 }
0x1648   : > { %7479 = vrot.lane.b32.xlu1 %v14768_v51, %s15612_s13  ;;  %7487 = vperm.xlu0 %11924, %v7376_v17   ;;  %s15618_s13 = sld [smem:[#allocation28_spill]] }
0x1649   : > { %7451 = vrot.lane.b32.xlu2 %v14750_v28, %s15599_s5 }
0x164a   : > { %v7392_v7 = vpop.permute.xlu0 %7391 }
0x1650   : > { %7455 = vrot.lane.b32.xlu1 %v14768_v51, %s15599_s5  ;;  %7502 = vperm.xlu0 %11924, %v7379_v29  }
0x1651   : > { %7449 = vrot.lane.b32.xlu2 %v14778_v15, %s15599_s5  ;;  %s15617_s5 = sld [smem:[#allocation26_spill]] }
0x1657   : > { %v11096_v1 = vld [vmem:[%s15617_s5] sm:$0xf]  ;;  %v11756_v38 = vld [vmem:[%s15617_s5 + $0x10] sm:$0xf0]  ;;  %v11116_v31 = vld [vmem:[%s15617_s5 + $0x28] sm:$0xf] }
0x1658   : > { %7427 = vrot.lane.b32.xlu1 %v14750_v28, %s15611_s11  ;;  %7517 = vperm.xlu0 %11924, %v7382_v11   ;;  %v11097_v16 = vor.u32 %v11756_v38, %v11096_v1  ;;  %v11761_v52 = vld [vmem:[%s15617_s5 + $0x38] sm:$0xf0]  ;;  %v11136_v6 = vld [vmem:[%s15617_s5 + $0x50] sm:$0xf]  ;;  %v11766_v32 = vld [vmem:[%s15617_s5 + $0x60] sm:$0xf0] }
0x1659   : > { %7497 = vperm.xlu2 %12026, %v7378_v46   ;;  %v11117_v42 = vor.u32 %v11761_v52, %v11116_v31  ;;  %v11754_v60 = vld [vmem:[%s15617_s5 + $0x4] sm:$0xf]  ;;  %v11098_v13 = vld [vmem:[%s15617_s5 + $0x14] sm:$0xf0]  ;;  %v11137_v10 = vor.u32 %v11766_v32, %v11136_v6  ;;  %v11771_v5 = vld [vmem:[%s15617_s5 + $0x88] sm:$0xf0] }
0x165a   : > { %v7394_v12 = vpop.permute.xlu2 %7393  ;;  %v11101_v61 = vor.u32 %v11754_v60, %v11098_v13  ;;  %v11156_v25 = vld [vmem:[%s15617_s5 + $0x78] sm:$0xf]  ;;  %v11759_v2 = vld [vmem:[%s15617_s5 + $0x2c] sm:$0xf]  ;;  %v11106_v53 = vld [vmem:[%s15617_s5 + $0x1c] sm:$0xf0] }
0x165b   : > { %v11755_v43 = vld [vmem:[%s15617_s5 + $0xc] sm:$0xf]  ;;  %v11157_v57 = vor.u32 %v11771_v5, %v11156_v25  ;;  %v11757_v20 = vld [vmem:[%s15617_s5 + $0x18] sm:$0xf0]  ;;  %v11764_v29 = vld [vmem:[%s15617_s5 + $0x54] sm:$0xf] }
0x165c   : > { %v11109_v33 = vor.u32 %v11755_v43, %v11106_v53  ;;  %v11138_v11 = vld [vmem:[%s15617_s5 + $0x64] sm:$0xf0]  ;;  %v11112_v46 = vld [vmem:[%s15617_s5 + $0x10] sm:$0xf]  ;;  %v11768_v1 = vld [vmem:[%s15617_s5 + $0x70] sm:$0xf0] }
0x165d   : > { %v11770_v38 = vld [vmem:[%s15617_s5 + $0x84] sm:$0xf] }
0x1660   : > { %7425 = vrot.lane.b32.xlu1 %v14778_v15, %s15611_s11  ;;  %s15619_s11 = sld [smem:[#allocation29_spill]] }
0x1661   : > { %7512 = vperm.xlu2 %12026, %v7381_v19   ;;  %v11760_v19 = vld [vmem:[%s15617_s5 + $0x34] sm:$0xf] }
0x1662   : > { %v7442_v48 = vpop.permute.xlu2 %7441 }
0x1668   : > { %7492 = vperm.xlu1 %11925, %v7377_v47   ;;  %v11141_v47 = vor.u32 %v11764_v29, %v11138_v11 }
0x166b   : > { %v7440_v55 = vpop.permute.xlu2 %7439 }
0x1670   : > { %7507 = vperm.xlu1 %11925, %v7380_v35   ;;  %v11762_v35 = vld [vmem:[%s15617_s5 + $0x40] sm:$0xf0] }
0x1672   : > { %v7418_v27 = vpop.permute.xlu0 %7417 }
0x1673   : > { %v7438_v37 = vpop.permute.xlu2 %7437 }
0x1678   : > { %7522 = vperm.xlu1 %11925, %v7383_v63   ;;  %v11769_v63 = vld [vmem:[%s15617_s5 + $0x7c] sm:$0xf] }
0x167a   : > { %v7466_v40 = vpop.permute.xlu0 %7465 }
0x167b   : > { %v7404_v21 = vpop.permute.xlu2 %7403 }
0x1682   : > { %v7464_v23 = vpop.permute.xlu0 %7463  ;;  %v7396_v54 = vpop.permute.xlu1 %7395 }
0x1683   : > { %v7420_v18 = vpop.permute.xlu2 %7419  ;;  %7637 = vmatpush.bf16.msrb.mxu2 %v7396_v54  ;;  %v11765_v54 = vld [vmem:[%s15617_s5 + $0x5c] sm:$0xf] }
0x1684   : > { %7666 = vmatpush.bf16.msrb.mxu3 %v7420_v18  ;;  %v11146_v18 = vld [vmem:[%s15617_s5 + $0x6c] sm:$0xf0] }
0x1687   : > { %7638 = vmatpush.bf16.msrb.mxu2 %v7394_v12  ;;  %v11758_v12 = vld [vmem:[%s15617_s5 + $0x20] sm:$0xf0] }
0x1688   : > { %7667 = vmatpush.bf16.msrb.mxu3 %v7418_v27 }
0x168a   : > { %v7462_v14 = vpop.permute.xlu0 %7461  ;;  %v7390_v58 = vpop.permute.xlu1 %7389 }
0x168b   : > { %v7444_v34 = vpop.permute.xlu2 %7443  ;;  %7639 = vmatpush.bf16.msrb.mxu2 %v7392_v7  ;;  %v11113_v7 = vor.u32 %v11758_v12, %v11112_v46  ;;  %v14891_v46 = vld [vmem:[%s15618_s13] ss:$0 sm:$0xff]  ;;  %s15620_s13 = sld [smem:[#allocation31_spill]] }
0x168c   : > { %7695 = vmatpush.bf16.msra.mxu0 %v7444_v34  ;;  %v11144_v34 = vld [vmem:[%s15617_s5 + $0x58] sm:$0xf] }
0x168f   : > { %7640 = vmatpush.bf16.msrb.mxu2 %v7390_v58 }
0x1690   : > { %7696 = vmatpush.bf16.msra.mxu0 %v7442_v48  ;;  %v11126_v48 = vld [vmem:[%s15617_s5 + $0x44] sm:$0xf0] }
0x1691   : > { %v11129_v27 = vor.u32 %v11760_v19, %v11126_v48 }
0x1692   : > { %v7402_v50 = vpop.permute.xlu0 %7401  ;;  %v7416_v4 = vpop.permute.xlu1 %7415 }
0x1693   : > { %7641 = vmatpush.bf16.msrb.mxu2 %v14768_v51  ;;  %7668 = vmatpush.bf16.msrb.mxu3 %v7416_v4  ;;  %v7478_v8 = vpop.permute.xlu2 %7477  ;;  %v11104_v51 = vld [vmem:[%s15617_s5 + $0x8] sm:$0xf]  ;;  %v11149_v4 = vor.u32 %v11765_v54, %v11146_v18 }
0x1694   : > { %7697 = vmatpush.bf16.msra.mxu0 %v7440_v55  ;;  %v11105_v17 = vor.u32 %v11757_v20, %v11104_v51  ;;  %v11124_v55 = vld [vmem:[%s15617_s5 + $0x30] sm:$0xf] }
0x1697   : > { %7642 = vmatpush.bf16.msrb.mxu2 %v14756_v36 }
0x1698   : > { %7698 = vmatpush.bf16.msra.mxu0 %v7438_v37  ;;  %v11125_v37 = vor.u32 %v11762_v35, %v11124_v55 }
0x169a   : > { %v7468_v3 = vpop.permute.xlu0 %7467  ;;  %v7414_v59 = vpop.permute.xlu1 %7413 }
0x169b   : > { %7643 = vmatpush.bf16.msrb.mxu2 %v14750_v28  ;;  %7669 = vmatpush.bf16.msrb.mxu3 %v7414_v59  ;;  %v7454_v56 = vpop.permute.xlu2 %7453  ;;  %v11118_v28 = vld [vmem:[%s15617_s5 + $0x3c] sm:$0xf0] }
0x169c   : > { %7724 = vmatpush.bf16.msrb.mxu1 %v7468_v3  ;;  %v11121_v44 = vor.u32 %v11759_v2, %v11118_v28  ;;  %v11152_v59 = vld [vmem:[%s15617_s5 + $0x60] sm:$0xf] }
0x169f   : > { %7644 = vmatpush.bf16.msrb.mxu2 %v14778_v15 }
0x16a0   : > { %7725 = vmatpush.bf16.msrb.mxu1 %v7466_v40  ;;  %v11158_v40 = vld [vmem:[%s15617_s5 + $0x8c] sm:$0xf0] }
0x16a2   : > { %v7432_v39 = vpop.permute.xlu0 %7431  ;;  %7645 = vmatmul.bf16.vlgmr.msrb.gmra.mxu2 %v11097_v16  ;;  %v7406_v41 = vpop.permute.xlu1 %7405  ;;  %v11166_v16 = vld [vmem:[%s15617_s5 + $0x94] sm:$0xf0] }
0x16a3   : > { %7699 = vmatpush.bf16.msra.mxu0 %v7432_v39  ;;  %v7452_v62 = vpop.permute.xlu2 %7451  ;;  %v11153_v39 = vor.u32 %v11768_v1, %v11152_v59  ;;  %v11169_v31 = vor.u32 %v11770_v38, %v11166_v16 }
0x16a4   : > { %7726 = vmatpush.bf16.msrb.mxu1 %v7464_v23  ;;  %v11763_v23 = vld [vmem:[%s15617_s5 + $0x48] sm:$0xf0] }
0x16a8   : > { %7727 = vmatpush.bf16.msrb.mxu1 %v7462_v14  ;;  %v11161_v14 = vor.u32 %v11769_v63, %v11158_v40 }
0x16aa   : > { %v7430_v24 = vpop.permute.xlu1 %7429  ;;  %v7476_v22 = vpop.permute.xlu0 %7475 }
0x16ab   : > { %7700 = vmatpush.bf16.msra.mxu0 %v7430_v24  ;;  %v7450_v36 = vpop.permute.xlu2 %7449  ;;  %v11772_v24 = vld [vmem:[%s15617_s5 + $0x90] sm:$0xf0] }
0x16b2   : > { %7650 = vmatmul.bf16.gmra.mxu2 %v11117_v42  ;;  %v7408_v49 = vpop.permute.xlu1 %7407  ;;  %v7474_v26 = vpop.permute.xlu0 %7473  ;;  %v11172_v42 = vld [vmem:[%s15617_s5 + $0x88] sm:$0xf] }
0x16b3   : > { %7670 = vmatpush.bf16.msrb.mxu3 %v7408_v49  ;;  %v7498_v12 = vpop.permute.xlu2 %7497 }
0x16b7   : > { %7671 = vmatpush.bf16.msrb.mxu3 %v7406_v41  ;;  %v11164_v41 = vld [vmem:[%s15617_s5 + $0x80] sm:$0xf] }
0x16b8   : > { %v11165_v52 = vor.u32 %v11772_v24, %v11164_v41 }
0x16ba   : > { %v7480_v45 = vpop.permute.xlu1 %7479 }
0x16bb   : > { %7672 = vmatpush.bf16.msrb.mxu3 %v7404_v21  ;;  %7757 = vmatpush.bf16.msra.mxu2 %v7480_v45  ;;  %v11132_v21 = vld [vmem:[%s15617_s5 + $0x38] sm:$0xf] }
0x16bc   : > { %v11133_v58 = vor.u32 %v11763_v23, %v11132_v21 }
0x16bf   : > { %7673 = vmatpush.bf16.msrb.mxu3 %v7402_v50  ;;  %7758 = vmatpush.bf16.msra.mxu2 %v7478_v8  ;;  %v11767_v50 = vld [vmem:[%s15617_s5 + $0x68] sm:$0xf0]  ;;  %v11773_v8 = vld [vmem:[%s15617_s5 + $0x98] sm:$0xf0]  ;;  %s15623_s5 = smov 124  }
0x16c0   : > { %v11145_v3 = vor.u32 %v11767_v50, %v11144_v34  ;;  %v11173_v49 = vor.u32 %v11773_v8, %v11172_v42 }
0x16c2   : > { %7655 = vmatmul.bf16.gmra.mxu2 %v11137_v10  ;;  %7674 = vmatmul.bf16.vlgmr.msrb.gmra.mxu3 %v11101_v61  ;;  %v7456_v30 = vpop.permute.xlu1 %7455 }
0x16c3   : > { %7728 = vmatpush.bf16.msrb.mxu1 %v7456_v30  ;;  %7759 = vmatpush.bf16.msra.mxu2 %v7476_v22 }
0x16c7   : > { %7729 = vmatpush.bf16.msrb.mxu1 %v7454_v56  ;;  %7760 = vmatpush.bf16.msra.mxu2 %v7474_v26  ;;  %v7488_v26 = vpop.permute.xlu0 %7487 }
0x16ca   : > { %v7428_v9 = vpop.permute.xlu1 %7427 }
0x16cb   : > { %7701 = vmatpush.bf16.msra.mxu0 %v7428_v9  ;;  %7730 = vmatpush.bf16.msrb.mxu1 %v7452_v62 }
0x16cf   : > { %7731 = vmatpush.bf16.msrb.mxu1 %v7450_v36  ;;  %v7503_v18 = vpop.permute.xlu0 %7502 }
0x16d2   : > { %7660 = vmatmul.bf16.gmra.mxu2 %v11157_v57  ;;  %7679 = vmatmul.bf16.gmra.mxu3 %v11121_v44  ;;  %v7426_v15 = vpop.permute.xlu1 %7425 }
0x16d3   : > { %7702 = vmatpush.bf16.msra.mxu0 %v7426_v15  ;;  %7732 = vmatmul.bf16.vlgmr.msrb.gmra.mxu1 %v11109_v33 }
0x16d6   : > { %7703 = vmatmul.bf16.vlgmr.msra.gmra.mxu0 %v11105_v17 }
0x16da   : > { %v7493_v36 = vpop.permute.xlu1 %7492 }
0x16e2   : > { %7684 = vmatmul.bf16.gmra.mxu3 %v11141_v47  ;;  %11174 = vmatmul.msk.bf16.vlgmr.msra.gmra.mxu2 %vm7123_vm12, %v11113_v7 }
0x16e3   : > { %7737 = vmatmul.bf16.gmra.mxu1 %v11129_v27 }
0x16e6   : > { %7708 = vmatmul.bf16.gmra.mxu0 %v11125_v37 }
0x16f2   : > { %7689 = vmatmul.bf16.gmra.mxu3 %v11161_v14  ;;  %11175 = vmatmul.msk.bf16.gmra.mxu2 %vm7123_vm12, %v11133_v58 }
0x16f3   : > { %7742 = vmatmul.bf16.gmra.mxu1 %v11149_v4 }
0x16f6   : > { %7713 = vmatmul.bf16.gmra.mxu0 %v11145_v3 }
0x1702   : > { %11176 = vmatmul.msk.bf16.gmra.mxu2 %vm7123_vm12, %v11153_v39 }
0x1703   : > { %7747 = vmatmul.bf16.gmra.mxu1 %v11169_v31  ;;  %v7508_v31 = vpop.permute.xlu1 %7507 }
0x1706   : > { %7718 = vmatmul.bf16.gmra.mxu0 %v11165_v52 }
0x1712   : > { %11177 = vmatmul.msk.bf16.gmra.mxu2 %vm7123_vm12, %v11173_v49 }
0x1725   : > { %v7646_v56 = vpop.f32.mrf.mxu2 }
0x1726   : > { %v7647_v25 = vadd.f32 %v7646_v56, %v7488_v26 }
0x172d   : > { %v7648_v45 = vpop.f32.mrf.mxu2 }
0x172e   : > { %v7649_v44 = vadd.f32 %v7648_v45, %v7493_v36 }
0x1735   : > { %v7651_v6 = vpop.f32.mrf.mxu2 }
0x1736   : > { %v7652_v48 = vadd.f32 %v7651_v6, %v7498_v12 }
0x173d   : > { %v7653_v32 = vpop.f32.mrf.mxu2 }
0x173e   : > { %v7654_v14 = vadd.f32 %v7653_v32, %v7503_v18 }
0x1745   : > { %v7656_v60 = vpop.f32.mrf.mxu2  ;;  %v7675_v13 = vpop.f32.mrf.mxu3 }
0x1746   : > { %v7676_v28 = vadd.f32 %v7675_v13, %v7647_v25  ;;  %v7657_v42 = vadd.f32 %v7656_v60, %v7508_v31 }
0x174d   : > { %v14884_v22 = vpop.f32.mrf.mxu2  ;;  %v7677_v62 = vpop.f32.mrf.mxu3 }
0x174e   : > { %v7678_v33 = vadd.f32 %v7677_v62, %v7649_v44 }
0x1750   : > { %v7733_v61 = vpop.f32.mrf.mxu1 }
0x1753   : > { %v7704_v10 = vpop.f32.mrf.mxu0 }
0x1754   : > { %v7705_v43 = vadd.f32 %v7704_v10, %v7676_v28 }
0x1755   : > { %v14886_v30 = vpop.f32.mrf.mxu2  ;;  %v7680_v53 = vpop.f32.mrf.mxu3 }
0x1756   : > { %v7734_v51 = vadd.f32 %v7733_v61, %v7705_v43  ;;  %v7681_v35 = vadd.f32 %v7680_v53, %v7652_v48 }
0x1758   : > { %v7735_v2 = vpop.f32.mrf.mxu1 }
0x175b   : > { %v7706_v9 = vpop.f32.mrf.mxu0 }
0x175c   : > { %v7707_v29 = vadd.f32 %v7706_v9, %v7678_v33  ;;  %v7513_v9 = vpop.permute.xlu2 %7512 }
0x175d   : > { %v14888_v5 = vpop.f32.mrf.mxu2  ;;  %v7682_v19 = vpop.f32.mrf.mxu3  ;;  %v7659_v25 = vadd.f32 %v14884_v22, %v7513_v9 }
0x175e   : > { %v7736_v47 = vadd.f32 %v7735_v2, %v7707_v29  ;;  %v7683_v3 = vadd.f32 %v7682_v19, %v7654_v14 }
0x1760   : > { %v7738_v17 = vpop.f32.mrf.mxu1 }
0x1763   : > { %v7709_v57 = vpop.f32.mrf.mxu0 }
0x1764   : > { %v7710_v63 = vadd.f32 %v7709_v57, %v7681_v35 }
0x1765   : > { %v7762_v20 = vpop.f32.mrf.mxu2  ;;  %v7685_v50 = vpop.f32.mrf.mxu3 }
0x1766   : > { %v7763_v15 = vadd.f32 %v7762_v20, %v7734_v51  ;;  %v7739_v58 = vadd.f32 %v7738_v17, %v7710_v63  ;;  %v7686_v56 = vadd.f32 %v7685_v50, %v7657_v42  ;;  %v7518_v17 = vpop.permute.xlu0 %7517  ;;  %v7523_v63 = vpop.permute.xlu1 %7522 }
0x1768   : > { %v7782_v11 = vmax.f32 %v7763_v15, 0.0  ;;  %v7740_v21 = vpop.f32.mrf.mxu1 }
0x176a   : > { %v7793_v27 = vmul.f32 %v14891_v46, %v7782_v11  ;;  %v7662_v11 = vadd.f32 %v14886_v30, %v7518_v17 }
0x176b   : > { %v7711_v7 = vpop.f32.mrf.mxu0 }
0x176c   : > { %v7801_v23 = vpack.c.bf16 %v7793_v27, %v7793_v27  ;;  %v7712_v39 = vadd.f32 %v7711_v7, %v7683_v3 }
0x176d   : > { %v7764_v55 = vpop.f32.mrf.mxu2  ;;  %v7687_v32 = vpop.f32.mrf.mxu3 }
0x176e   : > { %v7765_v37 = vadd.f32 %v7764_v55, %v7736_v47  ;;  %v7817_v59 = vunpack.c.l.b16 %v7801_v23  ;;  %v7741_v8 = vadd.f32 %v7740_v21, %v7712_v39  ;;  %v7688_v53 = vadd.f32 %v7687_v32, %v7659_v25 }
0x176f   : > { %v7664_v21 = vadd.f32 %v14888_v5, %v7523_v63 }
0x1770   : > { %v7783_v40 = vmax.f32 %v7765_v37, 0.0  ;;  %v7743_v52 = vpop.f32.mrf.mxu1 }
0x1772   : > { %v7794_v54 = vmul.f32 %v14891_v46, %v7783_v40 }
0x1773   : > { %v7714_v16 = vpop.f32.mrf.mxu0 }
0x1774   : > { %v7802_v34 = vpack.c.bf16 %v7794_v54, %v7794_v54  ;;  %v7715_v13 = vadd.f32 %v7714_v16, %v7686_v56 }
0x1775   : > { %v7767_v4 = vpop.f32.mrf.mxu2  ;;  %v7690_v33 = vpop.f32.mrf.mxu3 }
0x1776   : > { %v7818_v1 = vunpack.c.l.b16 %v7802_v34  ;;  %v7768_v38 = vadd.f32 %v7767_v4, %v7739_v58  ;;  %v7744_v2 = vadd.f32 %v7743_v52, %v7715_v13  ;;  %v7691_v19 = vadd.f32 %v7690_v33, %v7662_v11 }
0x1778   : > { %v7825_v41 = vpack.c.b16 %v7818_v1, %v7817_v59  ;;  %v7784_v24 = vmax.f32 %v7768_v38, 0.0  ;;  %v7745_v43 = vpop.f32.mrf.mxu1 }
0x177a   : > { %7829 = vrot.lane.b32.xlu2 %v7825_v41, %s15615_s8  ;;  %v7795_v45 = vmul.f32 %v14891_v46, %v7784_v24 }
0x177b   : > { %v7716_v61 = vpop.f32.mrf.mxu0 }
0x177c   : > { %v7803_v62 = vpack.c.bf16 %v7795_v45, %v7795_v45  ;;  %v7717_v51 = vadd.f32 %v7716_v61, %v7688_v53 }
0x177d   : > { %v7769_v49 = vpop.f32.mrf.mxu2  ;;  %v7692_v40 = vpop.f32.mrf.mxu3 }
0x177e   : > { %v7770_v6 = vadd.f32 %v7769_v49, %v7741_v8  ;;  %v7819_v36 = vunpack.c.l.b16 %v7803_v62  ;;  %v7746_v12 = vadd.f32 %v7745_v43, %v7717_v51  ;;  %v7693_v14 = vadd.f32 %v7692_v40, %v7664_v21 }
0x1780   : > { %v7785_v10 = vmax.f32 %v7770_v6, 0.0  ;;  %v7748_v7 = vpop.f32.mrf.mxu1 }
0x1782   : > { %v7796_v26 = vmul.f32 %v14891_v46, %v7785_v10 }
0x1783   : > { %v7719_v29 = vpop.f32.mrf.mxu0 }
0x1784   : > { %v7804_v28 = vpack.c.bf16 %v7796_v26, %v7796_v26  ;;  %v7720_v55 = vadd.f32 %v7719_v29, %v7691_v19 }
0x1785   : > { %v7772_v60 = vpop.f32.mrf.mxu2 }
0x1786   : > { %v7820_v57 = vunpack.c.l.b16 %v7804_v28  ;;  %v7773_v44 = vadd.f32 %v7772_v60, %v7744_v2  ;;  %v7749_v23 = vadd.f32 %v7748_v7, %v7720_v55 }
0x1788   : > { %v7826_v20 = vpack.c.b16 %v7820_v57, %v7819_v36  ;;  %v7786_v15 = vmax.f32 %v7773_v44, 0.0  ;;  %v7750_v59 = vpop.f32.mrf.mxu1 }
0x178a   : > { %7831 = vrot.lane.b32.xlu0 %v7826_v20, %s15615_s8  ;;  %v7797_v48 = vmul.f32 %v14891_v46, %v7786_v15 }
0x178b   : > { %v7721_v18 = vpop.f32.mrf.mxu0 }
0x178c   : > { %v7805_v27 = vpack.c.bf16 %v7797_v48, %v7797_v48  ;;  %v7722_v4 = vadd.f32 %v7721_v18, %v7693_v14  ;;  %v11184_v18 = vld [vmem:[%s15619_s11 + $0x8] sm:$0xf] }
0x178d   : > { %v7774_v22 = vpop.f32.mrf.mxu2 }
0x178e   : > { %v7775_v47 = vadd.f32 %v7774_v22, %v7746_v12  ;;  %v7821_v58 = vunpack.c.l.b16 %v7805_v27  ;;  %v7751_v38 = vadd.f32 %v7750_v59, %v7722_v4 }
0x1790   : > { %v7787_v35 = vmax.f32 %v7775_v47, 0.0 }
0x1792   : > { %v7798_v37 = vmul.f32 %v14891_v46, %v7787_v35 }
0x1794   : > { %v7806_v54 = vpack.c.bf16 %v7798_v37, %v7798_v37 }
0x1795   : > { %v7777_v30 = vpop.f32.mrf.mxu2 }
0x1796   : > { %v7822_v34 = vunpack.c.l.b16 %v7806_v54  ;;  %v7778_v50 = vadd.f32 %v7777_v30, %v7749_v23  ;;  %v11775_v30 = vld [vmem:[%s15619_s11 + $0x8] sm:$0x70] }
0x1797   : > { %v11185_v14 = vor.u32 %v11775_v30, %v11184_v18 }
0x1798   : > { %v7827_v3 = vpack.c.b16 %v7822_v34, %v7821_v58  ;;  %v7788_v1 = vmax.f32 %v7778_v50, 0.0  ;;  %v7990_v58 = vsel %vm7988_vm13, 4294967295, %v12243_v0 }
0x1799   : > { %v7991_v34 = vsel %vm7989_vm14, %v7990_v58, 0  ;;  %v8061_v58 = vld [vmem:[%s15620_s13 + $0x28] sm:$0xff] }
0x179a   : > { %7833 = vrot.lane.b32.xlu1 %v7827_v3, %s15615_s8  ;;  %v7799_v39 = vmul.f32 %v14891_v46, %v7788_v1  ;;  %v7993_v50 = vand.u32 %v11185_v14, %v7991_v34  ;;  %v11774_v3 = vld [vmem:[%s15619_s11] sm:$0xff]  ;;  %v8062_v14 = vld [vmem:[%s15620_s13 + $0x30] sm:$0xff]  ;;  %s15626_s11 = smov 123  }
0x179b   : > { %v8060_v34 = vld [vmem:[%s15620_s13 + $0x20] sm:$0xff] }
0x179c   : > { %v7807_v24 = vpack.c.bf16 %v7799_v39, %v7799_v39  ;;  %8001 = vmatpush.bf16.msra.mxu3 %v7993_v50  ;;  %v8056_v50 = vld [vmem:[%s15620_s13] sm:$0xff] }
0x179d   : > { %v7779_v16 = vpop.f32.mrf.mxu2 }
0x179e   : > { %v7780_v41 = vadd.f32 %v7779_v16, %v7751_v38  ;;  %v7823_v42 = vunpack.c.l.b16 %v7807_v24 }
0x17a0   : > { %v7789_v5 = vmax.f32 %v7780_v41, 0.0  ;;  %8002 = vmatpush.bf16.msra.mxu3 %v11774_v3 }
0x17a2   : > { %v7800_v31 = vmul.f32 %v14891_v46, %v7789_v5 }
0x17a4   : > { %v7808_v52 = vpack.c.bf16 %v7800_v31, %v7800_v31 }
0x17a6   : > { %v7824_v8 = vunpack.c.l.b16 %v7808_v52 }
0x17a8   : > { %v7828_v49 = vpack.c.b16 %v7824_v8, %v7823_v42 }
0x17aa   : > { %7835 = vrot.lane.b32.xlu0 %v7828_v49, %s15615_s8  ;;  %s15531_s8 = smov 123  }
0x17d4   : > { %v7830_v56 = vpop.permute.xlu2 %7829 }
0x17d5   : > { %v7838_v45 = vsel %vm6832_vm10, 0, %v7830_v56 }
0x17d6   : > { %v7845_v6 = vsel %vm6841_vm11, %v7838_v45, 0 }
0x17d7   : > { %v7857_v32 = vunpack.c.l.bf16 %v7845_v6  ;;  %v7858_v13 = vunpack.c.h.bf16 %v7845_v6 }
0x17d9   : > { %v12077_v10 = vpack.i.bf16 %v7858_v13, %v7857_v32 }
0x17db   : > { %12078 = vrot.lane.b32.xlu2 %v12077_v10, %s15598_s3 }
0x17fc   : > { %v7832_v61 = vpop.permute.xlu0 %7831 }
0x17fd   : > { %v7840_v62 = vsel %vm6832_vm10, 0, %v7832_v61 }
0x17fe   : > { %v7847_v46 = vsel %vm6841_vm11, %v7840_v62, 0 }
0x17ff   : > { %v7859_v26 = vunpack.c.l.bf16 %v7847_v46  ;;  %v7860_v9 = vunpack.c.h.bf16 %v7847_v46 }
0x1801   : > { %v12082_v25 = vpack.i.bf16 %v7860_v9, %v7859_v26 }
0x1803   : > { %12083 = vrot.lane.b32.xlu1 %v12082_v25, %s15598_s3 }
0x180c   : > { %v7834_v2 = vpop.permute.xlu1 %7833 }
0x180d   : > { %v7842_v28 = vsel %vm6832_vm10, 0, %v7834_v2 }
0x180e   : > { %v7849_v43 = vsel %vm6841_vm11, %v7842_v28, 0 }
0x180f   : > { %v7861_v60 = vunpack.c.l.bf16 %v7849_v43  ;;  %v7862_v53 = vunpack.c.h.bf16 %v7849_v43 }
0x1811   : > { %v12087_v36 = vpack.i.bf16 %v7862_v53, %v7861_v60 }
0x1813   : > { %12088 = vrot.lane.b32.xlu2 %v12087_v36, %s15598_s3 }
0x181c   : > { %v7836_v57 = vpop.permute.xlu0 %7835 }
0x181d   : > { %v7844_v44 = vsel %vm6832_vm10, 0, %v7836_v57 }
0x181e   : > { %v7851_v51 = vsel %vm6841_vm11, %v7844_v44, 0 }
0x181f   : > { %v7863_v20 = vunpack.c.l.bf16 %v7851_v51  ;;  %v7864_v33 = vunpack.c.h.bf16 %v7851_v51 }
0x1821   : > { %v12097_v15 = vpack.i.bf16 %v7864_v33, %v7863_v20 }
0x1823   : > { %12098 = vrot.lane.b32.xlu1 %v12097_v15, %s15598_s3 }
0x1835   : > { %v12079_v17 = vpop.permute.xlu2 %12078 }
0x1836   : > { %v12081_v29 = vunpack.i.h.bf16 %v12079_v17  ;;  %v12080_v11 = vunpack.i.l.bf16 %v12079_v17 }
0x1838   : > { %v7898_v12 = vmax.f32 %v7858_v13, %v12081_v29  ;;  %v7897_v22 = vmax.f32 %v7857_v32, %v12080_v11 }
0x183a   : > { %v12092_v19 = vpack.i.bf16 %v7898_v12, %v7897_v22 }
0x183c   : > { %12093 = vrot.lane.b32.xlu0 %v12092_v19, %s15608_s0 }
0x186d   : > { %v12089_v48 = vpop.permute.xlu2 %12088 }
0x186e   : > { %v12091_v47 = vunpack.i.h.bf16 %v12089_v48  ;;  %v12090_v7 = vunpack.i.l.bf16 %v12089_v48 }
0x1870   : > { %v7902_v55 = vmax.f32 %v7862_v53, %v12091_v47  ;;  %v7901_v35 = vmax.f32 %v7861_v60, %v12090_v7 }
0x1872   : > { %v12107_v37 = vpack.i.bf16 %v7902_v55, %v7901_v35 }
0x1874   : > { %12108 = vrot.lane.b32.xlu0 %v12107_v37, %s15608_s0 }
0x1875   : > { %v12084_v27 = vpop.permute.xlu1 %12083 }
0x1876   : > { %v12086_v63 = vunpack.i.h.bf16 %v12084_v27  ;;  %v12085_v40 = vunpack.i.l.bf16 %v12084_v27 }
0x1878   : > { %v7900_v21 = vmax.f32 %v7860_v9, %v12086_v63  ;;  %v7899_v23 = vmax.f32 %v7859_v26, %v12085_v40 }
0x187a   : > { %v12102_v54 = vpack.i.bf16 %v7900_v21, %v7899_v23 }
0x187c   : > { %12103 = vrot.lane.b32.xlu2 %v12102_v54, %s15608_s0 }
0x1895   : > { %v12099_v4 = vpop.permute.xlu1 %12098 }
0x1896   : > { %v12101_v59 = vunpack.i.h.bf16 %v12099_v4  ;;  %v12100_v1 = vunpack.i.l.bf16 %v12099_v4  ;;  %v8059_v4 = vld [vmem:[%s15620_s13 + $0x18] sm:$0xff] }
0x1898   : > { %v7904_v38 = vmax.f32 %v7864_v33, %v12101_v59  ;;  %v7903_v16 = vmax.f32 %v7863_v20, %v12100_v1 }
0x189a   : > { %v12112_v39 = vpack.i.bf16 %v7904_v38, %v7903_v16 }
0x189c   : > { %12113 = vrot.lane.b32.xlu1 %v12112_v39, %s15608_s0  ;;  %v8063_v39 = vld [vmem:[%s15620_s13 + $0x38] sm:$0xff] }
0x18ae   : > { %v12094_v41 = vpop.permute.xlu0 %12093 }
0x18af   : > { %v12096_v5 = vunpack.i.h.bf16 %v12094_v41  ;;  %v12095_v24 = vunpack.i.l.bf16 %v12094_v41 }
0x18b1   : > { %v7954_v31 = vmax.f32 %v7898_v12, %v12096_v5  ;;  %v7953_v52 = vmax.f32 %v7897_v22, %v12095_v24  ;;  %v8058_v24 = vld [vmem:[%s15620_s13 + $0x10] sm:$0xff] }
0x18b3   : > { %v7961_v42 = vpack.c.bf16 %v7954_v31, %v7953_v52 }
0x18b5   : > { %11186 = vmatmul.msk.bf16.vlgmr.msra.gmra.mxu3 %vm6841_vm11, %v7961_v42 }
0x18d6   : > { %v12104_v8 = vpop.permute.xlu2 %12103 }
0x18d7   : > { %v12106_v49 = vunpack.i.h.bf16 %v12104_v8  ;;  %v12105_v56 = vunpack.i.l.bf16 %v12104_v8  ;;  %v8057_v8 = vld [vmem:[%s15620_s13 + $0x8] sm:$0xff]  ;;  %s15627_s13 = sld [smem:[#allocation33_spill]] }
0x18d9   : > { %v7956_v45 = vmax.f32 %v7900_v21, %v12106_v49  ;;  %v7955_v6 = vmax.f32 %v7899_v23, %v12105_v56 }
0x18db   : > { %v7962_v32 = vpack.c.bf16 %v7956_v45, %v7955_v6 }
0x18dd   : > { %11187 = vmatmul.msk.bf16.gmra.mxu3 %vm6841_vm11, %v7962_v32 }
0x18e6   : > { %v12109_v13 = vpop.permute.xlu0 %12108 }
0x18e7   : > { %v12111_v10 = vunpack.i.h.bf16 %v12109_v13  ;;  %v12110_v61 = vunpack.i.l.bf16 %v12109_v13 }
0x18e9   : > { %v7958_v62 = vmax.f32 %v7902_v55, %v12111_v10  ;;  %v7957_v46 = vmax.f32 %v7901_v35, %v12110_v61 }
0x18eb   : > { %v7963_v26 = vpack.c.bf16 %v7958_v62, %v7957_v46 }
0x18ed   : > { %11188 = vmatmul.msk.bf16.gmra.mxu3 %vm6841_vm11, %v7963_v26 }
0x190e   : > { %v12114_v9 = vpop.permute.xlu1 %12113 }
0x190f   : > { %v12116_v25 = vunpack.i.h.bf16 %v12114_v9  ;;  %v12115_v2 = vunpack.i.l.bf16 %v12114_v9 }
0x1911   : > { %v7960_v28 = vmax.f32 %v7904_v38, %v12116_v25  ;;  %v7959_v43 = vmax.f32 %v7903_v16, %v12115_v2 }
0x1913   : > { %v7964_v60 = vpack.c.bf16 %v7960_v28, %v7959_v43 }
0x1915   : > { %11189 = vmatmul.msk.bf16.gmra.mxu3 %vm6841_vm11, %v7964_v60 }
0x1938   : > { %v8004_v53 = vpop.f32.mrf.mxu3 }
0x1939   : > { %v8024_v55 = vpack.c.bf16 %v8004_v53, %v8004_v53 }
0x193b   : > { %v8073_v27 = vunpack.c.l.b16 %v8024_v55 }
0x1940   : > { %v8006_v36 = vpop.f32.mrf.mxu3 }
0x1941   : > { %v8025_v7 = vpack.c.bf16 %v8006_v36, %v8006_v36 }
0x1943   : > { %v8074_v35 = vunpack.c.l.b16 %v8025_v7 }
0x1945   : > { %v14947_v37 = vpack.c.b16 %v8074_v35, %v8073_v27 }
0x1960   : > { %v8009_v57 = vpop.f32.mrf.mxu3 }
0x1961   : > { %v8026_v44 = vpack.c.bf16 %v8009_v57, %v8009_v57 }
0x1963   : > { %v8075_v33 = vunpack.c.l.b16 %v8026_v44 }
0x1968   : > { %v8011_v51 = vpop.f32.mrf.mxu3 }
0x1969   : > { %v8027_v20 = vpack.c.bf16 %v8011_v51, %v8011_v51 }
0x196b   : > { %v8076_v15 = vunpack.c.l.b16 %v8027_v20 }
0x196d   : > { %v14933_v17 = vpack.c.b16 %v8076_v15, %v8075_v33 }
0x196f   : > { %8091 = vrot.lane.b32.xlu1 %v14933_v17, %s15598_s3 }
0x1970   : > { %v8014_v29 = vpop.f32.mrf.mxu3 }
0x1971   : > { %v8028_v11 = vpack.c.bf16 %v8014_v29, %v8014_v29 }
0x1973   : > { %v8077_v19 = vunpack.c.l.b16 %v8028_v11 }
0x1978   : > { %v8016_v12 = vpop.f32.mrf.mxu3 }
0x1979   : > { %v8029_v22 = vpack.c.bf16 %v8016_v12, %v8016_v12 }
0x197b   : > { %v8078_v48 = vunpack.c.l.b16 %v8029_v22 }
0x197d   : > { %v14937_v47 = vpack.c.b16 %v8078_v48, %v8077_v19 }
0x197f   : > { %8165 = vrot.lane.b32.xlu1 %v14937_v47, %s15529_s6  ;;  %8093 = vrot.lane.b32.xlu0 %v14937_v47, %s15598_s3 }
0x1987   : > { %8163 = vrot.lane.b32.xlu1 %v14933_v17, %s15529_s6  ;;  %8141 = vrot.lane.b32.xlu0 %v14937_v47, %s15608_s0 }
0x198f   : > { %8161 = vrot.lane.b32.xlu1 %v14947_v37, %s15529_s6  ;;  %8139 = vrot.lane.b32.xlu0 %v14933_v17, %s15608_s0 }
0x1997   : > { %8153 = vrot.lane.b32.xlu1 %v14937_v47, %s15610_s9  ;;  %8137 = vrot.lane.b32.xlu0 %v14947_v37, %s15608_s0 }
0x1998   : > { %v8019_v63 = vpop.f32.mrf.mxu3 }
0x1999   : > { %v8030_v40 = vpack.c.bf16 %v8019_v63, %v8019_v63 }
0x199b   : > { %v8079_v54 = vunpack.c.l.b16 %v8030_v40 }
0x199f   : > { %8129 = vrot.lane.b32.xlu0 %v14937_v47, %s15531_s8 }
0x19a0   : > { %v8021_v21 = vpop.f32.mrf.mxu3 }
0x19a1   : > { %v8031_v23 = vpack.c.bf16 %v8021_v21, %v8021_v21 }
0x19a3   : > { %v8080_v18 = vunpack.c.l.b16 %v8031_v23 }
0x19a5   : > { %v8084_v30 = vpack.c.b16 %v8080_v18, %v8079_v54 }
0x19a7   : > { %8167 = vrot.lane.b32.xlu1 %v8084_v30, %s15529_s6  ;;  %8143 = vrot.lane.b32.xlu0 %v8084_v30, %s15608_s0  ;;  %s15533_s6 = smov 124  }
0x19a8   : > { %8095 = vrot.lane.b32.xlu2 %v8084_v30, %s15598_s3 }
0x19af   : > { %8151 = vrot.lane.b32.xlu1 %v14933_v17, %s15610_s9  ;;  %8127 = vrot.lane.b32.xlu0 %v14933_v17, %s15531_s8 }
0x19b0   : > { %8089 = vrot.lane.b32.xlu2 %v14947_v37, %s15598_s3 }
0x19b7   : > { %8155 = vrot.lane.b32.xlu1 %v8084_v30, %s15610_s9  ;;  %8131 = vrot.lane.b32.xlu0 %v8084_v30, %s15531_s8 }
0x19b8   : > { %8117 = vrot.lane.b32.xlu2 %v14937_v47, %s15533_s6 }
0x19bf   : > { %8125 = vrot.lane.b32.xlu1 %v14947_v37, %s15531_s8  ;;  %8103 = vrot.lane.b32.xlu0 %v14933_v17, %s15597_s2  ;;  %s15621_s8 = sld [smem:[#allocation30_spill]] }
0x19c0   : > { %8115 = vrot.lane.b32.xlu2 %v14933_v17, %s15533_s6 }
0x19c5   : > { %v11192_v10 = vld [vmem:[%s15621_s8] sm:$0xf]  ;;  %v11778_v61 = vld [vmem:[%s15621_s8 + $0x10] sm:$0xf0]  ;;  %v11212_v43 = vld [vmem:[%s15621_s8 + $0x28] sm:$0xf] }
0x19c6   : > { %v11193_v62 = vor.u32 %v11778_v61, %v11192_v10  ;;  %v11783_v60 = vld [vmem:[%s15621_s8 + $0x38] sm:$0xf0]  ;;  %v11200_v57 = vld [vmem:[%s15621_s8 + $0x8] sm:$0xf]  ;;  %v11777_v33 = vld [vmem:[%s15621_s8 + $0xc] sm:$0xf] }
0x19c7   : > { %8101 = vrot.lane.b32.xlu1 %v14947_v37, %s15597_s2  ;;  %8177 = vrot.lane.b32.xlu0 %v14937_v47, %s15593_s1  ;;  %v11213_v53 = vor.u32 %v11783_v60, %v11212_v43  ;;  %v11779_v44 = vld [vmem:[%s15621_s8 + $0x18] sm:$0xf0]  ;;  %v11202_v15 = vld [vmem:[%s15621_s8 + $0x1c] sm:$0xf0] }
0x19c8   : > { %8113 = vrot.lane.b32.xlu2 %v14947_v37, %s15533_s6  ;;  %v11201_v20 = vor.u32 %v11779_v44, %v11200_v57  ;;  %v11205_v29 = vor.u32 %v11777_v33, %v11202_v15  ;;  %v11232_v11 = vld [vmem:[%s15621_s8 + $0x50] sm:$0xf]  ;;  %v11788_v12 = vld [vmem:[%s15621_s8 + $0x60] sm:$0xf0]  ;;  %v11782_v35 = vld [vmem:[%s15621_s8 + $0x34] sm:$0xf] }
0x19c9   : > { %v11233_v22 = vor.u32 %v11788_v12, %v11232_v11  ;;  %v11784_v7 = vld [vmem:[%s15621_s8 + $0x40] sm:$0xf0]  ;;  %v11222_v27 = vld [vmem:[%s15621_s8 + $0x44] sm:$0xf0]  ;;  %v11252_v63 = vld [vmem:[%s15621_s8 + $0x78] sm:$0xf] }
0x19ca   : > { %v11225_v40 = vor.u32 %v11782_v35, %v11222_v27  ;;  %v11793_v21 = vld [vmem:[%s15621_s8 + $0x88] sm:$0xf0]  ;;  %v11776_v23 = vld [vmem:[%s15621_s8 + $0x4] sm:$0xf]  ;;  %v11194_v54 = vld [vmem:[%s15621_s8 + $0x14] sm:$0xf0] }
0x19cb   : > { %v11228_v10 = vld [vmem:[%s15621_s8 + $0x38] sm:$0xf]  ;;  %v11785_v61 = vld [vmem:[%s15621_s8 + $0x48] sm:$0xf0]  ;;  %v11268_v60 = vld [vmem:[%s15621_s8 + $0x88] sm:$0xf] }
0x19cf   : > { %8217 = vperm.xlu1 %11925, %v8062_v14   ;;  %8173 = vrot.lane.b32.xlu0 %v14947_v37, %s15593_s1  ;;  %v11253_v14 = vor.u32 %v11793_v21, %v11252_v63 }
0x19d0   : > { %8105 = vrot.lane.b32.xlu2 %v14937_v47, %s15597_s2 }
0x19d7   : > { %8212 = vperm.xlu1 %11925, %v8061_v58   ;;  %8207 = vperm.xlu0 %11924, %v8060_v34   ;;  %v11197_v58 = vor.u32 %v11776_v23, %v11194_v54 }
0x19d8   : > { %8119 = vrot.lane.b32.xlu2 %v8084_v30, %s15533_s6  ;;  %s15622_s6 = sld [smem:[#allocation32_spill]] }
0x19df   : > { %8187 = vperm.xlu1 %11925, %v8056_v50   ;;  %8202 = vperm.xlu0 %11924, %v8059_v4   ;;  %v11240_v50 = vld [vmem:[%s15621_s8 + $0x58] sm:$0xf]  ;;  %v11789_v4 = vld [vmem:[%s15621_s8 + $0x68] sm:$0xf0] }
0x19e0   : > { %8149 = vrot.lane.b32.xlu2 %v14947_v37, %s15610_s9 }
0x19e1   : > { %v8092_v3 = vpop.permute.xlu1 %8091 }
0x19e8   : > { %8107 = vrot.lane.b32.xlu2 %v8084_v30, %s15597_s2 }
0x19f0   : > { %8179 = vrot.lane.b32.xlu2 %v8084_v30, %s15593_s1 }
0x19f1   : > { %v8094_v59 = vpop.permute.xlu0 %8093  ;;  %v8166_v1 = vpop.permute.xlu1 %8165 }
0x19f8   : > { %8175 = vrot.lane.b32.xlu2 %v14933_v17, %s15593_s1 }
0x19f9   : > { %v8142_v38 = vpop.permute.xlu0 %8141  ;;  %v8164_v16 = vpop.permute.xlu1 %8163 }
0x1a00   : > { %8222 = vperm.xlu2 %12026, %v8063_v39  }
0x1a01   : > { %v8140_v41 = vpop.permute.xlu0 %8139  ;;  %v8162_v31 = vpop.permute.xlu1 %8161 }
0x1a02   : > { %v8096_v5 = vpop.permute.xlu2 %8095 }
0x1a03   : > { %8337 = vmatpush.bf16.msrb.mxu0 %v8096_v5  ;;  %v11208_v5 = vld [vmem:[%s15621_s8 + $0x10] sm:$0xf] }
0x1a07   : > { %8338 = vmatpush.bf16.msrb.mxu0 %v8094_v59 }
0x1a08   : > { %8197 = vperm.xlu2 %12026, %v8058_v24   ;;  %v11780_v24 = vld [vmem:[%s15621_s8 + $0x20] sm:$0xf0] }
0x1a09   : > { %v8138_v52 = vpop.permute.xlu0 %8137  ;;  %v8154_v49 = vpop.permute.xlu1 %8153 }
0x1a0a   : > { %v8090_v42 = vpop.permute.xlu2 %8089 }
0x1a0b   : > { %8339 = vmatpush.bf16.msrb.mxu0 %v8092_v3  ;;  %v11241_v3 = vor.u32 %v11789_v4, %v11240_v50 }
0x1a0f   : > { %8340 = vmatpush.bf16.msrb.mxu0 %v8090_v42  ;;  %v11260_v42 = vld [vmem:[%s15621_s8 + $0x80] sm:$0xf] }
0x1a10   : > { %8192 = vperm.xlu2 %12026, %v8057_v8   ;;  %v11794_v8 = vld [vmem:[%s15621_s8 + $0x90] sm:$0xf0] }
0x1a11   : > { %v8130_v56 = vpop.permute.xlu0 %8129 }
0x1a12   : > { %v8118_v45 = vpop.permute.xlu2 %8117 }
0x1a13   : > { %8341 = vmatpush.bf16.msrb.mxu0 %v8084_v30 }
0x1a17   : > { %8342 = vmatpush.bf16.msrb.mxu0 %v14937_v47  ;;  %v11220_v47 = vld [vmem:[%s15621_s8 + $0x30] sm:$0xf] }
0x1a18   : > { %v11221_v55 = vor.u32 %v11784_v7, %v11220_v47 }
0x1a19   : > { %v8168_v6 = vpop.permute.xlu1 %8167  ;;  %v8144_v32 = vpop.permute.xlu0 %8143 }
0x1a1a   : > { %v8116_v13 = vpop.permute.xlu2 %8115  ;;  %8395 = vmatpush.bf16.msrb.mxu2 %v8144_v32  ;;  %8424 = vmatpush.bf16.msrb.mxu3 %v8168_v6  ;;  %v11786_v6 = vld [vmem:[%s15621_s8 + $0x54] sm:$0xf] }
0x1a1b   : > { %8343 = vmatpush.bf16.msrb.mxu0 %v14933_v17 }
0x1a1e   : > { %8396 = vmatpush.bf16.msrb.mxu2 %v8142_v38  ;;  %8425 = vmatpush.bf16.msrb.mxu3 %v8166_v1  ;;  %v11787_v1 = vld [vmem:[%s15621_s8 + $0x5c] sm:$0xf]  ;;  %v11242_v38 = vld [vmem:[%s15621_s8 + $0x6c] sm:$0xf0] }
0x1a1f   : > { %8344 = vmatpush.bf16.msrb.mxu0 %v14947_v37  ;;  %v11245_v39 = vor.u32 %v11787_v1, %v11242_v38 }
0x1a21   : > { %v8152_v46 = vpop.permute.xlu1 %8151  ;;  %v8128_v26 = vpop.permute.xlu0 %8127 }
0x1a22   : > { %8345 = vmatmul.bf16.vlgmr.msrb.gmra.mxu0 %v11193_v62  ;;  %v8114_v9 = vpop.permute.xlu2 %8113  ;;  %8397 = vmatpush.bf16.msrb.mxu2 %v8140_v41  ;;  %v11214_v41 = vld [vmem:[%s15621_s8 + $0x3c] sm:$0xf0] }
0x1a23   : > { %8426 = vmatpush.bf16.msrb.mxu3 %v8164_v16  ;;  %v11781_v16 = vld [vmem:[%s15621_s8 + $0x2c] sm:$0xf] }
0x1a26   : > { %8398 = vmatpush.bf16.msrb.mxu2 %v8138_v52  ;;  %v11209_v52 = vor.u32 %v11780_v24, %v11208_v5 }
0x1a27   : > { %8427 = vmatpush.bf16.msrb.mxu3 %v8162_v31  ;;  %v11217_v31 = vor.u32 %v11781_v16, %v11214_v41 }
0x1a29   : > { %v8156_v25 = vpop.permute.xlu1 %8155  ;;  %v8132_v2 = vpop.permute.xlu0 %8131 }
0x1a2a   : > { %v8106_v28 = vpop.permute.xlu2 %8105  ;;  %8399 = vmatpush.bf16.msrb.mxu2 %v8132_v2  ;;  %v11790_v2 = vld [vmem:[%s15621_s8 + $0x70] sm:$0xf0] }
0x1a2b   : > { %8428 = vmatpush.bf16.msrb.mxu3 %v8156_v25  ;;  %v11248_v25 = vld [vmem:[%s15621_s8 + $0x60] sm:$0xf] }
0x1a2c   : > { %v11249_v43 = vor.u32 %v11790_v2, %v11248_v25 }
0x1a2e   : > { %8400 = vmatpush.bf16.msrb.mxu2 %v8130_v56  ;;  %v11792_v56 = vld [vmem:[%s15621_s8 + $0x84] sm:$0xf] }
0x1a2f   : > { %8429 = vmatpush.bf16.msrb.mxu3 %v8154_v49  ;;  %v11261_v49 = vor.u32 %v11794_v8, %v11260_v42 }
0x1a31   : > { %v8126_v51 = vpop.permute.xlu1 %8125  ;;  %v8104_v19 = vpop.permute.xlu0 %8103 }
0x1a32   : > { %8350 = vmatmul.bf16.gmra.mxu0 %v11213_v53  ;;  %v8120_v36 = vpop.permute.xlu2 %8119  ;;  %8401 = vmatpush.bf16.msrb.mxu2 %v8128_v26  ;;  %v11791_v26 = vld [vmem:[%s15621_s8 + $0x7c] sm:$0xf] }
0x1a33   : > { %8366 = vmatpush.bf16.msra.mxu1 %v8120_v36  ;;  %8430 = vmatpush.bf16.msrb.mxu3 %v8152_v46  ;;  %v11229_v46 = vor.u32 %v11785_v61, %v11228_v10  ;;  %v11795_v53 = vld [vmem:[%s15621_s8 + $0x98] sm:$0xf0] }
0x1a34   : > { %v11269_v36 = vor.u32 %v11795_v53, %v11268_v60 }
0x1a36   : > { %8402 = vmatpush.bf16.msrb.mxu2 %v8126_v51 }
0x1a37   : > { %8367 = vmatpush.bf16.msra.mxu1 %v8118_v45  ;;  %v11262_v45 = vld [vmem:[%s15621_s8 + $0x94] sm:$0xf0] }
0x1a38   : > { %v11265_v32 = vor.u32 %v11792_v56, %v11262_v45 }
0x1a39   : > { %8403 = vmatmul.bf16.vlgmr.msrb.gmra.mxu2 %v11201_v20  ;;  %v8178_v18 = vpop.permute.xlu0 %8177  ;;  %v8102_v30 = vpop.permute.xlu1 %8101 }
0x1a3a   : > { %v8150_v17 = vpop.permute.xlu2 %8149 }
0x1a3b   : > { %8368 = vmatpush.bf16.msra.mxu1 %v8116_v13  ;;  %8431 = vmatpush.bf16.msrb.mxu3 %v8150_v17  ;;  %v11234_v13 = vld [vmem:[%s15621_s8 + $0x64] sm:$0xf0] }
0x1a3c   : > { %v11237_v62 = vor.u32 %v11786_v6, %v11234_v13 }
0x1a3e   : > { %8432 = vmatmul.bf16.vlgmr.msrb.gmra.mxu3 %v11205_v29 }
0x1a3f   : > { %8369 = vmatpush.bf16.msra.mxu1 %v8114_v9  ;;  %v11254_v9 = vld [vmem:[%s15621_s8 + $0x8c] sm:$0xf0]  ;;  %s15625_s8 = sld [smem:[#allocation34_spill]] }
0x1a41   : > { %v8174_v59 = vpop.permute.xlu0 %8173  ;;  %v15052_v33 = vpop.permute.xlu1 %8217 }
0x1a42   : > { %8355 = vmatmul.bf16.gmra.mxu0 %v11233_v22  ;;  %v8108_v48 = vpop.permute.xlu2 %8107 }
0x1a43   : > { %8370 = vmatpush.bf16.msra.mxu1 %v8108_v48 }
0x1a47   : > { %8371 = vmatpush.bf16.msra.mxu1 %v8106_v28  ;;  %v11257_v28 = vor.u32 %v11791_v26, %v11254_v9 }
0x1a49   : > { %8408 = vmatmul.bf16.gmra.mxu2 %v11221_v55  ;;  %v8213_v17 = vpop.permute.xlu1 %8212 }
0x1a4a   : > { %v8180_v37 = vpop.permute.xlu2 %8179 }
0x1a4b   : > { %8372 = vmatpush.bf16.msra.mxu1 %v8104_v19  ;;  %8457 = vmatpush.bf16.msra.mxu0 %v8180_v37 }
0x1a4e   : > { %8437 = vmatmul.bf16.gmra.mxu3 %v11225_v40 }
0x1a4f   : > { %8373 = vmatpush.bf16.msra.mxu1 %v8102_v30  ;;  %8458 = vmatpush.bf16.msra.mxu0 %v8178_v18 }
0x1a51   : > { %v8188_v22 = vpop.permute.xlu1 %8187 }
0x1a52   : > { %8360 = vmatmul.bf16.gmra.mxu0 %v11253_v14  ;;  %8374 = vmatmul.bf16.vlgmr.msra.gmra.mxu1 %v11197_v58  ;;  %v8176_v34 = vpop.permute.xlu2 %8175  ;;  %v8208_v14 = vpop.permute.xlu0 %8207 }
0x1a53   : > { %8459 = vmatpush.bf16.msra.mxu0 %v8176_v34 }
0x1a57   : > { %8460 = vmatpush.bf16.msra.mxu0 %v8174_v59 }
0x1a59   : > { %8413 = vmatmul.bf16.gmra.mxu2 %v11241_v3 }
0x1a5a   : > { %v15062_v21 = vpop.permute.xlu2 %8222  ;;  %v8203_v16 = vpop.permute.xlu0 %8202 }
0x1a5e   : > { %8442 = vmatmul.bf16.gmra.mxu3 %v11245_v39 }
0x1a62   : > { %8379 = vmatmul.bf16.gmra.mxu1 %v11217_v31  ;;  %11270 = vmatmul.msk.bf16.vlgmr.msra.gmra.mxu0 %vm7123_vm12, %v11209_v52  ;;  %v8198_v34 = vpop.permute.xlu2 %8197 }
0x1a69   : > { %8418 = vmatmul.bf16.gmra.mxu2 %v11261_v49 }
0x1a6e   : > { %8447 = vmatmul.bf16.gmra.mxu3 %v11265_v32  ;;  %v15069_v32 = vld [vmem:[%s15622_s6] ss:$0 sm:$0xff]  ;;  %s15536_s6 = smov 5  }
0x1a72   : > { %8384 = vmatmul.bf16.gmra.mxu1 %v11237_v62  ;;  %11271 = vmatmul.msk.bf16.gmra.mxu0 %vm7123_vm12, %v11229_v46 }
0x1a82   : > { %8389 = vmatmul.bf16.gmra.mxu1 %v11257_v28  ;;  %11272 = vmatmul.msk.bf16.gmra.mxu0 %vm7123_vm12, %v11249_v43 }
0x1a92   : > { %11273 = vmatmul.msk.bf16.gmra.mxu0 %vm7123_vm12, %v11269_v36 }
0x1a9f   : > { %v8346_v57 = vpop.f32.mrf.mxu0 }
0x1aa0   : > { %v8347_v19 = vadd.f32 %v8346_v57, %v8188_v22 }
0x1aa7   : > { %v15050_v44 = vpop.f32.mrf.mxu0 }
0x1aaf   : > { %v8351_v51 = vpop.f32.mrf.mxu0 }
0x1ab0   : > { %v8352_v50 = vadd.f32 %v8351_v51, %v8198_v34 }
0x1ab7   : > { %v8353_v20 = vpop.f32.mrf.mxu0 }
0x1ab8   : > { %v8354_v41 = vadd.f32 %v8353_v20, %v8203_v16 }
0x1abc   : > { %v8404_v11 = vpop.f32.mrf.mxu2 }
0x1abf   : > { %v8356_v15 = vpop.f32.mrf.mxu0 }
0x1ac0   : > { %v8357_v56 = vadd.f32 %v8356_v15, %v8208_v14  ;;  %v8193_v14 = vpop.permute.xlu2 %8192 }
0x1ac1   : > { %v8433_v12 = vpop.f32.mrf.mxu3  ;;  %v8349_v34 = vadd.f32 %v15050_v44, %v8193_v14  ;;  %v8585_v14 = vld [vmem:[%s15625_s8 + $0x38] sm:$0xff] }
0x1ac4   : > { %v15054_v35 = vpop.f32.mrf.mxu2 }
0x1ac7   : > { %v8358_v29 = vpop.f32.mrf.mxu0 }
0x1ac8   : > { %v8359_v28 = vadd.f32 %v8358_v29, %v8213_v17 }
0x1ac9   : > { %v15056_v37 = vpop.f32.mrf.mxu3 }
0x1acc   : > { %v8409_v23 = vpop.f32.mrf.mxu2 }
0x1acf   : > { %v8361_v48 = vpop.f32.mrf.mxu0  ;;  %v8375_v47 = vpop.f32.mrf.mxu1 }
0x1ad0   : > { %v8376_v7 = vadd.f32 %v8375_v47, %v8347_v19 }
0x1ad1   : > { %v8438_v58 = vpop.f32.mrf.mxu3 }
0x1ad2   : > { %v8405_v55 = vadd.f32 %v8404_v11, %v8376_v7  ;;  %v8362_v7 = vadd.f32 %v8361_v48, %v15052_v33 }
0x1ad4   : > { %v8434_v27 = vadd.f32 %v8433_v12, %v8405_v55  ;;  %v8411_v3 = vpop.f32.mrf.mxu2 }
0x1ad7   : > { %v15058_v63 = vpop.f32.mrf.mxu0  ;;  %v15060_v40 = vpop.f32.mrf.mxu1 }
0x1ad8   : > { %v8364_v33 = vadd.f32 %v15058_v63, %v15062_v21  ;;  %v8378_v48 = vadd.f32 %v15060_v40, %v8349_v34 }
0x1ad9   : > { %v8440_v39 = vpop.f32.mrf.mxu3 }
0x1adc   : > { %v8414_v8 = vpop.f32.mrf.mxu2 }
0x1adf   : > { %v8380_v54 = vpop.f32.mrf.mxu1  ;;  %v8462_v18 = vpop.f32.mrf.mxu0 }
0x1ae0   : > { %v15064_v30 = vadd.f32 %v8462_v18, %v8434_v27  ;;  %v8381_v4 = vadd.f32 %v8380_v54, %v8352_v50 }
0x1ae1   : > { %v8443_v6 = vpop.f32.mrf.mxu3 }
0x1ae2   : > { %v8410_v38 = vadd.f32 %v8409_v23, %v8381_v4 }
0x1ae4   : > { %v8439_v5 = vadd.f32 %v8438_v58, %v8410_v38  ;;  %v8416_v2 = vpop.f32.mrf.mxu2 }
0x1ae7   : > { %v8382_v59 = vpop.f32.mrf.mxu1  ;;  %v15066_v1 = vpop.f32.mrf.mxu0 }
0x1ae8   : > { %v8383_v24 = vadd.f32 %v8382_v59, %v8354_v41 }
0x1ae9   : > { %v8445_v51 = vpop.f32.mrf.mxu3 }
0x1aea   : > { %v8412_v49 = vadd.f32 %v8411_v3, %v8383_v24 }
0x1aec   : > { %v8441_v13 = vadd.f32 %v8440_v39, %v8412_v49  ;;  %v8419_v17 = vpop.f32.mrf.mxu2 }
0x1aef   : > { %v8385_v31 = vpop.f32.mrf.mxu1  ;;  %v8467_v52 = vpop.f32.mrf.mxu0 }
0x1af0   : > { %v8468_v42 = vadd.f32 %v8467_v52, %v8439_v5  ;;  %v8386_v10 = vadd.f32 %v8385_v31, %v8357_v56  ;;  %v8407_v31 = vadd.f32 %v15054_v35, %v8378_v48 }
0x1af1   : > { %v8448_v58 = vpop.f32.mrf.mxu3 }
0x1af2   : > { %v8484_v45 = vmax.f32 %v8468_v42, 0.0  ;;  %v8415_v9 = vadd.f32 %v8414_v8, %v8386_v10  ;;  %v8436_v63 = vadd.f32 %v15056_v37, %v8407_v31 }
0x1af4   : > { %v8495_v46 = vmul.f32 %v15069_v32, %v8484_v45  ;;  %v8444_v53 = vadd.f32 %v8443_v6, %v8415_v9  ;;  %v8421_v5 = vpop.f32.mrf.mxu2  ;;  %v8465_v40 = vadd.f32 %v15066_v1, %v8436_v63 }
0x1af6   : > { %v8503_v43 = vpack.c.bf16 %v8495_v46, %v8495_v46 }
0x1af7   : > { %v8387_v61 = vpop.f32.mrf.mxu1  ;;  %v8469_v62 = vpop.f32.mrf.mxu0 }
0x1af8   : > { %v8470_v26 = vadd.f32 %v8469_v62, %v8441_v13  ;;  %v8388_v36 = vadd.f32 %v8387_v61, %v8359_v28  ;;  %v8519_v15 = vunpack.c.l.b16 %v8503_v43  ;;  %v8483_v61 = vmax.f32 %v8465_v40, 0.0 }
0x1af9   : > { %v8450_v56 = vpop.f32.mrf.mxu3  ;;  %v8482_v62 = vmax.f32 %v15064_v30, 0.0 }
0x1afa   : > { %v8485_v25 = vmax.f32 %v8470_v26, 0.0  ;;  %v8417_v47 = vadd.f32 %v8416_v2, %v8388_v36  ;;  %v8494_v9 = vmul.f32 %v15069_v32, %v8483_v61 }
0x1afc   : > { %v8496_v60 = vmul.f32 %v15069_v32, %v8485_v25  ;;  %v8446_v29 = vadd.f32 %v8445_v51, %v8417_v47  ;;  %v8493_v25 = vmul.f32 %v15069_v32, %v8482_v62  ;;  %v8502_v1 = vpack.c.bf16 %v8494_v9, %v8494_v9 }
0x1afe   : > { %v8504_v57 = vpack.c.bf16 %v8496_v60, %v8496_v60  ;;  %v8501_v60 = vpack.c.bf16 %v8493_v25, %v8493_v25 }
0x1aff   : > { %v8472_v20 = vpop.f32.mrf.mxu0  ;;  %v8390_v22 = vpop.f32.mrf.mxu1 }
0x1b00   : > { %v8520_v11 = vunpack.c.l.b16 %v8504_v57  ;;  %v8473_v12 = vadd.f32 %v8472_v20, %v8444_v53  ;;  %v8391_v27 = vadd.f32 %v8390_v22, %v8362_v7  ;;  %v8518_v53 = vunpack.c.l.b16 %v8502_v1 }
0x1b01   : > { %v8517_v36 = vunpack.c.l.b16 %v8501_v60 }
0x1b02   : > { %v8526_v19 = vpack.c.b16 %v8520_v11, %v8519_v15  ;;  %v8486_v55 = vmax.f32 %v8473_v12, 0.0  ;;  %v8420_v50 = vadd.f32 %v8419_v17, %v8391_v27  ;;  %v8582_v17 = vld [vmem:[%s15625_s8 + $0x20] sm:$0xff] }
0x1b03   : > { %v8525_v57 = vpack.c.b16 %v8518_v53, %v8517_v36  ;;  %v11284_v53 = vld [vmem:[%s15627_s13 + $0x8] sm:$0xf]  ;;  %v11799_v36 = vld [vmem:[%s15627_s13 + $0x18] sm:$0xf0] }
0x1b04   : > { %8531 = vrot.lane.b32.xlu2 %v8526_v19, %s15536_s6  ;;  %v8497_v54 = vmul.f32 %v15069_v32, %v8486_v55  ;;  %v8449_v16 = vadd.f32 %v8448_v58, %v8420_v50  ;;  %v8578_v58 = vld [vmem:[%s15625_s8] sm:$0xff]  ;;  %v8580_v50 = vld [vmem:[%s15625_s8 + $0x10] sm:$0xff] }
0x1b06   : > { %v8505_v59 = vpack.c.bf16 %v8497_v54, %v8497_v54  ;;  %v8583_v54 = vld [vmem:[%s15625_s8 + $0x28] sm:$0xff] }
0x1b07   : > { %v8474_v23 = vpop.f32.mrf.mxu0  ;;  %v8392_v3 = vpop.f32.mrf.mxu1 }
0x1b08   : > { %v8475_v18 = vadd.f32 %v8474_v23, %v8446_v29  ;;  %v8393_v39 = vadd.f32 %v8392_v3, %v8364_v33  ;;  %v8521_v52 = vunpack.c.l.b16 %v8505_v59  ;;  %v8584_v29 = vld [vmem:[%s15625_s8 + $0x30] sm:$0xff]  ;;  %v8581_v23 = vld [vmem:[%s15625_s8 + $0x18] sm:$0xff]  ;;  %v8579_v3 = vld [vmem:[%s15625_s8 + $0x8] sm:$0xff]  ;;  %s15628_s8 = sld [smem:[#allocation35_spill]] }
0x1b0a   : > { %v8487_v4 = vmax.f32 %v8475_v18, 0.0  ;;  %v8422_v49 = vadd.f32 %v8421_v5, %v8393_v39 }
0x1b0c   : > { %v8498_v38 = vmul.f32 %v15069_v32, %v8487_v4  ;;  %v8451_v45 = vadd.f32 %v8450_v56, %v8422_v49  ;;  %v11276_v49 = vld [vmem:[%s15627_s13] sm:$0xf]  ;;  %v11798_v56 = vld [vmem:[%s15627_s13 + $0x10] sm:$0xf0] }
0x1b0d   : > { %v11277_v63 = vor.u32 %v11798_v56, %v11276_v49  ;;  %v11814_v49 = vld [vmem:[%s15627_s13 + $0x90] sm:$0xf0] }
0x1b0e   : > { %v8506_v41 = vpack.c.bf16 %v8498_v38, %v8498_v38 }
0x1b0f   : > { %v8477_v24 = vpop.f32.mrf.mxu0 }
0x1b10   : > { %v8522_v44 = vunpack.c.l.b16 %v8506_v41  ;;  %v8478_v42 = vadd.f32 %v8477_v24, %v8449_v16 }
0x1b12   : > { %v8527_v8 = vpack.c.b16 %v8522_v44, %v8521_v52  ;;  %v8488_v21 = vmax.f32 %v8478_v42, 0.0 }
0x1b14   : > { %8533 = vrot.lane.b32.xlu1 %v8527_v8, %s15536_s6  ;;  %v8499_v13 = vmul.f32 %v15069_v32, %v8488_v21 }
0x1b16   : > { %v8507_v46 = vpack.c.bf16 %v8499_v13, %v8499_v13  ;;  %v11296_v13 = vld [vmem:[%s15627_s13 + $0x28] sm:$0xf] }
0x1b17   : > { %v8479_v6 = vpop.f32.mrf.mxu0 }
0x1b18   : > { %v8480_v10 = vadd.f32 %v8479_v6, %v8451_v45  ;;  %v8523_v2 = vunpack.c.l.b16 %v8507_v46  ;;  %v11796_v46 = vld [vmem:[%s15627_s13 + $0x4] sm:$0xf] }
0x1b1a   : > { %v8489_v35 = vmax.f32 %v8480_v10, 0.0  ;;  %v11803_v10 = vld [vmem:[%s15627_s13 + $0x38] sm:$0xf0] }
0x1b1b   : > { %v11297_v61 = vor.u32 %v11803_v10, %v11296_v13  ;;  %v11352_v10 = vld [vmem:[%s15627_s13 + $0x88] sm:$0xf] }
0x1b1c   : > { %v8500_v26 = vmul.f32 %v15069_v32, %v8489_v35 }
0x1b1e   : > { %v8508_v37 = vpack.c.bf16 %v8500_v26, %v8500_v26  ;;  %v11278_v26 = vld [vmem:[%s15627_s13 + $0x14] sm:$0xf0] }
0x1b1f   : > { %v11281_v9 = vor.u32 %v11796_v46, %v11278_v26 }
0x1b20   : > { %v8524_v28 = vunpack.c.l.b16 %v8508_v37 }
0x1b22   : > { %v8528_v43 = vpack.c.b16 %v8524_v28, %v8523_v2  ;;  %v11316_v2 = vld [vmem:[%s15627_s13 + $0x50] sm:$0xf]  ;;  %v11808_v28 = vld [vmem:[%s15627_s13 + $0x60] sm:$0xf0] }
0x1b23   : > { %v11317_v1 = vor.u32 %v11808_v28, %v11316_v2 }
0x1b24   : > { %8535 = vrot.lane.b32.xlu0 %v8528_v43, %s15536_s6 }
0x1b2c   : > { %8529 = vrot.lane.b32.xlu0 %v8525_v57, %s15536_s6  ;;  %s15624_s6 = smov 119   ;;  %v11801_v57 = vld [vmem:[%s15627_s13 + $0x2c] sm:$0xf] }
0x1b5e   : > { %v8532_v30 = vpop.permute.xlu2 %8531 }
0x1b5f   : > { %v8541_v51 = vsel %vm8537_vm15, 0, %v8532_v30  ;;  %v11298_v30 = vld [vmem:[%s15627_s13 + $0x3c] sm:$0xf0] }
0x1b60   : > { %v15094_v20 = vsel %vm5919_vm4, %v8541_v51, 0  ;;  %v11285_v51 = vor.u32 %v11799_v36, %v11284_v53 }
0x1b61   : > { %8593 = vrot.lane.b32.xlu0 %v15094_v20, %s15598_s3 }
0x1b69   : > { %8617 = vrot.lane.b32.xlu0 %v15094_v20, %s15623_s5 }
0x1b86   : > { %v8534_v32 = vpop.permute.xlu1 %8533 }
0x1b87   : > { %v8543_v15 = vsel %vm8537_vm15, 0, %v8534_v32 }
0x1b88   : > { %v15102_v11 = vsel %vm5919_vm4, %v8543_v15, 0  ;;  %v11336_v15 = vld [vmem:[%s15627_s13 + $0x78] sm:$0xf] }
0x1b89   : > { %8595 = vrot.lane.b32.xlu2 %v15102_v11, %s15598_s3 }
0x1b91   : > { %8643 = vrot.lane.b32.xlu2 %v15102_v11, %s15608_s0 }
0x1b96   : > { %v8536_v12 = vpop.permute.xlu0 %8535 }
0x1b97   : > { %v8545_v22 = vsel %vm8537_vm15, 0, %v8536_v12 }
0x1b98   : > { %v15110_v19 = vsel %vm5919_vm4, %v8545_v22, 0 }
0x1b99   : > { %8597 = vrot.lane.b32.xlu1 %v15110_v19, %s15598_s3  ;;  %8667 = vrot.lane.b32.xlu2 %v15102_v11, %s15624_s6 }
0x1b9e   : > { %v8530_v47 = vpop.permute.xlu0 %8529 }
0x1b9f   : > { %v8539_v7 = vsel %vm8537_vm15, 0, %v8530_v47  ;;  %v11286_v47 = vld [vmem:[%s15627_s13 + $0x1c] sm:$0xf0] }
0x1ba0   : > { %v15118_v55 = vsel %vm5919_vm4, %v8539_v7, 0 }
0x1ba1   : > { %8591 = vrot.lane.b32.xlu1 %v15118_v55, %s15598_s3  ;;  %8665 = vrot.lane.b32.xlu2 %v15094_v20, %s15624_s6 }
0x1ba2   : > { %8615 = vrot.lane.b32.xlu0 %v15118_v55, %s15623_s5 }
0x1ba9   : > { %8619 = vrot.lane.b32.xlu1 %v15102_v11, %s15623_s5  ;;  %8663 = vrot.lane.b32.xlu2 %v15118_v55, %s15624_s6 }
0x1baa   : > { %8607 = vrot.lane.b32.xlu0 %v15102_v11, %s15597_s2 }
0x1bb1   : > { %8621 = vrot.lane.b32.xlu2 %v15110_v19, %s15623_s5  ;;  %8641 = vrot.lane.b32.xlu1 %v15094_v20, %s15608_s0 }
0x1bb2   : > { %8645 = vrot.lane.b32.xlu0 %v15110_v19, %s15608_s0 }
0x1bb9   : > { %8669 = vrot.lane.b32.xlu2 %v15110_v19, %s15624_s6  ;;  %8639 = vrot.lane.b32.xlu1 %v15118_v55, %s15608_s0 }
0x1bba   : > { %8605 = vrot.lane.b32.xlu0 %v15094_v20, %s15597_s2 }
0x1bc1   : > { %8627 = vrot.lane.b32.xlu2 %v15118_v55, %s15626_s11  ;;  %8631 = vrot.lane.b32.xlu1 %v15102_v11, %s15626_s11 }
0x1bc2   : > { %8609 = vrot.lane.b32.xlu0 %v15110_v19, %s15597_s2 }
0x1bc9   : > { %8657 = vrot.lane.b32.xlu2 %v15110_v19, %s15610_s9  ;;  %8629 = vrot.lane.b32.xlu1 %v15094_v20, %s15626_s11 }
0x1bca   : > { %8603 = vrot.lane.b32.xlu0 %v15118_v55, %s15597_s2 }
0x1bd1   : > { %8653 = vrot.lane.b32.xlu2 %v15094_v20, %s15610_s9  ;;  %8633 = vrot.lane.b32.xlu1 %v15110_v19, %s15626_s11 }
0x1bd2   : > { %8655 = vrot.lane.b32.xlu0 %v15102_v11, %s15610_s9 }
0x1bd3   : > { %v8594_v33 = vpop.permute.xlu0 %8593 }
0x1bd9   : > { %8675 = vrot.lane.b32.xlu2 %v15118_v55, %s15593_s1  ;;  %8681 = vrot.lane.b32.xlu1 %v15110_v19, %s15593_s1 }
0x1bda   : > { %8677 = vrot.lane.b32.xlu0 %v15094_v20, %s15593_s1 }
0x1bdb   : > { %v8618_v16 = vpop.permute.xlu0 %8617 }
0x1be1   : > { %8709 = vperm.xlu2 %12026, %v8582_v17   ;;  %8679 = vrot.lane.b32.xlu1 %v15102_v11, %s15593_s1 }
0x1be2   : > { %8719 = vperm.xlu0 %11924, %v8584_v29   ;;  %v11304_v29 = vld [vmem:[%s15627_s13 + $0x30] sm:$0xf] }
0x1be3   : > { %v8596_v27 = vpop.permute.xlu2 %8595 }
0x1be9   : > { %8704 = vperm.xlu2 %12026, %v8581_v23   ;;  %8651 = vrot.lane.b32.xlu1 %v15118_v55, %s15610_s9  ;;  %v11806_v23 = vld [vmem:[%s15627_s13 + $0x54] sm:$0xf] }
0x1bea   : > { %8714 = vperm.xlu0 %11924, %v8583_v54   ;;  %v11318_v54 = vld [vmem:[%s15627_s13 + $0x64] sm:$0xf0] }
0x1beb   : > { %v8644_v18 = vpop.permute.xlu2 %8643 }
0x1bf1   : > { %8724 = vperm.xlu1 %11925, %v8585_v14   ;;  %v11321_v14 = vor.u32 %v11806_v23, %v11318_v54 }
0x1bf2   : > { %8689 = vperm.xlu0 %11924, %v8578_v58   ;;  %v11292_v58 = vld [vmem:[%s15627_s13 + $0x10] sm:$0xf] }
0x1bf3   : > { %v8668_v34 = vpop.permute.xlu2 %8667 }
0x1bf9   : > { %8699 = vperm.xlu1 %11925, %v8580_v50  }
0x1bfb   : > { %v8666_v4 = vpop.permute.xlu2 %8665 }
0x1c01   : > { %8694 = vperm.xlu1 %11925, %v8579_v3   ;;  %v11306_v3 = vld [vmem:[%s15627_s13 + $0x44] sm:$0xf0] }
0x1c03   : > { %v8664_v48 = vpop.permute.xlu2 %8663 }
0x1c0b   : > { %v8598_v59 = vpop.permute.xlu1 %8597  ;;  %v8622_v38 = vpop.permute.xlu2 %8621 }
0x1c0c   : > { %8839 = vmatpush.bf16.msrb.mxu1 %v8598_v59  ;;  %8868 = vmatpush.bf16.msra.mxu2 %v8622_v38  ;;  %v11809_v59 = vld [vmem:[%s15627_s13 + $0x68] sm:$0xf0]  ;;  %v11811_v38 = vld [vmem:[%s15627_s13 + $0x7c] sm:$0xf] }
0x1c10   : > { %8840 = vmatpush.bf16.msrb.mxu1 %v8596_v27  ;;  %v11804_v27 = vld [vmem:[%s15627_s13 + $0x40] sm:$0xf0] }
0x1c13   : > { %v8592_v39 = vpop.permute.xlu1 %8591  ;;  %v8670_v41 = vpop.permute.xlu2 %8669 }
0x1c14   : > { %v8616_v5 = vpop.permute.xlu0 %8615  ;;  %8841 = vmatpush.bf16.msrb.mxu1 %v8594_v33  ;;  %8926 = vmatpush.bf16.msrb.mxu0 %v8670_v41 }
0x1c18   : > { %8842 = vmatpush.bf16.msrb.mxu1 %v8592_v39  ;;  %8927 = vmatpush.bf16.msrb.mxu0 %v8668_v34  ;;  %v11800_v34 = vld [vmem:[%s15627_s13 + $0x20] sm:$0xf0] }
0x1c19   : > { %v11293_v50 = vor.u32 %v11800_v34, %v11292_v58  ;;  %v15241_v58 = vld [vmem:[%s15628_s8] ss:$0 sm:$0xff]  ;;  %s15629_s8 = smov 5  }
0x1c1b   : > { %v8620_v24 = vpop.permute.xlu1 %8619  ;;  %v8628_v31 = vpop.permute.xlu2 %8627 }
0x1c1c   : > { %v8608_v52 = vpop.permute.xlu0 %8607  ;;  %8843 = vmatpush.bf16.msrb.mxu1 %v15110_v19  ;;  %8869 = vmatpush.bf16.msra.mxu2 %v8620_v24  ;;  %v11797_v19 = vld [vmem:[%s15627_s13 + $0xc] sm:$0xf] }
0x1c1d   : > { %8928 = vmatpush.bf16.msrb.mxu0 %v8666_v4  ;;  %v11289_v17 = vor.u32 %v11797_v19, %v11286_v47  ;;  %v11802_v4 = vld [vmem:[%s15627_s13 + $0x34] sm:$0xf]  ;;  %v11805_v24 = vld [vmem:[%s15627_s13 + $0x48] sm:$0xf0] }
0x1c1e   : > { %v11309_v33 = vor.u32 %v11802_v4, %v11306_v3 }
0x1c20   : > { %8844 = vmatpush.bf16.msrb.mxu1 %v15102_v11  ;;  %8870 = vmatpush.bf16.msra.mxu2 %v8618_v16  ;;  %v11813_v11 = vld [vmem:[%s15627_s13 + $0x88] sm:$0xf0]  ;;  %v11338_v16 = vld [vmem:[%s15627_s13 + $0x8c] sm:$0xf0] }
0x1c21   : > { %8929 = vmatpush.bf16.msrb.mxu0 %v8664_v48  ;;  %v11337_v22 = vor.u32 %v11813_v11, %v11336_v15  ;;  %v11324_v48 = vld [vmem:[%s15627_s13 + $0x58] sm:$0xf]  ;;  %v11341_v41 = vor.u32 %v11811_v38, %v11338_v16 }
0x1c22   : > { %v11325_v39 = vor.u32 %v11809_v59, %v11324_v48 }
0x1c23   : > { %v8642_v44 = vpop.permute.xlu1 %8641  ;;  %v8658_v42 = vpop.permute.xlu2 %8657 }
0x1c24   : > { %v8646_v8 = vpop.permute.xlu0 %8645  ;;  %8845 = vmatpush.bf16.msrb.mxu1 %v15094_v20  ;;  %8871 = vmatpush.bf16.msra.mxu2 %v8616_v5  ;;  %v11301_v20 = vor.u32 %v11801_v57, %v11298_v30  ;;  %v11312_v5 = vld [vmem:[%s15627_s13 + $0x38] sm:$0xf] }
0x1c25   : > { %8897 = vmatpush.bf16.msra.mxu3 %v8646_v8  ;;  %8930 = vmatpush.bf16.msrb.mxu0 %v8658_v42  ;;  %v11344_v8 = vld [vmem:[%s15627_s13 + $0x80] sm:$0xf] }
0x1c26   : > { %v11345_v56 = vor.u32 %v11814_v49, %v11344_v8 }
0x1c28   : > { %8846 = vmatpush.bf16.msrb.mxu1 %v15118_v55 }
0x1c29   : > { %8898 = vmatpush.bf16.msra.mxu3 %v8644_v18  ;;  %v11305_v18 = vor.u32 %v11804_v27, %v11304_v29 }
0x1c2b   : > { %v8640_v21 = vpop.permute.xlu1 %8639  ;;  %8847 = vmatmul.bf16.vlgmr.msrb.gmra.mxu1 %v11277_v63  ;;  %v8654_v43 = vpop.permute.xlu2 %8653  ;;  %v11332_v63 = vld [vmem:[%s15627_s13 + $0x60] sm:$0xf] }
0x1c2c   : > { %v8606_v40 = vpop.permute.xlu0 %8605 }
0x1c2d   : > { %8899 = vmatpush.bf16.msra.mxu3 %v8642_v44  ;;  %v11326_v44 = vld [vmem:[%s15627_s13 + $0x6c] sm:$0xf0] }
0x1c31   : > { %8900 = vmatpush.bf16.msra.mxu3 %v8640_v21  ;;  %v11810_v21 = vld [vmem:[%s15627_s13 + $0x70] sm:$0xf0] }
0x1c33   : > { %v8632_v45 = vpop.permute.xlu1 %8631  ;;  %v8676_v7 = vpop.permute.xlu2 %8675 }
0x1c34   : > { %v8610_v6 = vpop.permute.xlu0 %8609 }
0x1c35   : > { %8872 = vmatpush.bf16.msra.mxu2 %v8610_v6  ;;  %v11346_v6 = vld [vmem:[%s15627_s13 + $0x94] sm:$0xf0] }
0x1c39   : > { %8873 = vmatpush.bf16.msra.mxu2 %v8608_v52  ;;  %v11807_v52 = vld [vmem:[%s15627_s13 + $0x5c] sm:$0xf] }
0x1c3a   : > { %v11329_v42 = vor.u32 %v11807_v52, %v11326_v44 }
0x1c3b   : > { %v8630_v35 = vpop.permute.xlu1 %8629  ;;  %8852 = vmatmul.bf16.gmra.mxu1 %v11297_v61  ;;  %v11815_v61 = vld [vmem:[%s15627_s13 + $0x98] sm:$0xf0]  ;;  %v8710_v34 = vpop.permute.xlu2 %8709 }
0x1c3c   : > { %v8604_v62 = vpop.permute.xlu0 %8603 }
0x1c3d   : > { %8874 = vmatpush.bf16.msra.mxu2 %v8606_v40  ;;  %v11333_v40 = vor.u32 %v11810_v21, %v11332_v63 }
0x1c41   : > { %8875 = vmatpush.bf16.msra.mxu2 %v8604_v62 }
0x1c43   : > { %v8634_v37 = vpop.permute.xlu1 %8633 }
0x1c44   : > { %v8656_v25 = vpop.permute.xlu0 %8655  ;;  %8876 = vmatmul.bf16.vlgmr.msra.gmra.mxu2 %v11281_v9  ;;  %8901 = vmatpush.bf16.msra.mxu3 %v8634_v37 }
0x1c45   : > { %8931 = vmatpush.bf16.msrb.mxu0 %v8656_v25 }
0x1c48   : > { %8902 = vmatpush.bf16.msra.mxu3 %v8632_v45  ;;  %v11812_v45 = vld [vmem:[%s15627_s13 + $0x84] sm:$0xf] }
0x1c49   : > { %8932 = vmatpush.bf16.msrb.mxu0 %v8654_v43  ;;  %v11349_v13 = vor.u32 %v11812_v45, %v11346_v6 }
0x1c4b   : > { %v8682_v60 = vpop.permute.xlu1 %8681  ;;  %8857 = vmatmul.bf16.gmra.mxu1 %v11317_v1 }
0x1c4c   : > { %8903 = vmatpush.bf16.msra.mxu3 %v8630_v35  ;;  %8959 = vmatpush.bf16.msra.mxu1 %v8682_v60  ;;  %v8678_v12 = vpop.permute.xlu0 %8677  ;;  %v11353_v35 = vor.u32 %v11815_v61, %v11352_v10 }
0x1c50   : > { %8904 = vmatpush.bf16.msra.mxu3 %v8628_v31  ;;  %v11313_v31 = vor.u32 %v11805_v24, %v11312_v5 }
0x1c53   : > { %v8680_v32 = vpop.permute.xlu1 %8679  ;;  %8905 = vmatmul.bf16.vlgmr.msra.gmra.mxu3 %v11285_v51 }
0x1c54   : > { %8881 = vmatmul.bf16.gmra.mxu2 %v11301_v20  ;;  %8960 = vmatpush.bf16.msra.mxu1 %v8680_v32  ;;  %v15228_v26 = vpop.permute.xlu0 %8719 }
0x1c58   : > { %8961 = vmatpush.bf16.msra.mxu1 %v8678_v12 }
0x1c5b   : > { %v8652_v55 = vpop.permute.xlu1 %8651  ;;  %8862 = vmatmul.bf16.gmra.mxu1 %v11337_v22 }
0x1c5c   : > { %8933 = vmatpush.bf16.msrb.mxu0 %v8652_v55  ;;  %8962 = vmatpush.bf16.msra.mxu1 %v8676_v7  ;;  %v15230_v37 = vpop.permute.xlu0 %8714 }
0x1c5f   : > { %8934 = vmatmul.bf16.vlgmr.msrb.gmra.mxu0 %v11289_v17 }
0x1c63   : > { %8910 = vmatmul.bf16.gmra.mxu3 %v11305_v18  ;;  %v15234_v36 = vpop.permute.xlu1 %8724 }
0x1c64   : > { %8886 = vmatmul.bf16.gmra.mxu2 %v11321_v14  ;;  %v8690_v2 = vpop.permute.xlu0 %8689 }
0x1c6b   : > { %11354 = vmatmul.msk.bf16.vlgmr.msra.gmra.mxu1 %vm7123_vm12, %v11293_v50  ;;  %v8700_v15 = vpop.permute.xlu1 %8699 }
0x1c6f   : > { %8939 = vmatmul.bf16.gmra.mxu0 %v11309_v33 }
0x1c73   : > { %8915 = vmatmul.bf16.gmra.mxu3 %v11325_v39  ;;  %v8695_v7 = vpop.permute.xlu1 %8694 }
0x1c74   : > { %8891 = vmatmul.bf16.gmra.mxu2 %v11341_v41 }
0x1c7b   : > { %11355 = vmatmul.msk.bf16.gmra.mxu1 %vm7123_vm12, %v11313_v31 }
0x1c7f   : > { %8944 = vmatmul.bf16.gmra.mxu0 %v11329_v42  ;;  %v8705_v42 = vpop.permute.xlu2 %8704 }
0x1c83   : > { %8920 = vmatmul.bf16.gmra.mxu3 %v11345_v56 }
0x1c8b   : > { %11356 = vmatmul.msk.bf16.gmra.mxu1 %vm7123_vm12, %v11333_v40 }
0x1c8f   : > { %8949 = vmatmul.bf16.gmra.mxu0 %v11349_v13 }
0x1c9b   : > { %11357 = vmatmul.msk.bf16.gmra.mxu1 %vm7123_vm12, %v11353_v35 }
0x1ca8   : > { %v8848_v62 = vpop.f32.mrf.mxu1 }
0x1ca9   : > { %v8849_v28 = vadd.f32 %v8848_v62, %v8690_v2 }
0x1cb0   : > { %v8850_v46 = vpop.f32.mrf.mxu1 }
0x1cb1   : > { %v8851_v29 = vadd.f32 %v8850_v46, %v8695_v7 }
0x1cb8   : > { %v8853_v9 = vpop.f32.mrf.mxu1 }
0x1cb9   : > { %v8854_v33 = vadd.f32 %v8853_v9, %v8700_v15 }
0x1cc0   : > { %v8855_v25 = vpop.f32.mrf.mxu1 }
0x1cc1   : > { %v8856_v49 = vadd.f32 %v8855_v25, %v8705_v42 }
0x1cc7   : > { %v8877_v1 = vpop.f32.mrf.mxu2 }
0x1cc8   : > { %v8878_v43 = vadd.f32 %v8877_v1, %v8849_v28  ;;  %v8858_v60 = vpop.f32.mrf.mxu1 }
0x1cc9   : > { %v8859_v9 = vadd.f32 %v8858_v60, %v8710_v34 }
0x1ccf   : > { %v8879_v20 = vpop.f32.mrf.mxu2 }
0x1cd0   : > { %v15232_v53 = vpop.f32.mrf.mxu1  ;;  %v8880_v23 = vadd.f32 %v8879_v20, %v8851_v29 }
0x1cd6   : > { %v8906_v57 = vpop.f32.mrf.mxu3 }
0x1cd7   : > { %v8907_v30 = vadd.f32 %v8906_v57, %v8878_v43  ;;  %v8882_v47 = vpop.f32.mrf.mxu2 }
0x1cd8   : > { %v15236_v51 = vpop.f32.mrf.mxu1  ;;  %v8883_v16 = vadd.f32 %v8882_v47, %v8854_v33  ;;  %v8861_v47 = vadd.f32 %v15232_v53, %v15230_v37 }
0x1cdc   : > { %v8935_v32 = vpop.f32.mrf.mxu0 }
0x1cdd   : > { %v8936_v11 = vadd.f32 %v8935_v32, %v8907_v30 }
0x1cde   : > { %v8908_v12 = vpop.f32.mrf.mxu3 }
0x1cdf   : > { %v8909_v18 = vadd.f32 %v8908_v12, %v8880_v23  ;;  %v8884_v4 = vpop.f32.mrf.mxu2 }
0x1ce0   : > { %v15238_v22 = vpop.f32.mrf.mxu1  ;;  %v8885_v45 = vadd.f32 %v8884_v4, %v8856_v49 }
0x1ce4   : > { %v8937_v19 = vpop.f32.mrf.mxu0 }
0x1ce5   : > { %v8938_v50 = vadd.f32 %v8937_v19, %v8909_v18 }
0x1ce6   : > { %v8911_v55 = vpop.f32.mrf.mxu3 }
0x1ce7   : > { %v8912_v5 = vadd.f32 %v8911_v55, %v8883_v16  ;;  %v8887_v40 = vpop.f32.mrf.mxu2 }
0x1ce8   : > { %v8964_v17 = vpop.f32.mrf.mxu1  ;;  %v8888_v28 = vadd.f32 %v8887_v40, %v8859_v9 }
0x1ce9   : > { %v8965_v27 = vadd.f32 %v8964_v17, %v8936_v11 }
0x1ceb   : > { %v8984_v14 = vmax.f32 %v8965_v27, 0.0 }
0x1cec   : > { %v8940_v54 = vpop.f32.mrf.mxu0 }
0x1ced   : > { %v8995_v48 = vmul.f32 %v15241_v58, %v8984_v14  ;;  %v8941_v52 = vadd.f32 %v8940_v54, %v8912_v5 }
0x1cee   : > { %v8913_v38 = vpop.f32.mrf.mxu3 }
0x1cef   : > { %v9003_v24 = vpack.c.bf16 %v8995_v48, %v8995_v48  ;;  %v8914_v10 = vadd.f32 %v8913_v38, %v8885_v45  ;;  %v8889_v43 = vpop.f32.mrf.mxu2 }
0x1cf0   : > { %v8966_v3 = vpop.f32.mrf.mxu1  ;;  %v8890_v17 = vadd.f32 %v8889_v43, %v8861_v47  ;;  %v9081_v47 = vld [vmem:[%s12472_s12 + $0x10] sm:$0xff] }
0x1cf1   : > { %v8967_v59 = vadd.f32 %v8966_v3, %v8938_v50  ;;  %v15245_v56 = vunpack.c.l.b16 %v9003_v24  ;;  %v8864_v50 = vadd.f32 %v15236_v51, %v15228_v26  ;;  %v8866_v24 = vadd.f32 %v15238_v22, %v15234_v36 }
0x1cf3   : > { %v8985_v39 = vmax.f32 %v8967_v59, 0.0 }
0x1cf4   : > { %v8942_v41 = vpop.f32.mrf.mxu0 }
0x1cf5   : > { %v8996_v31 = vmul.f32 %v15241_v58, %v8985_v39  ;;  %v8943_v62 = vadd.f32 %v8942_v41, %v8914_v10 }
0x1cf6   : > { %v8916_v13 = vpop.f32.mrf.mxu3 }
0x1cf7   : > { %v9004_v44 = vpack.c.bf16 %v8996_v31, %v8996_v31  ;;  %v8917_v57 = vadd.f32 %v8916_v13, %v8888_v28  ;;  %v8892_v54 = vpop.f32.mrf.mxu2 }
0x1cf8   : > { %v8969_v8 = vpop.f32.mrf.mxu1  ;;  %v8893_v53 = vadd.f32 %v8892_v54, %v8864_v50 }
0x1cf9   : > { %v15247_v63 = vunpack.c.l.b16 %v9004_v44  ;;  %v8970_v21 = vadd.f32 %v8969_v8, %v8941_v52 }
0x1cfb   : > { %v9027_v6 = vpack.c.b16 %v15247_v63, %v15245_v56  ;;  %v8986_v61 = vmax.f32 %v8970_v21, 0.0 }
0x1cfc   : > { %v8945_v35 = vpop.f32.mrf.mxu0 }
0x1cfd   : > { %v8997_v2 = vmul.f32 %v15241_v58, %v8986_v61  ;;  %v8946_v15 = vadd.f32 %v8945_v35, %v8917_v57 }
0x1cfe   : > { %v8918_v32 = vpop.f32.mrf.mxu3 }
0x1cff   : > { %v9005_v30 = vpack.c.bf16 %v8997_v2, %v8997_v2  ;;  %v8919_v27 = vadd.f32 %v8918_v32, %v8890_v17  ;;  %v8894_v41 = vpop.f32.mrf.mxu2  ;;  %v9079_v32 = vld [vmem:[%s12472_s12] sm:$0xff]  ;;  %v9086_v17 = vld [vmem:[%s12472_s12 + $0x38] sm:$0xff] }
0x1d00   : > { %v8971_v46 = vpop.f32.mrf.mxu1  ;;  %v8895_v44 = vadd.f32 %v8894_v41, %v8866_v24 }
0x1d01   : > { %v8972_v25 = vadd.f32 %v8971_v46, %v8943_v62  ;;  %v9021_v7 = vunpack.c.l.b16 %v9005_v30 }
0x1d03   : > { %v8987_v1 = vmax.f32 %v8972_v25, 0.0 }
0x1d04   : > { %v8947_v12 = vpop.f32.mrf.mxu0 }
0x1d05   : > { %v8998_v20 = vmul.f32 %v15241_v58, %v8987_v1  ;;  %v8948_v18 = vadd.f32 %v8947_v12, %v8919_v27 }
0x1d06   : > { %v8921_v14 = vpop.f32.mrf.mxu3 }
0x1d07   : > { %v9006_v11 = vpack.c.bf16 %v8998_v20, %v8998_v20  ;;  %v8922_v48 = vadd.f32 %v8921_v14, %v8893_v53 }
0x1d08   : > { %v8974_v19 = vpop.f32.mrf.mxu1 }
0x1d09   : > { %v9022_v60 = vunpack.c.l.b16 %v9006_v11  ;;  %v8975_v55 = vadd.f32 %v8974_v19, %v8946_v15  ;;  %v9082_v15 = vld [vmem:[%s12472_s12 + $0x18] sm:$0xff]  ;;  %v9080_v11 = vld [vmem:[%s12472_s12 + $0x8] sm:$0xff]  ;;  %v9085_v19 = vld [vmem:[%s12472_s12 + $0x30] sm:$0xff] }
0x1d0b   : > { %v9028_v29 = vpack.c.b16 %v9022_v60, %v9021_v7  ;;  %v8988_v23 = vmax.f32 %v8975_v55, 0.0  ;;  %v9083_v7 = vld [vmem:[%s12472_s12 + $0x20] sm:$0xff]  ;;  %v9084_v55 = vld [vmem:[%s12472_s12 + $0x28] sm:$0xff] }
0x1d0c   : > { %v8950_v37 = vpop.f32.mrf.mxu0 }
0x1d0d   : > { %9033 = vrot.lane.b32.xlu1 %v9028_v29, %s15629_s8  ;;  %v8999_v4 = vmul.f32 %v15241_v58, %v8988_v23  ;;  %v8951_v16 = vadd.f32 %v8950_v37, %v8922_v48 }
0x1d0e   : > { %v8923_v51 = vpop.f32.mrf.mxu3 }
0x1d0f   : > { %v9007_v59 = vpack.c.bf16 %v8999_v4, %v8999_v4  ;;  %v8924_v49 = vadd.f32 %v8923_v51, %v8895_v44 }
0x1d10   : > { %v8976_v34 = vpop.f32.mrf.mxu1 }
0x1d11   : > { %v8977_v3 = vadd.f32 %v8976_v34, %v8948_v18  ;;  %v9023_v31 = vunpack.c.l.b16 %v9007_v59 }
0x1d13   : > { %v8989_v33 = vmax.f32 %v8977_v3, 0.0 }
0x1d14   : > { %v8952_v8 = vpop.f32.mrf.mxu0 }
0x1d15   : > { %v9000_v38 = vmul.f32 %v15241_v58, %v8989_v33  ;;  %v8953_v40 = vadd.f32 %v8952_v8, %v8924_v49 }
0x1d17   : > { %v9008_v39 = vpack.c.bf16 %v9000_v38, %v9000_v38 }
0x1d18   : > { %v8979_v5 = vpop.f32.mrf.mxu1 }
0x1d19   : > { %v9024_v52 = vunpack.c.l.b16 %v9008_v39  ;;  %v8980_v26 = vadd.f32 %v8979_v5, %v8951_v16 }
0x1d1b   : > { %v9029_v42 = vpack.c.b16 %v9024_v52, %v9023_v31  ;;  %v8990_v21 = vmax.f32 %v8980_v26, 0.0 }
0x1d1d   : > { %9035 = vrot.lane.b32.xlu0 %v9029_v42, %s15629_s8  ;;  %v9001_v13 = vmul.f32 %v15241_v58, %v8990_v21 }
0x1d1f   : > { %v9009_v35 = vpack.c.bf16 %v9001_v13, %v9001_v13 }
0x1d20   : > { %v8981_v45 = vpop.f32.mrf.mxu1 }
0x1d21   : > { %v8982_v10 = vadd.f32 %v8981_v45, %v8953_v40  ;;  %v9025_v62 = vunpack.c.l.b16 %v9009_v35 }
0x1d23   : > { %v8991_v61 = vmax.f32 %v8982_v10, 0.0 }
0x1d25   : > { %v9002_v36 = vmul.f32 %v15241_v58, %v8991_v61 }
0x1d27   : > { %v9010_v22 = vpack.c.bf16 %v9002_v36, %v9002_v36 }
0x1d29   : > { %v9026_v46 = vunpack.c.l.b16 %v9010_v22 }
0x1d2b   : > { %v9030_v9 = vpack.c.b16 %v9026_v46, %v9025_v62 }
0x1d2d   : > { %9037 = vrot.lane.b32.xlu2 %v9030_v9, %s15629_s8 }
0x1d35   : > { %9031 = vrot.lane.b32.xlu2 %v9027_v6, %s15629_s8 }
0x1d7f   : > { %v9034_v2 = vpop.permute.xlu1 %9033 }
0x1d80   : > { %v9042_v25 = vsel %vm8537_vm15, 0, %v9034_v2 }
0x1d81   : > { %v15272_v28 = vsel %vm5919_vm4, %v9042_v25, 0 }
0x1d82   : > { %9094 = vrot.lane.b32.xlu2 %v15272_v28, %s15598_s3 }
0x1d87   : > { %v9038_v58 = vpop.permute.xlu2 %9037 }
0x1d88   : > { %v9046_v1 = vsel %vm8537_vm15, 0, %v9038_v58 }
0x1d89   : > { %v15278_v43 = vsel %vm5919_vm4, %v9046_v1, 0 }
0x1d8a   : > { %9098 = vrot.lane.b32.xlu0 %v15278_v43, %s15598_s3 }
0x1d8f   : > { %v9036_v56 = vpop.permute.xlu0 %9035  ;;  %v9032_v63 = vpop.permute.xlu2 %9031 }
0x1d90   : > { %v9044_v6 = vsel %vm8537_vm15, 0, %v9036_v56  ;;  %v9040_v57 = vsel %vm8537_vm15, 0, %v9032_v63 }
0x1d91   : > { %v15285_v30 = vsel %vm5919_vm4, %v9044_v6, 0  ;;  %v15288_v20 = vsel %vm5919_vm4, %v9040_v57, 0 }
0x1d92   : > { %9096 = vrot.lane.b32.xlu1 %v15285_v30, %s15598_s3  ;;  %9120 = vrot.lane.b32.xlu2 %v15285_v30, %s15623_s5 }
0x1d93   : > { %9092 = vrot.lane.b32.xlu0 %v15288_v20, %s15598_s3 }
0x1d9a   : > { %9144 = vrot.lane.b32.xlu1 %v15285_v30, %s15608_s0  ;;  %9168 = vrot.lane.b32.xlu2 %v15285_v30, %s15624_s6 }
0x1d9b   : > { %9118 = vrot.lane.b32.xlu0 %v15272_v28, %s15623_s5 }
0x1da2   : > { %9142 = vrot.lane.b32.xlu1 %v15272_v28, %s15608_s0  ;;  %9166 = vrot.lane.b32.xlu2 %v15272_v28, %s15624_s6 }
0x1da3   : > { %9116 = vrot.lane.b32.xlu0 %v15288_v20, %s15623_s5 }
0x1daa   : > { %9164 = vrot.lane.b32.xlu2 %v15288_v20, %s15624_s6  ;;  %9140 = vrot.lane.b32.xlu1 %v15288_v20, %s15608_s0 }
0x1dab   : > { %9108 = vrot.lane.b32.xlu0 %v15285_v30, %s15597_s2 }
0x1db2   : > { %9104 = vrot.lane.b32.xlu2 %v15288_v20, %s15597_s2  ;;  %9106 = vrot.lane.b32.xlu1 %v15272_v28, %s15597_s2 }
0x1db3   : > { %9132 = vrot.lane.b32.xlu0 %v15285_v30, %s15626_s11 }
0x1dba   : > { %9170 = vrot.lane.b32.xlu2 %v15278_v43, %s15624_s6  ;;  %9122 = vrot.lane.b32.xlu1 %v15278_v43, %s15623_s5 }
0x1dbb   : > { %9110 = vrot.lane.b32.xlu0 %v15278_v43, %s15597_s2 }
0x1dc2   : > { %9134 = vrot.lane.b32.xlu2 %v15278_v43, %s15626_s11  ;;  %9146 = vrot.lane.b32.xlu1 %v15278_v43, %s15608_s0 }
0x1dc3   : > { %9182 = vrot.lane.b32.xlu0 %v15278_v43, %s15593_s1 }
0x1dca   : > { %9178 = vrot.lane.b32.xlu2 %v15272_v28, %s15593_s1  ;;  %9180 = vrot.lane.b32.xlu1 %v15285_v30, %s15593_s1 }
0x1dcb   : > { %9158 = vrot.lane.b32.xlu0 %v15278_v43, %s15610_s9 }
0x1dd2   : > { %9176 = vrot.lane.b32.xlu2 %v15288_v20, %s15593_s1  ;;  %9156 = vrot.lane.b32.xlu1 %v15285_v30, %s15610_s9 }
0x1dd3   : > { %9130 = vrot.lane.b32.xlu0 %v15272_v28, %s15626_s11 }
0x1dda   : > { %9190 = vperm.xlu2 %12026, %v9079_v32   ;;  %9154 = vrot.lane.b32.xlu1 %v15272_v28, %s15610_s9 }
0x1ddb   : > { %9128 = vrot.lane.b32.xlu0 %v15288_v20, %s15626_s11 }
0x1ddc   : > { %v9095_v12 = vpop.permute.xlu2 %9094 }
0x1de2   : > { %9205 = vperm.xlu2 %12026, %v9082_v15   ;;  %9152 = vrot.lane.b32.xlu1 %v15288_v20, %s15610_s9  ;;  %s15630_s9 = sld [smem:[#allocation36_spill]] }
0x1de3   : > { %9195 = vperm.xlu0 %11924, %v9080_v11  }
0x1de8   : > { %v11360_v33 = vld [vmem:[%s15630_s9] sm:$0xf]  ;;  %v11818_v48 = vld [vmem:[%s15630_s9 + $0x10] sm:$0xf0]  ;;  %v11380_v5 = vld [vmem:[%s15630_s9 + $0x28] sm:$0xf] }
0x1de9   : > { %v11361_v38 = vor.u32 %v11818_v48, %v11360_v33  ;;  %v11823_v24 = vld [vmem:[%s15630_s9 + $0x38] sm:$0xf0]  ;;  %v11400_v8 = vld [vmem:[%s15630_s9 + $0x50] sm:$0xf]  ;;  %v11828_v49 = vld [vmem:[%s15630_s9 + $0x60] sm:$0xf0] }
0x1dea   : > { %9220 = vperm.xlu2 %12026, %v9085_v19   ;;  %9200 = vperm.xlu1 %11925, %v9081_v47   ;;  %v11381_v52 = vor.u32 %v11823_v24, %v11380_v5  ;;  %v11401_v45 = vor.u32 %v11828_v49, %v11400_v8  ;;  %v11816_v35 = vld [vmem:[%s15630_s9 + $0x4] sm:$0xf]  ;;  %v11362_v36 = vld [vmem:[%s15630_s9 + $0x14] sm:$0xf0]  ;;  %v11833_v9 = vld [vmem:[%s15630_s9 + $0x88] sm:$0xf0] }
0x1deb   : > { %9210 = vperm.xlu0 %11924, %v9083_v7   ;;  %v11365_v62 = vor.u32 %v11816_v35, %v11362_v36  ;;  %v11420_v46 = vld [vmem:[%s15630_s9 + $0x78] sm:$0xf]  ;;  %v11819_v58 = vld [vmem:[%s15630_s9 + $0x18] sm:$0xf0]  ;;  %v11817_v56 = vld [vmem:[%s15630_s9 + $0xc] sm:$0xf] }
0x1dec   : > { %v9121_v60 = vpop.permute.xlu2 %9120  ;;  %v11421_v25 = vor.u32 %v11833_v9, %v11420_v46  ;;  %v11370_v63 = vld [vmem:[%s15630_s9 + $0x1c] sm:$0xf0]  ;;  %v11376_v15 = vld [vmem:[%s15630_s9 + $0x10] sm:$0xf]  ;;  %v11820_v11 = vld [vmem:[%s15630_s9 + $0x20] sm:$0xf0] }
0x1ded   : > { %v11373_v57 = vor.u32 %v11817_v56, %v11370_v63  ;;  %v11388_v19 = vld [vmem:[%s15630_s9 + $0x30] sm:$0xf]  ;;  %v11824_v47 = vld [vmem:[%s15630_s9 + $0x40] sm:$0xf0]  ;;  %v11831_v33 = vld [vmem:[%s15630_s9 + $0x7c] sm:$0xf] }
0x1dee   : > { %v11389_v7 = vor.u32 %v11824_v47, %v11388_v19  ;;  %v11422_v48 = vld [vmem:[%s15630_s9 + $0x8c] sm:$0xf0]  ;;  %v11834_v5 = vld [vmem:[%s15630_s9 + $0x90] sm:$0xf0] }
0x1df2   : > { %9215 = vperm.xlu1 %11925, %v9084_v55   ;;  %v11390_v55 = vld [vmem:[%s15630_s9 + $0x44] sm:$0xf0] }
0x1df3   : > { %9225 = vperm.xlu0 %11924, %v9086_v17  }
0x1df4   : > { %v9169_v29 = vpop.permute.xlu2 %9168 }
0x1dfc   : > { %v9099_v27 = vpop.permute.xlu0 %9098  ;;  %v9167_v23 = vpop.permute.xlu2 %9166 }
0x1dfd   : > { %9340 = vmatpush.bf16.msrb.mxu2 %v9099_v27  ;;  %v11402_v27 = vld [vmem:[%s15630_s9 + $0x64] sm:$0xf0] }
0x1e04   : > { %v9097_v54 = vpop.permute.xlu1 %9096  ;;  %v9165_v18 = vpop.permute.xlu2 %9164 }
0x1e05   : > { %v9093_v14 = vpop.permute.xlu0 %9092  ;;  %9341 = vmatpush.bf16.msrb.mxu2 %v9097_v54  ;;  %v11396_v54 = vld [vmem:[%s15630_s9 + $0x38] sm:$0xf] }
0x1e09   : > { %9342 = vmatpush.bf16.msrb.mxu2 %v9095_v12  ;;  %v11377_v12 = vor.u32 %v11820_v11, %v11376_v15 }
0x1e0c   : > { %v9145_v34 = vpop.permute.xlu1 %9144  ;;  %v9105_v50 = vpop.permute.xlu2 %9104 }
0x1e0d   : > { %v9119_v4 = vpop.permute.xlu0 %9118  ;;  %9343 = vmatpush.bf16.msrb.mxu2 %v9093_v14 }
0x1e11   : > { %9344 = vmatpush.bf16.msrb.mxu2 %v15278_v43 }
0x1e14   : > { %v9143_v3 = vpop.permute.xlu1 %9142  ;;  %v9171_v37 = vpop.permute.xlu2 %9170 }
0x1e15   : > { %v9117_v53 = vpop.permute.xlu0 %9116  ;;  %9345 = vmatpush.bf16.msrb.mxu2 %v15285_v30  ;;  %9427 = vmatpush.bf16.msrb.mxu1 %v9171_v37  ;;  %v11821_v30 = vld [vmem:[%s15630_s9 + $0x2c] sm:$0xf]  ;;  %v11410_v37 = vld [vmem:[%s15630_s9 + $0x6c] sm:$0xf0] }
0x1e19   : > { %9346 = vmatpush.bf16.msrb.mxu2 %v15272_v28  ;;  %9428 = vmatpush.bf16.msrb.mxu1 %v9169_v29  ;;  %v11368_v28 = vld [vmem:[%s15630_s9 + $0x8] sm:$0xf]  ;;  %v11826_v29 = vld [vmem:[%s15630_s9 + $0x54] sm:$0xf] }
0x1e1a   : > { %v11369_v43 = vor.u32 %v11819_v58, %v11368_v28 }
0x1e1c   : > { %v9141_v59 = vpop.permute.xlu1 %9140  ;;  %v9135_v51 = vpop.permute.xlu2 %9134 }
0x1e1d   : > { %v9109_v16 = vpop.permute.xlu0 %9108  ;;  %9347 = vmatpush.bf16.msrb.mxu2 %v15288_v20  ;;  %9429 = vmatpush.bf16.msrb.mxu1 %v9167_v23  ;;  %v11382_v20 = vld [vmem:[%s15630_s9 + $0x3c] sm:$0xf0]  ;;  %v11405_v23 = vor.u32 %v11826_v29, %v11402_v27 }
0x1e1e   : > { %v11385_v32 = vor.u32 %v11821_v30, %v11382_v20 }
0x1e20   : > { %9348 = vmatmul.bf16.vlgmr.msrb.gmra.mxu2 %v11361_v38  ;;  %v11416_v38 = vld [vmem:[%s15630_s9 + $0x60] sm:$0xf] }
0x1e21   : > { %9430 = vmatpush.bf16.msrb.mxu1 %v9165_v18  ;;  %v11825_v18 = vld [vmem:[%s15630_s9 + $0x48] sm:$0xf0] }
0x1e22   : > { %v11397_v14 = vor.u32 %v11825_v18, %v11396_v54 }
0x1e24   : > { %v9107_v39 = vpop.permute.xlu1 %9106  ;;  %v9179_v21 = vpop.permute.xlu2 %9178 }
0x1e25   : > { %v9133_v41 = vpop.permute.xlu0 %9132 }
0x1e2c   : > { %v9123_v31 = vpop.permute.xlu1 %9122  ;;  %v9177_v61 = vpop.permute.xlu2 %9176 }
0x1e2d   : > { %v9111_v26 = vpop.permute.xlu0 %9110  ;;  %9369 = vmatpush.bf16.msrb.mxu3 %v9123_v31  ;;  %v11832_v31 = vld [vmem:[%s15630_s9 + $0x84] sm:$0xf] }
0x1e30   : > { %9353 = vmatmul.bf16.gmra.mxu2 %v11381_v52  ;;  %v11430_v52 = vld [vmem:[%s15630_s9 + $0x94] sm:$0xf0] }
0x1e31   : > { %9370 = vmatpush.bf16.msrb.mxu3 %v9121_v60  ;;  %v11822_v60 = vld [vmem:[%s15630_s9 + $0x34] sm:$0xf] }
0x1e32   : > { %v11393_v17 = vor.u32 %v11822_v60, %v11390_v55 }
0x1e34   : > { %v9147_v44 = vpop.permute.xlu1 %9146 }
0x1e35   : > { %v9183_v42 = vpop.permute.xlu0 %9182  ;;  %9371 = vmatpush.bf16.msrb.mxu3 %v9119_v4  ;;  %9398 = vmatpush.bf16.msra.mxu0 %v9147_v44  ;;  %v11835_v44 = vld [vmem:[%s15630_s9 + $0x98] sm:$0xf0] }
0x1e36   : > { %9460 = vmatpush.bf16.msra.mxu2 %v9183_v42 }
0x1e39   : > { %9372 = vmatpush.bf16.msrb.mxu3 %v9117_v53  ;;  %9399 = vmatpush.bf16.msra.mxu0 %v9145_v34  ;;  %v11408_v34 = vld [vmem:[%s15630_s9 + $0x58] sm:$0xf] }
0x1e3c   : > { %v9181_v40 = vpop.permute.xlu1 %9180 }
0x1e3d   : > { %v9159_v13 = vpop.permute.xlu0 %9158  ;;  %9373 = vmatpush.bf16.msrb.mxu3 %v9111_v26  ;;  %9400 = vmatpush.bf16.msra.mxu0 %v9143_v3  ;;  %v11827_v3 = vld [vmem:[%s15630_s9 + $0x5c] sm:$0xf]  ;;  %v11433_v26 = vor.u32 %v11832_v31, %v11430_v52 }
0x1e3e   : > { %9431 = vmatpush.bf16.msrb.mxu1 %v9159_v13  ;;  %9461 = vmatpush.bf16.msra.mxu2 %v9181_v40  ;;  %v11413_v53 = vor.u32 %v11827_v3, %v11410_v37 }
0x1e40   : > { %9358 = vmatmul.bf16.gmra.mxu2 %v11401_v45 }
0x1e41   : > { %9374 = vmatpush.bf16.msrb.mxu3 %v9109_v16  ;;  %9401 = vmatpush.bf16.msra.mxu0 %v9141_v59  ;;  %v11425_v59 = vor.u32 %v11831_v33, %v11422_v48  ;;  %v11830_v16 = vld [vmem:[%s15630_s9 + $0x70] sm:$0xf0] }
0x1e42   : > { %9462 = vmatpush.bf16.msra.mxu2 %v9179_v21 }
0x1e44   : > { %v9157_v10 = vpop.permute.xlu1 %9156 }
0x1e45   : > { %9375 = vmatpush.bf16.msrb.mxu3 %v9107_v39  ;;  %9402 = vmatpush.bf16.msra.mxu0 %v9135_v51  ;;  %v9131_v22 = vpop.permute.xlu0 %9130  ;;  %v11417_v39 = vor.u32 %v11830_v16, %v11416_v38  ;;  %v11436_v51 = vld [vmem:[%s15630_s9 + $0x88] sm:$0xf] }
0x1e46   : > { %9432 = vmatpush.bf16.msrb.mxu1 %v9157_v10  ;;  %9463 = vmatpush.bf16.msra.mxu2 %v9177_v61  ;;  %v11437_v42 = vor.u32 %v11835_v44, %v11436_v51 }
0x1e49   : > { %9376 = vmatpush.bf16.msrb.mxu3 %v9105_v50  ;;  %9403 = vmatpush.bf16.msra.mxu0 %v9133_v41  ;;  %v11829_v50 = vld [vmem:[%s15630_s9 + $0x68] sm:$0xf0]  ;;  %v11428_v41 = vld [vmem:[%s15630_s9 + $0x80] sm:$0xf] }
0x1e4a   : > { %v11409_v4 = vor.u32 %v11829_v50, %v11408_v34  ;;  %v11429_v24 = vor.u32 %v11834_v5, %v11428_v41 }
0x1e4c   : > { %v9155_v2 = vpop.permute.xlu1 %9154  ;;  %9377 = vmatmul.bf16.vlgmr.msrb.gmra.mxu3 %v11365_v62  ;;  %v9191_v62 = vpop.permute.xlu2 %9190 }
0x1e4d   : > { %9404 = vmatpush.bf16.msra.mxu0 %v9131_v22  ;;  %9433 = vmatpush.bf16.msrb.mxu1 %v9155_v2  ;;  %v9129_v1 = vpop.permute.xlu0 %9128 }
0x1e50   : > { %9363 = vmatmul.bf16.gmra.mxu2 %v11421_v25 }
0x1e51   : > { %9405 = vmatpush.bf16.msra.mxu0 %v9129_v1 }
0x1e54   : > { %v9153_v6 = vpop.permute.xlu1 %9152  ;;  %9406 = vmatmul.bf16.vlgmr.msra.gmra.mxu0 %v11369_v43 }
0x1e55   : > { %9434 = vmatpush.bf16.msrb.mxu1 %v9153_v6  ;;  %v9196_v43 = vpop.permute.xlu0 %9195 }
0x1e58   : > { %9435 = vmatmul.bf16.vlgmr.msrb.gmra.mxu1 %v11373_v57 }
0x1e5c   : > { %9382 = vmatmul.bf16.gmra.mxu3 %v11385_v32  ;;  %v9201_v19 = vpop.permute.xlu1 %9200 }
0x1e5d   : > { %v9211_v52 = vpop.permute.xlu0 %9210 }
0x1e60   : > { %11438 = vmatmul.msk.bf16.vlgmr.msra.gmra.mxu2 %vm7123_vm12, %v11377_v12  ;;  %v15413_v12 = vld [vmem:[%s12477_s20] ss:$0 sm:$0xff] }
0x1e64   : > { %9411 = vmatmul.bf16.gmra.mxu0 %v11389_v7 }
0x1e68   : > { %9440 = vmatmul.bf16.gmra.mxu1 %v11393_v17 }
0x1e6c   : > { %9387 = vmatmul.bf16.gmra.mxu3 %v11405_v23 }
0x1e70   : > { %11439 = vmatmul.msk.bf16.gmra.mxu2 %vm7123_vm12, %v11397_v14 }
0x1e74   : > { %9416 = vmatmul.bf16.gmra.mxu0 %v11409_v4  ;;  %v9206_v4 = vpop.permute.xlu2 %9205 }
0x1e78   : > { %9445 = vmatmul.bf16.gmra.mxu1 %v11413_v53 }
0x1e7c   : > { %9392 = vmatmul.bf16.gmra.mxu3 %v11425_v59 }
0x1e80   : > { %11440 = vmatmul.msk.bf16.gmra.mxu2 %vm7123_vm12, %v11417_v39 }
0x1e84   : > { %9421 = vmatmul.bf16.gmra.mxu0 %v11429_v24 }
0x1e88   : > { %9450 = vmatmul.bf16.gmra.mxu1 %v11433_v26 }
0x1e90   : > { %11441 = vmatmul.msk.bf16.gmra.mxu2 %vm7123_vm12, %v11437_v42 }
0x1ea3   : > { %v9349_v8 = vpop.f32.mrf.mxu2 }
0x1ea4   : > { %v9350_v9 = vadd.f32 %v9349_v8, %v9191_v62  ;;  %v9216_v62 = vpop.permute.xlu1 %9215 }
0x1eab   : > { %v9351_v49 = vpop.f32.mrf.mxu2 }
0x1eac   : > { %v9352_v56 = vadd.f32 %v9351_v49, %v9196_v43 }
0x1eb3   : > { %v9354_v21 = vpop.f32.mrf.mxu2 }
0x1eb4   : > { %v9355_v7 = vadd.f32 %v9354_v21, %v9201_v19 }
0x1ebb   : > { %v9356_v40 = vpop.f32.mrf.mxu2 }
0x1ebc   : > { %v9357_v3 = vadd.f32 %v9356_v40, %v9206_v4 }
0x1ec3   : > { %v9359_v45 = vpop.f32.mrf.mxu2 }
0x1ec4   : > { %v9360_v51 = vadd.f32 %v9359_v45, %v9211_v52 }
0x1ecb   : > { %v15406_v13 = vpop.f32.mrf.mxu2 }
0x1ecf   : > { %v9378_v10 = vpop.f32.mrf.mxu3 }
0x1ed0   : > { %v9379_v25 = vadd.f32 %v9378_v10, %v9350_v9  ;;  %v9362_v9 = vadd.f32 %v15406_v13, %v9216_v62 }
0x1ed1   : > { %v9407_v61 = vpop.f32.mrf.mxu0 }
0x1ed2   : > { %v9408_v1 = vadd.f32 %v9407_v61, %v9379_v25 }
0x1ed3   : > { %v15408_v35 = vpop.f32.mrf.mxu2 }
0x1ed5   : > { %v9436_v36 = vpop.f32.mrf.mxu1 }
0x1ed6   : > { %v9437_v63 = vadd.f32 %v9436_v36, %v9408_v1 }
0x1ed7   : > { %v9380_v22 = vpop.f32.mrf.mxu3 }
0x1ed8   : > { %v9381_v30 = vadd.f32 %v9380_v22, %v9352_v56 }
0x1ed9   : > { %v9409_v46 = vpop.f32.mrf.mxu0 }
0x1eda   : > { %v9410_v15 = vadd.f32 %v9409_v46, %v9381_v30 }
0x1edb   : > { %v15410_v2 = vpop.f32.mrf.mxu2 }
0x1edd   : > { %v9438_v28 = vpop.f32.mrf.mxu1 }
0x1ede   : > { %v9439_v60 = vadd.f32 %v9438_v28, %v9410_v15 }
0x1edf   : > { %v9383_v58 = vpop.f32.mrf.mxu3 }
0x1ee0   : > { %v9384_v17 = vadd.f32 %v9383_v58, %v9355_v7 }
0x1ee1   : > { %v9412_v6 = vpop.f32.mrf.mxu0 }
0x1ee2   : > { %v9413_v14 = vadd.f32 %v9412_v6, %v9384_v17 }
0x1ee3   : > { %v9465_v57 = vpop.f32.mrf.mxu2 }
0x1ee4   : > { %v9466_v20 = vadd.f32 %v9465_v57, %v9437_v63 }
0x1ee5   : > { %v9441_v32 = vpop.f32.mrf.mxu1 }
0x1ee6   : > { %v9485_v11 = vmax.f32 %v9466_v20, 0.0  ;;  %v9442_v37 = vadd.f32 %v9441_v32, %v9413_v14  ;;  %v9221_v32 = vpop.permute.xlu2 %9220 }
0x1ee7   : > { %v9385_v47 = vpop.f32.mrf.mxu3  ;;  %v9365_v15 = vadd.f32 %v15408_v35, %v9221_v32 }
0x1ee8   : > { %v9496_v29 = vmul.f32 %v15413_v12, %v9485_v11  ;;  %v9386_v38 = vadd.f32 %v9385_v47, %v9357_v3 }
0x1ee9   : > { %v9414_v23 = vpop.f32.mrf.mxu0 }
0x1eea   : > { %v9504_v34 = vpack.c.bf16 %v9496_v29, %v9496_v29  ;;  %v9415_v24 = vadd.f32 %v9414_v23, %v9386_v38 }
0x1eeb   : > { %v9467_v55 = vpop.f32.mrf.mxu2 }
0x1eec   : > { %v9468_v27 = vadd.f32 %v9467_v55, %v9439_v60  ;;  %v9520_v59 = vunpack.c.l.b16 %v9504_v34 }
0x1eed   : > { %v9443_v18 = vpop.f32.mrf.mxu1 }
0x1eee   : > { %v9486_v54 = vmax.f32 %v9468_v27, 0.0  ;;  %v9444_v44 = vadd.f32 %v9443_v18, %v9415_v24 }
0x1eef   : > { %v9388_v33 = vpop.f32.mrf.mxu3 }
0x1ef0   : > { %v9497_v50 = vmul.f32 %v15413_v12, %v9486_v54  ;;  %v9389_v8 = vadd.f32 %v9388_v33, %v9360_v51  ;;  %v9226_v54 = vpop.permute.xlu0 %9225 }
0x1ef1   : > { %v9417_v5 = vpop.f32.mrf.mxu0  ;;  %v9367_v14 = vadd.f32 %v15410_v2, %v9226_v54  ;;  %v11836_v54 = vld [vmem:[%s12482_s27] sm:$0x30] }
0x1ef2   : > { %v9505_v53 = vpack.c.bf16 %v9497_v50, %v9497_v50  ;;  %v9418_v61 = vadd.f32 %v9417_v5, %v9389_v8 }
0x1ef3   : > { %v9470_v48 = vpop.f32.mrf.mxu2 }
0x1ef4   : > { %v9521_v16 = vunpack.c.l.b16 %v9505_v53  ;;  %v9471_v39 = vadd.f32 %v9470_v48, %v9442_v37 }
0x1ef5   : > { %v9446_v26 = vpop.f32.mrf.mxu1 }
0x1ef6   : > { %v9528_v41 = vpack.c.b16 %v9521_v16, %v9520_v59  ;;  %v9487_v31 = vmax.f32 %v9471_v39, 0.0  ;;  %v9447_v25 = vadd.f32 %v9446_v26, %v9418_v61 }
0x1ef7   : > { %v9390_v40 = vpop.f32.mrf.mxu3 }
0x1ef8   : > { %9532 = vrot.lane.b32.xlu1 %v9528_v41, %s15629_s8  ;;  %v9498_v49 = vmul.f32 %v15413_v12, %v9487_v31  ;;  %v9391_v43 = vadd.f32 %v9390_v40, %v9362_v9 }
0x1ef9   : > { %v9419_v46 = vpop.f32.mrf.mxu0 }
0x1efa   : > { %v9506_v36 = vpack.c.bf16 %v9498_v49, %v9498_v49  ;;  %v9420_v30 = vadd.f32 %v9419_v46, %v9391_v43 }
0x1efb   : > { %v9472_v42 = vpop.f32.mrf.mxu2 }
0x1efc   : > { %v9473_v21 = vadd.f32 %v9472_v42, %v9444_v44  ;;  %v9522_v1 = vunpack.c.l.b16 %v9506_v36 }
0x1efd   : > { %v9448_v58 = vpop.f32.mrf.mxu1 }
0x1efe   : > { %v9488_v10 = vmax.f32 %v9473_v21, 0.0  ;;  %v9449_v11 = vadd.f32 %v9448_v58, %v9420_v30 }
0x1eff   : > { %v9393_v57 = vpop.f32.mrf.mxu3 }
0x1f00   : > { %v9499_v22 = vmul.f32 %v15413_v12, %v9488_v10  ;;  %v9394_v47 = vadd.f32 %v9393_v57, %v9365_v15 }
0x1f01   : > { %v9422_v19 = vpop.f32.mrf.mxu0 }
0x1f02   : > { %v9507_v28 = vpack.c.bf16 %v9499_v22, %v9499_v22  ;;  %v9423_v29 = vadd.f32 %v9422_v19, %v9394_v47 }
0x1f03   : > { %v9475_v45 = vpop.f32.mrf.mxu2 }
0x1f04   : > { %v9523_v56 = vunpack.c.l.b16 %v9507_v28  ;;  %v9476_v63 = vadd.f32 %v9475_v45, %v9447_v25 }
0x1f05   : > { %v9451_v55 = vpop.f32.mrf.mxu1 }
0x1f06   : > { %v9529_v6 = vpack.c.b16 %v9523_v56, %v9522_v1  ;;  %v9489_v20 = vmax.f32 %v9476_v63, 0.0  ;;  %v9452_v34 = vadd.f32 %v9451_v55, %v9423_v29 }
0x1f07   : > { %v9395_v18 = vpop.f32.mrf.mxu3 }
0x1f08   : > { %9534 = vrot.lane.b32.xlu2 %v9529_v6, %s15629_s8  ;;  %v9500_v7 = vmul.f32 %v15413_v12, %v9489_v20  ;;  %v9396_v3 = vadd.f32 %v9395_v18, %v9367_v14  ;;  %v9683_v18 = vsel %vm6464_vm9, 4294967295, %v12243_v0 }
0x1f09   : > { %v9424_v33 = vpop.f32.mrf.mxu0 }
0x1f0a   : > { %v9508_v27 = vpack.c.bf16 %v9500_v7, %v9500_v7  ;;  %v9425_v38 = vadd.f32 %v9424_v33, %v9396_v3 }
0x1f0b   : > { %v9477_v13 = vpop.f32.mrf.mxu2 }
0x1f0c   : > { %v9478_v60 = vadd.f32 %v9477_v13, %v9449_v11  ;;  %v9524_v4 = vunpack.c.l.b16 %v9508_v27 }
0x1f0d   : > { %v9453_v59 = vpop.f32.mrf.mxu1 }
0x1f0e   : > { %v9490_v17 = vmax.f32 %v9478_v60, 0.0  ;;  %v9454_v39 = vadd.f32 %v9453_v59, %v9425_v38 }
0x1f10   : > { %v9501_v23 = vmul.f32 %v15413_v12, %v9490_v17 }
0x1f12   : > { %v9509_v50 = vpack.c.bf16 %v9501_v23, %v9501_v23  ;;  %v11444_v23 = vld [vmem:[%s12482_s27] sm:$0xf] }
0x1f13   : > { %v9480_v35 = vpop.f32.mrf.mxu2  ;;  %v11445_v14 = vor.u32 %v11836_v54, %v11444_v23 }
0x1f14   : > { %v9525_v37 = vunpack.c.l.b16 %v9509_v50  ;;  %v9481_v53 = vadd.f32 %v9480_v35, %v9452_v34  ;;  %v9684_v34 = vsel %vm7988_vm13, %v9683_v18, 0 }
0x1f15   : > { %v9686_v50 = vand.u32 %v11445_v14, %v9684_v34 }
0x1f16   : > { %v9530_v48 = vpack.c.b16 %v9525_v37, %v9524_v4  ;;  %v9491_v16 = vmax.f32 %v9481_v53, 0.0 }
0x1f17   : > { %9695 = vmatpush.bf16.msra.mxu3 %v9686_v50 }
0x1f18   : > { %9536 = vrot.lane.b32.xlu0 %v9530_v48, %s15629_s8  ;;  %v9502_v5 = vmul.f32 %v15413_v12, %v9491_v16 }
0x1f1a   : > { %v9510_v31 = vpack.c.bf16 %v9502_v5, %v9502_v5 }
0x1f1b   : > { %v9482_v41 = vpop.f32.mrf.mxu2 }
0x1f1c   : > { %v9483_v24 = vadd.f32 %v9482_v41, %v9454_v39  ;;  %v9526_v51 = vunpack.c.l.b16 %v9510_v31 }
0x1f1e   : > { %v9492_v2 = vmax.f32 %v9483_v24, 0.0 }
0x1f20   : > { %v9503_v52 = vmul.f32 %v15413_v12, %v9492_v2 }
0x1f22   : > { %v9511_v26 = vpack.c.bf16 %v9503_v52, %v9503_v52 }
0x1f24   : > { %v9527_v44 = vunpack.c.l.b16 %v9511_v26 }
0x1f26   : > { %v9531_v42 = vpack.c.b16 %v9527_v44, %v9526_v51 }
0x1f28   : > { %9538 = vrot.lane.b32.xlu2 %v9531_v42, %s15629_s8 }
0x1f62   : > { %v9535_v8 = vpop.permute.xlu2 %9534 }
0x1f63   : > { %v9543_v49 = vsel %vm8537_vm15, 0, %v9535_v8 }
0x1f64   : > { %v9550_v21 = vsel %vm5919_vm4, %v9543_v49, 0 }
0x1f65   : > { %v9560_v40 = vunpack.c.l.bf16 %v9550_v21  ;;  %v9561_v10 = vunpack.c.h.bf16 %v9550_v21 }
0x1f67   : > { %v12122_v61 = vpack.i.bf16 %v9561_v10, %v9560_v40 }
0x1f69   : > { %12123 = vrot.lane.b32.xlu0 %v12122_v61, %s15598_s3 }
0x1f6a   : > { %v9533_v36 = vpop.permute.xlu1 %9532 }
0x1f6b   : > { %v9541_v22 = vsel %vm8537_vm15, 0, %v9533_v36 }
0x1f6c   : > { %v9548_v12 = vsel %vm5919_vm4, %v9541_v22, 0 }
0x1f6d   : > { %v9558_v62 = vunpack.c.l.bf16 %v9548_v12  ;;  %v9559_v46 = vunpack.c.h.bf16 %v9548_v12 }
0x1f6f   : > { %v12117_v9 = vpack.i.bf16 %v9559_v46, %v9558_v62 }
0x1f71   : > { %12118 = vrot.lane.b32.xlu1 %v12117_v9, %s15598_s3 }
0x1f82   : > { %v9539_v25 = vpop.permute.xlu2 %9538 }
0x1f83   : > { %v9547_v28 = vsel %vm8537_vm15, 0, %v9539_v25 }
0x1f84   : > { %v9554_v58 = vsel %vm5919_vm4, %v9547_v28, 0 }
0x1f85   : > { %v9564_v45 = vunpack.c.l.bf16 %v9554_v58  ;;  %v9565_v1 = vunpack.c.h.bf16 %v9554_v58 }
0x1f87   : > { %v12137_v43 = vpack.i.bf16 %v9565_v1, %v9564_v45 }
0x1f89   : > { %12138 = vrot.lane.b32.xlu0 %v12137_v43, %s15598_s3 }
0x1f8a   : > { %v9537_v56 = vpop.permute.xlu0 %9536 }
0x1f8b   : > { %v9545_v63 = vsel %vm8537_vm15, 0, %v9537_v56 }
0x1f8c   : > { %v9552_v6 = vsel %vm5919_vm4, %v9545_v63, 0 }
0x1f8d   : > { %v9562_v57 = vunpack.c.l.bf16 %v9552_v6  ;;  %v9563_v30 = vunpack.c.h.bf16 %v9552_v6 }
0x1f8f   : > { %v12127_v20 = vpack.i.bf16 %v9563_v30, %v9562_v57 }
0x1f91   : > { %12128 = vrot.lane.b32.xlu1 %v12127_v20, %s15598_s3  ;;  %s11452_s3 = sshll.u32 %s15632_s10, 5 }
0x1f92   : > { %s1350_s2 = scalar_lea.vmem %s12487_s4, %s11452_s3 }
0x1fdb   : > { %v12124_v32 = vpop.permute.xlu0 %12123 }
0x1fdc   : > { %v12126_v15 = vunpack.i.h.bf16 %v12124_v32  ;;  %v12125_v11 = vunpack.i.l.bf16 %v12124_v32 }
0x1fde   : > { %v9601_v19 = vmax.f32 %v9561_v10, %v12126_v15  ;;  %v9600_v13 = vmax.f32 %v9560_v40, %v12125_v11 }
0x1fe0   : > { %v12142_v7 = vpack.i.bf16 %v9601_v19, %v9600_v13 }
0x1fe2   : > { %12143 = vrot.lane.b32.xlu1 %v12142_v7, %s15623_s5 }
0x1fe3   : > { %v12119_v47 = vpop.permute.xlu1 %12118 }
0x1fe4   : > { %v12121_v60 = vunpack.i.h.bf16 %v12119_v47  ;;  %v12120_v55 = vunpack.i.l.bf16 %v12119_v47 }
0x1fe6   : > { %v9599_v17 = vmax.f32 %v9559_v46, %v12121_v60  ;;  %v9598_v29 = vmax.f32 %v9558_v62, %v12120_v55 }
0x1fe8   : > { %v12132_v27 = vpack.i.bf16 %v9599_v17, %v9598_v29 }
0x1fea   : > { %12133 = vrot.lane.b32.xlu2 %v12132_v27, %s15623_s5 }
0x1ffb   : > { %v12139_v35 = vpop.permute.xlu0 %12138 }
0x1ffc   : > { %v12141_v4 = vunpack.i.h.bf16 %v12139_v35  ;;  %v12140_v3 = vunpack.i.l.bf16 %v12139_v35 }
0x1ffe   : > { %v9605_v37 = vmax.f32 %v9565_v1, %v12141_v4  ;;  %v9604_v53 = vmax.f32 %v9564_v45, %v12140_v3 }
0x2000   : > { %v12152_v48 = vpack.i.bf16 %v9605_v37, %v9604_v53 }
0x2002   : > { %12153 = vrot.lane.b32.xlu0 %v12152_v48, %s15623_s5 }
0x2003   : > { %v12129_v33 = vpop.permute.xlu1 %12128 }
0x2004   : > { %v12131_v59 = vunpack.i.h.bf16 %v12129_v33  ;;  %v12130_v38 = vunpack.i.l.bf16 %v12129_v33 }
0x2006   : > { %v9603_v16 = vmax.f32 %v9563_v30, %v12131_v59  ;;  %v9602_v39 = vmax.f32 %v9562_v57, %v12130_v38 }
0x2008   : > { %v12147_v41 = vpack.i.bf16 %v9603_v16, %v9602_v39 }
0x200a   : > { %12148 = vrot.lane.b32.xlu2 %v12147_v41, %s15623_s5 }
0x2044   : > { %v12134_v0 = vpop.permute.xlu2 %12133 }
0x2045   : > { %v12136_v5 = vunpack.i.h.bf16 %v12134_v0  ;;  %v12135_v24 = vunpack.i.l.bf16 %v12134_v0 }
0x2047   : > { %v9655_v2 = vmax.f32 %v9599_v17, %v12136_v5  ;;  %v9654_v31 = vmax.f32 %v9598_v29, %v12135_v24 }
0x2049   : > { %v9662_v52 = vpack.c.bf16 %v9655_v2, %v9654_v31 }
0x204b   : > { %11446 = vmatmul.msk.bf16.vlgmr.msra.gmra.mxu3 %vm5919_vm4, %v9662_v52 }
0x2054   : > { %v12144_v26 = vpop.permute.xlu1 %12143 }
0x2055   : > { %v12146_v51 = vunpack.i.h.bf16 %v12144_v26  ;;  %v12145_v44 = vunpack.i.l.bf16 %v12144_v26 }
0x2057   : > { %v9657_v42 = vmax.f32 %v9601_v19, %v12146_v51  ;;  %v9656_v8 = vmax.f32 %v9600_v13, %v12145_v44 }
0x2059   : > { %v9663_v49 = vpack.c.bf16 %v9657_v42, %v9656_v8 }
0x205b   : > { %11447 = vmatmul.msk.bf16.gmra.mxu3 %vm5919_vm4, %v9663_v49 }
0x2064   : > { %v12149_v21 = vpop.permute.xlu2 %12148 }
0x2065   : > { %v12151_v40 = vunpack.i.h.bf16 %v12149_v21  ;;  %v12150_v10 = vunpack.i.l.bf16 %v12149_v21 }
0x2067   : > { %v9659_v61 = vmax.f32 %v9603_v16, %v12151_v40  ;;  %v9658_v36 = vmax.f32 %v9602_v39, %v12150_v10 }
0x2069   : > { %v9664_v22 = vpack.c.bf16 %v9659_v61, %v9658_v36 }
0x206b   : > { %11448 = vmatmul.msk.bf16.gmra.mxu3 %vm5919_vm4, %v9664_v22 }
0x2074   : > { %v12154_v12 = vpop.permute.xlu0 %12153 }
0x2075   : > { %v12156_v62 = vunpack.i.h.bf16 %v12154_v12  ;;  %v12155_v46 = vunpack.i.l.bf16 %v12154_v12 }
0x2077   : > { %v9661_v9 = vmax.f32 %v9605_v37, %v12156_v62  ;;  %v9660_v25 = vmax.f32 %v9604_v53, %v12155_v46 }
0x2079   : > { %v9665_v28 = vpack.c.bf16 %v9661_v9, %v9660_v25 }
0x207b   : > { %11449 = vmatmul.msk.bf16.gmra.mxu3 %vm5919_vm4, %v9665_v28 }
0x20ce   : > { %v9697_v58 = vpop.f32.mrf.mxu3 }
0x20cf   : > { %v9717_v45 = vpack.c.bf16 %v9697_v58, %v9697_v58 }
0x20d1   : > { %9726 = vst.msk [vmem:[%s1350_s2] sm:$0xf] %vm9725_vm0, %v9717_v45 }
0x20d6   : > { %v9699_v1 = vpop.f32.mrf.mxu3 }
0x20d7   : > { %v9718_v43 = vpack.c.bf16 %v9699_v1, %v9699_v1 }
0x20d9   : > { %9727 = vst.msk [vmem:[%s1350_s2 + $0x4] sm:$0xf] %vm9725_vm0, %v9718_v43 }
0x20de   : > { %v9702_v56 = vpop.f32.mrf.mxu3 }
0x20df   : > { %v9719_v63 = vpack.c.bf16 %v9702_v56, %v9702_v56 }
0x20e1   : > { %9728 = vst.msk [vmem:[%s1350_s2 + $0x8] sm:$0xf] %vm9725_vm0, %v9719_v63 }
0x20e6   : > { %v9704_v6 = vpop.f32.mrf.mxu3 }
0x20e7   : > { %v9720_v57 = vpack.c.bf16 %v9704_v6, %v9704_v6 }
0x20e9   : > { %9729 = vst.msk [vmem:[%s1350_s2 + $0xc] sm:$0xf] %vm9725_vm0, %v9720_v57 }
0x20ee   : > { %v9707_v30 = vpop.f32.mrf.mxu3 }
0x20ef   : > { %v9721_v20 = vpack.c.bf16 %v9707_v30, %v9707_v30 }
0x20f1   : > { %9730 = vst.msk [vmem:[%s1350_s2 + $0x10] sm:$0xf] %vm9725_vm0, %v9721_v20 }
0x20f6   : > { %v9709_v32 = vpop.f32.mrf.mxu3 }
0x20f7   : > { %v9722_v15 = vpack.c.bf16 %v9709_v32, %v9709_v32 }
0x20f9   : > { %9731 = vst.msk [vmem:[%s1350_s2 + $0x14] sm:$0xf] %vm9725_vm0, %v9722_v15 }
0x20fe   : > { %v9712_v11 = vpop.f32.mrf.mxu3 }
0x20ff   : > { %v9723_v19 = vpack.c.bf16 %v9712_v11, %v9712_v11 }
0x2101   : > { %9732 = vst.msk [vmem:[%s1350_s2 + $0x18] sm:$0xf] %vm9725_vm0, %v9723_v19 }
0x2106   : > { %v9714_v13 = vpop.f32.mrf.mxu3 }
0x2107   : > { %v9724_v47 = vpack.c.bf16 %v9714_v13, %v9714_v13 }
0x2109   : > { %9733 = vst.msk [vmem:[%s1350_s2 + $0x1c] sm:$0xf] %vm9725_vm0, %v9724_v47 }
0x210a PF: > { %s101_s7 = sadd.s32 1, %s12174_s7  }
0x210b   : > { %p98_p4 = scmp.ge.s32.totalorder %s101_s7, 4  }
0x210d   :  { %100 = sbr.rel (!%p98_p4) target bundleno = 95 (0x5f), region = 275 }

</bundles_post_ra>
